<compile_context>
chip_gen: v7x
topology: tpu7x:2x2x1
jax: 0.10.0
libtpu: 0.0.40
codegen_flags: <defaults>
</compile_context>

<pallas_src>
import functools

import jax
import jax.numpy as jnp
from jax import lax
from jax.experimental import pallas as pl
from jax.experimental.pallas import tpu as pltpu

NUM_CLASSES = 36
HIDDEN = 256


# ---------------------------------------------------------------------------
# Fused conv GEMM: im2col-patches @ W + b -> ReLU -> 2x2 max-pool, one kernel.
# ---------------------------------------------------------------------------
def _conv_relu_pool_kernel(a_ref, b_ref, bias_ref, o_ref, s1_ref, s2_ref, *, width):
    """One tile of conv rows -> bias + ReLU -> 2x2/2 max-pool, all in VMEM.

    a_ref : (tm, K) bf16 im2col rows in (n, h, w) row-major order, tm % (2*width) == 0
    o_ref : (tm // (2*width), width // 2, Cout) pooled output tile
    s1_ref: (tm, Cout) f32 scratch (pre-pool activation, never leaves VMEM)
    s2_ref: (tm // width, width // 2, Cout) f32 scratch (W-pooled rows)
    """
    y = jnp.dot(a_ref[...], b_ref[...], preferred_element_type=jnp.float32)
    y = jnp.maximum(y + bias_ref[...], 0.0)                  # bias + ReLU
    tm, _ = y.shape
    rows, wo = tm // width, width // 2

    # Pool W pairs: w and w+1 are adjacent rows of the flat (h*W + w) GEMM
    # output, so even/odd flat rows (stride-2 pl.ds reads) are the pool inputs.
    s1_ref[...] = y
    wp = jnp.maximum(s1_ref[pl.ds(0, tm // 2, 2), :],
                     s1_ref[pl.ds(1, tm // 2, 2), :])        # (tm//2, Cout), rows = h*wo + j

    # Regroup (h*wo + j) rows into (h, wo, c) so H pairs become stride-2 slabs.
    for h in range(rows):                                    # static unroll, rows <= 16
        s2_ref[h] = wp[h * wo:(h + 1) * wo, :]

    pooled = jnp.maximum(s2_ref[pl.ds(0, rows // 2, 2), :, :],
                         s2_ref[pl.ds(1, rows // 2, 2), :, :])   # (rows//2, wo, Cout)
    o_ref[...] = pooled.astype(o_ref.dtype)


def _conv_tile_m(M, row_group, max_rows=2048):
    """Largest multiple of row_group dividing M (<= max_rows), preferring >=2 tiles."""
    for k in range(max(1, min(M, max_rows) // row_group), 0, -1):
        cand = k * row_group
        if M % cand == 0 and M // cand >= 2:
            return cand
    return M


def conv_gemm_relu_pool(a, w, bias, *, width, out_dtype=jnp.bfloat16):
    """relu(a @ w + bias) followed by a fused 2x2 stride-2 max-pool.

    a: (M, K) bf16 im2col patches, rows in (n, h, w) row-major order (M = N*H*W).
    w: (K, Cout).  Returns (M // (2*width), width // 2, Cout) = (N*Ho, Wo, Cout).
    """
    a = a.astype(jnp.bfloat16)
    w = w.astype(jnp.bfloat16)
    M, K = a.shape
    Cout = w.shape[1]
    assert width % 2 == 0 and M % (2 * width) == 0
    bias = bias.astype(jnp.float32).reshape(1, Cout)

    tm = _conv_tile_m(M, 2 * width)
    rows, wo = tm // width, width // 2

    return pl.pallas_call(
        functools.partial(_conv_relu_pool_kernel, width=width),
        out_shape=jax.ShapeDtypeStruct((M // (2 * width), wo, Cout), out_dtype),
        grid=(M // tm,),
        in_specs=[
            pl.BlockSpec((tm, K), lambda i: (i, 0)),
            pl.BlockSpec((K, Cout), lambda i: (0, 0)),
            pl.BlockSpec((1, Cout), lambda i: (0, 0)),
        ],
        out_specs=pl.BlockSpec((rows // 2, wo, Cout), lambda i: (i, 0, 0)),
        scratch_shapes=[pltpu.VMEM((tm, Cout), jnp.float32),
                        pltpu.VMEM((rows, wo, Cout), jnp.float32)],
        compiler_params=pltpu.CompilerParams(dimension_semantics=("parallel",)),
    )(a, w, bias)


# ---------------------------------------------------------------------------
# Generic tiled matmul + bias (x-projection, final FC)
# ---------------------------------------------------------------------------
def _matmul_bias_kernel(a_ref, b_ref, bias_ref, o_ref):
    y = jnp.dot(a_ref[...], b_ref[...],
                preferred_element_type=jnp.float32) + bias_ref[...]
    o_ref[...] = y.astype(o_ref.dtype)


def _matmul_bias_acc_kernel(a_ref, b_ref, bias_ref, o_ref, acc_ref):
    @pl.when(pl.program_id(2) == 0)
    def _():
        acc_ref[...] = jnp.zeros_like(acc_ref)

    acc_ref[...] += jnp.dot(a_ref[...], b_ref[...],
                            preferred_element_type=jnp.float32)

    @pl.when(pl.program_id(2) == pl.num_programs(2) - 1)
    def _():
        o_ref[...] = (acc_ref[...] + bias_ref[...]).astype(o_ref.dtype)


def _pick_tile(dim, candidates, prefer_split=True):
    if prefer_split:
        for c in candidates:
            if dim % c == 0 and dim // c >= 2:
                return c
    for c in candidates:
        if dim % c == 0:
            return c
    return dim


def _matmul_tiles(M, K, N, budget=8 * 1024 * 1024):
    """Tile choice with a double-buffered VMEM byte budget (v5e 16 MiB scoped)."""
    tm = _pick_tile(M, (512, 256, 128, 64, 32, 16, 8))
    tn = _pick_tile(N, (1024, 512, 256, 128))
    tk = K

    def footprint(tm, tn, tk):
        dbl = 2 * (tm * tk * 2 + tk * tn * 2 + tm * tn * 4)      # bf16 A/B, f32 out
        return dbl + (tm * tn * 4 if tk < K else 0)              # + acc scratch

    while footprint(tm, tn, tk) > budget:
        if tn > 128 and N % (tn // 2) == 0:
            tn //= 2
        elif tk % 2 == 0 and tk > 256 and K % (tk // 2) == 0:
            tk //= 2
        elif tm > 8 and M % (tm // 2) == 0:
            tm //= 2
        else:
            break
    return tm, tn, tk


def matmul_bias(a, b, bias, out_dtype=jnp.float32):
    """(M, K) @ (K, N) + bias.  bf16 MXU operands (cast in the wrapper), f32 acc."""
    a = a.astype(jnp.bfloat16)           # wrapper-side cast: halves A DMA + VMEM
    b = b.astype(jnp.bfloat16)
    M, K = a.shape
    N = b.shape[1]
    bias = bias.astype(jnp.float32).reshape(1, N)

    tm, tn, tk = _matmul_tiles(M, K, N)
    grid = (M // tm, N // tn, K // tk)

    common = dict(
        out_shape=jax.ShapeDtypeStruct((M, N), out_dtype),
        grid=grid,
        in_specs=[
            pl.BlockSpec((tm, tk), lambda i, j, k: (i, k)),
            pl.BlockSpec((tk, tn), lambda i, j, k: (k, j)),
            pl.BlockSpec((1, tn), lambda i, j, k: (0, j)),
        ],
        out_specs=pl.BlockSpec((tm, tn), lambda i, j, k: (i, j)),
        compiler_params=pltpu.CompilerParams(
            dimension_semantics=("parallel", "parallel", "arbitrary")),
    )
    if grid[2] == 1:                     # no K split -> no accumulator scratch
        return pl.pallas_call(_matmul_bias_kernel, **common)(a, b, bias)
    return pl.pallas_call(_matmul_bias_acc_kernel,
                          scratch_shapes=[pltpu.VMEM((tm, tn), jnp.float32)],
                          **common)(a, b, bias)


# ---------------------------------------------------------------------------
# Bidirectional LSTM: grid = (direction, time-chunk); (h, c) carried in VMEM.
# ---------------------------------------------------------------------------
def _bilstm_kernel(xp_ref, whh_ref, out_ref, h_sc, c_sc, *, hidden, t_chunk):
    d = pl.program_id(0)                 # 0 = forward direction, 1 = backward

    @pl.when(pl.program_id(1) == 0)      # first time-chunk of this direction
    def _():
        h_sc[...] = jnp.zeros_like(h_sc)
        c_sc[...] = jnp.zeros_like(c_sc)

    def step(i, carry):
        h, c = carry
        # Forward walks the chunk 0..t_chunk-1, backward walks t_chunk-1..0
        # (sequence reversal folded into indexing -> no HBM reversals).
        t = d * (t_chunk - 1) + (1 - 2 * d) * i
        # TODO(synk): keep W_hh pushed on the MXU across the loop
        # (pltpu.matmul_push_rhs / matmul_acc_lhs) instead of re-issuing the dot.
        gates = xp_ref[t] + jnp.dot(h.astype(jnp.bfloat16), whh_ref[0],
                                    preferred_element_type=jnp.float32)
        gi = jax.nn.sigmoid(gates[:, 0 * hidden:1 * hidden])   # PyTorch order i,f,g,o
        gf = jax.nn.sigmoid(gates[:, 1 * hidden:2 * hidden])
        gg = jnp.tanh(gates[:, 2 * hidden:3 * hidden])
        go = jax.nn.sigmoid(gates[:, 3 * hidden:4 * hidden])
        c_new = gf * c + gi * gg
        h_new = go * jnp.tanh(c_new)
        out_ref[t] = h_new
        return h_new, c_new

    h_fin, c_fin = lax.fori_loop(0, t_chunk, step, (h_sc[...], c_sc[...]),
                                 unroll=min(4, t_chunk))       # capped unroll
    h_sc[...] = h_fin
    c_sc[...] = c_fin


def _time_chunk(T, max_chunk=16):
    for c in range(min(T, max_chunk), 0, -1):
        if T % c == 0:
            return c
    return T


def bilstm(xproj, whh, hidden):
    """xproj: (T, Nb, 2*4*hidden) f32, columns = [fwd gates | bwd gates]
    (x @ W_ih^T + b_ih + b_hh).  whh: (2, hidden, 4*hidden) bf16 = [W_hh_f^T, W_hh_b^T].
    Returns (T, Nb, 2*hidden) f32 = [h_fwd | h_bwd] in natural time order."""
    T, Nb, G2 = xproj.shape
    G = G2 // 2
    t_chunk = _time_chunk(T)             # bounds the VMEM-resident slab (v7x 64 MiB)
    n_chunks = T // t_chunk

    def chunk_idx(d, c):                 # forward: c, backward: n_chunks-1-c
        return d * (n_chunks - 1) + (1 - 2 * d) * c

    return pl.pallas_call(
        functools.partial(_bilstm_kernel, hidden=hidden, t_chunk=t_chunk),
        out_shape=jax.ShapeDtypeStruct((T, Nb, 2 * hidden), jnp.float32),
        grid=(2, n_chunks),
        in_specs=[
            pl.BlockSpec((t_chunk, Nb, G), lambda d, c: (chunk_idx(d, c), 0, d)),
            pl.BlockSpec((1, hidden, G), lambda d, c: (d, 0, 0)),
        ],
        out_specs=pl.BlockSpec((t_chunk, Nb, hidden),
                               lambda d, c: (chunk_idx(d, c), 0, d)),
        scratch_shapes=[pltpu.VMEM((Nb, hidden), jnp.float32),
                        pltpu.VMEM((Nb, hidden), jnp.float32)],
        compiler_params=pltpu.CompilerParams(
            dimension_semantics=("parallel", "arbitrary")),   # 2 TCs on v7x
    )(xproj, whh)


# ---------------------------------------------------------------------------
# Model glue
# ---------------------------------------------------------------------------
def im2col_3x3(x):
    """x: (N, H, W, C) -> (N*H*W, 9*C) bf16 patches for 3x3 conv, stride 1, pad 1."""
    # TODO(synk): replace with an implicit-GEMM conv (gather the 3x3 window with
    # in-kernel DMAs) to avoid the 9x patch materialization at large sizes.
    N, H, W, C = x.shape
    xp = jnp.pad(x.astype(jnp.bfloat16), ((0, 0), (1, 1), (1, 1), (0, 0)))
    cols = [xp[:, kh:kh + H, kw:kw + W, :] for kh in range(3) for kw in range(3)]
    return jnp.concatenate(cols, axis=-1).reshape(N * H * W, 9 * C)


def crnn_forward(x_nchw, p):
    x = jnp.transpose(x_nchw, (0, 2, 3, 1))                      # NCHW -> NHWC
    N, H, W, _ = x.shape

    # conv1 (1->64) + ReLU + 2x2 pool, fused in one GEMM kernel.
    # TODO(synk): conv1's K=9 GEMM under-uses MXU depth; a VPU stencil (C_in=1)
    # with the same fused ReLU+pool epilogue would avoid it at large sizes.
    y = conv_gemm_relu_pool(im2col_3x3(x),
                            p["w1"].reshape(9 * 1, 64), p["b1"],
                            width=W)                             # (N*H/2, W/2, 64) bf16
    H2, W2 = H // 2, W // 2
    y = y.reshape(N, H2, W2, 64)

    # conv2 (64->128) + ReLU + 2x2 pool, fused.
    y = conv_gemm_relu_pool(im2col_3x3(y),
                            p["w2"].reshape(9 * 64, 128), p["b2"],
                            width=W2)                            # (N*H/4, W/4, 128) bf16
    T, Wp = H2 // 2, W2 // 2

    # PyTorch permute(0,2,3,1) == NHWC already.  nn.LSTM needs a 3-D input, so
    # the implied (W', C)->feature flatten is applied (W'/4 * 128 == 2048).
    # Put rows in (t, n) order once (tiny bf16 copy): no further glue is needed
    # around the x-projection, the LSTM, or the FC.
    feat = y.reshape(N, T, Wp * 128).transpose(1, 0, 2).reshape(T * N, Wp * 128)

    # Both directions' input projections in ONE weight-streaming GEMM (it is
    # weight-bandwidth bound at M = N*T; keep B bf16 and the N tile large).
    G = 4 * HIDDEN
    w_ih_cat = jnp.concatenate([p["w_ih_fwd"].T, p["w_ih_bwd"].T], axis=1)
    b_cat = jnp.concatenate([p["b_ih_fwd"] + p["b_hh_fwd"],
                             p["b_ih_bwd"] + p["b_hh_bwd"]])
    xproj = matmul_bias(feat, w_ih_cat, b_cat)                   # (T*N, 2*4H) f32
    xproj = xproj.reshape(T, N, 2 * G)                           # free (leading split)

    whh = jnp.stack([p["w_hh_fwd"].T, p["w_hh_bwd"].T]).astype(jnp.bfloat16)
    h = bilstm(xproj, whh, HIDDEN)                               # (T, N, 512) f32

    # Final Linear: pad 36 -> 128 output lanes for dense stores, slice after.
    npad = 128
    w_fc = jnp.pad(p["w_fc"].T, ((0, 0), (0, npad - NUM_CLASSES)))
    b_fc = jnp.pad(p["b_fc"], (0, npad - NUM_CLASSES))
    logits = matmul_bias(h.reshape(T * N, 2 * HIDDEN), w_fc, b_fc)
    logits = logits[:, :NUM_CLASSES].reshape(T, N, NUM_CLASSES)
    return jnp.transpose(logits, (1, 0, 2))                      # (N, T, classes)


def init_params(key):
    ks = jax.random.split(key, 14)
    nrm = lambda k, s, sc: sc * jax.random.normal(k, s, jnp.float32)
    in_feat = 128 * 16
    return {
        "w1": nrm(ks[0], (3, 3, 1, 64), 0.30),     # HWIO conv weights
        "b1": nrm(ks[1], (64,), 0.10),
        "w2": nrm(ks[2], (3, 3, 64, 128), 0.05),
        "b2": nrm(ks[3], (128,), 0.10),
        "w_ih_fwd": nrm(ks[4], (4 * HIDDEN, in_feat), 0.02),
        "w_hh_fwd": nrm(ks[5], (4 * HIDDEN, HIDDEN), 0.05),
        "b_ih_fwd": nrm(ks[6], (4 * HIDDEN,), 0.05),
        "b_hh_fwd": nrm(ks[7], (4 * HIDDEN,), 0.05),
        "w_ih_bwd": nrm(ks[8], (4 * HIDDEN, in_feat), 0.02),
        "w_hh_bwd": nrm(ks[9], (4 * HIDDEN, HIDDEN), 0.05),
        "b_ih_bwd": nrm(ks[10], (4 * HIDDEN,), 0.05),
        "b_hh_bwd": nrm(ks[11], (4 * HIDDEN,), 0.05),
        "w_fc": nrm(ks[12], (NUM_CLASSES, 2 * HIDDEN), 0.05),
        "b_fc": nrm(ks[13], (NUM_CLASSES,), 0.05),
    }


if __name__ == "__main__":
    key = jax.random.PRNGKey(0)
    pkey, xkey = jax.random.split(key)
    params = init_params(pkey)
    # Input (N=2, C=1, H=16, W=64): after two 2x2 pools -> H'=4 (sequence),
    # W'=16, C=128, so the per-step feature is 16*128 = 2048 = 128*16.
    x = jax.random.normal(xkey, (2, 1, 16, 64), jnp.float32)
    out = jax.jit(crnn_forward)(x, params)
    jax.block_until_ready(out)
    assert out.shape == (2, 4, NUM_CLASSES), out.shape
    assert bool(jnp.all(jnp.isfinite(out)))
    print("KERNEL_OK")
</pallas_src>

<mosaic_0001>
module attributes {stable_mosaic.version = 11 : i64} {
  func.func @_conv_relu_pool_kernel(%arg0: i32, %arg1: memref<1024x9xbf16, #tpu.memory_space<vmem>>, %arg2: memref<9x64xbf16, #tpu.memory_space<vmem>>, %arg3: memref<1x64xf32, #tpu.memory_space<vmem>>, %arg4: memref<8x32x64xbf16, #tpu.memory_space<vmem>>, %arg5: memref<1024x64xf32, #tpu.memory_space<vmem>>, %arg6: memref<16x32x64xf32, #tpu.memory_space<vmem>>) attributes {dimension_semantics = [#tpu.dimension_semantics<parallel>], iteration_bounds = array<i64: 2>, scalar_prefetch = 0 : i64, scratch_operands = 2 : i64, tpu.core_type = #tpu.core_type<tc>, window_params = [{transform_indices = @transform_0, window_bounds = array<i64: 1024, 9>}, {pipeline_mode = #tpu.pipeline_mode<synchronous>, transform_indices = @transform_1, window_bounds = array<i64: 9, 64>}, {pipeline_mode = #tpu.pipeline_mode<synchronous>, transform_indices = @transform_2, window_bounds = array<i64: 1, 64>}, {transform_indices = @transform_3, window_bounds = array<i64: 8, 32, 64>}]} {
    %c0 = arith.constant 0 : index
    %c0_0 = arith.constant 0 : index
    %0 = vector.load %arg1[%c0, %c0_0] : memref<1024x9xbf16, #tpu.memory_space<vmem>>, vector<1024x9xbf16>
    %c0_1 = arith.constant 0 : index
    %c0_2 = arith.constant 0 : index
    %1 = vector.load %arg2[%c0_1, %c0_2] : memref<9x64xbf16, #tpu.memory_space<vmem>>, vector<9x64xbf16>
    %cst = arith.constant dense<0.000000e+00> : vector<1024x64xf32>
    %2 = tpu.matmul %0, %1, %cst {dimension_numbers = #tpu.dot_dimension_numbers<[1], [0], [0], [1], [0, 0, 1, 1], [], []>} : vector<1024x9xbf16>, vector<9x64xbf16>, vector<1024x64xf32> -> vector<1024x64xf32>
    %c0_3 = arith.constant 0 : index
    %c0_4 = arith.constant 0 : index
    %3 = vector.load %arg3[%c0_3, %c0_4] : memref<1x64xf32, #tpu.memory_space<vmem>>, vector<1x64xf32>
    %4 = vector.broadcast %3 : vector<1x64xf32> to vector<1024x64xf32>
    %5 = arith.addf %2, %4 : vector<1024x64xf32>
    %cst_5 = arith.constant 0.000000e+00 : f32
    %6 = vector.broadcast %cst_5 : f32 to vector<1024x64xf32>
    %7 = arith.maximumf %5, %6 : vector<1024x64xf32>
    %c0_6 = arith.constant 0 : index
    %c0_7 = arith.constant 0 : index
    %8 = vector.load %arg5[%c0_6, %c0_7] : memref<1024x64xf32, #tpu.memory_space<vmem>>, vector<1024x64xf32>
    tpu.vector_store %arg5[%c0_6, %c0_7], %7 {strides = array<i32>} : memref<1024x64xf32, #tpu.memory_space<vmem>>, vector<1024x64xf32>,
    %c0_8 = arith.constant 0 : index
    %c0_9 = arith.constant 0 : index
    %9 = tpu.strided_load %arg5[%c0_8, %c0_9] {strides = array<i32: 2, 1>} : memref<1024x64xf32, #tpu.memory_space<vmem>>, vector<512x64xf32>
    %c1 = arith.constant 1 : index
    %c0_10 = arith.constant 0 : index
    %10 = tpu.strided_load %arg5[%c1, %c0_10] {strides = array<i32: 2, 1>} : memref<1024x64xf32, #tpu.memory_space<vmem>>, vector<512x64xf32>
    %11 = arith.maximumf %9, %10 : vector<512x64xf32>
    %12 = vector.extract_strided_slice %11 {offsets = [0, 0], sizes = [32, 64], strides = [1, 1]} : vector<512x64xf32> to vector<32x64xf32>
    %c0_11 = arith.constant 0 : index
    %c0_12 = arith.constant 0 : index
    %c0_13 = arith.constant 0 : index
    %13 = vector.load %arg6[%c0_11, %c0_12, %c0_13] : memref<16x32x64xf32, #tpu.memory_space<vmem>>, vector<1x32x64xf32>
    %14 = vector.shape_cast %13 : vector<1x32x64xf32> to vector<32x64xf32>
    %15 = vector.shape_cast %12 : vector<32x64xf32> to vector<1x32x64xf32>
    tpu.vector_store %arg6[%c0_11, %c0_12, %c0_13], %15 {strides = array<i32>} : memref<16x32x64xf32, #tpu.memory_space<vmem>>, vector<1x32x64xf32>,
    %16 = vector.extract_strided_slice %11 {offsets = [32, 0], sizes = [32, 64], strides = [1, 1]} : vector<512x64xf32> to vector<32x64xf32>
    %c1_14 = arith.constant 1 : index
    %c0_15 = arith.constant 0 : index
    %c0_16 = arith.constant 0 : index
    %17 = vector.load %arg6[%c1_14, %c0_15, %c0_16] : memref<16x32x64xf32, #tpu.memory_space<vmem>>, vector<1x32x64xf32>
    %18 = vector.shape_cast %17 : vector<1x32x64xf32> to vector<32x64xf32>
    %19 = vector.shape_cast %16 : vector<32x64xf32> to vector<1x32x64xf32>
    tpu.vector_store %arg6[%c1_14, %c0_15, %c0_16], %19 {strides = array<i32>} : memref<16x32x64xf32, #tpu.memory_space<vmem>>, vector<1x32x64xf32>,
    %20 = vector.extract_strided_slice %11 {offsets = [64, 0], sizes = [32, 64], strides = [1, 1]} : vector<512x64xf32> to vector<32x64xf32>
    %c2 = arith.constant 2 : index
    %c0_17 = arith.constant 0 : index
    %c0_18 = arith.constant 0 : index
    %21 = vector.load %arg6[%c2, %c0_17, %c0_18] : memref<16x32x64xf32, #tpu.memory_space<vmem>>, vector<1x32x64xf32>
    %22 = vector.shape_cast %21 : vector<1x32x64xf32> to vector<32x64xf32>
    %23 = vector.shape_cast %20 : vector<32x64xf32> to vector<1x32x64xf32>
    tpu.vector_store %arg6[%c2, %c0_17, %c0_18], %23 {strides = array<i32>} : memref<16x32x64xf32, #tpu.memory_space<vmem>>, vector<1x32x64xf32>,
    %24 = vector.extract_strided_slice %11 {offsets = [96, 0], sizes = [32, 64], strides = [1, 1]} : vector<512x64xf32> to vector<32x64xf32>
    %c3 = arith.constant 3 : index
    %c0_19 = arith.constant 0 : index
    %c0_20 = arith.constant 0 : index
    %25 = vector.load %arg6[%c3, %c0_19, %c0_20] : memref<16x32x64xf32, #tpu.memory_space<vmem>>, vector<1x32x64xf32>
    %26 = vector.shape_cast %25 : vector<1x32x64xf32> to vector<32x64xf32>
    %27 = vector.shape_cast %24 : vector<32x64xf32> to vector<1x32x64xf32>
    tpu.vector_store %arg6[%c3, %c0_19, %c0_20], %27 {strides = array<i32>} : memref<16x32x64xf32, #tpu.memory_space<vmem>>, vector<1x32x64xf32>,
    %28 = vector.extract_strided_slice %11 {offsets = [128, 0], sizes = [32, 64], strides = [1, 1]} : vector<512x64xf32> to vector<32x64xf32>
    %c4 = arith.constant 4 : index
    %c0_21 = arith.constant 0 : index
    %c0_22 = arith.constant 0 : index
    %29 = vector.load %arg6[%c4, %c0_21, %c0_22] : memref<16x32x64xf32, #tpu.memory_space<vmem>>, vector<1x32x64xf32>
    %30 = vector.shape_cast %29 : vector<1x32x64xf32> to vector<32x64xf32>
    %31 = vector.shape_cast %28 : vector<32x64xf32> to vector<1x32x64xf32>
    tpu.vector_store %arg6[%c4, %c0_21, %c0_22], %31 {strides = array<i32>} : memref<16x32x64xf32, #tpu.memory_space<vmem>>, vector<1x32x64xf32>,
    %32 = vector.extract_strided_slice %11 {offsets = [160, 0], sizes = [32, 64], strides = [1, 1]} : vector<512x64xf32> to vector<32x64xf32>
    %c5 = arith.constant 5 : index
    %c0_23 = arith.constant 0 : index
    %c0_24 = arith.constant 0 : index
    %33 = vector.load %arg6[%c5, %c0_23, %c0_24] : memref<16x32x64xf32, #tpu.memory_space<vmem>>, vector<1x32x64xf32>
    %34 = vector.shape_cast %33 : vector<1x32x64xf32> to vector<32x64xf32>
    %35 = vector.shape_cast %32 : vector<32x64xf32> to vector<1x32x64xf32>
    tpu.vector_store %arg6[%c5, %c0_23, %c0_24], %35 {strides = array<i32>} : memref<16x32x64xf32, #tpu.memory_space<vmem>>, vector<1x32x64xf32>,
    %36 = vector.extract_strided_slice %11 {offsets = [192, 0], sizes = [32, 64], strides = [1, 1]} : vector<512x64xf32> to vector<32x64xf32>
    %c6 = arith.constant 6 : index
    %c0_25 = arith.constant 0 : index
    %c0_26 = arith.constant 0 : index
    %37 = vector.load %arg6[%c6, %c0_25, %c0_26] : memref<16x32x64xf32, #tpu.memory_space<vmem>>, vector<1x32x64xf32>
    %38 = vector.shape_cast %37 : vector<1x32x64xf32> to vector<32x64xf32>
    %39 = vector.shape_cast %36 : vector<32x64xf32> to vector<1x32x64xf32>
    tpu.vector_store %arg6[%c6, %c0_25, %c0_26], %39 {strides = array<i32>} : memref<16x32x64xf32, #tpu.memory_space<vmem>>, vector<1x32x64xf32>,
    %40 = vector.extract_strided_slice %11 {offsets = [224, 0], sizes = [32, 64], strides = [1, 1]} : vector<512x64xf32> to vector<32x64xf32>
    %c7 = arith.constant 7 : index
    %c0_27 = arith.constant 0 : index
    %c0_28 = arith.constant 0 : index
    %41 = vector.load %arg6[%c7, %c0_27, %c0_28] : memref<16x32x64xf32, #tpu.memory_space<vmem>>, vector<1x32x64xf32>
    %42 = vector.shape_cast %41 : vector<1x32x64xf32> to vector<32x64xf32>
    %43 = vector.shape_cast %40 : vector<32x64xf32> to vector<1x32x64xf32>
    tpu.vector_store %arg6[%c7, %c0_27, %c0_28], %43 {strides = array<i32>} : memref<16x32x64xf32, #tpu.memory_space<vmem>>, vector<1x32x64xf32>,
    %44 = vector.extract_strided_slice %11 {offsets = [256, 0], sizes = [32, 64], strides = [1, 1]} : vector<512x64xf32> to vector<32x64xf32>
    %c8 = arith.constant 8 : index
    %c0_29 = arith.constant 0 : index
    %c0_30 = arith.constant 0 : index
    %45 = vector.load %arg6[%c8, %c0_29, %c0_30] : memref<16x32x64xf32, #tpu.memory_space<vmem>>, vector<1x32x64xf32>
    %46 = vector.shape_cast %45 : vector<1x32x64xf32> to vector<32x64xf32>
    %47 = vector.shape_cast %44 : vector<32x64xf32> to vector<1x32x64xf32>
    tpu.vector_store %arg6[%c8, %c0_29, %c0_30], %47 {strides = array<i32>} : memref<16x32x64xf32, #tpu.memory_space<vmem>>, vector<1x32x64xf32>,
    %48 = vector.extract_strided_slice %11 {offsets = [288, 0], sizes = [32, 64], strides = [1, 1]} : vector<512x64xf32> to vector<32x64xf32>
    %c9 = arith.constant 9 : index
    %c0_31 = arith.constant 0 : index
    %c0_32 = arith.constant 0 : index
    %49 = vector.load %arg6[%c9, %c0_31, %c0_32] : memref<16x32x64xf32, #tpu.memory_space<vmem>>, vector<1x32x64xf32>
    %50 = vector.shape_cast %49 : vector<1x32x64xf32> to vector<32x64xf32>
    %51 = vector.shape_cast %48 : vector<32x64xf32> to vector<1x32x64xf32>
    tpu.vector_store %arg6[%c9, %c0_31, %c0_32], %51 {strides = array<i32>} : memref<16x32x64xf32, #tpu.memory_space<vmem>>, vector<1x32x64xf32>,
    %52 = vector.extract_strided_slice %11 {offsets = [320, 0], sizes = [32, 64], strides = [1, 1]} : vector<512x64xf32> to vector<32x64xf32>
    %c10 = arith.constant 10 : index
    %c0_33 = arith.constant 0 : index
    %c0_34 = arith.constant 0 : index
    %53 = vector.load %arg6[%c10, %c0_33, %c0_34] : memref<16x32x64xf32, #tpu.memory_space<vmem>>, vector<1x32x64xf32>
    %54 = vector.shape_cast %53 : vector<1x32x64xf32> to vector<32x64xf32>
    %55 = vector.shape_cast %52 : vector<32x64xf32> to vector<1x32x64xf32>
    tpu.vector_store %arg6[%c10, %c0_33, %c0_34], %55 {strides = array<i32>} : memref<16x32x64xf32, #tpu.memory_space<vmem>>, vector<1x32x64xf32>,
    %56 = vector.extract_strided_slice %11 {offsets = [352, 0], sizes = [32, 64], strides = [1, 1]} : vector<512x64xf32> to vector<32x64xf32>
    %c11 = arith.constant 11 : index
    %c0_35 = arith.constant 0 : index
    %c0_36 = arith.constant 0 : index
    %57 = vector.load %arg6[%c11, %c0_35, %c0_36] : memref<16x32x64xf32, #tpu.memory_space<vmem>>, vector<1x32x64xf32>
    %58 = vector.shape_cast %57 : vector<1x32x64xf32> to vector<32x64xf32>
    %59 = vector.shape_cast %56 : vector<32x64xf32> to vector<1x32x64xf32>
    tpu.vector_store %arg6[%c11, %c0_35, %c0_36], %59 {strides = array<i32>} : memref<16x32x64xf32, #tpu.memory_space<vmem>>, vector<1x32x64xf32>,
    %60 = vector.extract_strided_slice %11 {offsets = [384, 0], sizes = [32, 64], strides = [1, 1]} : vector<512x64xf32> to vector<32x64xf32>
    %c12 = arith.constant 12 : index
    %c0_37 = arith.constant 0 : index
    %c0_38 = arith.constant 0 : index
    %61 = vector.load %arg6[%c12, %c0_37, %c0_38] : memref<16x32x64xf32, #tpu.memory_space<vmem>>, vector<1x32x64xf32>
    %62 = vector.shape_cast %61 : vector<1x32x64xf32> to vector<32x64xf32>
    %63 = vector.shape_cast %60 : vector<32x64xf32> to vector<1x32x64xf32>
    tpu.vector_store %arg6[%c12, %c0_37, %c0_38], %63 {strides = array<i32>} : memref<16x32x64xf32, #tpu.memory_space<vmem>>, vector<1x32x64xf32>,
    %64 = vector.extract_strided_slice %11 {offsets = [416, 0], sizes = [32, 64], strides = [1, 1]} : vector<512x64xf32> to vector<32x64xf32>
    %c13 = arith.constant 13 : index
    %c0_39 = arith.constant 0 : index
    %c0_40 = arith.constant 0 : index
    %65 = vector.load %arg6[%c13, %c0_39, %c0_40] : memref<16x32x64xf32, #tpu.memory_space<vmem>>, vector<1x32x64xf32>
    %66 = vector.shape_cast %65 : vector<1x32x64xf32> to vector<32x64xf32>
    %67 = vector.shape_cast %64 : vector<32x64xf32> to vector<1x32x64xf32>
    tpu.vector_store %arg6[%c13, %c0_39, %c0_40], %67 {strides = array<i32>} : memref<16x32x64xf32, #tpu.memory_space<vmem>>, vector<1x32x64xf32>,
    %68 = vector.extract_strided_slice %11 {offsets = [448, 0], sizes = [32, 64], strides = [1, 1]} : vector<512x64xf32> to vector<32x64xf32>
    %c14 = arith.constant 14 : index
    %c0_41 = arith.constant 0 : index
    %c0_42 = arith.constant 0 : index
    %69 = vector.load %arg6[%c14, %c0_41, %c0_42] : memref<16x32x64xf32, #tpu.memory_space<vmem>>, vector<1x32x64xf32>
    %70 = vector.shape_cast %69 : vector<1x32x64xf32> to vector<32x64xf32>
    %71 = vector.shape_cast %68 : vector<32x64xf32> to vector<1x32x64xf32>
    tpu.vector_store %arg6[%c14, %c0_41, %c0_42], %71 {strides = array<i32>} : memref<16x32x64xf32, #tpu.memory_space<vmem>>, vector<1x32x64xf32>,
    %72 = vector.extract_strided_slice %11 {offsets = [480, 0], sizes = [32, 64], strides = [1, 1]} : vector<512x64xf32> to vector<32x64xf32>
    %c15 = arith.constant 15 : index
    %c0_43 = arith.constant 0 : index
    %c0_44 = arith.constant 0 : index
    %73 = vector.load %arg6[%c15, %c0_43, %c0_44] : memref<16x32x64xf32, #tpu.memory_space<vmem>>, vector<1x32x64xf32>
    %74 = vector.shape_cast %73 : vector<1x32x64xf32> to vector<32x64xf32>
    %75 = vector.shape_cast %72 : vector<32x64xf32> to vector<1x32x64xf32>
    tpu.vector_store %arg6[%c15, %c0_43, %c0_44], %75 {strides = array<i32>} : memref<16x32x64xf32, #tpu.memory_space<vmem>>, vector<1x32x64xf32>,
    %c0_45 = arith.constant 0 : index
    %c0_46 = arith.constant 0 : index
    %c0_47 = arith.constant 0 : index
    %76 = tpu.strided_load %arg6[%c0_45, %c0_46, %c0_47] {strides = array<i32: 2, 1, 1>} : memref<16x32x64xf32, #tpu.memory_space<vmem>>, vector<8x32x64xf32>
    %c1_48 = arith.constant 1 : index
    %c0_49 = arith.constant 0 : index
    %c0_50 = arith.constant 0 : index
    %77 = tpu.strided_load %arg6[%c1_48, %c0_49, %c0_50] {strides = array<i32: 2, 1, 1>} : memref<16x32x64xf32, #tpu.memory_space<vmem>>, vector<8x32x64xf32>
    %78 = arith.maximumf %76, %77 : vector<8x32x64xf32>
    %79 = arith.truncf %78 : vector<8x32x64xf32> to vector<8x32x64xbf16>
    %c0_51 = arith.constant 0 : index
    %c0_52 = arith.constant 0 : index
    %c0_53 = arith.constant 0 : index
    %80 = vector.load %arg4[%c0_51, %c0_52, %c0_53] : memref<8x32x64xbf16, #tpu.memory_space<vmem>>, vector<8x32x64xbf16>
    tpu.vector_store %arg4[%c0_51, %c0_52, %c0_53], %79 {strides = array<i32>} : memref<8x32x64xbf16, #tpu.memory_space<vmem>>, vector<8x32x64xbf16>,
    return
  }
  func.func @transform_0(%arg0: i32) -> (i32, i32) {
    %c0_i32 = arith.constant 0 : i32
    %c0_i32_0 = arith.constant 0 : i32
    return %arg0, %c0_i32 : i32, i32
  }
  func.func @transform_1(%arg0: i32) -> (i32, i32) {
    %c0_i32 = arith.constant 0 : i32
    %c0_i32_0 = arith.constant 0 : i32
    %c0_i32_1 = arith.constant 0 : i32
    return %c0_i32, %c0_i32_0 : i32, i32
  }
  func.func @transform_2(%arg0: i32) -> (i32, i32) {
    %c0_i32 = arith.constant 0 : i32
    %c0_i32_0 = arith.constant 0 : i32
    %c0_i32_1 = arith.constant 0 : i32
    return %c0_i32, %c0_i32_0 : i32, i32
  }
  func.func @transform_3(%arg0: i32) -> (i32, i32, i32) {
    %c0_i32 = arith.constant 0 : i32
    %c0_i32_0 = arith.constant 0 : i32
    %c0_i32_1 = arith.constant 0 : i32
    return %arg0, %c0_i32, %c0_i32_0 : i32, i32, i32
  }
}

module attributes {stable_mosaic.version = 11 : i64} {
  func.func @_conv_relu_pool_kernel(%arg0: i32, %arg1: memref<256x576xbf16, #tpu.memory_space<vmem>>, %arg2: memref<576x128xbf16, #tpu.memory_space<vmem>>, %arg3: memref<1x128xf32, #tpu.memory_space<vmem>>, %arg4: memref<4x16x128xbf16, #tpu.memory_space<vmem>>, %arg5: memref<256x128xf32, #tpu.memory_space<vmem>>, %arg6: memref<8x16x128xf32, #tpu.memory_space<vmem>>) attributes {dimension_semantics = [#tpu.dimension_semantics<parallel>], iteration_bounds = array<i64: 2>, scalar_prefetch = 0 : i64, scratch_operands = 2 : i64, tpu.core_type = #tpu.core_type<tc>, window_params = [{transform_indices = @transform_0, window_bounds = array<i64: 256, 576>}, {pipeline_mode = #tpu.pipeline_mode<synchronous>, transform_indices = @transform_1, window_bounds = array<i64: 576, 128>}, {pipeline_mode = #tpu.pipeline_mode<synchronous>, transform_indices = @transform_2, window_bounds = array<i64: 1, 128>}, {transform_indices = @transform_3, window_bounds = array<i64: 4, 16, 128>}]} {
    %c0 = arith.constant 0 : index
    %c0_0 = arith.constant 0 : index
    %0 = vector.load %arg1[%c0, %c0_0] : memref<256x576xbf16, #tpu.memory_space<vmem>>, vector<256x576xbf16>
    %c0_1 = arith.constant 0 : index
    %c0_2 = arith.constant 0 : index
    %1 = vector.load %arg2[%c0_1, %c0_2] : memref<576x128xbf16, #tpu.memory_space<vmem>>, vector<576x128xbf16>
    %cst = arith.constant dense<0.000000e+00> : vector<256x128xf32>
    %2 = tpu.matmul %0, %1, %cst {dimension_numbers = #tpu.dot_dimension_numbers<[1], [0], [0], [1], [0, 0, 1, 1], [], []>} : vector<256x576xbf16>, vector<576x128xbf16>, vector<256x128xf32> -> vector<256x128xf32>
    %c0_3 = arith.constant 0 : index
    %c0_4 = arith.constant 0 : index
    %3 = vector.load %arg3[%c0_3, %c0_4] : memref<1x128xf32, #tpu.memory_space<vmem>>, vector<1x128xf32>
    %4 = vector.broadcast %3 : vector<1x128xf32> to vector<256x128xf32>
    %5 = arith.addf %2, %4 : vector<256x128xf32>
    %cst_5 = arith.constant 0.000000e+00 : f32
    %6 = vector.broadcast %cst_5 : f32 to vector<256x128xf32>
    %7 = arith.maximumf %5, %6 : vector<256x128xf32>
    %c0_6 = arith.constant 0 : index
    %c0_7 = arith.constant 0 : index
    %8 = vector.load %arg5[%c0_6, %c0_7] : memref<256x128xf32, #tpu.memory_space<vmem>>, vector<256x128xf32>
    tpu.vector_store %arg5[%c0_6, %c0_7], %7 {strides = array<i32>} : memref<256x128xf32, #tpu.memory_space<vmem>>, vector<256x128xf32>,
    %c0_8 = arith.constant 0 : index
    %c0_9 = arith.constant 0 : index
    %9 = tpu.strided_load %arg5[%c0_8, %c0_9] {strides = array<i32: 2, 1>} : memref<256x128xf32, #tpu.memory_space<vmem>>, vector<128x128xf32>
    %c1 = arith.constant 1 : index
    %c0_10 = arith.constant 0 : index
    %10 = tpu.strided_load %arg5[%c1, %c0_10] {strides = array<i32: 2, 1>} : memref<256x128xf32, #tpu.memory_space<vmem>>, vector<128x128xf32>
    %11 = arith.maximumf %9, %10 : vector<128x128xf32>
    %12 = vector.extract_strided_slice %11 {offsets = [0, 0], sizes = [16, 128], strides = [1, 1]} : vector<128x128xf32> to vector<16x128xf32>
    %c0_11 = arith.constant 0 : index
    %c0_12 = arith.constant 0 : index
    %c0_13 = arith.constant 0 : index
    %13 = vector.load %arg6[%c0_11, %c0_12, %c0_13] : memref<8x16x128xf32, #tpu.memory_space<vmem>>, vector<1x16x128xf32>
    %14 = vector.shape_cast %13 : vector<1x16x128xf32> to vector<16x128xf32>
    %15 = vector.shape_cast %12 : vector<16x128xf32> to vector<1x16x128xf32>
    tpu.vector_store %arg6[%c0_11, %c0_12, %c0_13], %15 {strides = array<i32>} : memref<8x16x128xf32, #tpu.memory_space<vmem>>, vector<1x16x128xf32>,
    %16 = vector.extract_strided_slice %11 {offsets = [16, 0], sizes = [16, 128], strides = [1, 1]} : vector<128x128xf32> to vector<16x128xf32>
    %c1_14 = arith.constant 1 : index
    %c0_15 = arith.constant 0 : index
    %c0_16 = arith.constant 0 : index
    %17 = vector.load %arg6[%c1_14, %c0_15, %c0_16] : memref<8x16x128xf32, #tpu.memory_space<vmem>>, vector<1x16x128xf32>
    %18 = vector.shape_cast %17 : vector<1x16x128xf32> to vector<16x128xf32>
    %19 = vector.shape_cast %16 : vector<16x128xf32> to vector<1x16x128xf32>
    tpu.vector_store %arg6[%c1_14, %c0_15, %c0_16], %19 {strides = array<i32>} : memref<8x16x128xf32, #tpu.memory_space<vmem>>, vector<1x16x128xf32>,
    %20 = vector.extract_strided_slice %11 {offsets = [32, 0], sizes = [16, 128], strides = [1, 1]} : vector<128x128xf32> to vector<16x128xf32>
    %c2 = arith.constant 2 : index
    %c0_17 = arith.constant 0 : index
    %c0_18 = arith.constant 0 : index
    %21 = vector.load %arg6[%c2, %c0_17, %c0_18] : memref<8x16x128xf32, #tpu.memory_space<vmem>>, vector<1x16x128xf32>
    %22 = vector.shape_cast %21 : vector<1x16x128xf32> to vector<16x128xf32>
    %23 = vector.shape_cast %20 : vector<16x128xf32> to vector<1x16x128xf32>
    tpu.vector_store %arg6[%c2, %c0_17, %c0_18], %23 {strides = array<i32>} : memref<8x16x128xf32, #tpu.memory_space<vmem>>, vector<1x16x128xf32>,
    %24 = vector.extract_strided_slice %11 {offsets = [48, 0], sizes = [16, 128], strides = [1, 1]} : vector<128x128xf32> to vector<16x128xf32>
    %c3 = arith.constant 3 : index
    %c0_19 = arith.constant 0 : index
    %c0_20 = arith.constant 0 : index
    %25 = vector.load %arg6[%c3, %c0_19, %c0_20] : memref<8x16x128xf32, #tpu.memory_space<vmem>>, vector<1x16x128xf32>
    %26 = vector.shape_cast %25 : vector<1x16x128xf32> to vector<16x128xf32>
    %27 = vector.shape_cast %24 : vector<16x128xf32> to vector<1x16x128xf32>
    tpu.vector_store %arg6[%c3, %c0_19, %c0_20], %27 {strides = array<i32>} : memref<8x16x128xf32, #tpu.memory_space<vmem>>, vector<1x16x128xf32>,
    %28 = vector.extract_strided_slice %11 {offsets = [64, 0], sizes = [16, 128], strides = [1, 1]} : vector<128x128xf32> to vector<16x128xf32>
    %c4 = arith.constant 4 : index
    %c0_21 = arith.constant 0 : index
    %c0_22 = arith.constant 0 : index
    %29 = vector.load %arg6[%c4, %c0_21, %c0_22] : memref<8x16x128xf32, #tpu.memory_space<vmem>>, vector<1x16x128xf32>
    %30 = vector.shape_cast %29 : vector<1x16x128xf32> to vector<16x128xf32>
    %31 = vector.shape_cast %28 : vector<16x128xf32> to vector<1x16x128xf32>
    tpu.vector_store %arg6[%c4, %c0_21, %c0_22], %31 {strides = array<i32>} : memref<8x16x128xf32, #tpu.memory_space<vmem>>, vector<1x16x128xf32>,
    %32 = vector.extract_strided_slice %11 {offsets = [80, 0], sizes = [16, 128], strides = [1, 1]} : vector<128x128xf32> to vector<16x128xf32>
    %c5 = arith.constant 5 : index
    %c0_23 = arith.constant 0 : index
    %c0_24 = arith.constant 0 : index
    %33 = vector.load %arg6[%c5, %c0_23, %c0_24] : memref<8x16x128xf32, #tpu.memory_space<vmem>>, vector<1x16x128xf32>
    %34 = vector.shape_cast %33 : vector<1x16x128xf32> to vector<16x128xf32>
    %35 = vector.shape_cast %32 : vector<16x128xf32> to vector<1x16x128xf32>
    tpu.vector_store %arg6[%c5, %c0_23, %c0_24], %35 {strides = array<i32>} : memref<8x16x128xf32, #tpu.memory_space<vmem>>, vector<1x16x128xf32>,
    %36 = vector.extract_strided_slice %11 {offsets = [96, 0], sizes = [16, 128], strides = [1, 1]} : vector<128x128xf32> to vector<16x128xf32>
    %c6 = arith.constant 6 : index
    %c0_25 = arith.constant 0 : index
    %c0_26 = arith.constant 0 : index
    %37 = vector.load %arg6[%c6, %c0_25, %c0_26] : memref<8x16x128xf32, #tpu.memory_space<vmem>>, vector<1x16x128xf32>
    %38 = vector.shape_cast %37 : vector<1x16x128xf32> to vector<16x128xf32>
    %39 = vector.shape_cast %36 : vector<16x128xf32> to vector<1x16x128xf32>
    tpu.vector_store %arg6[%c6, %c0_25, %c0_26], %39 {strides = array<i32>} : memref<8x16x128xf32, #tpu.memory_space<vmem>>, vector<1x16x128xf32>,
    %40 = vector.extract_strided_slice %11 {offsets = [112, 0], sizes = [16, 128], strides = [1, 1]} : vector<128x128xf32> to vector<16x128xf32>
    %c7 = arith.constant 7 : index
    %c0_27 = arith.constant 0 : index
    %c0_28 = arith.constant 0 : index
    %41 = vector.load %arg6[%c7, %c0_27, %c0_28] : memref<8x16x128xf32, #tpu.memory_space<vmem>>, vector<1x16x128xf32>
    %42 = vector.shape_cast %41 : vector<1x16x128xf32> to vector<16x128xf32>
    %43 = vector.shape_cast %40 : vector<16x128xf32> to vector<1x16x128xf32>
    tpu.vector_store %arg6[%c7, %c0_27, %c0_28], %43 {strides = array<i32>} : memref<8x16x128xf32, #tpu.memory_space<vmem>>, vector<1x16x128xf32>,
    %c0_29 = arith.constant 0 : index
    %c0_30 = arith.constant 0 : index
    %c0_31 = arith.constant 0 : index
    %44 = tpu.strided_load %arg6[%c0_29, %c0_30, %c0_31] {strides = array<i32: 2, 1, 1>} : memref<8x16x128xf32, #tpu.memory_space<vmem>>, vector<4x16x128xf32>
    %c1_32 = arith.constant 1 : index
    %c0_33 = arith.constant 0 : index
    %c0_34 = arith.constant 0 : index
    %45 = tpu.strided_load %arg6[%c1_32, %c0_33, %c0_34] {strides = array<i32: 2, 1, 1>} : memref<8x16x128xf32, #tpu.memory_space<vmem>>, vector<4x16x128xf32>
    %46 = arith.maximumf %44, %45 : vector<4x16x128xf32>
    %47 = arith.truncf %46 : vector<4x16x128xf32> to vector<4x16x128xbf16>
    %c0_35 = arith.constant 0 : index
    %c0_36 = arith.constant 0 : index
    %c0_37 = arith.constant 0 : index
    %48 = vector.load %arg4[%c0_35, %c0_36, %c0_37] : memref<4x16x128xbf16, #tpu.memory_space<vmem>>, vector<4x16x128xbf16>
    tpu.vector_store %arg4[%c0_35, %c0_36, %c0_37], %47 {strides = array<i32>} : memref<4x16x128xbf16, #tpu.memory_space<vmem>>, vector<4x16x128xbf16>,
    return
  }
  func.func @transform_0(%arg0: i32) -> (i32, i32) {
    %c0_i32 = arith.constant 0 : i32
    %c0_i32_0 = arith.constant 0 : i32
    return %arg0, %c0_i32 : i32, i32
  }
  func.func @transform_1(%arg0: i32) -> (i32, i32) {
    %c0_i32 = arith.constant 0 : i32
    %c0_i32_0 = arith.constant 0 : i32
    %c0_i32_1 = arith.constant 0 : i32
    return %c0_i32, %c0_i32_0 : i32, i32
  }
  func.func @transform_2(%arg0: i32) -> (i32, i32) {
    %c0_i32 = arith.constant 0 : i32
    %c0_i32_0 = arith.constant 0 : i32
    %c0_i32_1 = arith.constant 0 : i32
    return %c0_i32, %c0_i32_0 : i32, i32
  }
  func.func @transform_3(%arg0: i32) -> (i32, i32, i32) {
    %c0_i32 = arith.constant 0 : i32
    %c0_i32_0 = arith.constant 0 : i32
    %c0_i32_1 = arith.constant 0 : i32
    return %arg0, %c0_i32, %c0_i32_0 : i32, i32, i32
  }
}

module attributes {stable_mosaic.version = 11 : i64} {
  func.func @_matmul_bias_kernel(%arg0: i32, %arg1: i32, %arg2: i32, %arg3: memref<8x2048xbf16, #tpu.memory_space<vmem>>, %arg4: memref<2048x512xbf16, #tpu.memory_space<vmem>>, %arg5: memref<1x512xf32, #tpu.memory_space<vmem>>, %arg6: memref<8x512xf32, #tpu.memory_space<vmem>>) attributes {dimension_semantics = [#tpu.dimension_semantics<parallel>, #tpu.dimension_semantics<parallel>, #tpu.dimension_semantics<arbitrary>], iteration_bounds = array<i64: 1, 4, 1>, scalar_prefetch = 0 : i64, scratch_operands = 0 : i64, tpu.core_type = #tpu.core_type<tc>, window_params = [{transform_indices = @transform_0, window_bounds = array<i64: 8, 2048>}, {transform_indices = @transform_1, window_bounds = array<i64: 2048, 512>}, {transform_indices = @transform_2, window_bounds = array<i64: 1, 512>}, {transform_indices = @transform_3, window_bounds = array<i64: 8, 512>}]} {
    %c0 = arith.constant 0 : index
    %c0_0 = arith.constant 0 : index
    %0 = vector.load %arg3[%c0, %c0_0] : memref<8x2048xbf16, #tpu.memory_space<vmem>>, vector<8x2048xbf16>
    %c0_1 = arith.constant 0 : index
    %c0_2 = arith.constant 0 : index
    %1 = vector.load %arg4[%c0_1, %c0_2] : memref<2048x512xbf16, #tpu.memory_space<vmem>>, vector<2048x512xbf16>
    %cst = arith.constant dense<0.000000e+00> : vector<8x512xf32>
    %2 = tpu.matmul %0, %1, %cst {dimension_numbers = #tpu.dot_dimension_numbers<[1], [0], [0], [1], [0, 0, 1, 1], [], []>} : vector<8x2048xbf16>, vector<2048x512xbf16>, vector<8x512xf32> -> vector<8x512xf32>
    %c0_3 = arith.constant 0 : index
    %c0_4 = arith.constant 0 : index
    %3 = vector.load %arg5[%c0_3, %c0_4] : memref<1x512xf32, #tpu.memory_space<vmem>>, vector<1x512xf32>
    %4 = vector.broadcast %3 : vector<1x512xf32> to vector<8x512xf32>
    %5 = arith.addf %2, %4 : vector<8x512xf32>
    %c0_5 = arith.constant 0 : index
    %c0_6 = arith.constant 0 : index
    %6 = vector.load %arg6[%c0_5, %c0_6] : memref<8x512xf32, #tpu.memory_space<vmem>>, vector<8x512xf32>
    tpu.vector_store %arg6[%c0_5, %c0_6], %5 {strides = array<i32>} : memref<8x512xf32, #tpu.memory_space<vmem>>, vector<8x512xf32>,
    return
  }
  func.func @transform_0(%arg0: i32, %arg1: i32, %arg2: i32) -> (i32, i32) {
    %c0_i32 = arith.constant 0 : i32
    return %arg0, %arg2 : i32, i32
  }
  func.func @transform_1(%arg0: i32, %arg1: i32, %arg2: i32) -> (i32, i32) {
    %c0_i32 = arith.constant 0 : i32
    return %arg2, %arg1 : i32, i32
  }
  func.func @transform_2(%arg0: i32, %arg1: i32, %arg2: i32) -> (i32, i32) {
    %c0_i32 = arith.constant 0 : i32
    %c0_i32_0 = arith.constant 0 : i32
    return %c0_i32, %arg1 : i32, i32
  }
  func.func @transform_3(%arg0: i32, %arg1: i32, %arg2: i32) -> (i32, i32) {
    %c0_i32 = arith.constant 0 : i32
    return %arg0, %arg1 : i32, i32
  }
}

module attributes {stable_mosaic.version = 11 : i64} {
  func.func @_bilstm_kernel(%arg0: i32, %arg1: i32, %arg2: memref<4x2x1024xf32, #tpu.memory_space<vmem>>, %arg3: memref<1x256x1024xbf16, #tpu.memory_space<vmem>>, %arg4: memref<4x2x256xf32, #tpu.memory_space<vmem>>, %arg5: memref<2x256xf32, #tpu.memory_space<vmem>>, %arg6: memref<2x256xf32, #tpu.memory_space<vmem>>) attributes {dimension_semantics = [#tpu.dimension_semantics<parallel>, #tpu.dimension_semantics<arbitrary>], iteration_bounds = array<i64: 2, 1>, scalar_prefetch = 0 : i64, scratch_operands = 2 : i64, tpu.core_type = #tpu.core_type<tc>, window_params = [{transform_indices = @transform_0, window_bounds = array<i64: 4, 2, 1024>}, {transform_indices = @transform_1, window_bounds = array<i64: 1, 256, 1024>}, {transform_indices = @transform_2, window_bounds = array<i64: 4, 2, 256>}]} {
    %c0_i32 = arith.constant 0 : i32
    %0 = arith.cmpi eq, %arg1, %c0_i32 : i32
    %1 = arith.extui %0 : i1 to i32
    %c0_i32_0 = arith.constant 0 : i32
    %2 = arith.cmpi ne, %1, %c0_i32_0 : i32
    scf.if %2 {
      %cst_64 = arith.constant 0.000000e+00 : f32
      %175 = vector.broadcast %cst_64 : f32 to vector<2x256xf32>
      %c0_65 = arith.constant 0 : index
      %c0_66 = arith.constant 0 : index
      %176 = vector.load %arg5[%c0_65, %c0_66] : memref<2x256xf32, #tpu.memory_space<vmem>>, vector<2x256xf32>
      tpu.vector_store %arg5[%c0_65, %c0_66], %175 {strides = array<i32>} : memref<2x256xf32, #tpu.memory_space<vmem>>, vector<2x256xf32>,
      %cst_67 = arith.constant 0.000000e+00 : f32
      %177 = vector.broadcast %cst_67 : f32 to vector<2x256xf32>
      %c0_68 = arith.constant 0 : index
      %c0_69 = arith.constant 0 : index
      %178 = vector.load %arg6[%c0_68, %c0_69] : memref<2x256xf32, #tpu.memory_space<vmem>>, vector<2x256xf32>
      tpu.vector_store %arg6[%c0_68, %c0_69], %177 {strides = array<i32>} : memref<2x256xf32, #tpu.memory_space<vmem>>, vector<2x256xf32>,
    } else {
    }
    %c0 = arith.constant 0 : index
    %c0_1 = arith.constant 0 : index
    %3 = vector.load %arg5[%c0, %c0_1] : memref<2x256xf32, #tpu.memory_space<vmem>>, vector<2x256xf32>
    %c0_2 = arith.constant 0 : index
    %c0_3 = arith.constant 0 : index
    %4 = vector.load %arg6[%c0_2, %c0_3] : memref<2x256xf32, #tpu.memory_space<vmem>>, vector<2x256xf32>
    %c0_i32_4 = arith.constant 0 : i32
    %c3_i32 = arith.constant 3 : i32
    %5 = arith.muli %arg0, %c3_i32 : i32
    %c2_i32 = arith.constant 2 : i32
    %6 = arith.muli %c2_i32, %arg0 : i32
    %c1_i32 = arith.constant 1 : i32
    %7 = arith.subi %c1_i32, %6 : i32
    %8 = arith.muli %7, %c0_i32_4 : i32
    %9 = arith.addi %5, %8 : i32
    %10 = arith.index_cast %9 : i32 to index
    %c0_5 = arith.constant 0 : index
    %c0_6 = arith.constant 0 : index
    %11 = vector.load %arg2[%10, %c0_5, %c0_6] : memref<4x2x1024xf32, #tpu.memory_space<vmem>>, vector<1x2x1024xf32>
    %12 = vector.shape_cast %11 : vector<1x2x1024xf32> to vector<2x1024xf32>
    %13 = arith.truncf %3 : vector<2x256xf32> to vector<2x256xbf16>
    %c0_7 = arith.constant 0 : index
    %c0_8 = arith.constant 0 : index
    %c0_9 = arith.constant 0 : index
    %14 = vector.load %arg3[%c0_7, %c0_8, %c0_9] : memref<1x256x1024xbf16, #tpu.memory_space<vmem>>, vector<1x256x1024xbf16>
    %15 = vector.shape_cast %14 : vector<1x256x1024xbf16> to vector<256x1024xbf16>
    %cst = arith.constant dense<0.000000e+00> : vector<2x1024xf32>
    %16 = tpu.matmul %13, %15, %cst {dimension_numbers = #tpu.dot_dimension_numbers<[1], [0], [0], [1], [0, 0, 1, 1], [], []>} : vector<2x256xbf16>, vector<256x1024xbf16>, vector<2x1024xf32> -> vector<2x1024xf32>
    %17 = arith.addf %12, %16 : vector<2x1024xf32>
    %18 = vector.extract_strided_slice %17 {offsets = [0, 0], sizes = [2, 256], strides = [1, 1]} : vector<2x1024xf32> to vector<2x256xf32>
    %19 = arith.negf %18 : vector<2x256xf32>
    %20 = math.exp %19 : vector<2x256xf32>
    %cst_10 = arith.constant 1.000000e+00 : f32
    %21 = vector.broadcast %cst_10 : f32 to vector<2x256xf32>
    %22 = arith.addf %21, %20 : vector<2x256xf32>
    %23 = arith.divf %21, %22 : vector<2x256xf32>
    %24 = vector.extract_strided_slice %17 {offsets = [0, 256], sizes = [2, 256], strides = [1, 1]} : vector<2x1024xf32> to vector<2x256xf32>
    %25 = arith.negf %24 : vector<2x256xf32>
    %26 = math.exp %25 : vector<2x256xf32>
    %cst_11 = arith.constant 1.000000e+00 : f32
    %27 = vector.broadcast %cst_11 : f32 to vector<2x256xf32>
    %28 = arith.addf %27, %26 : vector<2x256xf32>
    %29 = arith.divf %27, %28 : vector<2x256xf32>
    %30 = vector.extract_strided_slice %17 {offsets = [0, 512], sizes = [2, 256], strides = [1, 1]} : vector<2x1024xf32> to vector<2x256xf32>
    %31 = math.tanh %30 : vector<2x256xf32>
    %32 = vector.extract_strided_slice %17 {offsets = [0, 768], sizes = [2, 256], strides = [1, 1]} : vector<2x1024xf32> to vector<2x256xf32>
    %33 = arith.negf %32 : vector<2x256xf32>
    %34 = math.exp %33 : vector<2x256xf32>
    %cst_12 = arith.constant 1.000000e+00 : f32
    %35 = vector.broadcast %cst_12 : f32 to vector<2x256xf32>
    %36 = arith.addf %35, %34 : vector<2x256xf32>
    %37 = arith.divf %35, %36 : vector<2x256xf32>
    %38 = arith.mulf %29, %4 : vector<2x256xf32>
    %39 = arith.mulf %23, %31 : vector<2x256xf32>
    %40 = arith.addf %38, %39 : vector<2x256xf32>
    %41 = math.tanh %40 : vector<2x256xf32>
    %42 = arith.mulf %37, %41 : vector<2x256xf32>
    %43 = arith.index_cast %9 : i32 to index
    %c0_13 = arith.constant 0 : index
    %c0_14 = arith.constant 0 : index
    %44 = vector.load %arg4[%43, %c0_13, %c0_14] : memref<4x2x256xf32, #tpu.memory_space<vmem>>, vector<1x2x256xf32>
    %45 = vector.shape_cast %44 : vector<1x2x256xf32> to vector<2x256xf32>
    %46 = vector.shape_cast %42 : vector<2x256xf32> to vector<1x2x256xf32>
    tpu.vector_store %arg4[%43, %c0_13, %c0_14], %46 {strides = array<i32>} : memref<4x2x256xf32, #tpu.memory_space<vmem>>, vector<1x2x256xf32>,
    %c1_i32_15 = arith.constant 1 : i32
    %c3_i32_16 = arith.constant 3 : i32
    %47 = arith.muli %arg0, %c3_i32_16 : i32
    %c2_i32_17 = arith.constant 2 : i32
    %48 = arith.muli %c2_i32_17, %arg0 : i32
    %c1_i32_18 = arith.constant 1 : i32
    %49 = arith.subi %c1_i32_18, %48 : i32
    %50 = arith.muli %49, %c1_i32_15 : i32
    %51 = arith.addi %47, %50 : i32
    %52 = arith.index_cast %51 : i32 to index
    %c0_19 = arith.constant 0 : index
    %c0_20 = arith.constant 0 : index
    %53 = vector.load %arg2[%52, %c0_19, %c0_20] : memref<4x2x1024xf32, #tpu.memory_space<vmem>>, vector<1x2x1024xf32>
    %54 = vector.shape_cast %53 : vector<1x2x1024xf32> to vector<2x1024xf32>
    %55 = arith.truncf %42 : vector<2x256xf32> to vector<2x256xbf16>
    %c0_21 = arith.constant 0 : index
    %c0_22 = arith.constant 0 : index
    %c0_23 = arith.constant 0 : index
    %56 = vector.load %arg3[%c0_21, %c0_22, %c0_23] : memref<1x256x1024xbf16, #tpu.memory_space<vmem>>, vector<1x256x1024xbf16>
    %57 = vector.shape_cast %56 : vector<1x256x1024xbf16> to vector<256x1024xbf16>
    %cst_24 = arith.constant dense<0.000000e+00> : vector<2x1024xf32>
    %58 = tpu.matmul %55, %57, %cst_24 {dimension_numbers = #tpu.dot_dimension_numbers<[1], [0], [0], [1], [0, 0, 1, 1], [], []>} : vector<2x256xbf16>, vector<256x1024xbf16>, vector<2x1024xf32> -> vector<2x1024xf32>
    %59 = arith.addf %54, %58 : vector<2x1024xf32>
    %60 = vector.extract_strided_slice %59 {offsets = [0, 0], sizes = [2, 256], strides = [1, 1]} : vector<2x1024xf32> to vector<2x256xf32>
    %61 = arith.negf %60 : vector<2x256xf32>
    %62 = math.exp %61 : vector<2x256xf32>
    %cst_25 = arith.constant 1.000000e+00 : f32
    %63 = vector.broadcast %cst_25 : f32 to vector<2x256xf32>
    %64 = arith.addf %63, %62 : vector<2x256xf32>
    %65 = arith.divf %63, %64 : vector<2x256xf32>
    %66 = vector.extract_strided_slice %59 {offsets = [0, 256], sizes = [2, 256], strides = [1, 1]} : vector<2x1024xf32> to vector<2x256xf32>
    %67 = arith.negf %66 : vector<2x256xf32>
    %68 = math.exp %67 : vector<2x256xf32>
    %cst_26 = arith.constant 1.000000e+00 : f32
    %69 = vector.broadcast %cst_26 : f32 to vector<2x256xf32>
    %70 = arith.addf %69, %68 : vector<2x256xf32>
    %71 = arith.divf %69, %70 : vector<2x256xf32>
    %72 = vector.extract_strided_slice %59 {offsets = [0, 512], sizes = [2, 256], strides = [1, 1]} : vector<2x1024xf32> to vector<2x256xf32>
    %73 = math.tanh %72 : vector<2x256xf32>
    %74 = vector.extract_strided_slice %59 {offsets = [0, 768], sizes = [2, 256], strides = [1, 1]} : vector<2x1024xf32> to vector<2x256xf32>
    %75 = arith.negf %74 : vector<2x256xf32>
    %76 = math.exp %75 : vector<2x256xf32>
    %cst_27 = arith.constant 1.000000e+00 : f32
    %77 = vector.broadcast %cst_27 : f32 to vector<2x256xf32>
    %78 = arith.addf %77, %76 : vector<2x256xf32>
    %79 = arith.divf %77, %78 : vector<2x256xf32>
    %80 = arith.mulf %71, %40 : vector<2x256xf32>
    %81 = arith.mulf %65, %73 : vector<2x256xf32>
    %82 = arith.addf %80, %81 : vector<2x256xf32>
    %83 = math.tanh %82 : vector<2x256xf32>
    %84 = arith.mulf %79, %83 : vector<2x256xf32>
    %85 = arith.index_cast %51 : i32 to index
    %c0_28 = arith.constant 0 : index
    %c0_29 = arith.constant 0 : index
    %86 = vector.load %arg4[%85, %c0_28, %c0_29] : memref<4x2x256xf32, #tpu.memory_space<vmem>>, vector<1x2x256xf32>
    %87 = vector.shape_cast %86 : vector<1x2x256xf32> to vector<2x256xf32>
    %88 = vector.shape_cast %84 : vector<2x256xf32> to vector<1x2x256xf32>
    tpu.vector_store %arg4[%85, %c0_28, %c0_29], %88 {strides = array<i32>} : memref<4x2x256xf32, #tpu.memory_space<vmem>>, vector<1x2x256xf32>,
    %c2_i32_30 = arith.constant 2 : i32
    %c3_i32_31 = arith.constant 3 : i32
    %89 = arith.muli %arg0, %c3_i32_31 : i32
    %c2_i32_32 = arith.constant 2 : i32
    %90 = arith.muli %c2_i32_32, %arg0 : i32
    %c1_i32_33 = arith.constant 1 : i32
    %91 = arith.subi %c1_i32_33, %90 : i32
    %92 = arith.muli %91, %c2_i32_30 : i32
    %93 = arith.addi %89, %92 : i32
    %94 = arith.index_cast %93 : i32 to index
    %c0_34 = arith.constant 0 : index
    %c0_35 = arith.constant 0 : index
    %95 = vector.load %arg2[%94, %c0_34, %c0_35] : memref<4x2x1024xf32, #tpu.memory_space<vmem>>, vector<1x2x1024xf32>
    %96 = vector.shape_cast %95 : vector<1x2x1024xf32> to vector<2x1024xf32>
    %97 = arith.truncf %84 : vector<2x256xf32> to vector<2x256xbf16>
    %c0_36 = arith.constant 0 : index
    %c0_37 = arith.constant 0 : index
    %c0_38 = arith.constant 0 : index
    %98 = vector.load %arg3[%c0_36, %c0_37, %c0_38] : memref<1x256x1024xbf16, #tpu.memory_space<vmem>>, vector<1x256x1024xbf16>
    %99 = vector.shape_cast %98 : vector<1x256x1024xbf16> to vector<256x1024xbf16>
    %cst_39 = arith.constant dense<0.000000e+00> : vector<2x1024xf32>
    %100 = tpu.matmul %97, %99, %cst_39 {dimension_numbers = #tpu.dot_dimension_numbers<[1], [0], [0], [1], [0, 0, 1, 1], [], []>} : vector<2x256xbf16>, vector<256x1024xbf16>, vector<2x1024xf32> -> vector<2x1024xf32>
    %101 = arith.addf %96, %100 : vector<2x1024xf32>
    %102 = vector.extract_strided_slice %101 {offsets = [0, 0], sizes = [2, 256], strides = [1, 1]} : vector<2x1024xf32> to vector<2x256xf32>
    %103 = arith.negf %102 : vector<2x256xf32>
    %104 = math.exp %103 : vector<2x256xf32>
    %cst_40 = arith.constant 1.000000e+00 : f32
    %105 = vector.broadcast %cst_40 : f32 to vector<2x256xf32>
    %106 = arith.addf %105, %104 : vector<2x256xf32>
    %107 = arith.divf %105, %106 : vector<2x256xf32>
    %108 = vector.extract_strided_slice %101 {offsets = [0, 256], sizes = [2, 256], strides = [1, 1]} : vector<2x1024xf32> to vector<2x256xf32>
    %109 = arith.negf %108 : vector<2x256xf32>
    %110 = math.exp %109 : vector<2x256xf32>
    %cst_41 = arith.constant 1.000000e+00 : f32
    %111 = vector.broadcast %cst_41 : f32 to vector<2x256xf32>
    %112 = arith.addf %111, %110 : vector<2x256xf32>
    %113 = arith.divf %111, %112 : vector<2x256xf32>
    %114 = vector.extract_strided_slice %101 {offsets = [0, 512], sizes = [2, 256], strides = [1, 1]} : vector<2x1024xf32> to vector<2x256xf32>
    %115 = math.tanh %114 : vector<2x256xf32>
    %116 = vector.extract_strided_slice %101 {offsets = [0, 768], sizes = [2, 256], strides = [1, 1]} : vector<2x1024xf32> to vector<2x256xf32>
    %117 = arith.negf %116 : vector<2x256xf32>
    %118 = math.exp %117 : vector<2x256xf32>
    %cst_42 = arith.constant 1.000000e+00 : f32
    %119 = vector.broadcast %cst_42 : f32 to vector<2x256xf32>
    %120 = arith.addf %119, %118 : vector<2x256xf32>
    %121 = arith.divf %119, %120 : vector<2x256xf32>
    %122 = arith.mulf %113, %82 : vector<2x256xf32>
    %123 = arith.mulf %107, %115 : vector<2x256xf32>
    %124 = arith.addf %122, %123 : vector<2x256xf32>
    %125 = math.tanh %124 : vector<2x256xf32>
    %126 = arith.mulf %121, %125 : vector<2x256xf32>
    %127 = arith.index_cast %93 : i32 to index
    %c0_43 = arith.constant 0 : index
    %c0_44 = arith.constant 0 : index
    %128 = vector.load %arg4[%127, %c0_43, %c0_44] : memref<4x2x256xf32, #tpu.memory_space<vmem>>, vector<1x2x256xf32>
    %129 = vector.shape_cast %128 : vector<1x2x256xf32> to vector<2x256xf32>
    %130 = vector.shape_cast %126 : vector<2x256xf32> to vector<1x2x256xf32>
    tpu.vector_store %arg4[%127, %c0_43, %c0_44], %130 {strides = array<i32>} : memref<4x2x256xf32, #tpu.memory_space<vmem>>, vector<1x2x256xf32>,
    %c3_i32_45 = arith.constant 3 : i32
    %c3_i32_46 = arith.constant 3 : i32
    %131 = arith.muli %arg0, %c3_i32_46 : i32
    %c2_i32_47 = arith.constant 2 : i32
    %132 = arith.muli %c2_i32_47, %arg0 : i32
    %c1_i32_48 = arith.constant 1 : i32
    %133 = arith.subi %c1_i32_48, %132 : i32
    %134 = arith.muli %133, %c3_i32_45 : i32
    %135 = arith.addi %131, %134 : i32
    %136 = arith.index_cast %135 : i32 to index
    %c0_49 = arith.constant 0 : index
    %c0_50 = arith.constant 0 : index
    %137 = vector.load %arg2[%136, %c0_49, %c0_50] : memref<4x2x1024xf32, #tpu.memory_space<vmem>>, vector<1x2x1024xf32>
    %138 = vector.shape_cast %137 : vector<1x2x1024xf32> to vector<2x1024xf32>
    %139 = arith.truncf %126 : vector<2x256xf32> to vector<2x256xbf16>
    %c0_51 = arith.constant 0 : index
    %c0_52 = arith.constant 0 : index
    %c0_53 = arith.constant 0 : index
    %140 = vector.load %arg3[%c0_51, %c0_52, %c0_53] : memref<1x256x1024xbf16, #tpu.memory_space<vmem>>, vector<1x256x1024xbf16>
    %141 = vector.shape_cast %140 : vector<1x256x1024xbf16> to vector<256x1024xbf16>
    %cst_54 = arith.constant dense<0.000000e+00> : vector<2x1024xf32>
    %142 = tpu.matmul %139, %141, %cst_54 {dimension_numbers = #tpu.dot_dimension_numbers<[1], [0], [0], [1], [0, 0, 1, 1], [], []>} : vector<2x256xbf16>, vector<256x1024xbf16>, vector<2x1024xf32> -> vector<2x1024xf32>
    %143 = arith.addf %138, %142 : vector<2x1024xf32>
    %144 = vector.extract_strided_slice %143 {offsets = [0, 0], sizes = [2, 256], strides = [1, 1]} : vector<2x1024xf32> to vector<2x256xf32>
    %145 = arith.negf %144 : vector<2x256xf32>
    %146 = math.exp %145 : vector<2x256xf32>
    %cst_55 = arith.constant 1.000000e+00 : f32
    %147 = vector.broadcast %cst_55 : f32 to vector<2x256xf32>
    %148 = arith.addf %147, %146 : vector<2x256xf32>
    %149 = arith.divf %147, %148 : vector<2x256xf32>
    %150 = vector.extract_strided_slice %143 {offsets = [0, 256], sizes = [2, 256], strides = [1, 1]} : vector<2x1024xf32> to vector<2x256xf32>
    %151 = arith.negf %150 : vector<2x256xf32>
    %152 = math.exp %151 : vector<2x256xf32>
    %cst_56 = arith.constant 1.000000e+00 : f32
    %153 = vector.broadcast %cst_56 : f32 to vector<2x256xf32>
    %154 = arith.addf %153, %152 : vector<2x256xf32>
    %155 = arith.divf %153, %154 : vector<2x256xf32>
    %156 = vector.extract_strided_slice %143 {offsets = [0, 512], sizes = [2, 256], strides = [1, 1]} : vector<2x1024xf32> to vector<2x256xf32>
    %157 = math.tanh %156 : vector<2x256xf32>
    %158 = vector.extract_strided_slice %143 {offsets = [0, 768], sizes = [2, 256], strides = [1, 1]} : vector<2x1024xf32> to vector<2x256xf32>
    %159 = arith.negf %158 : vector<2x256xf32>
    %160 = math.exp %159 : vector<2x256xf32>
    %cst_57 = arith.constant 1.000000e+00 : f32
    %161 = vector.broadcast %cst_57 : f32 to vector<2x256xf32>
    %162 = arith.addf %161, %160 : vector<2x256xf32>
    %163 = arith.divf %161, %162 : vector<2x256xf32>
    %164 = arith.mulf %155, %124 : vector<2x256xf32>
    %165 = arith.mulf %149, %157 : vector<2x256xf32>
    %166 = arith.addf %164, %165 : vector<2x256xf32>
    %167 = math.tanh %166 : vector<2x256xf32>
    %168 = arith.mulf %163, %167 : vector<2x256xf32>
    %169 = arith.index_cast %135 : i32 to index
    %c0_58 = arith.constant 0 : index
    %c0_59 = arith.constant 0 : index
    %170 = vector.load %arg4[%169, %c0_58, %c0_59] : memref<4x2x256xf32, #tpu.memory_space<vmem>>, vector<1x2x256xf32>
    %171 = vector.shape_cast %170 : vector<1x2x256xf32> to vector<2x256xf32>
    %172 = vector.shape_cast %168 : vector<2x256xf32> to vector<1x2x256xf32>
    tpu.vector_store %arg4[%169, %c0_58, %c0_59], %172 {strides = array<i32>} : memref<4x2x256xf32, #tpu.memory_space<vmem>>, vector<1x2x256xf32>,
    %c4_i32 = arith.constant 4 : i32
    %c0_60 = arith.constant 0 : index
    %c0_61 = arith.constant 0 : index
    %173 = vector.load %arg5[%c0_60, %c0_61] : memref<2x256xf32, #tpu.memory_space<vmem>>, vector<2x256xf32>
    tpu.vector_store %arg5[%c0_60, %c0_61], %168 {strides = array<i32>} : memref<2x256xf32, #tpu.memory_space<vmem>>, vector<2x256xf32>,
    %c0_62 = arith.constant 0 : index
    %c0_63 = arith.constant 0 : index
    %174 = vector.load %arg6[%c0_62, %c0_63] : memref<2x256xf32, #tpu.memory_space<vmem>>, vector<2x256xf32>
    tpu.vector_store %arg6[%c0_62, %c0_63], %166 {strides = array<i32>} : memref<2x256xf32, #tpu.memory_space<vmem>>, vector<2x256xf32>,
    return
  }
  func.func @transform_0(%arg0: i32, %arg1: i32) -> (i32, i32, i32) {
    %c0_i32 = arith.constant 0 : i32
    %0 = arith.muli %arg0, %c0_i32 : i32
    %c2_i32 = arith.constant 2 : i32
    %1 = arith.muli %c2_i32, %arg0 : i32
    %c1_i32 = arith.constant 1 : i32
    %2 = arith.subi %c1_i32, %1 : i32
    %3 = arith.muli %2, %arg1 : i32
    %4 = arith.addi %0, %3 : i32
    %c0_i32_0 = arith.constant 0 : i32
    %c0_i32_1 = arith.constant 0 : i32
    return %4, %c0_i32_0, %arg0 : i32, i32, i32
  }
  func.func @transform_1(%arg0: i32, %arg1: i32) -> (i32, i32, i32) {
    %c0_i32 = arith.constant 0 : i32
    %c0_i32_0 = arith.constant 0 : i32
    %c0_i32_1 = arith.constant 0 : i32
    return %arg0, %c0_i32, %c0_i32_0 : i32, i32, i32
  }
  func.func @transform_2(%arg0: i32, %arg1: i32) -> (i32, i32, i32) {
    %c0_i32 = arith.constant 0 : i32
    %0 = arith.muli %arg0, %c0_i32 : i32
    %c2_i32 = arith.constant 2 : i32
    %1 = arith.muli %c2_i32, %arg0 : i32
    %c1_i32 = arith.constant 1 : i32
    %2 = arith.subi %c1_i32, %1 : i32
    %3 = arith.muli %2, %arg1 : i32
    %4 = arith.addi %0, %3 : i32
    %c0_i32_0 = arith.constant 0 : i32
    %c0_i32_1 = arith.constant 0 : i32
    return %4, %c0_i32_0, %arg0 : i32, i32, i32
  }
}

module attributes {stable_mosaic.version = 11 : i64} {
  func.func @_matmul_bias_kernel(%arg0: i32, %arg1: i32, %arg2: i32, %arg3: memref<8x512xbf16, #tpu.memory_space<vmem>>, %arg4: memref<512x128xbf16, #tpu.memory_space<vmem>>, %arg5: memref<1x128xf32, #tpu.memory_space<vmem>>, %arg6: memref<8x128xf32, #tpu.memory_space<vmem>>) attributes {dimension_semantics = [#tpu.dimension_semantics<parallel>, #tpu.dimension_semantics<parallel>, #tpu.dimension_semantics<arbitrary>], iteration_bounds = array<i64: 1, 1, 1>, scalar_prefetch = 0 : i64, scratch_operands = 0 : i64, tpu.core_type = #tpu.core_type<tc>, window_params = [{transform_indices = @transform_0, window_bounds = array<i64: 8, 512>}, {transform_indices = @transform_1, window_bounds = array<i64: 512, 128>}, {transform_indices = @transform_2, window_bounds = array<i64: 1, 128>}, {transform_indices = @transform_3, window_bounds = array<i64: 8, 128>}]} {
    %c0 = arith.constant 0 : index
    %c0_0 = arith.constant 0 : index
    %0 = vector.load %arg3[%c0, %c0_0] : memref<8x512xbf16, #tpu.memory_space<vmem>>, vector<8x512xbf16>
    %c0_1 = arith.constant 0 : index
    %c0_2 = arith.constant 0 : index
    %1 = vector.load %arg4[%c0_1, %c0_2] : memref<512x128xbf16, #tpu.memory_space<vmem>>, vector<512x128xbf16>
    %cst = arith.constant dense<0.000000e+00> : vector<8x128xf32>
    %2 = tpu.matmul %0, %1, %cst {dimension_numbers = #tpu.dot_dimension_numbers<[1], [0], [0], [1], [0, 0, 1, 1], [], []>} : vector<8x512xbf16>, vector<512x128xbf16>, vector<8x128xf32> -> vector<8x128xf32>
    %c0_3 = arith.constant 0 : index
    %c0_4 = arith.constant 0 : index
    %3 = vector.load %arg5[%c0_3, %c0_4] : memref<1x128xf32, #tpu.memory_space<vmem>>, vector<1x128xf32>
    %4 = vector.broadcast %3 : vector<1x128xf32> to vector<8x128xf32>
    %5 = arith.addf %2, %4 : vector<8x128xf32>
    %c0_5 = arith.constant 0 : index
    %c0_6 = arith.constant 0 : index
    %6 = vector.load %arg6[%c0_5, %c0_6] : memref<8x128xf32, #tpu.memory_space<vmem>>, vector<8x128xf32>
    tpu.vector_store %arg6[%c0_5, %c0_6], %5 {strides = array<i32>} : memref<8x128xf32, #tpu.memory_space<vmem>>, vector<8x128xf32>,
    return
  }
  func.func @transform_0(%arg0: i32, %arg1: i32, %arg2: i32) -> (i32, i32) {
    %c0_i32 = arith.constant 0 : i32
    return %arg0, %arg2 : i32, i32
  }
  func.func @transform_1(%arg0: i32, %arg1: i32, %arg2: i32) -> (i32, i32) {
    %c0_i32 = arith.constant 0 : i32
    return %arg2, %arg1 : i32, i32
  }
  func.func @transform_2(%arg0: i32, %arg1: i32, %arg2: i32) -> (i32, i32) {
    %c0_i32 = arith.constant 0 : i32
    %c0_i32_0 = arith.constant 0 : i32
    return %c0_i32, %arg1 : i32, i32
  }
  func.func @transform_3(%arg0: i32, %arg1: i32, %arg2: i32) -> (i32, i32) {
    %c0_i32 = arith.constant 0 : i32
    return %arg0, %arg1 : i32, i32
  }
}

</mosaic_0001>

<bundles_post_ra>
// kernel: crnn_forward.5
= control target key start
LH: loop header
LB: loop body
LE: loop exit
PB: predicated region body
PF: predicated region fallthrough
CT: control target
= control target key end

     0   :  { %8 = vsyncpa [#allocation5], 0  ;;  %s2933_s12 = smov 0   ;;  %s3527_s0 = inlined_call_operand.vmem [shape: bf16[2048,9], index: 0, kind: input, shape index: {}]   ;;  %s3528_s1 = inlined_call_operand.vmem [shape: bf16[9,64], index: 1, kind: input, shape index: {}]   ;;  %s3529_s2 = inlined_call_operand.hbm [shape: f32[1,64], index: 2, kind: input, shape index: {}]   ;;  %s3530_s3 = inlined_call_operand.vmem [shape: bf16[16,32,64], index: 3, kind: output, shape index: {}]  }
   0x1 LB: > { %s2939_s13 = sadd.s32 4294967295, %s2909_s12   ;;  %p2381_p0 = scmp.ge.s32.totalorder %s2909_s12, 1  ;;  %s2909_s12 = sphi %s2933_s12, %s14_s12  }
   0x2   : > { %p113_p1 = scmp.lt.s32.totalorder %s2909_s12, 3  ;;  %p3531_p3 = scmp.eq.s32.totalorder %s2939_s13, 0 }
   0x3   : > { %s2911_s15 = smov [#allocation4]   ;;  %s2871_s20 = scalar_lea.hbm %s3529_s2, 16 }
   0x4   : > { %p2943_p2 = pnand %p2381_p0, %p113_p1  ;;  %s129_s16 = sshll.u32 %s2911_s15, 4  ;;  %s130_s16 = int_to_ptr.vmem [resolvable:$true] %s129_s16 }
   0x5   : > { %p2872_p6 = scmp.ne.s32.totalorder %s3529_s2, %s2871_s20  ;;  %p2878_p10 = scmp.lt.u32.totalorder %s2871_s20, %s3529_s2 }
   0x6   : > { %s3533_s14 = scalar_select %p2943_p2, 1, 0 }
   0x7   : > { %p2789_p4 = pneg %p2943_p2 }
   0x9   : > { %p2952_p5 = pnand %p3531_p3, %p2789_p4 }
   0xb   : > { %p2873_p7 = pneg %p2952_p5 }
   0xd   : > { %p2874_p8 = pnand %p2873_p7, %p2872_p6 }
   0xf   : > { %p2875_p9 = pneg %p2874_p8 }
  0x11   : > { %p2880_p11 = pnand %p2878_p10, %p2875_p9 }
  0x13   : > { %2883 = shalt.err (!%p2880_p11)
}
  0x14   : > { %s2884_s25 = scalar_lea.vmem %s130_s16, 16  ;;  %s2891_s26 = scalar_lea.vmem %s130_s16, 32 }
  0x15   : > { %p2885_p12 = scmp.ne.s32.totalorder %s130_s16, %s2884_s25  ;;  %p2892_p1 = scmp.lt.s32.totalorder %s130_s16, %s130_s16 }
  0x16   : > { %p2893_p4 = scmp.lt.s32.totalorder %s2891_s26, %s2884_s25 }
  0x17   : > { %p2887_p13 = pnand %p2885_p12, %p2873_p7 }
  0x18   : > { %p2894_p3 = por %p2893_p4, %p2892_p1 }
  0x19   : > { %p2888_p0 = pneg %p2887_p13 }
  0x1b   : > { %p2895_p2 = pnand %p2894_p3, %p2888_p0 }
  0x1d   : > { %2898 = shalt.err (!%p2895_p2)
}
  0x1e   : > { %2792 = dma.hbm_to_vmem [thread:$0]  (!%p2952_p5), %s3529_s2, 16, %s130_s16, [#allocation5]  }
  0x1f   : > { %p3535_p6 = scmp.ne.s32.totalorder %s3533_s14, 0 }
  0x20   : > { %p3536_p8 = scmp.eq.s32.totalorder (!%p3535_p6), %s2939_s13, 0 }
  0x21   : > { %151 = sbr.rel (%p3535_p6) target bundleno = 430 (0x1ae), region = 32 }
  0x28   : > { %2904 = dma.done.wait (%p3536_p8), [#allocation5], 16   ;;  %p3537_p7 = pmov %p3536_p8 }
  0x29   : > { %vm845_vm0 = vcmask 1043456   ;;  %s2386_s29 = sshll.u32 %s2939_s13, 7  ;;  %vm846_vm1 = vcmask 1044480   ;;  %v2912_v0 = vmov 65535   ;;  %vm652_vm2 = vcmask 72704   ;;  %s2388_s9 = sshll.u32 %s2939_s13, 3 }
  0x2a   : > { %2906 = vsyncadd (%p3537_p7), [#allocation5], 4294967280  ;;  %p177_p3 = scmp.lt.s32.totalorder %s2386_s29, 255  ;;  %v847_v1 = vsel %vm845_vm0, 4294967295, %v2912_v0  ;;  %v2805_v3 = vld [vmem:[%s3528_s1] sm:$0x1f]  }
  0x2b   : > { %v848_v2 = vsel %vm846_vm1, %v847_v1, 0  ;;  %vm1525_vm3 = vcmask 523264   ;;  %p3181_p2 = scmp.lt.s32.totalorder %s2388_s9, 15  ;;  %vm2276_vm4 = vcmask 519168  }
  0x2c   : > { %s3540_s29 = smov (!%p177_p3, %s2386_s29), 255  ;;  %v850_v5 = vand.u32 %v2805_v3, %v848_v2 }
  0x2d   : > { %s2387_s30 = sshll.u32 %s3540_s29, 2  ;;  %s3542_s9 = smov (!%p3181_p2, %s2388_s9), 15 }
  0x2e   : > { %s2982_s6 = scalar_lea.vmem %s3527_s0, %s2387_s30  ;;  %2653 = vmatprep.subr.bf16.mxu0 %v850_v5  ;;  %2783 = vmatprep.subr.bf16.mxu1 %v850_v5  ;;  %s2555_s11 = sshll.u32 %s3542_s9, 4 }
  0x2f   : > { %v2806_v4 = vld [vmem:[%s2982_s6] sm:$0xff]   ;;  %v2808_v7 = vld [vmem:[%s2982_s6 + $0x8] sm:$0xff]   ;;  %2654 = vmatpush3.bf16.msra.mxu0 %v850_v5  ;;  %2784 = vmatpush3.bf16.msra.mxu1 %v850_v5  ;;  %v2810_v9 = vld [vmem:[%s2982_s6 + $0x10] sm:$0xff]   ;;  %s3235_s15 = scalar_lea.vmem %s3530_s3, %s2555_s11 }
  0x30   : > { %v2807_v6 = vld [vmem:[%s2982_s6 + $0x100] sm:$0xff]   ;;  %2655 = vmatprep.mubr.msk.bf16.mxu0 %vm652_vm2, %v2806_v4  ;;  %v2809_v8 = vld [vmem:[%s2982_s6 + $0x108] sm:$0xff]   ;;  %v2811_v10 = vld [vmem:[%s2982_s6 + $0x110] sm:$0xff]  }
  0x31   : > { %2719 = vmatprep.mubr.msk.bf16.mxu1 %vm652_vm2, %v2807_v6  ;;  %v2812_v11 = vld [vmem:[%s2982_s6 + $0x18] sm:$0xff]   ;;  %v2814_v13 = vld [vmem:[%s2982_s6 + $0x20] sm:$0xff]   ;;  %v2816_v15 = vld [vmem:[%s2982_s6 + $0x28] sm:$0xff]  }
  0x32   : > { %2656 = vmatmul.mubr.msk.bf16.vlgmr.msra.gmra.mrb[0].mxu0 %vm652_vm2, %v2808_v7  ;;  %2720 = vmatmul.mubr.msk.bf16.vlgmr.msra.gmra.mrb[0].mxu1 %vm652_vm2, %v2809_v8  ;;  %v2813_v12 = vld [vmem:[%s2982_s6 + $0x118] sm:$0xff]   ;;  %v2815_v14 = vld [vmem:[%s2982_s6 + $0x120] sm:$0xff]   ;;  %v2817_v16 = vld [vmem:[%s2982_s6 + $0x128] sm:$0xff]  }
  0x33   : > { %2659 = vmatprep.mubr.msk.bf16.mxu0 %vm652_vm2, %v2810_v9  ;;  %2723 = vmatprep.mubr.msk.bf16.mxu1 %vm652_vm2, %v2811_v10  ;;  %v2818_v17 = vld [vmem:[%s2982_s6 + $0x30] sm:$0xff]   ;;  %v2820_v19 = vld [vmem:[%s2982_s6 + $0x38] sm:$0xff]   ;;  %v2822_v21 = vld [vmem:[%s2982_s6 + $0x40] sm:$0xff]  }
  0x34   : > { %v2819_v18 = vld [vmem:[%s2982_s6 + $0x130] sm:$0xff]   ;;  %v2821_v20 = vld [vmem:[%s2982_s6 + $0x138] sm:$0xff]   ;;  %v2823_v22 = vld [vmem:[%s2982_s6 + $0x140] sm:$0xff]  }
  0x35   : > { %v2824_v23 = vld [vmem:[%s2982_s6 + $0x48] sm:$0xff]   ;;  %v2826_v25 = vld [vmem:[%s2982_s6 + $0x50] sm:$0xff]   ;;  %v2828_v27 = vld [vmem:[%s2982_s6 + $0x58] sm:$0xff]  }
  0x36   : > { %v2825_v24 = vld [vmem:[%s2982_s6 + $0x148] sm:$0xff]   ;;  %v2827_v26 = vld [vmem:[%s2982_s6 + $0x150] sm:$0xff]   ;;  %v2829_v28 = vld [vmem:[%s2982_s6 + $0x158] sm:$0xff]  }
  0x37   : > { %v2830_v29 = vld [vmem:[%s2982_s6 + $0x60] sm:$0xff]   ;;  %v2832_v31 = vld [vmem:[%s2982_s6 + $0x68] sm:$0xff]   ;;  %v2834_v33 = vld [vmem:[%s2982_s6 + $0x70] sm:$0xff]  }
  0x38   : > { %v2831_v30 = vld [vmem:[%s2982_s6 + $0x160] sm:$0xff]   ;;  %v2833_v32 = vld [vmem:[%s2982_s6 + $0x168] sm:$0xff]   ;;  %v2835_v34 = vld [vmem:[%s2982_s6 + $0x170] sm:$0xff]  }
  0x39   : > { %v2836_v35 = vld [vmem:[%s2982_s6 + $0x78] sm:$0xff]   ;;  %v2838_v37 = vld [vmem:[%s2982_s6 + $0x80] sm:$0xff]   ;;  %v2840_v39 = vld [vmem:[%s2982_s6 + $0x88] sm:$0xff]  }
  0x3a   : > { %2660 = vmatmul.mubr.msk.bf16.gmra.mrb[4].mxu0 %vm652_vm2, %v2812_v11  ;;  %2724 = vmatmul.mubr.msk.bf16.gmra.mrb[4].mxu1 %vm652_vm2, %v2813_v12  ;;  %v2837_v36 = vld [vmem:[%s2982_s6 + $0x178] sm:$0xff]   ;;  %v2839_v38 = vld [vmem:[%s2982_s6 + $0x180] sm:$0xff]   ;;  %v2841_v40 = vld [vmem:[%s2982_s6 + $0x188] sm:$0xff]  }
  0x3b   : > { %2663 = vmatprep.mubr.msk.bf16.mxu0 %vm652_vm2, %v2814_v13  ;;  %2727 = vmatprep.mubr.msk.bf16.mxu1 %vm652_vm2, %v2815_v14  ;;  %v2842_v41 = vld [vmem:[%s2982_s6 + $0x90] sm:$0xff]   ;;  %v2844_v43 = vld [vmem:[%s2982_s6 + $0x98] sm:$0xff]   ;;  %v2846_v45 = vld [vmem:[%s2982_s6 + $0xa0] sm:$0xff]  }
  0x3c   : > { %v2843_v42 = vld [vmem:[%s2982_s6 + $0x190] sm:$0xff]   ;;  %v2845_v44 = vld [vmem:[%s2982_s6 + $0x198] sm:$0xff]   ;;  %v2847_v46 = vld [vmem:[%s2982_s6 + $0x1a0] sm:$0xff]  }
  0x3d   : > { %v2848_v47 = vld [vmem:[%s2982_s6 + $0xa8] sm:$0xff]   ;;  %v2850_v49 = vld [vmem:[%s2982_s6 + $0xb0] sm:$0xff]   ;;  %v2852_v51 = vld [vmem:[%s2982_s6 + $0xb8] sm:$0xff]  }
  0x3e   : > { %v2849_v48 = vld [vmem:[%s2982_s6 + $0x1a8] sm:$0xff]   ;;  %v2851_v50 = vld [vmem:[%s2982_s6 + $0x1b0] sm:$0xff]   ;;  %v2853_v52 = vld [vmem:[%s2982_s6 + $0x1b8] sm:$0xff]  }
  0x3f   : > { %v2854_v53 = vld [vmem:[%s2982_s6 + $0xc0] sm:$0xff]   ;;  %v2856_v55 = vld [vmem:[%s2982_s6 + $0xc8] sm:$0xff]   ;;  %v2858_v57 = vld [vmem:[%s2982_s6 + $0xd0] sm:$0xff]  }
  0x40   : > { %v2855_v54 = vld [vmem:[%s2982_s6 + $0x1c0] sm:$0xff]   ;;  %v2857_v56 = vld [vmem:[%s2982_s6 + $0x1c8] sm:$0xff]   ;;  %v2859_v58 = vld [vmem:[%s2982_s6 + $0x1d0] sm:$0xff]  }
  0x41   : > { %v2860_v59 = vld [vmem:[%s2982_s6 + $0xd8] sm:$0xff]   ;;  %v2862_v61 = vld [vmem:[%s2982_s6 + $0xe0] sm:$0xff]   ;;  %v2864_v63 = vld [vmem:[%s2982_s6 + $0xe8] sm:$0xff]  }
  0x42   : > { %2664 = vmatmul.mubr.msk.bf16.gmra.mrb[8].mxu0 %vm652_vm2, %v2816_v15  ;;  %2728 = vmatmul.mubr.msk.bf16.gmra.mrb[8].mxu1 %vm652_vm2, %v2817_v16  ;;  %v2861_v60 = vld [vmem:[%s2982_s6 + $0x1d8] sm:$0xff]   ;;  %v2863_v62 = vld [vmem:[%s2982_s6 + $0x1e0] sm:$0xff]   ;;  %v2865_v0 = vld [vmem:[%s2982_s6 + $0x1e8] sm:$0xff]  }
  0x43   : > { %2667 = vmatprep.mubr.msk.bf16.mxu0 %vm652_vm2, %v2818_v17  ;;  %2731 = vmatprep.mubr.msk.bf16.mxu1 %vm652_vm2, %v2819_v18  ;;  %v2866_v1 = vld [vmem:[%s2982_s6 + $0xf0] sm:$0xff]   ;;  %v2868_v3 = vld [vmem:[%s2982_s6 + $0xf8] sm:$0xff]   ;;  %v3115_v5 = vld [vmem:[#allocation4] ss:$0 sm:$0xff] }
  0x44   : > { %v2867_v2 = vld [vmem:[%s2982_s6 + $0x1f0] sm:$0xff]   ;;  %v2869_v4 = vld [vmem:[%s2982_s6 + $0x1f8] sm:$0xff]  }
  0x4a   : > { %2668 = vmatmul.mubr.msk.bf16.gmra.mrb[12].mxu0 %vm652_vm2, %v2820_v19  ;;  %2732 = vmatmul.mubr.msk.bf16.gmra.mrb[12].mxu1 %vm652_vm2, %v2821_v20 }
  0x4b   : > { %2671 = vmatprep.mubr.msk.bf16.mxu0 %vm652_vm2, %v2822_v21  ;;  %2735 = vmatprep.mubr.msk.bf16.mxu1 %vm652_vm2, %v2823_v22 }
  0x52   : > { %2672 = vmatmul.mubr.msk.bf16.gmra.mrb[16].mxu0 %vm652_vm2, %v2824_v23  ;;  %2736 = vmatmul.mubr.msk.bf16.gmra.mrb[16].mxu1 %vm652_vm2, %v2825_v24 }
  0x53   : > { %2675 = vmatprep.mubr.msk.bf16.mxu0 %vm652_vm2, %v2826_v25  ;;  %2739 = vmatprep.mubr.msk.bf16.mxu1 %vm652_vm2, %v2827_v26 }
  0x5a   : > { %2676 = vmatmul.mubr.msk.bf16.gmra.mrb[20].mxu0 %vm652_vm2, %v2828_v27  ;;  %2740 = vmatmul.mubr.msk.bf16.gmra.mrb[20].mxu1 %vm652_vm2, %v2829_v28 }
  0x5b   : > { %2679 = vmatprep.mubr.msk.bf16.mxu0 %vm652_vm2, %v2830_v29  ;;  %2743 = vmatprep.mubr.msk.bf16.mxu1 %vm652_vm2, %v2831_v30 }
  0x62   : > { %2680 = vmatmul.mubr.msk.bf16.gmra.mrb[24].mxu0 %vm652_vm2, %v2832_v31  ;;  %2744 = vmatmul.mubr.msk.bf16.gmra.mrb[24].mxu1 %vm652_vm2, %v2833_v32 }
  0x63   : > { %2683 = vmatprep.mubr.msk.bf16.mxu0 %vm652_vm2, %v2834_v33  ;;  %2747 = vmatprep.mubr.msk.bf16.mxu1 %vm652_vm2, %v2835_v34 }
  0x6a   : > { %2684 = vmatmul.mubr.msk.bf16.gmra.mrb[28].mxu0 %vm652_vm2, %v2836_v35  ;;  %2748 = vmatmul.mubr.msk.bf16.gmra.mrb[28].mxu1 %vm652_vm2, %v2837_v36 }
  0x6b   : > { %2687 = vmatprep.mubr.msk.bf16.mxu0 %vm652_vm2, %v2838_v37  ;;  %2751 = vmatprep.mubr.msk.bf16.mxu1 %vm652_vm2, %v2839_v38 }
  0x72   : > { %2688 = vmatmul.mubr.msk.bf16.gmra.mrb[32].mxu0 %vm652_vm2, %v2840_v39  ;;  %2752 = vmatmul.mubr.msk.bf16.gmra.mrb[32].mxu1 %vm652_vm2, %v2841_v40 }
  0x73   : > { %2691 = vmatprep.mubr.msk.bf16.mxu0 %vm652_vm2, %v2842_v41  ;;  %2755 = vmatprep.mubr.msk.bf16.mxu1 %vm652_vm2, %v2843_v42 }
  0x7a   : > { %2692 = vmatmul.mubr.msk.bf16.gmra.mrb[36].mxu0 %vm652_vm2, %v2844_v43  ;;  %2756 = vmatmul.mubr.msk.bf16.gmra.mrb[36].mxu1 %vm652_vm2, %v2845_v44 }
  0x7b   : > { %2695 = vmatprep.mubr.msk.bf16.mxu0 %vm652_vm2, %v2846_v45  ;;  %2759 = vmatprep.mubr.msk.bf16.mxu1 %vm652_vm2, %v2847_v46 }
  0x82   : > { %2696 = vmatmul.mubr.msk.bf16.gmra.mrb[40].mxu0 %vm652_vm2, %v2848_v47  ;;  %2760 = vmatmul.mubr.msk.bf16.gmra.mrb[40].mxu1 %vm652_vm2, %v2849_v48 }
  0x83   : > { %2699 = vmatprep.mubr.msk.bf16.mxu0 %vm652_vm2, %v2850_v49  ;;  %2763 = vmatprep.mubr.msk.bf16.mxu1 %vm652_vm2, %v2851_v50 }
  0x8a   : > { %2700 = vmatmul.mubr.msk.bf16.gmra.mrb[44].mxu0 %vm652_vm2, %v2852_v51  ;;  %2764 = vmatmul.mubr.msk.bf16.gmra.mrb[44].mxu1 %vm652_vm2, %v2853_v52 }
  0x8b   : > { %2703 = vmatprep.mubr.msk.bf16.mxu0 %vm652_vm2, %v2854_v53  ;;  %2767 = vmatprep.mubr.msk.bf16.mxu1 %vm652_vm2, %v2855_v54 }
  0x92   : > { %2704 = vmatmul.mubr.msk.bf16.gmra.mrb[48].mxu0 %vm652_vm2, %v2856_v55  ;;  %2768 = vmatmul.mubr.msk.bf16.gmra.mrb[48].mxu1 %vm652_vm2, %v2857_v56 }
  0x93   : > { %2707 = vmatprep.mubr.msk.bf16.mxu0 %vm652_vm2, %v2858_v57  ;;  %2771 = vmatprep.mubr.msk.bf16.mxu1 %vm652_vm2, %v2859_v58 }
  0x9a   : > { %2708 = vmatmul.mubr.msk.bf16.gmra.mrb[52].mxu0 %vm652_vm2, %v2860_v59  ;;  %2772 = vmatmul.mubr.msk.bf16.gmra.mrb[52].mxu1 %vm652_vm2, %v2861_v60 }
  0x9b   : > { %2711 = vmatprep.mubr.msk.bf16.mxu0 %vm652_vm2, %v2862_v61  ;;  %2775 = vmatprep.mubr.msk.bf16.mxu1 %vm652_vm2, %v2863_v62 }
  0xa2   : > { %2712 = vmatmul.mubr.msk.bf16.gmra.mrb[56].mxu0 %vm652_vm2, %v2864_v63  ;;  %2776 = vmatmul.mubr.msk.bf16.gmra.mrb[56].mxu1 %vm652_vm2, %v2865_v0 }
  0xa3   : > { %2715 = vmatprep.mubr.msk.bf16.mxu0 %vm652_vm2, %v2866_v1  ;;  %2779 = vmatprep.mubr.msk.bf16.mxu1 %vm652_vm2, %v2867_v2 }
  0xaa   : > { %2716 = vmatmul.mubr.msk.bf16.gmra.mrb[60].mxu0 %vm652_vm2, %v2868_v3  ;;  %2780 = vmatmul.mubr.msk.bf16.gmra.mrb[60].mxu1 %vm652_vm2, %v2869_v4 }
 0x105   : > { %v2657_v6 = vpop.f32.mrb[0].mxu0  ;;  %v2721_v7 = vpop.f32.mrb[0].mxu1 }
 0x106   : > { %v895_v8 = vadd.f32 %v2657_v6, %v3115_v5  ;;  %v1151_v9 = vadd.f32 %v2721_v7, %v3115_v5  ;;  %v886_v10 = vpop.f32.mrb[1].mxu0  ;;  %v1142_v11 = vpop.f32.mrb[1].mxu1 }
 0x107   : > { %v887_v12 = vadd.f32 %v3115_v5, %v886_v10  ;;  %v1143_v13 = vadd.f32 %v3115_v5, %v1142_v11  ;;  %v2658_v14 = vpop.f32.mrb[2].mxu0  ;;  %v2722_v15 = vpop.f32.mrb[2].mxu1 }
 0x108   : > { %v1399_v16 = vmax.f32 %v895_v8, 0.0  ;;  %v1463_v17 = vmax.f32 %v1151_v9, 0.0  ;;  %v898_v18 = vadd.f32 %v2658_v14, %v3115_v5  ;;  %v1154_v19 = vadd.f32 %v2722_v15, %v3115_v5  ;;  %v889_v20 = vpop.f32.mrb[3].mxu0  ;;  %v1145_v21 = vpop.f32.mrb[3].mxu1 }
 0x109   : > { %v1397_v22 = vmax.f32 %v887_v12, 0.0  ;;  %v1461_v23 = vmax.f32 %v1143_v13, 0.0  ;;  %v890_v24 = vadd.f32 %v3115_v5, %v889_v20  ;;  %v1146_v25 = vadd.f32 %v3115_v5, %v1145_v21 }
 0x10a   : > { %1528 = vst.msk [vmem:[#allocation2 + $0x10] sm:$0xff] %vm1525_vm3, %v1399_v16  ;;  %1592 = vst.msk [vmem:[#allocation2 + $0x210] sm:$0xff] %vm1525_vm3, %v1463_v17  ;;  %v1400_v26 = vmax.f32 %v898_v18, 0.0  ;;  %v1464_v27 = vmax.f32 %v1154_v19, 0.0 }
 0x10b   : > { %1526 = vst.msk [vmem:[#allocation2] sm:$0xff] %vm1525_vm3, %v1397_v22  ;;  %1590 = vst.msk [vmem:[#allocation2 + $0x200] sm:$0xff] %vm1525_vm3, %v1461_v23  ;;  %v1398_v28 = vmax.f32 %v890_v24, 0.0  ;;  %v1462_v29 = vmax.f32 %v1146_v25, 0.0 }
 0x10c   : > { %1529 = vst.msk [vmem:[#allocation2 + $0x18] sm:$0xff] %vm1525_vm3, %v1400_v26  ;;  %1593 = vst.msk [vmem:[#allocation2 + $0x218] sm:$0xff] %vm1525_vm3, %v1464_v27 }
 0x10d   : > { %1527 = vst.msk [vmem:[#allocation2 + $0x8] sm:$0xff] %vm1525_vm3, %v1398_v28  ;;  %1591 = vst.msk [vmem:[#allocation2 + $0x208] sm:$0xff] %vm1525_vm3, %v1462_v29  ;;  %v2661_v30 = vpop.f32.mrb[4].mxu0  ;;  %v2725_v31 = vpop.f32.mrb[4].mxu1 }
 0x10e   : > { %v911_v32 = vadd.f32 %v2661_v30, %v3115_v5  ;;  %v1167_v33 = vadd.f32 %v2725_v31, %v3115_v5  ;;  %v902_v34 = vpop.f32.mrb[5].mxu0  ;;  %v1158_v35 = vpop.f32.mrb[5].mxu1 }
 0x10f   : > { %v903_v36 = vadd.f32 %v3115_v5, %v902_v34  ;;  %v1159_v37 = vadd.f32 %v3115_v5, %v1158_v35  ;;  %v2662_v38 = vpop.f32.mrb[6].mxu0  ;;  %v2726_v39 = vpop.f32.mrb[6].mxu1 }
 0x110   : > { %v1403_v40 = vmax.f32 %v911_v32, 0.0  ;;  %v1467_v41 = vmax.f32 %v1167_v33, 0.0  ;;  %v914_v42 = vadd.f32 %v2662_v38, %v3115_v5  ;;  %v1170_v43 = vadd.f32 %v2726_v39, %v3115_v5  ;;  %v905_v44 = vpop.f32.mrb[7].mxu0  ;;  %v1161_v45 = vpop.f32.mrb[7].mxu1 }
 0x111   : > { %v1401_v46 = vmax.f32 %v903_v36, 0.0  ;;  %v1465_v47 = vmax.f32 %v1159_v37, 0.0  ;;  %v906_v48 = vadd.f32 %v3115_v5, %v905_v44  ;;  %v1162_v49 = vadd.f32 %v3115_v5, %v1161_v45 }
 0x112   : > { %1532 = vst.msk [vmem:[#allocation2 + $0x30] sm:$0xff] %vm1525_vm3, %v1403_v40  ;;  %1596 = vst.msk [vmem:[#allocation2 + $0x230] sm:$0xff] %vm1525_vm3, %v1467_v41  ;;  %v1404_v50 = vmax.f32 %v914_v42, 0.0  ;;  %v1468_v51 = vmax.f32 %v1170_v43, 0.0 }
 0x113   : > { %v1656_v52 = vld [vmem:[#allocation2 + $0x10] ss:$2 sm:$0xff]  ;;  %v1784_v53 = vld [vmem:[#allocation2 + $0x11] ss:$2 sm:$0xff]  ;;  %1530 = vst.msk [vmem:[#allocation2 + $0x20] sm:$0xff] %vm1525_vm3, %v1401_v46  ;;  %1594 = vst.msk [vmem:[#allocation2 + $0x220] sm:$0xff] %vm1525_vm3, %v1465_v47 }
 0x114   : > { %v1720_v54 = vld [vmem:[#allocation2 + $0x210] ss:$2 sm:$0xff]  ;;  %v1910_v55 = vmax.f32 %v1656_v52, %v1784_v53  ;;  %v1848_v56 = vld [vmem:[#allocation2 + $0x211] ss:$2 sm:$0xff]  ;;  %v1654_v57 = vld [vmem:[#allocation2] ss:$2 sm:$0xff] }
 0x115   : > { %v1782_v58 = vld [vmem:[#allocation2 + $0x1] ss:$2 sm:$0xff]  ;;  %1533 = vst.msk [vmem:[#allocation2 + $0x38] sm:$0xff] %vm1525_vm3, %v1404_v50  ;;  %1597 = vst.msk [vmem:[#allocation2 + $0x238] sm:$0xff] %vm1525_vm3, %v1468_v51  ;;  %v1942_v59 = vmax.f32 %v1720_v54, %v1848_v56  ;;  %v1718_v61 = vld [vmem:[#allocation2 + $0x200] ss:$2 sm:$0xff] }
 0x116   : > { %v1909_v60 = vmax.f32 %v1654_v57, %v1782_v58  ;;  %v1846_v62 = vld [vmem:[#allocation2 + $0x201] ss:$2 sm:$0xff]  ;;  %v1402_v63 = vmax.f32 %v906_v48, 0.0  ;;  %v1466_v0 = vmax.f32 %v1162_v49, 0.0  ;;  %1974 = vst.msk [vmem:[#allocation3 + $0x8] sm:$0xff] %vm1525_vm3, %v1910_v55  ;;  %v2665_v2 = vpop.f32.mrb[8].mxu0 }
 0x117   : > { %v1941_v1 = vmax.f32 %v1718_v61, %v1846_v62  ;;  %v2729_v3 = vpop.f32.mrb[8].mxu1  ;;  %2014 = vst.msk [vmem:[#allocation3 + $0x108] sm:$0xff] %vm1525_vm3, %v1942_v59  ;;  %v927_v4 = vadd.f32 %v2665_v2, %v3115_v5  ;;  %v918_v7 = vpop.f32.mrb[9].mxu0 }
 0x118   : > { %1973 = vst.msk [vmem:[#allocation3] sm:$0xff] %vm1525_vm3, %v1909_v60  ;;  %1531 = vst.msk [vmem:[#allocation2 + $0x28] sm:$0xff] %vm1525_vm3, %v1402_v63  ;;  %v1183_v6 = vadd.f32 %v2729_v3, %v3115_v5  ;;  %v1174_v8 = vpop.f32.mrb[9].mxu1  ;;  %v919_v9 = vadd.f32 %v3115_v5, %v918_v7  ;;  %v2666_v11 = vpop.f32.mrb[10].mxu0 }
 0x119   : > { %1595 = vst.msk [vmem:[#allocation2 + $0x228] sm:$0xff] %vm1525_vm3, %v1466_v0  ;;  %2013 = vst.msk [vmem:[#allocation3 + $0x100] sm:$0xff] %vm1525_vm3, %v1941_v1  ;;  %v1175_v10 = vadd.f32 %v3115_v5, %v1174_v8  ;;  %v2730_v12 = vpop.f32.mrb[10].mxu1  ;;  %v1407_v13 = vmax.f32 %v927_v4, 0.0  ;;  %v930_v15 = vadd.f32 %v2666_v11, %v3115_v5  ;;  %v921_v17 = vpop.f32.mrb[11].mxu0 }
 0x11a   : > { %v1471_v14 = vmax.f32 %v1183_v6, 0.0  ;;  %v1186_v16 = vadd.f32 %v2730_v12, %v3115_v5  ;;  %v1177_v18 = vpop.f32.mrb[11].mxu1  ;;  %v1405_v19 = vmax.f32 %v919_v9, 0.0  ;;  %v922_v21 = vadd.f32 %v3115_v5, %v921_v17 }
 0x11b   : > { %v1469_v20 = vmax.f32 %v1175_v10, 0.0  ;;  %v1178_v22 = vadd.f32 %v3115_v5, %v1177_v18  ;;  %1536 = vst.msk [vmem:[#allocation2 + $0x50] sm:$0xff] %vm1525_vm3, %v1407_v13  ;;  %v1408_v28 = vmax.f32 %v930_v15, 0.0 }
 0x11c   : > { %v1660_v23 = vld [vmem:[#allocation2 + $0x30] ss:$2 sm:$0xff]  ;;  %v1788_v24 = vld [vmem:[#allocation2 + $0x31] ss:$2 sm:$0xff]  ;;  %1600 = vst.msk [vmem:[#allocation2 + $0x250] sm:$0xff] %vm1525_vm3, %v1471_v14  ;;  %1534 = vst.msk [vmem:[#allocation2 + $0x40] sm:$0xff] %vm1525_vm3, %v1405_v19 }
 0x11d   : > { %v1724_v25 = vld [vmem:[#allocation2 + $0x230] ss:$2 sm:$0xff]  ;;  %v1912_v26 = vmax.f32 %v1660_v23, %v1788_v24  ;;  %v1852_v27 = vld [vmem:[#allocation2 + $0x231] ss:$2 sm:$0xff]  ;;  %1598 = vst.msk [vmem:[#allocation2 + $0x240] sm:$0xff] %vm1525_vm3, %v1469_v20  ;;  %v1472_v29 = vmax.f32 %v1186_v16, 0.0 }
 0x11e   : > { %v1406_v30 = vmax.f32 %v922_v21, 0.0  ;;  %v1944_v31 = vmax.f32 %v1724_v25, %v1852_v27  ;;  %v1470_v32 = vmax.f32 %v1178_v22, 0.0  ;;  %v2669_v33 = vpop.f32.mrb[12].mxu0  ;;  %v2733_v34 = vpop.f32.mrb[12].mxu1  ;;  %1537 = vst.msk [vmem:[#allocation2 + $0x58] sm:$0xff] %vm1525_vm3, %v1408_v28 }
 0x11f   : > { %1976 = vst.msk [vmem:[#allocation3 + $0x18] sm:$0xff] %vm1525_vm3, %v1912_v26  ;;  %v1658_v35 = vld [vmem:[#allocation2 + $0x20] ss:$2 sm:$0xff]  ;;  %1601 = vst.msk [vmem:[#allocation2 + $0x258] sm:$0xff] %vm1525_vm3, %v1472_v29  ;;  %v943_v36 = vadd.f32 %v2669_v33, %v3115_v5  ;;  %v1199_v37 = vadd.f32 %v2733_v34, %v3115_v5  ;;  %v934_v38 = vpop.f32.mrb[13].mxu0  ;;  %v1190_v39 = vpop.f32.mrb[13].mxu1 }
 0x120   : > { %1535 = vst.msk [vmem:[#allocation2 + $0x48] sm:$0xff] %vm1525_vm3, %v1406_v30  ;;  %2016 = vst.msk [vmem:[#allocation3 + $0x118] sm:$0xff] %vm1525_vm3, %v1944_v31  ;;  %v1786_v40 = vld [vmem:[#allocation2 + $0x21] ss:$2 sm:$0xff]  ;;  %v1722_v41 = vld [vmem:[#allocation2 + $0x220] ss:$2 sm:$0xff]  ;;  %v935_v42 = vadd.f32 %v3115_v5, %v934_v38  ;;  %v1191_v43 = vadd.f32 %v3115_v5, %v1190_v39 }
 0x121   : > { %1599 = vst.msk [vmem:[#allocation2 + $0x248] sm:$0xff] %vm1525_vm3, %v1470_v32  ;;  %v2670_v44 = vpop.f32.mrb[14].mxu0  ;;  %v1911_v45 = vmax.f32 %v1658_v35, %v1786_v40  ;;  %v1850_v46 = vld [vmem:[#allocation2 + $0x221] ss:$2 sm:$0xff]  ;;  %v1411_v47 = vmax.f32 %v943_v36, 0.0  ;;  %v1475_v48 = vmax.f32 %v1199_v37, 0.0 }
 0x122   : > { %v946_v49 = vadd.f32 %v2670_v44, %v3115_v5  ;;  %v2734_v50 = vpop.f32.mrb[14].mxu1  ;;  %v937_v51 = vpop.f32.mrb[15].mxu0  ;;  %v1943_v52 = vmax.f32 %v1722_v41, %v1850_v46  ;;  %v1409_v53 = vmax.f32 %v935_v42, 0.0  ;;  %v1473_v54 = vmax.f32 %v1191_v43, 0.0 }
 0x123   : > { %v1202_v55 = vadd.f32 %v2734_v50, %v3115_v5  ;;  %v1193_v56 = vpop.f32.mrb[15].mxu1  ;;  %1975 = vst.msk [vmem:[#allocation3 + $0x10] sm:$0xff] %vm1525_vm3, %v1911_v45  ;;  %1540 = vst.msk [vmem:[#allocation2 + $0x70] sm:$0xff] %vm1525_vm3, %v1411_v47  ;;  %v938_v58 = vadd.f32 %v3115_v5, %v937_v51 }
 0x124   : > { %1604 = vst.msk [vmem:[#allocation2 + $0x270] sm:$0xff] %vm1525_vm3, %v1475_v48  ;;  %v1412_v57 = vmax.f32 %v946_v49, 0.0  ;;  %v1194_v59 = vadd.f32 %v3115_v5, %v1193_v56  ;;  %2015 = vst.msk [vmem:[#allocation3 + $0x110] sm:$0xff] %vm1525_vm3, %v1943_v52  ;;  %v2053_v49 = vld [vmem:[#allocation3 + $0x8] sm:$0xff] }
 0x125   : > { %1538 = vst.msk [vmem:[#allocation2 + $0x60] sm:$0xff] %vm1525_vm3, %v1409_v53  ;;  %1602 = vst.msk [vmem:[#allocation2 + $0x260] sm:$0xff] %vm1525_vm3, %v1473_v54  ;;  %v1476_v60 = vmax.f32 %v1202_v55, 0.0  ;;  %v1410_v61 = vmax.f32 %v938_v58, 0.0  ;;  %v1664_v63 = vld [vmem:[#allocation2 + $0x50] ss:$2 sm:$0xff] }
 0x126   : > { %1541 = vst.msk [vmem:[#allocation2 + $0x78] sm:$0xff] %vm1525_vm3, %v1412_v57  ;;  %v1474_v62 = vmax.f32 %v1194_v59, 0.0  ;;  %v1792_v0 = vld [vmem:[#allocation2 + $0x51] ss:$2 sm:$0xff]  ;;  %v2673_v1 = vpop.f32.mrb[16].mxu0  ;;  %v2737_v7 = vpop.f32.mrb[16].mxu1 }
 0x127   : > { %1605 = vst.msk [vmem:[#allocation2 + $0x278] sm:$0xff] %vm1525_vm3, %v1476_v60  ;;  %v1914_v2 = vmax.f32 %v1664_v63, %v1792_v0  ;;  %v1728_v3 = vld [vmem:[#allocation2 + $0x250] ss:$2 sm:$0xff]  ;;  %v1856_v4 = vld [vmem:[#allocation2 + $0x251] ss:$2 sm:$0xff]  ;;  %1539 = vst.msk [vmem:[#allocation2 + $0x68] sm:$0xff] %vm1525_vm3, %v1410_v61  ;;  %v959_v6 = vadd.f32 %v2673_v1, %v3115_v5  ;;  %v1215_v12 = vadd.f32 %v2737_v7, %v3115_v5 }
 0x128   : > { %1603 = vst.msk [vmem:[#allocation2 + $0x268] sm:$0xff] %vm1525_vm3, %v1474_v62  ;;  %v1946_v8 = vmax.f32 %v1728_v3, %v1856_v4  ;;  %v1662_v9 = vld [vmem:[#allocation2 + $0x40] ss:$2 sm:$0xff]  ;;  %v1790_v10 = vld [vmem:[#allocation2 + $0x41] ss:$2 sm:$0xff]  ;;  %v950_v16 = vpop.f32.mrb[17].mxu0 }
 0x129   : > { %v1726_v11 = vld [vmem:[#allocation2 + $0x240] ss:$2 sm:$0xff]  ;;  %1979 = vst.msk [vmem:[#allocation3 + $0x28] sm:$0xff] %vm1525_vm3, %v1914_v2  ;;  %v1913_v13 = vmax.f32 %v1662_v9, %v1790_v10  ;;  %v1854_v14 = vld [vmem:[#allocation2 + $0x241] ss:$2 sm:$0xff]  ;;  %v1415_v15 = vmax.f32 %v959_v6, 0.0  ;;  %v951_v20 = vadd.f32 %v3115_v5, %v950_v16 }
 0x12a   : > { %v1206_v17 = vpop.f32.mrb[17].mxu1  ;;  %2019 = vst.msk [vmem:[#allocation3 + $0x128] sm:$0xff] %vm1525_vm3, %v1946_v8  ;;  %v1945_v18 = vmax.f32 %v1726_v11, %v1854_v14  ;;  %v1479_v19 = vmax.f32 %v1215_v12, 0.0  ;;  %v2674_v22 = vpop.f32.mrb[18].mxu0  ;;  %v2069_v56 = vld [vmem:[#allocation3 + $0x108] sm:$0xff]  ;;  %v2052_v63 = vld [vmem:[#allocation3] sm:$0xff] }
 0x12b   : > { %v1207_v21 = vadd.f32 %v3115_v5, %v1206_v17  ;;  %v2738_v23 = vpop.f32.mrb[18].mxu1  ;;  %1978 = vst.msk [vmem:[#allocation3 + $0x20] sm:$0xff] %vm1525_vm3, %v1913_v13  ;;  %1544 = vst.msk [vmem:[#allocation2 + $0x90] sm:$0xff] %vm1525_vm3, %v1415_v15  ;;  %v962_v24 = vadd.f32 %v2674_v22, %v3115_v5  ;;  %v953_v26 = vpop.f32.mrb[19].mxu0  ;;  %v1413_v30 = vmax.f32 %v951_v20, 0.0  ;;  %v2068_v8 = vld [vmem:[#allocation3 + $0x100] sm:$0xff] }
 0x12c   : > { %v1218_v25 = vadd.f32 %v2738_v23, %v3115_v5  ;;  %v1209_v27 = vpop.f32.mrb[19].mxu1  ;;  %2018 = vst.msk [vmem:[#allocation3 + $0x120] sm:$0xff] %vm1525_vm3, %v1945_v18  ;;  %1608 = vst.msk [vmem:[#allocation2 + $0x290] sm:$0xff] %vm1525_vm3, %v1479_v19  ;;  %v954_v32 = vadd.f32 %v3115_v5, %v953_v26  ;;  %v2055_v18 = vld [vmem:[#allocation3 + $0x18] sm:$0xff]  ;;  %v2054_v23 = vld [vmem:[#allocation3 + $0x10] sm:$0xff] }
 0x12d   : > { %v1668_v28 = vld [vmem:[#allocation2 + $0x70] ss:$2 sm:$0xff]  ;;  %v1796_v29 = vld [vmem:[#allocation2 + $0x71] ss:$2 sm:$0xff]  ;;  %v1477_v31 = vmax.f32 %v1207_v21, 0.0  ;;  %v1210_v33 = vadd.f32 %v3115_v5, %v1209_v27  ;;  %v1416_v37 = vmax.f32 %v962_v24, 0.0 }
 0x12e   : > { %v1916_v34 = vmax.f32 %v1668_v28, %v1796_v29  ;;  %v1732_v35 = vld [vmem:[#allocation2 + $0x270] ss:$2 sm:$0xff]  ;;  %v1860_v36 = vld [vmem:[#allocation2 + $0x271] ss:$2 sm:$0xff]  ;;  %v1480_v38 = vmax.f32 %v1218_v25, 0.0  ;;  %1542 = vst.msk [vmem:[#allocation2 + $0x80] sm:$0xff] %vm1525_vm3, %v1413_v30 }
 0x12f   : > { %v1948_v39 = vmax.f32 %v1732_v35, %v1860_v36  ;;  %v1666_v40 = vld [vmem:[#allocation2 + $0x60] ss:$2 sm:$0xff]  ;;  %v1794_v41 = vld [vmem:[#allocation2 + $0x61] ss:$2 sm:$0xff]  ;;  %1606 = vst.msk [vmem:[#allocation2 + $0x280] sm:$0xff] %vm1525_vm3, %v1477_v31  ;;  %1545 = vst.msk [vmem:[#allocation2 + $0x98] sm:$0xff] %vm1525_vm3, %v1416_v37 }
 0x130   : > { %v1730_v42 = vld [vmem:[#allocation2 + $0x260] ss:$2 sm:$0xff]  ;;  %1981 = vst.msk [vmem:[#allocation3 + $0x38] sm:$0xff] %vm1525_vm3, %v1916_v34  ;;  %v1915_v43 = vmax.f32 %v1666_v40, %v1794_v41  ;;  %v1858_v44 = vld [vmem:[#allocation2 + $0x261] ss:$2 sm:$0xff]  ;;  %1609 = vst.msk [vmem:[#allocation2 + $0x298] sm:$0xff] %vm1525_vm3, %v1480_v38 }
 0x131   : > { %v1414_v45 = vmax.f32 %v954_v32, 0.0  ;;  %v1478_v46 = vmax.f32 %v1210_v33, 0.0  ;;  %v2677_v47 = vpop.f32.mrb[20].mxu0  ;;  %v2741_v48 = vpop.f32.mrb[20].mxu1  ;;  %v2085_v50 = vld [vmem:[#allocation3 + $0x28] sm:$0xff]  ;;  %2021 = vst.msk [vmem:[#allocation3 + $0x138] sm:$0xff] %vm1525_vm3, %v1948_v39  ;;  %v1947_v51 = vmax.f32 %v1730_v42, %v1858_v44 }
 0x132   : > { %v975_v52 = vadd.f32 %v2677_v47, %v3115_v5  ;;  %v1231_v53 = vadd.f32 %v2741_v48, %v3115_v5  ;;  %v966_v54 = vpop.f32.mrb[21].mxu0  ;;  %v1222_v55 = vpop.f32.mrb[21].mxu1  ;;  %v2117_v57 = vmax.f32 %v2053_v49, %v2085_v50  ;;  %v2101_v58 = vld [vmem:[#allocation3 + $0x128] sm:$0xff]  ;;  %1980 = vst.msk [vmem:[#allocation3 + $0x30] sm:$0xff] %vm1525_vm3, %v1915_v43  ;;  %v2084_v1 = vld [vmem:[#allocation3 + $0x20] sm:$0xff]  ;;  %v2071_v19 = vld [vmem:[#allocation3 + $0x118] sm:$0xff] }
 0x133   : > { %1543 = vst.msk [vmem:[#allocation2 + $0x88] sm:$0xff] %vm1525_vm3, %v1414_v45  ;;  %1607 = vst.msk [vmem:[#allocation2 + $0x288] sm:$0xff] %vm1525_vm3, %v1478_v46  ;;  %v967_v59 = vadd.f32 %v3115_v5, %v966_v54  ;;  %v1223_v60 = vadd.f32 %v3115_v5, %v1222_v55  ;;  %v2678_v61 = vpop.f32.mrb[22].mxu0  ;;  %v2742_v62 = vpop.f32.mrb[22].mxu1  ;;  %v2133_v0 = vmax.f32 %v2069_v56, %v2101_v58  ;;  %v2100_v11 = vld [vmem:[#allocation3 + $0x120] sm:$0xff]  ;;  %v2070_v29 = vld [vmem:[#allocation3 + $0x110] sm:$0xff] }
 0x134   : > { %2020 = vst.msk [vmem:[#allocation3 + $0x130] sm:$0xff] %vm1525_vm3, %v1947_v51  ;;  %v1419_v2 = vmax.f32 %v975_v52, 0.0  ;;  %v1483_v3 = vmax.f32 %v1231_v53, 0.0  ;;  %v978_v4 = vadd.f32 %v2678_v61, %v3115_v5  ;;  %v969_v6 = vpop.f32.mrb[23].mxu0  ;;  %v1225_v7 = vpop.f32.mrb[23].mxu1  ;;  %v2557_v9 = vpack.c.bf16 %v2117_v57, %v2117_v57 }
 0x135   : > { %v2116_v10 = vmax.f32 %v2052_v63, %v2084_v1  ;;  %v1417_v12 = vmax.f32 %v967_v59, 0.0  ;;  %v1481_v13 = vmax.f32 %v1223_v60, 0.0  ;;  %v2573_v14 = vpack.c.bf16 %v2133_v0, %v2133_v0  ;;  %v2681_v48 = vpop.f32.mrb[24].mxu0  ;;  %v2745_v53 = vpop.f32.mrb[24].mxu1 }
 0x136   : > { %v2132_v15 = vmax.f32 %v2068_v8, %v2100_v11  ;;  %1548 = vst.msk [vmem:[#allocation2 + $0xb0] sm:$0xff] %vm1525_vm3, %v1419_v2  ;;  %1612 = vst.msk [vmem:[#allocation2 + $0x2b0] sm:$0xff] %vm1525_vm3, %v1483_v3  ;;  %v1420_v16 = vmax.f32 %v978_v4, 0.0  ;;  %v1234_v17 = vadd.f32 %v2742_v62, %v3115_v5  ;;  %v970_v21 = vadd.f32 %v3115_v5, %v969_v6  ;;  %v1672_v26 = vld [vmem:[#allocation2 + $0x90] ss:$2 sm:$0xff]  ;;  %v982_v54 = vpop.f32.mrb[25].mxu0 }
 0x137   : > { %2278 = vst.msk [vmem:[%s3235_s15 + $0x4] sm:$0xf] %vm2276_vm4, %v2557_v9  ;;  %v2556_v20 = vpack.c.bf16 %v2116_v10, %v2116_v10  ;;  %v1226_v22 = vadd.f32 %v3115_v5, %v1225_v7  ;;  %2294 = vst.msk [vmem:[%s3235_s15 + $0x44] sm:$0xf] %vm2276_vm4, %v2573_v14  ;;  %v2087_v25 = vld [vmem:[#allocation3 + $0x38] sm:$0xff]  ;;  %v991_v52 = vadd.f32 %v2681_v48, %v3115_v5  ;;  %v1238_v58 = vpop.f32.mrb[25].mxu1 }
 0x138   : > { %1546 = vst.msk [vmem:[#allocation2 + $0xa0] sm:$0xff] %vm1525_vm3, %v1417_v12  ;;  %1610 = vst.msk [vmem:[#allocation2 + $0x2a0] sm:$0xff] %vm1525_vm3, %v1481_v13  ;;  %v2572_v24 = vpack.c.bf16 %v2132_v15, %v2132_v15  ;;  %v1800_v27 = vld [vmem:[#allocation2 + $0x91] ss:$2 sm:$0xff]  ;;  %v1484_v28 = vmax.f32 %v1234_v17, 0.0  ;;  %v2119_v30 = vmax.f32 %v2055_v18, %v2087_v25  ;;  %v1418_v35 = vmax.f32 %v970_v21, 0.0 }
 0x139   : > { %1549 = vst.msk [vmem:[#allocation2 + $0xb8] sm:$0xff] %vm1525_vm3, %v1420_v16  ;;  %v2103_v31 = vld [vmem:[#allocation3 + $0x138] sm:$0xff]  ;;  %v1918_v32 = vmax.f32 %v1672_v26, %v1800_v27  ;;  %v2086_v37 = vld [vmem:[#allocation3 + $0x30] sm:$0xff]  ;;  %v1482_v41 = vmax.f32 %v1226_v22, 0.0  ;;  %v1247_v56 = vadd.f32 %v2745_v53, %v3115_v5  ;;  %v983_v57 = vadd.f32 %v3115_v5, %v982_v54  ;;  %v2682_v59 = vpop.f32.mrb[26].mxu0  ;;  %v2746_v0 = vpop.f32.mrb[26].mxu1 }
 0x13a   : > { %2277 = vst.msk [vmem:[%s3235_s15] sm:$0xf] %vm2276_vm4, %v2556_v20  ;;  %v1736_v33 = vld [vmem:[#allocation2 + $0x290] ss:$2 sm:$0xff]  ;;  %v1864_v34 = vld [vmem:[#allocation2 + $0x291] ss:$2 sm:$0xff]  ;;  %v2135_v36 = vmax.f32 %v2071_v19, %v2103_v31  ;;  %v2559_v42 = vpack.c.bf16 %v2119_v30, %v2119_v30  ;;  %v2118_v43 = vmax.f32 %v2054_v23, %v2086_v37  ;;  %v1239_v62 = vadd.f32 %v3115_v5, %v1238_v58 }
 0x13b   : > { %2293 = vst.msk [vmem:[%s3235_s15 + $0x40] sm:$0xf] %vm2276_vm4, %v2572_v24  ;;  %v1950_v38 = vmax.f32 %v1736_v33, %v1864_v34  ;;  %v1670_v39 = vld [vmem:[#allocation2 + $0x80] ss:$2 sm:$0xff]  ;;  %v1798_v40 = vld [vmem:[#allocation2 + $0x81] ss:$2 sm:$0xff]  ;;  %v994_v63 = vadd.f32 %v2682_v59, %v3115_v5  ;;  %v1250_v7 = vadd.f32 %v2746_v0, %v3115_v5 }
 0x13c   : > { %1613 = vst.msk [vmem:[#allocation2 + $0x2b8] sm:$0xff] %vm1525_vm3, %v1484_v28  ;;  %v2102_v44 = vld [vmem:[#allocation3 + $0x130] sm:$0xff]  ;;  %1984 = vst.msk [vmem:[#allocation3 + $0x48] sm:$0xff] %vm1525_vm3, %v1918_v32  ;;  %v1917_v45 = vmax.f32 %v1670_v39, %v1798_v40  ;;  %v1734_v46 = vld [vmem:[#allocation2 + $0x280] ss:$2 sm:$0xff]  ;;  %v2575_v49 = vpack.c.bf16 %v2135_v36, %v2135_v36  ;;  %v2558_v55 = vpack.c.bf16 %v2118_v43, %v2118_v43  ;;  %v1423_v61 = vmax.f32 %v991_v52, 0.0 }
 0x13d   : > { %v1862_v47 = vld [vmem:[#allocation2 + $0x281] ss:$2 sm:$0xff]  ;;  %1547 = vst.msk [vmem:[#allocation2 + $0xa8] sm:$0xff] %vm1525_vm3, %v1418_v35  ;;  %v2134_v50 = vmax.f32 %v2070_v29, %v2102_v44  ;;  %2024 = vst.msk [vmem:[#allocation3 + $0x148] sm:$0xff] %vm1525_vm3, %v1950_v38  ;;  %v985_v1 = vpop.f32.mrb[27].mxu0  ;;  %v1487_v4 = vmax.f32 %v1247_v56, 0.0 }
 0x13e   : > { %v1949_v51 = vmax.f32 %v1734_v46, %v1862_v47  ;;  %1611 = vst.msk [vmem:[#allocation2 + $0x2a8] sm:$0xff] %vm1525_vm3, %v1482_v41  ;;  %1983 = vst.msk [vmem:[#allocation3 + $0x40] sm:$0xff] %vm1525_vm3, %v1917_v45  ;;  %v1421_v6 = vmax.f32 %v983_v57, 0.0  ;;  %v986_v8 = vadd.f32 %v3115_v5, %v985_v1  ;;  %v1485_v10 = vmax.f32 %v1239_v62, 0.0  ;;  %v1241_v12 = vpop.f32.mrb[27].mxu1  ;;  %v2685_v13 = vpop.f32.mrb[28].mxu0 }
 0x13f   : > { %2280 = vst.msk [vmem:[%s3235_s15 + $0xc] sm:$0xf] %vm2276_vm4, %v2559_v42  ;;  %2296 = vst.msk [vmem:[%s3235_s15 + $0x4c] sm:$0xf] %vm2276_vm4, %v2575_v49  ;;  %v2574_v60 = vpack.c.bf16 %v2134_v50, %v2134_v50  ;;  %v1424_v11 = vmax.f32 %v994_v63, 0.0  ;;  %v1488_v16 = vmax.f32 %v1250_v7, 0.0  ;;  %v1242_v18 = vadd.f32 %v3115_v5, %v1241_v12 }
 0x140   : > { %2023 = vst.msk [vmem:[#allocation3 + $0x140] sm:$0xff] %vm1525_vm3, %v1949_v51  ;;  %v1676_v2 = vld [vmem:[#allocation2 + $0xb0] ss:$2 sm:$0xff]  ;;  %v1804_v3 = vld [vmem:[#allocation2 + $0xb1] ss:$2 sm:$0xff]  ;;  %1552 = vst.msk [vmem:[#allocation2 + $0xd0] sm:$0xff] %vm1525_vm3, %v1423_v61  ;;  %v1007_v19 = vadd.f32 %v2685_v13, %v3115_v5 }
 0x141   : > { %2279 = vst.msk [vmem:[%s3235_s15 + $0x8] sm:$0xf] %vm2276_vm4, %v2558_v55  ;;  %2295 = vst.msk [vmem:[%s3235_s15 + $0x48] sm:$0xf] %vm2276_vm4, %v2574_v60  ;;  %v1920_v9 = vmax.f32 %v1676_v2, %v1804_v3  ;;  %v1422_v17 = vmax.f32 %v986_v8, 0.0  ;;  %v2749_v23 = vpop.f32.mrb[28].mxu1 }
 0x142   : > { %1616 = vst.msk [vmem:[#allocation2 + $0x2d0] sm:$0xff] %vm1525_vm3, %v1487_v4  ;;  %1550 = vst.msk [vmem:[#allocation2 + $0xc0] sm:$0xff] %vm1525_vm3, %v1421_v6  ;;  %v1486_v27 = vmax.f32 %v1242_v18, 0.0  ;;  %v1263_v28 = vadd.f32 %v2749_v23, %v3115_v5  ;;  %v1427_v30 = vmax.f32 %v1007_v19, 0.0  ;;  %v998_v31 = vpop.f32.mrb[29].mxu0  ;;  %v1254_v32 = vpop.f32.mrb[29].mxu1 }
 0x143   : > { %v1740_v14 = vld [vmem:[#allocation2 + $0x2b0] ss:$2 sm:$0xff]  ;;  %v1868_v15 = vld [vmem:[#allocation2 + $0x2b1] ss:$2 sm:$0xff]  ;;  %1986 = vst.msk [vmem:[#allocation3 + $0x58] sm:$0xff] %vm1525_vm3, %v1920_v9  ;;  %1614 = vst.msk [vmem:[#allocation2 + $0x2c0] sm:$0xff] %vm1525_vm3, %v1485_v10  ;;  %v999_v34 = vadd.f32 %v3115_v5, %v998_v31  ;;  %v1255_v35 = vadd.f32 %v3115_v5, %v1254_v32 }
 0x144   : > { %v1952_v20 = vmax.f32 %v1740_v14, %v1868_v15  ;;  %v1674_v21 = vld [vmem:[#allocation2 + $0xa0] ss:$2 sm:$0xff]  ;;  %v1802_v22 = vld [vmem:[#allocation2 + $0xa1] ss:$2 sm:$0xff]  ;;  %1553 = vst.msk [vmem:[#allocation2 + $0xd8] sm:$0xff] %vm1525_vm3, %v1424_v11  ;;  %1617 = vst.msk [vmem:[#allocation2 + $0x2d8] sm:$0xff] %vm1525_vm3, %v1488_v16 }
 0x145   : > { %v1919_v24 = vmax.f32 %v1674_v21, %v1802_v22  ;;  %v1738_v25 = vld [vmem:[#allocation2 + $0x2a0] ss:$2 sm:$0xff]  ;;  %v1866_v26 = vld [vmem:[#allocation2 + $0x2a1] ss:$2 sm:$0xff]  ;;  %1551 = vst.msk [vmem:[#allocation2 + $0xc8] sm:$0xff] %vm1525_vm3, %v1422_v17  ;;  %1615 = vst.msk [vmem:[#allocation2 + $0x2c8] sm:$0xff] %vm1525_vm3, %v1486_v27 }
 0x146   : > { %2026 = vst.msk [vmem:[#allocation3 + $0x158] sm:$0xff] %vm1525_vm3, %v1952_v20  ;;  %v1951_v29 = vmax.f32 %v1738_v25, %v1866_v26  ;;  %v1491_v33 = vmax.f32 %v1263_v28, 0.0  ;;  %v2686_v36 = vpop.f32.mrb[30].mxu0  ;;  %v2750_v37 = vpop.f32.mrb[30].mxu1  ;;  %1556 = vst.msk [vmem:[#allocation2 + $0xf0] sm:$0xff] %vm1525_vm3, %v1427_v30  ;;  %v1425_v42 = vmax.f32 %v999_v34, 0.0 }
 0x147   : > { %1985 = vst.msk [vmem:[#allocation3 + $0x50] sm:$0xff] %vm1525_vm3, %v1919_v24  ;;  %v1010_v38 = vadd.f32 %v2686_v36, %v3115_v5  ;;  %v1266_v39 = vadd.f32 %v2750_v37, %v3115_v5  ;;  %v1001_v40 = vpop.f32.mrb[31].mxu0  ;;  %v1257_v41 = vpop.f32.mrb[31].mxu1  ;;  %v1489_v43 = vmax.f32 %v1255_v35, 0.0  ;;  %v2057_v22 = vld [vmem:[#allocation3 + $0x48] sm:$0xff] }
 0x148   : > { %2025 = vst.msk [vmem:[#allocation3 + $0x150] sm:$0xff] %vm1525_vm3, %v1951_v29  ;;  %1620 = vst.msk [vmem:[#allocation2 + $0x2f0] sm:$0xff] %vm1525_vm3, %v1491_v33  ;;  %v1002_v44 = vadd.f32 %v3115_v5, %v1001_v40  ;;  %v1258_v45 = vadd.f32 %v3115_v5, %v1257_v41  ;;  %v2689_v48 = vpop.f32.mrb[32].mxu0  ;;  %v2753_v49 = vpop.f32.mrb[32].mxu1  ;;  %v2073_v32 = vld [vmem:[#allocation3 + $0x148] sm:$0xff] }
 0x149   : > { %v1428_v46 = vmax.f32 %v1010_v38, 0.0  ;;  %v1492_v47 = vmax.f32 %v1266_v39, 0.0  ;;  %1554 = vst.msk [vmem:[#allocation2 + $0xe0] sm:$0xff] %vm1525_vm3, %v1425_v42  ;;  %1618 = vst.msk [vmem:[#allocation2 + $0x2e0] sm:$0xff] %vm1525_vm3, %v1489_v43  ;;  %v1023_v53 = vadd.f32 %v2689_v48, %v3115_v5  ;;  %v1279_v54 = vadd.f32 %v2753_v49, %v3115_v5  ;;  %v1014_v3 = vpop.f32.mrb[33].mxu0  ;;  %v1270_v7 = vpop.f32.mrb[33].mxu1 }
 0x14a   : > { %v1426_v52 = vmax.f32 %v1002_v44, 0.0  ;;  %v1490_v61 = vmax.f32 %v1258_v45, 0.0  ;;  %v1015_v6 = vadd.f32 %v3115_v5, %v1014_v3  ;;  %v2690_v8 = vpop.f32.mrb[34].mxu0  ;;  %v1271_v9 = vadd.f32 %v3115_v5, %v1270_v7  ;;  %v2754_v11 = vpop.f32.mrb[34].mxu1 }
 0x14b   : > { %v1680_v50 = vld [vmem:[#allocation2 + $0xd0] ss:$2 sm:$0xff]  ;;  %v1808_v51 = vld [vmem:[#allocation2 + $0xd1] ss:$2 sm:$0xff]  ;;  %1557 = vst.msk [vmem:[#allocation2 + $0xf8] sm:$0xff] %vm1525_vm3, %v1428_v46  ;;  %1621 = vst.msk [vmem:[#allocation2 + $0x2f8] sm:$0xff] %vm1525_vm3, %v1492_v47  ;;  %v1026_v10 = vadd.f32 %v2690_v8, %v3115_v5  ;;  %v1282_v14 = vadd.f32 %v2754_v11, %v3115_v5 }
 0x14c   : > { %v1922_v55 = vmax.f32 %v1680_v50, %v1808_v51  ;;  %v1744_v56 = vld [vmem:[#allocation2 + $0x2d0] ss:$2 sm:$0xff]  ;;  %v1872_v57 = vld [vmem:[#allocation2 + $0x2d1] ss:$2 sm:$0xff]  ;;  %v1678_v58 = vld [vmem:[#allocation2 + $0xc0] ss:$2 sm:$0xff] }
 0x14d   : > { %v1954_v59 = vmax.f32 %v1744_v56, %v1872_v57  ;;  %v1806_v60 = vld [vmem:[#allocation2 + $0xc1] ss:$2 sm:$0xff]  ;;  %1555 = vst.msk [vmem:[#allocation2 + $0xe8] sm:$0xff] %vm1525_vm3, %v1426_v52  ;;  %v1431_v62 = vmax.f32 %v1023_v53, 0.0  ;;  %v1495_v63 = vmax.f32 %v1279_v54, 0.0  ;;  %1619 = vst.msk [vmem:[#allocation2 + $0x2e8] sm:$0xff] %vm1525_vm3, %v1490_v61 }
 0x14e   : > { %1989 = vst.msk [vmem:[#allocation3 + $0x68] sm:$0xff] %vm1525_vm3, %v1922_v55  ;;  %v1921_v0 = vmax.f32 %v1678_v58, %v1806_v60  ;;  %v1742_v1 = vld [vmem:[#allocation2 + $0x2c0] ss:$2 sm:$0xff]  ;;  %v1870_v2 = vld [vmem:[#allocation2 + $0x2c1] ss:$2 sm:$0xff]  ;;  %v1017_v12 = vpop.f32.mrb[35].mxu0 }
 0x14f   : > { %2029 = vst.msk [vmem:[#allocation3 + $0x168] sm:$0xff] %vm1525_vm3, %v1954_v59  ;;  %v1953_v4 = vmax.f32 %v1742_v1, %v1870_v2  ;;  %1560 = vst.msk [vmem:[#allocation2 + $0x110] sm:$0xff] %vm1525_vm3, %v1431_v62  ;;  %v1429_v13 = vmax.f32 %v1015_v6, 0.0  ;;  %v1018_v15 = vadd.f32 %v3115_v5, %v1017_v12  ;;  %v1273_v16 = vpop.f32.mrb[35].mxu1  ;;  %v1493_v17 = vmax.f32 %v1271_v9, 0.0  ;;  %v2693_v20 = vpop.f32.mrb[36].mxu0 }
 0x150   : > { %1624 = vst.msk [vmem:[#allocation2 + $0x310] sm:$0xff] %vm1525_vm3, %v1495_v63  ;;  %1988 = vst.msk [vmem:[#allocation3 + $0x60] sm:$0xff] %vm1525_vm3, %v1921_v0  ;;  %v1432_v18 = vmax.f32 %v1026_v10, 0.0  ;;  %v1274_v19 = vadd.f32 %v3115_v5, %v1273_v16  ;;  %v2757_v21 = vpop.f32.mrb[36].mxu1  ;;  %v1039_v26 = vadd.f32 %v2693_v20, %v3115_v5  ;;  %v1496_v36 = vmax.f32 %v1282_v14, 0.0  ;;  %v1030_v38 = vpop.f32.mrb[37].mxu0 }
 0x151   : > { %2028 = vst.msk [vmem:[#allocation3 + $0x160] sm:$0xff] %vm1525_vm3, %v1953_v4  ;;  %1558 = vst.msk [vmem:[#allocation2 + $0x100] sm:$0xff] %vm1525_vm3, %v1429_v13  ;;  %v1295_v27 = vadd.f32 %v2757_v21, %v3115_v5  ;;  %v1430_v37 = vmax.f32 %v1018_v15, 0.0  ;;  %v1286_v39 = vpop.f32.mrb[37].mxu1  ;;  %v1031_v45 = vadd.f32 %v3115_v5, %v1030_v38  ;;  %v2056_v47 = vld [vmem:[#allocation3 + $0x40] sm:$0xff]  ;;  %v2694_v53 = vpop.f32.mrb[38].mxu0 }
 0x152   : > { %v1684_v23 = vld [vmem:[#allocation2 + $0xf0] ss:$2 sm:$0xff]  ;;  %v1812_v24 = vld [vmem:[#allocation2 + $0xf1] ss:$2 sm:$0xff]  ;;  %1622 = vst.msk [vmem:[#allocation2 + $0x300] sm:$0xff] %vm1525_vm3, %v1493_v17  ;;  %1561 = vst.msk [vmem:[#allocation2 + $0x118] sm:$0xff] %vm1525_vm3, %v1432_v18  ;;  %v1287_v46 = vadd.f32 %v3115_v5, %v1286_v39  ;;  %v1042_v1 = vadd.f32 %v2694_v53, %v3115_v5 }
 0x153   : > { %v1748_v25 = vld [vmem:[#allocation2 + $0x2f0] ss:$2 sm:$0xff]  ;;  %v1924_v28 = vmax.f32 %v1684_v23, %v1812_v24  ;;  %v1876_v29 = vld [vmem:[#allocation2 + $0x2f1] ss:$2 sm:$0xff]  ;;  %v1494_v44 = vmax.f32 %v1274_v19, 0.0  ;;  %1625 = vst.msk [vmem:[#allocation2 + $0x318] sm:$0xff] %vm1525_vm3, %v1496_v36 }
 0x154   : > { %v1682_v30 = vld [vmem:[#allocation2 + $0xe0] ss:$2 sm:$0xff]  ;;  %v1810_v31 = vld [vmem:[#allocation2 + $0xe1] ss:$2 sm:$0xff]  ;;  %v1956_v34 = vmax.f32 %v1748_v25, %v1876_v29  ;;  %1559 = vst.msk [vmem:[#allocation2 + $0x108] sm:$0xff] %vm1525_vm3, %v1430_v37  ;;  %v1435_v51 = vmax.f32 %v1039_v26, 0.0 }
 0x155   : > { %v2089_v33 = vld [vmem:[#allocation3 + $0x68] sm:$0xff]  ;;  %v1923_v35 = vmax.f32 %v1682_v30, %v1810_v31  ;;  %1991 = vst.msk [vmem:[#allocation3 + $0x78] sm:$0xff] %vm1525_vm3, %v1924_v28  ;;  %v1499_v52 = vmax.f32 %v1295_v27, 0.0  ;;  %v2758_v54 = vpop.f32.mrb[38].mxu1  ;;  %v2072_v55 = vld [vmem:[#allocation3 + $0x140] sm:$0xff]  ;;  %1623 = vst.msk [vmem:[#allocation2 + $0x308] sm:$0xff] %vm1525_vm3, %v1494_v44 }
 0x156   : > { %v2121_v40 = vmax.f32 %v2057_v22, %v2089_v33  ;;  %v2105_v41 = vld [vmem:[#allocation3 + $0x168] sm:$0xff]  ;;  %2031 = vst.msk [vmem:[#allocation3 + $0x178] sm:$0xff] %vm1525_vm3, %v1956_v34  ;;  %v1433_v59 = vmax.f32 %v1031_v45, 0.0  ;;  %v1497_v60 = vmax.f32 %v1287_v46, 0.0  ;;  %v1033_v61 = vpop.f32.mrb[39].mxu0  ;;  %v1289_v62 = vpop.f32.mrb[39].mxu1  ;;  %v1298_v2 = vadd.f32 %v2758_v54, %v3115_v5 }
 0x157   : > { %v1746_v42 = vld [vmem:[#allocation2 + $0x2e0] ss:$2 sm:$0xff]  ;;  %v1874_v43 = vld [vmem:[#allocation2 + $0x2e1] ss:$2 sm:$0xff]  ;;  %v2137_v48 = vmax.f32 %v2073_v32, %v2105_v41  ;;  %1990 = vst.msk [vmem:[#allocation3 + $0x70] sm:$0xff] %vm1525_vm3, %v1923_v35  ;;  %1564 = vst.msk [vmem:[#allocation2 + $0x130] sm:$0xff] %vm1525_vm3, %v1435_v51  ;;  %v1034_v4 = vadd.f32 %v3115_v5, %v1033_v61  ;;  %v1290_v6 = vadd.f32 %v3115_v5, %v1289_v62 }
 0x158   : > { %v2088_v49 = vld [vmem:[#allocation3 + $0x60] sm:$0xff]  ;;  %v1955_v50 = vmax.f32 %v1746_v42, %v1874_v43  ;;  %v2561_v56 = vpack.c.bf16 %v2121_v40, %v2121_v40  ;;  %1628 = vst.msk [vmem:[#allocation2 + $0x330] sm:$0xff] %vm1525_vm3, %v1499_v52  ;;  %1562 = vst.msk [vmem:[#allocation2 + $0x120] sm:$0xff] %vm1525_vm3, %v1433_v59  ;;  %v2697_v7 = vpop.f32.mrb[40].mxu0  ;;  %v2761_v8 = vpop.f32.mrb[40].mxu1  ;;  %v1436_v12 = vmax.f32 %v1042_v1, 0.0 }
 0x159   : > { %v2120_v57 = vmax.f32 %v2056_v47, %v2088_v49  ;;  %v2104_v58 = vld [vmem:[#allocation3 + $0x160] sm:$0xff]  ;;  %v2577_v63 = vpack.c.bf16 %v2137_v48, %v2137_v48  ;;  %1626 = vst.msk [vmem:[#allocation2 + $0x320] sm:$0xff] %vm1525_vm3, %v1497_v60  ;;  %v1688_v10 = vld [vmem:[#allocation2 + $0x110] ss:$2 sm:$0xff]  ;;  %v1816_v11 = vld [vmem:[#allocation2 + $0x111] ss:$2 sm:$0xff] }
 0x15a   : > { %v2136_v0 = vmax.f32 %v2072_v55, %v2104_v58  ;;  %2030 = vst.msk [vmem:[#allocation3 + $0x170] sm:$0xff] %vm1525_vm3, %v1955_v50  ;;  %v1500_v13 = vmax.f32 %v1298_v2, 0.0  ;;  %v3346_v14 = vld [vmem:[#allocation4] ss:$0 sm:$0xff]  ;;  %v2059_v16 = vld [vmem:[#allocation3 + $0x58] sm:$0xff]  ;;  %v1926_v17 = vmax.f32 %v1688_v10, %v1816_v11  ;;  %v1434_v18 = vmax.f32 %v1034_v4, 0.0 }
 0x15b   : > { %2282 = vst.msk [vmem:[%s3235_s15 + $0x14] sm:$0xf] %vm2276_vm4, %v2561_v56  ;;  %v2560_v3 = vpack.c.bf16 %v2120_v57, %v2120_v57  ;;  %2298 = vst.msk [vmem:[%s3235_s15 + $0x54] sm:$0xf] %vm2276_vm4, %v2577_v63  ;;  %v1055_v15 = vadd.f32 %v3346_v14, %v2697_v7  ;;  %v1498_v5 = vmax.f32 %v1290_v6, 0.0  ;;  %v1311_v19 = vadd.f32 %v3346_v14, %v2761_v8  ;;  %v1046_v20 = vpop.f32.mrb[41].mxu0 }
 0x15c   : > { %v2576_v9 = vpack.c.bf16 %v2136_v0, %v2136_v0  ;;  %v1302_v21 = vpop.f32.mrb[41].mxu1  ;;  %v2075_v22 = vld [vmem:[#allocation3 + $0x158] sm:$0xff]  ;;  %v2058_v23 = vld [vmem:[#allocation3 + $0x50] sm:$0xff]  ;;  %1565 = vst.msk [vmem:[#allocation2 + $0x138] sm:$0xff] %vm1525_vm3, %v1436_v12  ;;  %1629 = vst.msk [vmem:[#allocation2 + $0x338] sm:$0xff] %vm1525_vm3, %v1500_v13  ;;  %v1047_v26 = vadd.f32 %v3346_v14, %v1046_v20  ;;  %v2698_v28 = vpop.f32.mrb[42].mxu0 }
 0x15d   : > { %2281 = vst.msk [vmem:[%s3235_s15 + $0x10] sm:$0xf] %vm2276_vm4, %v2560_v3  ;;  %v2091_v24 = vld [vmem:[#allocation3 + $0x78] sm:$0xff]  ;;  %v1439_v25 = vmax.f32 %v1055_v15, 0.0  ;;  %v1303_v27 = vadd.f32 %v3346_v14, %v1302_v21  ;;  %v2762_v29 = vpop.f32.mrb[42].mxu1  ;;  %v2074_v30 = vld [vmem:[#allocation3 + $0x150] sm:$0xff]  ;;  %v1058_v36 = vadd.f32 %v3346_v14, %v2698_v28 }
 0x15e   : > { %2297 = vst.msk [vmem:[%s3235_s15 + $0x50] sm:$0xf] %vm2276_vm4, %v2576_v9  ;;  %v2123_v31 = vmax.f32 %v2059_v16, %v2091_v24  ;;  %v2107_v32 = vld [vmem:[#allocation3 + $0x178] sm:$0xff]  ;;  %v2090_v33 = vld [vmem:[#allocation3 + $0x70] sm:$0xff]  ;;  %v1503_v35 = vmax.f32 %v1311_v19, 0.0  ;;  %v1314_v37 = vadd.f32 %v3346_v14, %v2762_v29  ;;  %v1049_v38 = vpop.f32.mrb[43].mxu0 }
 0x15f   : > { %1994 = vst.msk [vmem:[#allocation3 + $0x88] sm:$0xff] %vm1525_vm3, %v1926_v17  ;;  %v1752_v34 = vld [vmem:[#allocation2 + $0x310] ss:$2 sm:$0xff]  ;;  %1563 = vst.msk [vmem:[#allocation2 + $0x128] sm:$0xff] %vm1525_vm3, %v1434_v18  ;;  %v2139_v39 = vmax.f32 %v2075_v22, %v2107_v32  ;;  %v2122_v40 = vmax.f32 %v2058_v23, %v2090_v33  ;;  %v1880_v41 = vld [vmem:[#allocation2 + $0x311] ss:$2 sm:$0xff]  ;;  %v1050_v44 = vadd.f32 %v3346_v14, %v1049_v38 }
 0x160   : > { %1627 = vst.msk [vmem:[#allocation2 + $0x328] sm:$0xff] %vm1525_vm3, %v1498_v5  ;;  %v1686_v42 = vld [vmem:[#allocation2 + $0x100] ss:$2 sm:$0xff]  ;;  %v1814_v43 = vld [vmem:[#allocation2 + $0x101] ss:$2 sm:$0xff]  ;;  %1568 = vst.msk [vmem:[#allocation2 + $0x150] sm:$0xff] %vm1525_vm3, %v1439_v25  ;;  %v2563_v45 = vpack.c.bf16 %v2123_v31, %v2123_v31  ;;  %v1958_v47 = vmax.f32 %v1752_v34, %v1880_v41 }
 0x161   : > { %v2106_v46 = vld [vmem:[#allocation3 + $0x170] sm:$0xff]  ;;  %v1925_v48 = vmax.f32 %v1686_v42, %v1814_v43  ;;  %v1750_v49 = vld [vmem:[#allocation2 + $0x300] ss:$2 sm:$0xff]  ;;  %v1878_v50 = vld [vmem:[#allocation2 + $0x301] ss:$2 sm:$0xff]  ;;  %1632 = vst.msk [vmem:[#allocation2 + $0x350] sm:$0xff] %vm1525_vm3, %v1503_v35  ;;  %v2579_v52 = vpack.c.bf16 %v2139_v39, %v2139_v39  ;;  %v2562_v53 = vpack.c.bf16 %v2122_v40, %v2122_v40 }
 0x162   : > { %v1437_v51 = vmax.f32 %v1047_v26, 0.0  ;;  %v2138_v54 = vmax.f32 %v2074_v30, %v2106_v46  ;;  %v1957_v55 = vmax.f32 %v1750_v49, %v1878_v50  ;;  %v1305_v56 = vpop.f32.mrb[43].mxu1  ;;  %2284 = vst.msk [vmem:[%s3235_s15 + $0x1c] sm:$0xf] %vm2276_vm4, %v2563_v45  ;;  %v1501_v57 = vmax.f32 %v1303_v27, 0.0  ;;  %v2701_v61 = vpop.f32.mrb[44].mxu0 }
 0x163   : > { %2034 = vst.msk [vmem:[#allocation3 + $0x188] sm:$0xff] %vm1525_vm3, %v1958_v47  ;;  %1993 = vst.msk [vmem:[#allocation3 + $0x80] sm:$0xff] %vm1525_vm3, %v1925_v48  ;;  %v1440_v58 = vmax.f32 %v1058_v36, 0.0  ;;  %v1504_v59 = vmax.f32 %v1314_v37, 0.0  ;;  %v1438_v60 = vmax.f32 %v1050_v44, 0.0  ;;  %v2765_v62 = vpop.f32.mrb[44].mxu1  ;;  %v1306_v0 = vadd.f32 %v3346_v14, %v1305_v56 }
 0x164   : > { %1566 = vst.msk [vmem:[#allocation2 + $0x140] sm:$0xff] %vm1525_vm3, %v1437_v51  ;;  %v2578_v63 = vpack.c.bf16 %v2138_v54, %v2138_v54  ;;  %2033 = vst.msk [vmem:[#allocation3 + $0x180] sm:$0xff] %vm1525_vm3, %v1957_v55  ;;  %v1071_v1 = vadd.f32 %v3346_v14, %v2701_v61  ;;  %v1327_v2 = vadd.f32 %v3346_v14, %v2765_v62  ;;  %v1062_v3 = vpop.f32.mrb[45].mxu0  ;;  %v1318_v4 = vpop.f32.mrb[45].mxu1  ;;  %v1692_v6 = vld [vmem:[#allocation2 + $0x130] ss:$2 sm:$0xff] }
 0x165   : > { %2300 = vst.msk [vmem:[%s3235_s15 + $0x5c] sm:$0xf] %vm2276_vm4, %v2579_v52  ;;  %2283 = vst.msk [vmem:[%s3235_s15 + $0x18] sm:$0xf] %vm2276_vm4, %v2562_v53  ;;  %v1820_v7 = vld [vmem:[#allocation2 + $0x131] ss:$2 sm:$0xff]  ;;  %v1063_v9 = vadd.f32 %v3346_v14, %v1062_v3  ;;  %v1319_v10 = vadd.f32 %v3346_v14, %v1318_v4 }
 0x166   : > { %v1756_v8 = vld [vmem:[#allocation2 + $0x330] ss:$2 sm:$0xff]  ;;  %1630 = vst.msk [vmem:[#allocation2 + $0x340] sm:$0xff] %vm1525_vm3, %v1501_v57  ;;  %1569 = vst.msk [vmem:[#allocation2 + $0x158] sm:$0xff] %vm1525_vm3, %v1440_v58  ;;  %v1928_v11 = vmax.f32 %v1692_v6, %v1820_v7  ;;  %v1884_v12 = vld [vmem:[#allocation2 + $0x331] ss:$2 sm:$0xff] }
 0x167   : > { %1633 = vst.msk [vmem:[#allocation2 + $0x358] sm:$0xff] %vm1525_vm3, %v1504_v59  ;;  %1567 = vst.msk [vmem:[#allocation2 + $0x148] sm:$0xff] %vm1525_vm3, %v1438_v60  ;;  %v1690_v13 = vld [vmem:[#allocation2 + $0x120] ss:$2 sm:$0xff]  ;;  %v1502_v15 = vmax.f32 %v1306_v0, 0.0  ;;  %v1960_v16 = vmax.f32 %v1756_v8, %v1884_v12  ;;  %v1443_v21 = vmax.f32 %v1071_v1, 0.0 }
 0x168   : > { %2299 = vst.msk [vmem:[%s3235_s15 + $0x58] sm:$0xf] %vm2276_vm4, %v2578_v63  ;;  %v1818_v17 = vld [vmem:[#allocation2 + $0x121] ss:$2 sm:$0xff]  ;;  %v1754_v18 = vld [vmem:[#allocation2 + $0x320] ss:$2 sm:$0xff] }
 0x169   : > { %v1882_v5 = vld [vmem:[#allocation2 + $0x321] ss:$2 sm:$0xff]  ;;  %1996 = vst.msk [vmem:[#allocation3 + $0x98] sm:$0xff] %vm1525_vm3, %v1928_v11  ;;  %v1927_v19 = vmax.f32 %v1690_v13, %v1818_v17  ;;  %1631 = vst.msk [vmem:[#allocation2 + $0x348] sm:$0xff] %vm1525_vm3, %v1502_v15  ;;  %v1507_v22 = vmax.f32 %v1327_v2, 0.0  ;;  %v2702_v23 = vpop.f32.mrb[46].mxu0 }
 0x16a   : > { %v1959_v20 = vmax.f32 %v1754_v18, %v1882_v5  ;;  %v2766_v24 = vpop.f32.mrb[46].mxu1  ;;  %2036 = vst.msk [vmem:[#allocation3 + $0x198] sm:$0xff] %vm1525_vm3, %v1960_v16  ;;  %v1441_v25 = vmax.f32 %v1063_v9, 0.0  ;;  %v1505_v26 = vmax.f32 %v1319_v10, 0.0  ;;  %v1074_v27 = vadd.f32 %v3346_v14, %v2702_v23  ;;  %v1065_v29 = vpop.f32.mrb[47].mxu0  ;;  %1572 = vst.msk [vmem:[#allocation2 + $0x170] sm:$0xff] %vm1525_vm3, %v1443_v21 }
 0x16b   : > { %v1330_v28 = vadd.f32 %v3346_v14, %v2766_v24  ;;  %v1321_v30 = vpop.f32.mrb[47].mxu1  ;;  %1995 = vst.msk [vmem:[#allocation3 + $0x90] sm:$0xff] %vm1525_vm3, %v1927_v19  ;;  %1636 = vst.msk [vmem:[#allocation2 + $0x370] sm:$0xff] %vm1525_vm3, %v1507_v22  ;;  %v1066_v31 = vadd.f32 %v3346_v14, %v1065_v29  ;;  %v2705_v35 = vpop.f32.mrb[48].mxu0  ;;  %v2061_v10 = vld [vmem:[#allocation3 + $0x88] sm:$0xff]  ;;  %v2060_v23 = vld [vmem:[#allocation3 + $0x80] sm:$0xff] }
 0x16c   : > { %2035 = vst.msk [vmem:[#allocation3 + $0x190] sm:$0xff] %vm1525_vm3, %v1959_v20  ;;  %v1322_v32 = vadd.f32 %v3346_v14, %v1321_v30  ;;  %1570 = vst.msk [vmem:[#allocation2 + $0x160] sm:$0xff] %vm1525_vm3, %v1441_v25  ;;  %v1444_v33 = vmax.f32 %v1074_v27, 0.0  ;;  %v2769_v36 = vpop.f32.mrb[48].mxu1  ;;  %v1087_v40 = vadd.f32 %v3346_v14, %v2705_v35  ;;  %v1078_v50 = vpop.f32.mrb[49].mxu0  ;;  %v2077_v17 = vld [vmem:[#allocation3 + $0x188] sm:$0xff] }
 0x16d   : > { %1634 = vst.msk [vmem:[#allocation2 + $0x360] sm:$0xff] %vm1525_vm3, %v1505_v26  ;;  %v1508_v34 = vmax.f32 %v1330_v28, 0.0  ;;  %v1696_v37 = vld [vmem:[#allocation2 + $0x150] ss:$2 sm:$0xff]  ;;  %v1824_v38 = vld [vmem:[#allocation2 + $0x151] ss:$2 sm:$0xff]  ;;  %v1343_v41 = vadd.f32 %v3346_v14, %v2769_v36  ;;  %v1079_v55 = vadd.f32 %v3346_v14, %v1078_v50 }
 0x16e   : > { %v1760_v39 = vld [vmem:[#allocation2 + $0x350] ss:$2 sm:$0xff]  ;;  %v1930_v42 = vmax.f32 %v1696_v37, %v1824_v38  ;;  %v1888_v43 = vld [vmem:[#allocation2 + $0x351] ss:$2 sm:$0xff]  ;;  %v1694_v44 = vld [vmem:[#allocation2 + $0x140] ss:$2 sm:$0xff] }
 0x16f   : > { %v1822_v45 = vld [vmem:[#allocation2 + $0x141] ss:$2 sm:$0xff]  ;;  %1573 = vst.msk [vmem:[#allocation2 + $0x178] sm:$0xff] %vm1525_vm3, %v1444_v33  ;;  %1637 = vst.msk [vmem:[#allocation2 + $0x378] sm:$0xff] %vm1525_vm3, %v1508_v34  ;;  %v1962_v46 = vmax.f32 %v1760_v39, %v1888_v43  ;;  %v1442_v48 = vmax.f32 %v1066_v31, 0.0  ;;  %v1506_v49 = vmax.f32 %v1322_v32, 0.0 }
 0x170   : > { %v1929_v47 = vmax.f32 %v1694_v44, %v1822_v45  ;;  %v1334_v51 = vpop.f32.mrb[49].mxu1  ;;  %1999 = vst.msk [vmem:[#allocation3 + $0xa8] sm:$0xff] %vm1525_vm3, %v1930_v42  ;;  %v1758_v52 = vld [vmem:[#allocation2 + $0x340] ss:$2 sm:$0xff]  ;;  %v1886_v53 = vld [vmem:[#allocation2 + $0x341] ss:$2 sm:$0xff] }
 0x171   : > { %v1447_v54 = vmax.f32 %v1087_v40, 0.0  ;;  %v1335_v56 = vadd.f32 %v3346_v14, %v1334_v51  ;;  %2039 = vst.msk [vmem:[#allocation3 + $0x1a8] sm:$0xff] %vm1525_vm3, %v1962_v46  ;;  %v1961_v57 = vmax.f32 %v1758_v52, %v1886_v53  ;;  %1571 = vst.msk [vmem:[#allocation2 + $0x168] sm:$0xff] %vm1525_vm3, %v1442_v48  ;;  %v1511_v58 = vmax.f32 %v1343_v41, 0.0  ;;  %v2706_v59 = vpop.f32.mrb[50].mxu0  ;;  %v2770_v60 = vpop.f32.mrb[50].mxu1 }
 0x172   : > { %1998 = vst.msk [vmem:[#allocation3 + $0xa0] sm:$0xff] %vm1525_vm3, %v1929_v47  ;;  %1635 = vst.msk [vmem:[#allocation2 + $0x368] sm:$0xff] %vm1525_vm3, %v1506_v49  ;;  %v1445_v61 = vmax.f32 %v1079_v55, 0.0  ;;  %v1090_v63 = vadd.f32 %v3346_v14, %v2706_v59  ;;  %v1346_v0 = vadd.f32 %v3346_v14, %v2770_v60  ;;  %v1081_v1 = vpop.f32.mrb[51].mxu0  ;;  %v1337_v2 = vpop.f32.mrb[51].mxu1  ;;  %v2076_v47 = vld [vmem:[#allocation3 + $0x180] sm:$0xff] }
 0x173   : > { %1576 = vst.msk [vmem:[#allocation2 + $0x190] sm:$0xff] %vm1525_vm3, %v1447_v54  ;;  %v1509_v62 = vmax.f32 %v1335_v56, 0.0  ;;  %2038 = vst.msk [vmem:[#allocation3 + $0x1a0] sm:$0xff] %vm1525_vm3, %v1961_v57  ;;  %v1082_v3 = vadd.f32 %v3346_v14, %v1081_v1  ;;  %v1338_v4 = vadd.f32 %v3346_v14, %v1337_v2  ;;  %v2709_v8 = vpop.f32.mrb[52].mxu0  ;;  %v2773_v9 = vpop.f32.mrb[52].mxu1 }
 0x174   : > { %1640 = vst.msk [vmem:[#allocation2 + $0x390] sm:$0xff] %vm1525_vm3, %v1511_v58  ;;  %1574 = vst.msk [vmem:[#allocation2 + $0x180] sm:$0xff] %vm1525_vm3, %v1445_v61  ;;  %v1448_v6 = vmax.f32 %v1090_v63, 0.0  ;;  %v1512_v7 = vmax.f32 %v1346_v0, 0.0  ;;  %v1103_v15 = vadd.f32 %v3346_v14, %v2709_v8  ;;  %v1359_v16 = vadd.f32 %v3346_v14, %v2773_v9  ;;  %v1094_v21 = vpop.f32.mrb[53].mxu0  ;;  %v1350_v22 = vpop.f32.mrb[53].mxu1 }
 0x175   : > { %1638 = vst.msk [vmem:[#allocation2 + $0x380] sm:$0xff] %vm1525_vm3, %v1509_v62  ;;  %v1446_v19 = vmax.f32 %v1082_v3, 0.0  ;;  %v1510_v20 = vmax.f32 %v1338_v4, 0.0  ;;  %v1095_v28 = vadd.f32 %v3346_v14, %v1094_v21  ;;  %v2710_v29 = vpop.f32.mrb[54].mxu0  ;;  %v2774_v30 = vpop.f32.mrb[54].mxu1  ;;  %v1351_v35 = vadd.f32 %v3346_v14, %v1350_v22 }
 0x176   : > { %v1700_v11 = vld [vmem:[#allocation2 + $0x170] ss:$2 sm:$0xff]  ;;  %v1828_v12 = vld [vmem:[#allocation2 + $0x171] ss:$2 sm:$0xff]  ;;  %1577 = vst.msk [vmem:[#allocation2 + $0x198] sm:$0xff] %vm1525_vm3, %v1448_v6  ;;  %1641 = vst.msk [vmem:[#allocation2 + $0x398] sm:$0xff] %vm1525_vm3, %v1512_v7  ;;  %v1106_v36 = vadd.f32 %v3346_v14, %v2710_v29  ;;  %v1362_v37 = vadd.f32 %v3346_v14, %v2774_v30 }
 0x177   : > { %v1764_v13 = vld [vmem:[#allocation2 + $0x370] ss:$2 sm:$0xff]  ;;  %v1932_v18 = vmax.f32 %v1700_v11, %v1828_v12  ;;  %v1892_v5 = vld [vmem:[#allocation2 + $0x371] ss:$2 sm:$0xff]  ;;  %v2093_v24 = vld [vmem:[#allocation3 + $0xa8] sm:$0xff]  ;;  %v1451_v26 = vmax.f32 %v1103_v15, 0.0 }
 0x178   : > { %v1964_v25 = vmax.f32 %v1764_v13, %v1892_v5  ;;  %v1515_v27 = vmax.f32 %v1359_v16, 0.0  ;;  %v2125_v31 = vmax.f32 %v2061_v10, %v2093_v24  ;;  %v2109_v32 = vld [vmem:[#allocation3 + $0x1a8] sm:$0xff]  ;;  %1575 = vst.msk [vmem:[#allocation2 + $0x188] sm:$0xff] %vm1525_vm3, %v1446_v19  ;;  %1639 = vst.msk [vmem:[#allocation2 + $0x388] sm:$0xff] %vm1525_vm3, %v1510_v20  ;;  %v1097_v38 = vpop.f32.mrb[55].mxu0  ;;  %v1353_v39 = vpop.f32.mrb[55].mxu1 }
 0x179   : > { %v2092_v33 = vld [vmem:[#allocation3 + $0xa0] sm:$0xff]  ;;  %2001 = vst.msk [vmem:[#allocation3 + $0xb8] sm:$0xff] %vm1525_vm3, %v1932_v18  ;;  %v2141_v40 = vmax.f32 %v2077_v17, %v2109_v32  ;;  %1580 = vst.msk [vmem:[#allocation2 + $0x1b0] sm:$0xff] %vm1525_vm3, %v1451_v26  ;;  %v1098_v45 = vadd.f32 %v3346_v14, %v1097_v38  ;;  %v1354_v46 = vadd.f32 %v3346_v14, %v1353_v39  ;;  %v1449_v52 = vmax.f32 %v1095_v28, 0.0  ;;  %v2713_v61 = vpop.f32.mrb[56].mxu0  ;;  %v2777_v62 = vpop.f32.mrb[56].mxu1 }
 0x17a   : > { %v1698_v34 = vld [vmem:[#allocation2 + $0x160] ss:$2 sm:$0xff]  ;;  %v2124_v41 = vmax.f32 %v2060_v23, %v2092_v33  ;;  %2041 = vst.msk [vmem:[#allocation3 + $0x1b8] sm:$0xff] %vm1525_vm3, %v1964_v25  ;;  %v1826_v42 = vld [vmem:[#allocation2 + $0x161] ss:$2 sm:$0xff]  ;;  %1644 = vst.msk [vmem:[#allocation2 + $0x3b0] sm:$0xff] %vm1525_vm3, %v1515_v27  ;;  %v2565_v48 = vpack.c.bf16 %v2125_v31, %v2125_v31  ;;  %v1119_v3 = vadd.f32 %v3346_v14, %v2713_v61 }
 0x17b   : > { %v1762_v43 = vld [vmem:[#allocation2 + $0x360] ss:$2 sm:$0xff]  ;;  %v1890_v44 = vld [vmem:[#allocation2 + $0x361] ss:$2 sm:$0xff]  ;;  %v1931_v50 = vmax.f32 %v1698_v34, %v1826_v42  ;;  %v2581_v53 = vpack.c.bf16 %v2141_v40, %v2141_v40  ;;  %v1513_v56 = vmax.f32 %v1351_v35, 0.0  ;;  %1578 = vst.msk [vmem:[#allocation2 + $0x1a0] sm:$0xff] %vm1525_vm3, %v1449_v52  ;;  %v1375_v4 = vadd.f32 %v3346_v14, %v2777_v62 }
 0x17c   : > { %v2108_v49 = vld [vmem:[#allocation3 + $0x1a0] sm:$0xff]  ;;  %v1963_v51 = vmax.f32 %v1762_v43, %v1890_v44  ;;  %v2564_v54 = vpack.c.bf16 %v2124_v41, %v2124_v41  ;;  %2286 = vst.msk [vmem:[%s3235_s15 + $0x24] sm:$0xf] %vm2276_vm4, %v2565_v48  ;;  %v1452_v57 = vmax.f32 %v1106_v36, 0.0  ;;  %v1516_v58 = vmax.f32 %v1362_v37, 0.0  ;;  %v2063_v6 = vld [vmem:[#allocation3 + $0x98] sm:$0xff] }
 0x17d   : > { %v2140_v55 = vmax.f32 %v2076_v47, %v2108_v49  ;;  %2000 = vst.msk [vmem:[#allocation3 + $0xb0] sm:$0xff] %vm1525_vm3, %v1931_v50  ;;  %v1450_v59 = vmax.f32 %v1098_v45, 0.0  ;;  %v1514_v60 = vmax.f32 %v1354_v46, 0.0  ;;  %v1704_v0 = vld [vmem:[#allocation2 + $0x190] ss:$2 sm:$0xff]  ;;  %1642 = vst.msk [vmem:[#allocation2 + $0x3a0] sm:$0xff] %vm1525_vm3, %v1513_v56 }
 0x17e   : > { %2040 = vst.msk [vmem:[#allocation3 + $0x1b0] sm:$0xff] %vm1525_vm3, %v1963_v51  ;;  %v1832_v1 = vld [vmem:[#allocation2 + $0x191] ss:$2 sm:$0xff]  ;;  %v1768_v2 = vld [vmem:[#allocation2 + $0x390] ss:$2 sm:$0xff]  ;;  %1581 = vst.msk [vmem:[#allocation2 + $0x1b8] sm:$0xff] %vm1525_vm3, %v1452_v57 }
 0x17f   : > { %2302 = vst.msk [vmem:[%s3235_s15 + $0x64] sm:$0xf] %vm2276_vm4, %v2581_v53  ;;  %2285 = vst.msk [vmem:[%s3235_s15 + $0x20] sm:$0xf] %vm2276_vm4, %v2564_v54  ;;  %v2580_v63 = vpack.c.bf16 %v2140_v55, %v2140_v55  ;;  %v2079_v7 = vld [vmem:[#allocation3 + $0x198] sm:$0xff]  ;;  %v1934_v8 = vmax.f32 %v1704_v0, %v1832_v1  ;;  %v1110_v10 = vpop.f32.mrb[57].mxu0 }
 0x180   : > { %v1896_v9 = vld [vmem:[#allocation2 + $0x391] ss:$2 sm:$0xff]  ;;  %1645 = vst.msk [vmem:[#allocation2 + $0x3b8] sm:$0xff] %vm1525_vm3, %v1516_v58  ;;  %1579 = vst.msk [vmem:[#allocation2 + $0x1a8] sm:$0xff] %vm1525_vm3, %v1450_v59  ;;  %v1366_v11 = vpop.f32.mrb[57].mxu1  ;;  %v1455_v17 = vmax.f32 %v1119_v3, 0.0  ;;  %v1111_v18 = vadd.f32 %v3346_v14, %v1110_v10 }
 0x181   : > { %1643 = vst.msk [vmem:[#allocation2 + $0x3a8] sm:$0xff] %vm1525_vm3, %v1514_v60  ;;  %v2095_v12 = vld [vmem:[#allocation3 + $0xb8] sm:$0xff]  ;;  %v1966_v13 = vmax.f32 %v1768_v2, %v1896_v9  ;;  %v1702_v15 = vld [vmem:[#allocation2 + $0x180] ss:$2 sm:$0xff]  ;;  %v1830_v16 = vld [vmem:[#allocation2 + $0x181] ss:$2 sm:$0xff]  ;;  %v1367_v5 = vadd.f32 %v3346_v14, %v1366_v11 }
 0x182   : > { %2301 = vst.msk [vmem:[%s3235_s15 + $0x60] sm:$0xf] %vm2276_vm4, %v2580_v63  ;;  %v2127_v19 = vmax.f32 %v2063_v6, %v2095_v12  ;;  %v2111_v20 = vld [vmem:[#allocation3 + $0x1b8] sm:$0xff]  ;;  %v1933_v21 = vmax.f32 %v1702_v15, %v1830_v16  ;;  %v1766_v22 = vld [vmem:[#allocation2 + $0x380] ss:$2 sm:$0xff]  ;;  %v1519_v24 = vmax.f32 %v1375_v4, 0.0 }
 0x183   : > { %2004 = vst.msk [vmem:[#allocation3 + $0xc8] sm:$0xff] %vm1525_vm3, %v1934_v8  ;;  %v1894_v23 = vld [vmem:[#allocation2 + $0x381] ss:$2 sm:$0xff]  ;;  %v2143_v25 = vmax.f32 %v2079_v7, %v2111_v20  ;;  %2044 = vst.msk [vmem:[#allocation3 + $0x1c8] sm:$0xff] %vm1525_vm3, %v1966_v13  ;;  %v1453_v27 = vmax.f32 %v1111_v18, 0.0  ;;  %v1517_v28 = vmax.f32 %v1367_v5, 0.0 }
 0x184   : > { %v1965_v26 = vmax.f32 %v1766_v22, %v1894_v23  ;;  %1584 = vst.msk [vmem:[#allocation2 + $0x1d0] sm:$0xff] %vm1525_vm3, %v1455_v17  ;;  %v2714_v29 = vpop.f32.mrb[58].mxu0  ;;  %v2778_v30 = vpop.f32.mrb[58].mxu1  ;;  %v2062_v31 = vld [vmem:[#allocation3 + $0x90] sm:$0xff]  ;;  %v2567_v32 = vpack.c.bf16 %v2127_v19, %v2127_v19  ;;  %2003 = vst.msk [vmem:[#allocation3 + $0xc0] sm:$0xff] %vm1525_vm3, %v1933_v21 }
 0x185   : > { %1648 = vst.msk [vmem:[#allocation2 + $0x3d0] sm:$0xff] %vm1525_vm3, %v1519_v24  ;;  %v1122_v33 = vadd.f32 %v3346_v14, %v2714_v29  ;;  %v1378_v34 = vadd.f32 %v3346_v14, %v2778_v30  ;;  %v1113_v35 = vpop.f32.mrb[59].mxu0  ;;  %v1369_v36 = vpop.f32.mrb[59].mxu1  ;;  %v2078_v37 = vld [vmem:[#allocation3 + $0x190] sm:$0xff]  ;;  %v2583_v38 = vpack.c.bf16 %v2143_v25, %v2143_v25  ;;  %1582 = vst.msk [vmem:[#allocation2 + $0x1c0] sm:$0xff] %vm1525_vm3, %v1453_v27 }
 0x186   : > { %v2094_v39 = vld [vmem:[#allocation3 + $0xb0] sm:$0xff]  ;;  %2043 = vst.msk [vmem:[#allocation3 + $0x1c0] sm:$0xff] %vm1525_vm3, %v1965_v26  ;;  %1646 = vst.msk [vmem:[#allocation2 + $0x3c0] sm:$0xff] %vm1525_vm3, %v1517_v28  ;;  %v1114_v41 = vadd.f32 %v3346_v14, %v1113_v35  ;;  %v1370_v42 = vadd.f32 %v3346_v14, %v1369_v36  ;;  %v2717_v47 = vpop.f32.mrb[60].mxu0  ;;  %v2781_v48 = vpop.f32.mrb[60].mxu1 }
 0x187   : > { %v2110_v40 = vld [vmem:[#allocation3 + $0x1b0] sm:$0xff]  ;;  %2288 = vst.msk [vmem:[%s3235_s15 + $0x2c] sm:$0xf] %vm2276_vm4, %v2567_v32  ;;  %v2126_v43 = vmax.f32 %v2062_v31, %v2094_v39  ;;  %v1456_v45 = vmax.f32 %v1122_v33, 0.0  ;;  %v1520_v46 = vmax.f32 %v1378_v34, 0.0  ;;  %v1135_v52 = vadd.f32 %v3346_v14, %v2717_v47  ;;  %v1126_v6 = vpop.f32.mrb[61].mxu0 }
 0x188   : > { %v2142_v44 = vmax.f32 %v2078_v37, %v2110_v40  ;;  %2304 = vst.msk [vmem:[%s3235_s15 + $0x6c] sm:$0xf] %vm2276_vm4, %v2583_v38  ;;  %v1708_v49 = vld [vmem:[#allocation2 + $0x1b0] ss:$2 sm:$0xff]  ;;  %v1836_v50 = vld [vmem:[#allocation2 + $0x1b1] ss:$2 sm:$0xff]  ;;  %v1391_v53 = vadd.f32 %v3346_v14, %v2781_v48  ;;  %v1127_v8 = vadd.f32 %v3346_v14, %v1126_v6 }
 0x189   : > { %v1772_v51 = vld [vmem:[#allocation2 + $0x3b0] ss:$2 sm:$0xff]  ;;  %v2566_v54 = vpack.c.bf16 %v2126_v43, %v2126_v43  ;;  %v1936_v56 = vmax.f32 %v1708_v49, %v1836_v50  ;;  %v1900_v57 = vld [vmem:[#allocation2 + $0x3b1] ss:$2 sm:$0xff]  ;;  %v1706_v58 = vld [vmem:[#allocation2 + $0x1a0] ss:$2 sm:$0xff] }
 0x18a   : > { %v2582_v55 = vpack.c.bf16 %v2142_v44, %v2142_v44  ;;  %v1834_v59 = vld [vmem:[#allocation2 + $0x1a1] ss:$2 sm:$0xff]  ;;  %1585 = vst.msk [vmem:[#allocation2 + $0x1d8] sm:$0xff] %vm1525_vm3, %v1456_v45  ;;  %1649 = vst.msk [vmem:[#allocation2 + $0x3d8] sm:$0xff] %vm1525_vm3, %v1520_v46  ;;  %v1968_v60 = vmax.f32 %v1772_v51, %v1900_v57  ;;  %v1770_v62 = vld [vmem:[#allocation2 + $0x3a0] ss:$2 sm:$0xff] }
 0x18b   : > { %v1935_v61 = vmax.f32 %v1706_v58, %v1834_v59  ;;  %v1898_v63 = vld [vmem:[#allocation2 + $0x3a1] ss:$2 sm:$0xff]  ;;  %v1454_v0 = vmax.f32 %v1114_v41, 0.0  ;;  %2287 = vst.msk [vmem:[%s3235_s15 + $0x28] sm:$0xf] %vm2276_vm4, %v2566_v54  ;;  %v1518_v2 = vmax.f32 %v1370_v42, 0.0 }
 0x18c   : > { %2303 = vst.msk [vmem:[%s3235_s15 + $0x68] sm:$0xf] %vm2276_vm4, %v2582_v55  ;;  %v1967_v1 = vmax.f32 %v1770_v62, %v1898_v63  ;;  %v1459_v3 = vmax.f32 %v1135_v52, 0.0  ;;  %v1523_v4 = vmax.f32 %v1391_v53, 0.0  ;;  %v1382_v7 = vpop.f32.mrb[61].mxu1  ;;  %v2718_v10 = vpop.f32.mrb[62].mxu0 }
 0x18d   : > { %2006 = vst.msk [vmem:[#allocation3 + $0xd8] sm:$0xff] %vm1525_vm3, %v1936_v56  ;;  %2046 = vst.msk [vmem:[#allocation3 + $0x1d8] sm:$0xff] %vm1525_vm3, %v1968_v60  ;;  %v1383_v9 = vadd.f32 %v3346_v14, %v1382_v7  ;;  %v2782_v11 = vpop.f32.mrb[62].mxu1  ;;  %v1138_v12 = vadd.f32 %v3346_v14, %v2718_v10  ;;  %v1129_v15 = vpop.f32.mrb[63].mxu0  ;;  %v1457_v17 = vmax.f32 %v1127_v8, 0.0  ;;  %v2065_v38 = vld [vmem:[#allocation3 + $0xc8] sm:$0xff] }
 0x18e   : > { %2005 = vst.msk [vmem:[#allocation3 + $0xd0] sm:$0xff] %vm1525_vm3, %v1935_v61  ;;  %1583 = vst.msk [vmem:[#allocation2 + $0x1c8] sm:$0xff] %vm1525_vm3, %v1454_v0  ;;  %v1394_v13 = vadd.f32 %v3346_v14, %v2782_v11  ;;  %v1385_v16 = vpop.f32.mrb[63].mxu1  ;;  %v1130_v5 = vadd.f32 %v3346_v14, %v1129_v15  ;;  %v2081_v39 = vld [vmem:[#allocation3 + $0x1c8] sm:$0xff]  ;;  %v2064_v54 = vld [vmem:[#allocation3 + $0xc0] sm:$0xff] }
 0x18f   : > { %2045 = vst.msk [vmem:[#allocation3 + $0x1d0] sm:$0xff] %vm1525_vm3, %v1967_v1  ;;  %1647 = vst.msk [vmem:[#allocation2 + $0x3c8] sm:$0xff] %vm1525_vm3, %v1518_v2  ;;  %v1521_v18 = vmax.f32 %v1383_v9, 0.0  ;;  %v1386_v19 = vadd.f32 %v3346_v14, %v1385_v16  ;;  %v1460_v20 = vmax.f32 %v1138_v12, 0.0  ;;  %v2080_v57 = vld [vmem:[#allocation3 + $0x1c0] sm:$0xff] }
 0x190   : > { %1588 = vst.msk [vmem:[#allocation2 + $0x1f0] sm:$0xff] %vm1525_vm3, %v1459_v3  ;;  %1652 = vst.msk [vmem:[#allocation2 + $0x3f0] sm:$0xff] %vm1525_vm3, %v1523_v4  ;;  %v1524_v21 = vmax.f32 %v1394_v13, 0.0  ;;  %v1458_v27 = vmax.f32 %v1130_v5, 0.0 }
 0x191   : > { %v1712_v22 = vld [vmem:[#allocation2 + $0x1d0] ss:$2 sm:$0xff]  ;;  %v1840_v23 = vld [vmem:[#allocation2 + $0x1d1] ss:$2 sm:$0xff]  ;;  %1586 = vst.msk [vmem:[#allocation2 + $0x1e0] sm:$0xff] %vm1525_vm3, %v1457_v17  ;;  %1650 = vst.msk [vmem:[#allocation2 + $0x3e0] sm:$0xff] %vm1525_vm3, %v1521_v18 }
 0x192   : > { %v1776_v24 = vld [vmem:[#allocation2 + $0x3d0] ss:$2 sm:$0xff]  ;;  %v1938_v25 = vmax.f32 %v1712_v22, %v1840_v23  ;;  %v1904_v26 = vld [vmem:[#allocation2 + $0x3d1] ss:$2 sm:$0xff]  ;;  %1589 = vst.msk [vmem:[#allocation2 + $0x1f8] sm:$0xff] %vm1525_vm3, %v1460_v20  ;;  %1653 = vst.msk [vmem:[#allocation2 + $0x3f8] sm:$0xff] %vm1525_vm3, %v1524_v21 }
 0x193   : > { %v1522_v28 = vmax.f32 %v1386_v19, 0.0  ;;  %v1970_v29 = vmax.f32 %v1776_v24, %v1904_v26  ;;  %1587 = vst.msk [vmem:[#allocation2 + $0x1e8] sm:$0xff] %vm1525_vm3, %v1458_v27 }
 0x194   : > { %2009 = vst.msk [vmem:[#allocation3 + $0xe8] sm:$0xff] %vm1525_vm3, %v1938_v25  ;;  %v2067_v62 = vld [vmem:[#allocation3 + $0xd8] sm:$0xff] }
 0x195   : > { %v1710_v14 = vld [vmem:[#allocation2 + $0x1c0] ss:$2 sm:$0xff]  ;;  %1651 = vst.msk [vmem:[#allocation2 + $0x3e8] sm:$0xff] %vm1525_vm3, %v1522_v28  ;;  %2049 = vst.msk [vmem:[#allocation3 + $0x1e8] sm:$0xff] %vm1525_vm3, %v1970_v29  ;;  %v1838_v30 = vld [vmem:[#allocation2 + $0x1c1] ss:$2 sm:$0xff] }
 0x196   : > { %v1774_v31 = vld [vmem:[#allocation2 + $0x3c0] ss:$2 sm:$0xff]  ;;  %v1937_v32 = vmax.f32 %v1710_v14, %v1838_v30  ;;  %v1902_v33 = vld [vmem:[#allocation2 + $0x3c1] ss:$2 sm:$0xff]  ;;  %v2083_v1 = vld [vmem:[#allocation3 + $0x1d8] sm:$0xff] }
 0x197   : > { %v1969_v34 = vmax.f32 %v1774_v31, %v1902_v33  ;;  %v2066_v4 = vld [vmem:[#allocation3 + $0xd0] sm:$0xff] }
 0x198   : > { %2008 = vst.msk [vmem:[#allocation3 + $0xe0] sm:$0xff] %vm1525_vm3, %v1937_v32  ;;  %v2082_v8 = vld [vmem:[#allocation3 + $0x1d0] sm:$0xff] }
 0x199   : > { %2048 = vst.msk [vmem:[#allocation3 + $0x1e0] sm:$0xff] %vm1525_vm3, %v1969_v34  ;;  %v1716_v35 = vld [vmem:[#allocation2 + $0x1f0] ss:$2 sm:$0xff]  ;;  %v1844_v36 = vld [vmem:[#allocation2 + $0x1f1] ss:$2 sm:$0xff] }
 0x19a   : > { %v1780_v37 = vld [vmem:[#allocation2 + $0x3f0] ss:$2 sm:$0xff]  ;;  %v1940_v40 = vmax.f32 %v1716_v35, %v1844_v36  ;;  %v1908_v41 = vld [vmem:[#allocation2 + $0x3f1] ss:$2 sm:$0xff]  ;;  %v1714_v44 = vld [vmem:[#allocation2 + $0x1e0] ss:$2 sm:$0xff] }
 0x19b   : > { %v2097_v42 = vld [vmem:[#allocation3 + $0xe8] sm:$0xff]  ;;  %v1972_v43 = vmax.f32 %v1780_v37, %v1908_v41 }
 0x19c   : > { %v1842_v45 = vld [vmem:[#allocation2 + $0x1e1] ss:$2 sm:$0xff]  ;;  %v2129_v46 = vmax.f32 %v2065_v38, %v2097_v42  ;;  %2011 = vst.msk [vmem:[#allocation3 + $0xf8] sm:$0xff] %vm1525_vm3, %v1940_v40  ;;  %v1778_v49 = vld [vmem:[#allocation2 + $0x3e0] ss:$2 sm:$0xff] }
 0x19d   : > { %v2113_v47 = vld [vmem:[#allocation3 + $0x1e8] sm:$0xff]  ;;  %v1939_v48 = vmax.f32 %v1714_v44, %v1842_v45  ;;  %2051 = vst.msk [vmem:[#allocation3 + $0x1f8] sm:$0xff] %vm1525_vm3, %v1972_v43 }
 0x19e   : > { %v1906_v50 = vld [vmem:[#allocation2 + $0x3e1] ss:$2 sm:$0xff]  ;;  %v2145_v51 = vmax.f32 %v2081_v39, %v2113_v47  ;;  %v2569_v53 = vpack.c.bf16 %v2129_v46, %v2129_v46 }
 0x19f   : > { %v1971_v52 = vmax.f32 %v1778_v49, %v1906_v50  ;;  %2010 = vst.msk [vmem:[#allocation3 + $0xf0] sm:$0xff] %vm1525_vm3, %v1939_v48  ;;  %v2096_v56 = vld [vmem:[#allocation3 + $0xe0] sm:$0xff] }
 0x1a0   : > { %v2585_v55 = vpack.c.bf16 %v2145_v51, %v2145_v51  ;;  %2290 = vst.msk [vmem:[%s3235_s15 + $0x34] sm:$0xf] %vm2276_vm4, %v2569_v53  ;;  %v2128_v58 = vmax.f32 %v2064_v54, %v2096_v56  ;;  %v2112_v59 = vld [vmem:[#allocation3 + $0x1e0] sm:$0xff] }
 0x1a1   : > { %2050 = vst.msk [vmem:[#allocation3 + $0x1f0] sm:$0xff] %vm1525_vm3, %v1971_v52  ;;  %v2144_v60 = vmax.f32 %v2080_v57, %v2112_v59 }
 0x1a2   : > { %2306 = vst.msk [vmem:[%s3235_s15 + $0x74] sm:$0xf] %vm2276_vm4, %v2585_v55  ;;  %v2568_v61 = vpack.c.bf16 %v2128_v58, %v2128_v58 }
 0x1a3   : > { %v2584_v63 = vpack.c.bf16 %v2144_v60, %v2144_v60  ;;  %v2099_v0 = vld [vmem:[#allocation3 + $0xf8] sm:$0xff] }
 0x1a4   : > { %2289 = vst.msk [vmem:[%s3235_s15 + $0x30] sm:$0xf] %vm2276_vm4, %v2568_v61  ;;  %v2131_v2 = vmax.f32 %v2067_v62, %v2099_v0  ;;  %v2115_v3 = vld [vmem:[#allocation3 + $0x1f8] sm:$0xff] }
 0x1a5   : > { %2305 = vst.msk [vmem:[%s3235_s15 + $0x70] sm:$0xf] %vm2276_vm4, %v2584_v63  ;;  %v2147_v6 = vmax.f32 %v2083_v1, %v2115_v3 }
 0x1a6   : > { %v2098_v7 = vld [vmem:[#allocation3 + $0xf0] sm:$0xff]  ;;  %v2571_v9 = vpack.c.bf16 %v2131_v2, %v2131_v2 }
 0x1a7   : > { %v2130_v10 = vmax.f32 %v2066_v4, %v2098_v7  ;;  %v2587_v12 = vpack.c.bf16 %v2147_v6, %v2147_v6 }
 0x1a8   : > { %v2114_v11 = vld [vmem:[#allocation3 + $0x1f0] sm:$0xff]  ;;  %2292 = vst.msk [vmem:[%s3235_s15 + $0x3c] sm:$0xf] %vm2276_vm4, %v2571_v9 }
 0x1a9   : > { %v2146_v13 = vmax.f32 %v2082_v8, %v2114_v11  ;;  %v2570_v15 = vpack.c.bf16 %v2130_v10, %v2130_v10  ;;  %2308 = vst.msk [vmem:[%s3235_s15 + $0x7c] sm:$0xf] %vm2276_vm4, %v2587_v12 }
 0x1ab   : > { %v2586_v16 = vpack.c.bf16 %v2146_v13, %v2146_v13  ;;  %2291 = vst.msk [vmem:[%s3235_s15 + $0x38] sm:$0xf] %vm2276_vm4, %v2570_v15 }
 0x1ad   : > { %2307 = vst.msk [vmem:[%s3235_s15 + $0x78] sm:$0xf] %vm2276_vm4, %v2586_v16 }
 0x1ae PF: > { %s14_s12 = sadd.s32 1, %s2909_s12  }
 0x1af   : > { %p11_p5 = scmp.ge.s32.totalorder %s14_s12, 4  }
 0x1b1   :  { %13 = sbr.rel (!%p11_p5) target bundleno = 1 (0x1), region = 209 }
 0x1b8   :  { %2333 = vsyncpa [#allocation5], 1 }
 0x1b9   :  { %2335 = vsyncpa [#allocation5 + $0x1], 1 }

// kernel: crnn_forward.6
= control target key start
LH: loop header
LB: loop body
LE: loop exit
PB: predicated region body
PF: predicated region fallthrough
CT: control target
= control target key end

     0   :  { %8 = vsyncpa [#allocation5], 0  ;;  %s2532_s12 = smov 0   ;;  %s2951_s0 = inlined_call_operand.vmem [shape: bf16[512,576], index: 0, kind: input, shape index: {}]   ;;  %s2952_s1 = inlined_call_operand.vmem [shape: bf16[576,128], index: 1, kind: input, shape index: {}]   ;;  %s2953_s2 = inlined_call_operand.hbm [shape: f32[1,128], index: 2, kind: input, shape index: {}]   ;;  %s2954_s3 = inlined_call_operand.vmem [shape: bf16[8,16,128], index: 3, kind: output, shape index: {}]  }
   0x1 LB: > { %s2538_s13 = sadd.s32 4294967295, %s2509_s12   ;;  %p1818_p0 = scmp.ge.s32.totalorder %s2509_s12, 1  ;;  %s2509_s12 = sphi %s2532_s12, %s14_s12  }
   0x2   : > { %p113_p1 = scmp.lt.s32.totalorder %s2509_s12, 3  ;;  %p2955_p3 = scmp.eq.s32.totalorder %s2538_s13, 0 }
   0x3   : > { %s2511_s15 = smov [#allocation4]   ;;  %s2471_s20 = scalar_lea.hbm %s2953_s2, 16 }
   0x4   : > { %p2542_p2 = pnand %p1818_p0, %p113_p1  ;;  %s129_s16 = sshll.u32 %s2511_s15, 4  ;;  %s130_s16 = int_to_ptr.vmem [resolvable:$true] %s129_s16 }
   0x5   : > { %p2472_p6 = scmp.ne.s32.totalorder %s2953_s2, %s2471_s20  ;;  %p2478_p10 = scmp.lt.u32.totalorder %s2471_s20, %s2953_s2 }
   0x6   : > { %s2957_s14 = scalar_select %p2542_p2, 1, 0 }
   0x7   : > { %p2308_p4 = pneg %p2542_p2 }
   0x9   : > { %p2551_p5 = pnand %p2955_p3, %p2308_p4 }
   0xb   : > { %p2473_p7 = pneg %p2551_p5 }
   0xd   : > { %p2474_p8 = pnand %p2473_p7, %p2472_p6 }
   0xf   : > { %p2475_p9 = pneg %p2474_p8 }
  0x11   : > { %p2480_p11 = pnand %p2478_p10, %p2475_p9 }
  0x13   : > { %2483 = shalt.err (!%p2480_p11)
}
  0x14   : > { %s2484_s25 = scalar_lea.vmem %s130_s16, 16  ;;  %s2491_s26 = scalar_lea.vmem %s130_s16, 32 }
  0x15   : > { %p2485_p12 = scmp.ne.s32.totalorder %s130_s16, %s2484_s25  ;;  %p2492_p1 = scmp.lt.s32.totalorder %s130_s16, %s130_s16 }
  0x16   : > { %p2493_p4 = scmp.lt.s32.totalorder %s2491_s26, %s2484_s25 }
  0x17   : > { %p2487_p13 = pnand %p2485_p12, %p2473_p7 }
  0x18   : > { %p2494_p3 = por %p2493_p4, %p2492_p1 }
  0x19   : > { %p2488_p0 = pneg %p2487_p13 }
  0x1b   : > { %p2495_p2 = pnand %p2494_p3, %p2488_p0 }
  0x1d   : > { %2498 = shalt.err (!%p2495_p2)
}
  0x1e   : > { %2311 = dma.hbm_to_vmem [thread:$0]  (!%p2551_p5), %s2953_s2, 16, %s130_s16, [#allocation5]  }
  0x1f   : > { %p2959_p6 = scmp.ne.s32.totalorder %s2957_s14, 0 }
  0x20   : > { %p2960_p8 = scmp.eq.s32.totalorder (!%p2959_p6), %s2538_s13, 0 }
  0x21   : > { %152 = sbr.rel (%p2959_p6) target bundleno = 464 (0x1d0), region = 32 }
  0x28   : > { %2504 = dma.done.wait (%p2960_p8), [#allocation5], 16   ;;  %p2961_p7 = pmov %p2960_p8 }
  0x29   : > { %s1823_s29 = sshll.u32 %s2538_s13, 5  ;;  %v2323_v0 = vld [vmem:[%s2952_s1 + $0x40] sm:$0xff]   ;;  %v2325_v2 = vld [vmem:[%s2952_s1 + $0x48] sm:$0xff]   ;;  %v2327_v4 = vld [vmem:[%s2952_s1 + $0x50] sm:$0xff]   ;;  %vm984_vm0 = vcmask 523264  }
  0x2a   : > { %2506 = vsyncadd (%p2961_p7), [#allocation5], 4294967280  ;;  %v2324_v1 = vld [vmem:[%s2952_s1] sm:$0xff]   ;;  %2003 = vmatprep.subr.bf16.mxu0 %v2323_v0  ;;  %2287 = vmatprep.subr.bf16.mxu1 %v2323_v0  ;;  %p179_p2 = scmp.lt.s32.totalorder %s1823_s29, 63  ;;  %v2326_v3 = vld [vmem:[%s2952_s1 + $0x8] sm:$0xff]  }
  0x2b   : > { %2004 = vmatpush3.bf16.msra.mxu0 %v2324_v1  ;;  %2295 = vmatpush3.bf16.msra.mxu1 %v2324_v1  ;;  %v2328_v5 = vld [vmem:[%s2952_s1 + $0x10] sm:$0xff]   ;;  %v2329_v6 = vld [vmem:[%s2952_s1 + $0x58] sm:$0xff]   ;;  %v2331_v8 = vld [vmem:[%s2952_s1 + $0x60] sm:$0xff]  }
  0x2c   : > { %2005 = vmatprep.subr.bf16.mxu0 %v2325_v2  ;;  %2288 = vmatprep.subr.bf16.mxu1 %v2325_v2  ;;  %s2964_s29 = smov (!%p179_p2, %s1823_s29), 63  ;;  %v2330_v7 = vld [vmem:[%s2952_s1 + $0x18] sm:$0xff]   ;;  %v2332_v9 = vld [vmem:[%s2952_s1 + $0x20] sm:$0xff]   ;;  %v2333_v10 = vld [vmem:[%s2952_s1 + $0x68] sm:$0xff]  }
  0x2d   : > { %s2303_s19 = smul.u32 20, %s2964_s29  ;;  %v2334_v13 = vld [vmem:[%s2952_s1 + $0x28] sm:$0xff]   ;;  %v2335_v14 = vld [vmem:[%s2952_s1 + $0x70] sm:$0xff]   ;;  %v2337_v16 = vld [vmem:[%s2952_s1 + $0x78] sm:$0xff]  }
  0x2e   : > { %v2336_v15 = vld [vmem:[%s2952_s1 + $0x30] sm:$0xff]   ;;  %v2338_v17 = vld [vmem:[%s2952_s1 + $0x38] sm:$0xff]   ;;  %v2345_v18 = vld [vmem:[%s2952_s1 + $0xc0] sm:$0xff]  }
  0x2f   : > { %2006 = vmatpush3.bf16.msra.mxu0 %v2326_v3  ;;  %2296 = vmatpush3.bf16.msra.mxu1 %v2326_v3  ;;  %s2608_s26 = scalar_lea.vmem %s2951_s0, %s2303_s19  ;;  %v2348_v19 = vld [vmem:[%s2952_s1 + $0x100] sm:$0xff]   ;;  %v2347_v23 = vld [vmem:[%s2952_s1 + $0xc8] sm:$0xff]   ;;  %v2356_v28 = vld [vmem:[%s2952_s1 + $0xd0] sm:$0xff]  }
  0x30   : > { %2007 = vmatprep.subr.bf16.mxu0 %v2327_v4  ;;  %2289 = vmatprep.subr.bf16.mxu1 %v2327_v4  ;;  %v2341_v11 = vld [vmem:[%s2608_s26 + $0x4] ss:$20 sps:$4 sm:$0xff]   ;;  %v2339_v20 = vld [vmem:[%s2608_s26] ss:$20 sps:$4 sm:$0xff]   ;;  %v2349_v26 = vld [vmem:[%s2952_s1 + $0x88] sm:$0xff]  }
  0x31   : > { %v2344_v12 = vld [vmem:[%s2608_s26 + $0x1e4] ss:$20 sps:$4 sm:$0xff]   ;;  %1065 = vmatprep.mubr.bf16.mxu0 %v2341_v11  ;;  %v2342_v21 = vld [vmem:[%s2608_s26 + $0x1e0] ss:$20 sps:$4 sm:$0xff]   ;;  %v2354_v27 = vld [vmem:[%s2608_s26 + $0x28] ss:$20 sps:$4 sm:$0xff]  }
  0x32   : > { %1161 = vmatprep.mubr.bf16.mxu1 %v2344_v12  ;;  %v2346_v22 = vld [vmem:[%s2952_s1 + $0x80] sm:$0xff]   ;;  %v2355_v29 = vld [vmem:[%s2608_s26 + $0x208] ss:$20 sps:$4 sm:$0xff]   ;;  %v2357_v30 = vld [vmem:[%s2952_s1 + $0x90] sm:$0xff]  }
  0x33   : > { %2008 = vmatpush3.bf16.msra.mxu0 %v2328_v5  ;;  %2297 = vmatpush3.bf16.msra.mxu1 %v2328_v5  ;;  %v2350_v24 = vld [vmem:[%s2608_s26 + $0x2c] ss:$20 sps:$4 sm:$0xff]   ;;  %v2358_v31 = vld [vmem:[%s2952_s1 + $0xd8] sm:$0xff]   ;;  %v2360_v32 = vld [vmem:[%s2608_s26 + $0x54] ss:$20 sps:$4 sm:$0xff]  }
  0x34   : > { %2009 = vmatprep.subr.bf16.mxu0 %v2329_v6  ;;  %2290 = vmatprep.subr.bf16.mxu1 %v2329_v6  ;;  %v2352_v25 = vld [vmem:[%s2608_s26 + $0x20c] ss:$20 sps:$4 sm:$0xff]   ;;  %v2362_v33 = vld [vmem:[%s2608_s26 + $0x234] ss:$20 sps:$4 sm:$0xff]   ;;  %v2359_v34 = vld [vmem:[%s2952_s1 + $0x98] sm:$0xff]  }
  0x35   : > { %v2379_v35 = vld [vmem:[%s2952_s1 + $0x108] sm:$0xff]   ;;  %v2364_v36 = vld [vmem:[%s2608_s26 + $0x50] ss:$20 sps:$4 sm:$0xff]   ;;  %v2378_v49 = vld [vmem:[%s2952_s1 + $0xf8] sm:$0xff]  }
  0x36   : > { %v2366_v37 = vld [vmem:[%s2952_s1 + $0xe0] sm:$0xff]   ;;  %v2368_v40 = vld [vmem:[%s2952_s1 + $0xe8] sm:$0xff]   ;;  %v2370_v41 = vld [vmem:[%s2608_s26 + $0x7c] ss:$20 sps:$4 sm:$0xff]  }
  0x37   : > { %2010 = vmatpush3.bf16.msra.mxu0 %v2330_v7  ;;  %2298 = vmatpush3.bf16.msra.mxu1 %v2330_v7  ;;  %v2365_v38 = vld [vmem:[%s2608_s26 + $0x230] ss:$20 sps:$4 sm:$0xff]   ;;  %v2369_v43 = vld [vmem:[%s2952_s1 + $0xa8] sm:$0xff]   ;;  %v2380_v52 = vld [vmem:[%s2952_s1 + $0xb8] sm:$0xff]  }
  0x38   : > { %2011 = vmatprep.subr.bf16.mxu0 %v2331_v8  ;;  %2291 = vmatprep.subr.bf16.mxu1 %v2331_v8  ;;  %v2367_v39 = vld [vmem:[%s2952_s1 + $0xa0] sm:$0xff]   ;;  %v2372_v42 = vld [vmem:[%s2608_s26 + $0x25c] ss:$20 sps:$4 sm:$0xff]   ;;  %v2374_v44 = vld [vmem:[%s2608_s26 + $0x78] ss:$20 sps:$4 sm:$0xff]  }
  0x39   : > { %v2375_v45 = vld [vmem:[%s2608_s26 + $0x258] ss:$20 sps:$4 sm:$0xff]   ;;  %v2376_v46 = vld [vmem:[%s2952_s1 + $0xf0] sm:$0xff]   ;;  %v2383_v53 = vld [vmem:[%s2608_s26 + $0x8] ss:$20 sps:$4 sm:$0xff]  }
  0x3a   : > { %v2399_v47 = vld [vmem:[%s2952_s1 + $0x110] sm:$0xff]   ;;  %v2381_v50 = vld [vmem:[%s2608_s26 + $0xa4] ss:$20 sps:$4 sm:$0xff]   ;;  %v2385_v51 = vld [vmem:[%s2608_s26 + $0xc] ss:$20 sps:$4 sm:$0xff]  }
  0x3b   : > { %2012 = vmatpush3.bf16.msra.mxu0 %v2332_v9  ;;  %2299 = vmatpush3.bf16.msra.mxu1 %v2332_v9  ;;  %v2377_v48 = vld [vmem:[%s2952_s1 + $0xb0] sm:$0xff]   ;;  %v2387_v55 = vld [vmem:[%s2608_s26 + $0xcc] ss:$20 sps:$4 sm:$0xff]   ;;  %v2418_v56 = vld [vmem:[%s2952_s1 + $0x118] sm:$0xff]  }
  0x3c   : > { %2013 = vmatprep.subr.bf16.mxu0 %v2333_v10  ;;  %2292 = vmatprep.subr.bf16.mxu1 %v2333_v10  ;;  %v2386_v54 = vld [vmem:[%s2608_s26 + $0xa0] ss:$20 sps:$4 sm:$0xff]   ;;  %v2391_v58 = vld [vmem:[%s2608_s26 + $0xc8] ss:$20 sps:$4 sm:$0xff]   ;;  %v2392_v59 = vld [vmem:[%s2608_s26 + $0x30] ss:$20 sps:$4 sm:$0xff]  }
  0x3d   : > { %v2389_v57 = vld [vmem:[%s2608_s26 + $0x34] ss:$20 sps:$4 sm:$0xff]   ;;  %v2395_v61 = vld [vmem:[%s2608_s26 + $0x5c] ss:$20 sps:$4 sm:$0xff]   ;;  %v2398_v63 = vld [vmem:[%s2608_s26 + $0x58] ss:$20 sps:$4 sm:$0xff]  }
  0x3e   : > { %v2393_v60 = vld [vmem:[%s2608_s26 + $0xf4] ss:$20 sps:$4 sm:$0xff]   ;;  %v2397_v62 = vld [vmem:[%s2608_s26 + $0xf0] ss:$20 sps:$4 sm:$0xff]   ;;  %v2404_v2 = vld [vmem:[%s2608_s26 + $0x118] ss:$20 sps:$4 sm:$0xff]  }
  0x3f   : > { %2014 = vmatpush3.bf16.msra.mxu0 %v2334_v13  ;;  %2300 = vmatpush3.bf16.msra.mxu1 %v2334_v13  ;;  %v2400_v0 = vld [vmem:[%s2608_s26 + $0x11c] ss:$20 sps:$4 sm:$0xff]   ;;  %v2402_v1 = vld [vmem:[%s2608_s26 + $0x84] ss:$20 sps:$4 sm:$0xff]   ;;  %v2405_v3 = vld [vmem:[%s2608_s26 + $0x80] ss:$20 sps:$4 sm:$0xff]  }
  0x40   : > { %2015 = vmatprep.subr.bf16.mxu0 %v2335_v14  ;;  %2293 = vmatprep.subr.bf16.mxu1 %v2335_v14  ;;  %v2406_v4 = vld [vmem:[%s2608_s26 + $0x144] ss:$20 sps:$4 sm:$0xff]   ;;  %v2408_v5 = vld [vmem:[%s2608_s26 + $0xac] ss:$20 sps:$4 sm:$0xff]   ;;  %v2411_v7 = vld [vmem:[%s2608_s26 + $0xa8] ss:$20 sps:$4 sm:$0xff]  }
  0x41   : > { %v2410_v6 = vld [vmem:[%s2608_s26 + $0x140] ss:$20 sps:$4 sm:$0xff]   ;;  %v2416_v10 = vld [vmem:[%s2608_s26 + $0x168] ss:$20 sps:$4 sm:$0xff]   ;;  %v2417_v11 = vld [vmem:[%s2608_s26 + $0xd0] ss:$20 sps:$4 sm:$0xff]  }
  0x42   : > { %v2412_v8 = vld [vmem:[%s2608_s26 + $0x16c] ss:$20 sps:$4 sm:$0xff]   ;;  %v2414_v9 = vld [vmem:[%s2608_s26 + $0xd4] ss:$20 sps:$4 sm:$0xff]   ;;  %v2421_v13 = vld [vmem:[%s2608_s26 + $0xfc] ss:$20 sps:$4 sm:$0xff]  }
  0x43   : > { %2016 = vmatpush3.bf16.msra.mxu0 %v2336_v15  ;;  %2301 = vmatpush3.bf16.msra.mxu1 %v2336_v15  ;;  %v2419_v12 = vld [vmem:[%s2608_s26 + $0x194] ss:$20 sps:$4 sm:$0xff]   ;;  %v2423_v14 = vld [vmem:[%s2608_s26 + $0x190] ss:$20 sps:$4 sm:$0xff]   ;;  %v2424_v15 = vld [vmem:[%s2608_s26 + $0xf8] ss:$20 sps:$4 sm:$0xff]  }
  0x44   : > { %2017 = vmatprep.subr.bf16.mxu0 %v2337_v16  ;;  %2294 = vmatprep.subr.bf16.mxu1 %v2337_v16  ;;  %v2425_v16 = vld [vmem:[%s2608_s26 + $0x1bc] ss:$20 sps:$4 sm:$0xff]  }
  0x47   : > { %2018 = vmatpush3.bf16.msra.mxu0 %v2338_v17  ;;  %2302 = vmatpush3.bf16.msra.mxu1 %v2338_v17  ;;  %v2427_v17 = vld [vmem:[%s2608_s26 + $0x124] ss:$20 sps:$4 sm:$0xff]  }
  0x48   : > { %2115 = vmatprep.subr.bf16.mxu1 %v2345_v18  ;;  %2247 = vmatprep.subr.bf16.mxu0 %v2348_v19  ;;  %v2429_v18 = vld [vmem:[%s2608_s26 + $0x1b8] ss:$20 sps:$4 sm:$0xff]  }
  0x4a   : > { %1066 = vmatmul.mubr.bf16.vlgmr.msra.gmra.mrb[0].mxu0 %v2339_v20  ;;  %1162 = vmatmul.mubr.bf16.vlgmr.msra.gmra.mrb[0].mxu1 %v2342_v21  ;;  %v2431_v20 = vld [vmem:[%s2608_s26 + $0x14c] ss:$20 sps:$4 sm:$0xff]   ;;  %v2433_v21 = vld [vmem:[%s2608_s26 + $0x10] ss:$20 sps:$4 sm:$0xff]  }
  0x4b   : > { %2116 = vmatpush3.bf16.msra.mxu1 %v2346_v22  ;;  %2248 = vmatpush3.bf16.msra.mxu0 %v2348_v19  ;;  %v2430_v19 = vld [vmem:[%s2608_s26 + $0x120] ss:$20 sps:$4 sm:$0xff]   ;;  %v2434_v22 = vld [vmem:[%s2608_s26 + $0x148] ss:$20 sps:$4 sm:$0xff]  }
  0x4c   : > { %2117 = vmatprep.subr.bf16.mxu1 %v2347_v23  ;;  %1073 = vmatprep.mubr.bf16.mxu0 %v2350_v24  ;;  %v2435_v23 = vld [vmem:[%s2608_s26 + $0x38] ss:$20 sps:$4 sm:$0xff]   ;;  %v2436_v24 = vld [vmem:[%s2608_s26 + $0x174] ss:$20 sps:$4 sm:$0xff]  }
  0x4d   : > { %1169 = vmatprep.mubr.bf16.mxu1 %v2352_v25  ;;  %2249 = vmatprep.subr.bf16.mxu0 %v2379_v35  ;;  %v2438_v25 = vld [vmem:[%s2608_s26 + $0x60] ss:$20 sps:$4 sm:$0xff]  }
  0x4f   : > { %2118 = vmatpush3.bf16.msra.mxu1 %v2349_v26  ;;  %2250 = vmatpush3.bf16.msra.mxu0 %v2379_v35  ;;  %v2439_v26 = vld [vmem:[%s2608_s26 + $0x170] ss:$20 sps:$4 sm:$0xff]   ;;  %v2450_v35 = vld [vmem:[%s2608_s26 + $0x128] ss:$20 sps:$4 sm:$0xff]  }
  0x50   : > { %2119 = vmatprep.subr.bf16.mxu1 %v2356_v28  ;;  %2251 = vmatprep.subr.bf16.mxu0 %v2399_v47  ;;  %v2441_v28 = vld [vmem:[%s2608_s26 + $0x19c] ss:$20 sps:$4 sm:$0xff]  }
  0x52   : > { %1074 = vmatmul.mubr.bf16.gmra.mrb[4].mxu0 %v2354_v27  ;;  %1170 = vmatmul.mubr.bf16.gmra.mrb[4].mxu1 %v2355_v29  ;;  %v2440_v27 = vld [vmem:[%s2608_s26 + $0x88] ss:$20 sps:$4 sm:$0xff]   ;;  %v2443_v29 = vld [vmem:[%s2608_s26 + $0xb0] ss:$20 sps:$4 sm:$0xff]  }
  0x53   : > { %2120 = vmatpush3.bf16.msra.mxu1 %v2357_v30  ;;  %1081 = vmatprep.mubr.bf16.mxu0 %v2360_v32  ;;  %v2444_v30 = vld [vmem:[%s2608_s26 + $0x198] ss:$20 sps:$4 sm:$0xff]  }
  0x54   : > { %2121 = vmatprep.subr.bf16.mxu1 %v2358_v31  ;;  %1177 = vmatprep.mubr.bf16.mxu1 %v2362_v33  ;;  %v2445_v31 = vld [vmem:[%s2608_s26 + $0xd8] ss:$20 sps:$4 sm:$0xff]   ;;  %v2448_v33 = vld [vmem:[%s2608_s26 + $0x100] ss:$20 sps:$4 sm:$0xff]  }
  0x55   : > { %2252 = vmatpush3.bf16.msra.mxu0 %v2399_v47  ;;  %v2446_v32 = vld [vmem:[%s2608_s26 + $0x1c4] ss:$20 sps:$4 sm:$0xff]  }
  0x56   : > { %2253 = vmatprep.subr.bf16.mxu0 %v2418_v56  ;;  %v2465_v47 = vld [vmem:[%s2608_s26 + $0x218] ss:$20 sps:$4 sm:$0xff]  }
  0x57   : > { %2122 = vmatpush3.bf16.msra.mxu1 %v2359_v34  ;;  %v2449_v34 = vld [vmem:[%s2608_s26 + $0x1c0] ss:$20 sps:$4 sm:$0xff]  }
  0x58   : > { %2123 = vmatprep.subr.bf16.mxu1 %v2366_v37  ;;  %v2453_v37 = vld [vmem:[%s2608_s26 + $0x150] ss:$20 sps:$4 sm:$0xff]  }
  0x59   : > { %2254 = vmatpush3.bf16.msra.mxu0 %v2418_v56 }
  0x5a   : > { %1082 = vmatmul.mubr.bf16.gmra.mrb[8].mxu0 %v2364_v36  ;;  %1178 = vmatmul.mubr.bf16.gmra.mrb[8].mxu1 %v2365_v38  ;;  %v2451_v36 = vld [vmem:[%s2608_s26 + $0x1ec] ss:$20 sps:$4 sm:$0xff]   ;;  %v2454_v38 = vld [vmem:[%s2608_s26 + $0x1e8] ss:$20 sps:$4 sm:$0xff]  }
  0x5b   : > { %2124 = vmatpush3.bf16.msra.mxu1 %v2367_v39  ;;  %1089 = vmatprep.mubr.bf16.mxu0 %v2370_v41  ;;  %v2455_v39 = vld [vmem:[%s2608_s26 + $0x178] ss:$20 sps:$4 sm:$0xff]   ;;  %v2458_v41 = vld [vmem:[%s2608_s26 + $0x1a0] ss:$20 sps:$4 sm:$0xff]  }
  0x5c   : > { %2125 = vmatprep.subr.bf16.mxu1 %v2368_v40  ;;  %1185 = vmatprep.mubr.bf16.mxu1 %v2372_v42  ;;  %v2456_v40 = vld [vmem:[%s2608_s26 + $0x214] ss:$20 sps:$4 sm:$0xff]   ;;  %v2459_v42 = vld [vmem:[%s2608_s26 + $0x210] ss:$20 sps:$4 sm:$0xff]  }
  0x5f   : > { %2126 = vmatpush3.bf16.msra.mxu1 %v2369_v43  ;;  %v2460_v43 = vld [vmem:[%s2608_s26 + $0x1c8] ss:$20 sps:$4 sm:$0xff]  }
  0x60   : > { %2127 = vmatprep.subr.bf16.mxu1 %v2376_v46  ;;  %v2464_v46 = vld [vmem:[%s2608_s26 + $0x238] ss:$20 sps:$4 sm:$0xff]  }
  0x62   : > { %1090 = vmatmul.mubr.bf16.gmra.mrb[12].mxu0 %v2374_v44  ;;  %1186 = vmatmul.mubr.bf16.gmra.mrb[12].mxu1 %v2375_v45  ;;  %v2461_v44 = vld [vmem:[%s2608_s26 + $0x23c] ss:$20 sps:$4 sm:$0xff]  }
  0x63   : > { %2128 = vmatpush3.bf16.msra.mxu1 %v2377_v48  ;;  %1097 = vmatprep.mubr.bf16.mxu0 %v2381_v50  ;;  %v2463_v45 = vld [vmem:[%s2608_s26 + $0x1f0] ss:$20 sps:$4 sm:$0xff]   ;;  %v2469_v50 = vld [vmem:[%s2608_s26 + $0x260] ss:$20 sps:$4 sm:$0xff]  }
  0x64   : > { %2129 = vmatprep.subr.bf16.mxu1 %v2378_v49  ;;  %1226 = vmatprep.mubr.bf16.mxu1 %v2385_v51  ;;  %v2466_v48 = vld [vmem:[%s2608_s26 + $0x264] ss:$20 sps:$4 sm:$0xff]   ;;  %v2468_v49 = vld [vmem:[%s2608_s26 + $0x240] ss:$20 sps:$4 sm:$0xff]   ;;  %v2470_v51 = vld [vmem:[%s2608_s26 + $0x268] ss:$20 sps:$4 sm:$0xff]  }
  0x65   : > { %s1825_s26 = sshll.u32 %s2538_s13, 2 }
  0x66   : > { %p2888_p3 = scmp.lt.s32.totalorder %s1825_s26, 7 }
  0x67   : > { %2130 = vmatpush3.bf16.msra.mxu1 %v2380_v52 }
  0x68   : > { %s2966_s26 = smov (!%p2888_p3, %s1825_s26), 7 }
  0x69   : > { %s1971_s13 = sshll.u32 %s2966_s26, 3 }
  0x6a   : > { %1098 = vmatmul.mubr.bf16.gmra.mrb[16].mxu0 %v2386_v54  ;;  %1227 = vmatmul.mubr.bf16.vlgmr.msra.gmra.mrb[16].mxu1 %v2383_v53  ;;  %s2918_s9 = scalar_lea.vmem %s2954_s3, %s1971_s13 }
  0x6b   : > { %1105 = vmatprep.mubr.bf16.mxu0 %v2387_v55  ;;  %1234 = vmatprep.mubr.bf16.mxu1 %v2389_v57 }
  0x72   : > { %1106 = vmatmul.mubr.bf16.gmra.mrb[20].mxu0 %v2391_v58  ;;  %1235 = vmatmul.mubr.bf16.gmra.mrb[20].mxu1 %v2392_v59 }
  0x73   : > { %1113 = vmatprep.mubr.bf16.mxu0 %v2393_v60  ;;  %1242 = vmatprep.mubr.bf16.mxu1 %v2395_v61 }
  0x7a   : > { %1114 = vmatmul.mubr.bf16.gmra.mrb[24].mxu0 %v2397_v62  ;;  %1243 = vmatmul.mubr.bf16.gmra.mrb[24].mxu1 %v2398_v63 }
  0x7b   : > { %1121 = vmatprep.mubr.bf16.mxu0 %v2400_v0  ;;  %1250 = vmatprep.mubr.bf16.mxu1 %v2402_v1 }
  0x82   : > { %1122 = vmatmul.mubr.bf16.gmra.mrb[28].mxu0 %v2404_v2  ;;  %1251 = vmatmul.mubr.bf16.gmra.mrb[28].mxu1 %v2405_v3 }
  0x83   : > { %1129 = vmatprep.mubr.bf16.mxu0 %v2406_v4  ;;  %1258 = vmatprep.mubr.bf16.mxu1 %v2408_v5 }
  0x8a   : > { %1130 = vmatmul.mubr.bf16.gmra.mrb[32].mxu0 %v2410_v6  ;;  %1259 = vmatmul.mubr.bf16.gmra.mrb[32].mxu1 %v2411_v7 }
  0x8b   : > { %1137 = vmatprep.mubr.bf16.mxu0 %v2412_v8  ;;  %1266 = vmatprep.mubr.bf16.mxu1 %v2414_v9 }
  0x92   : > { %1138 = vmatmul.mubr.bf16.gmra.mrb[36].mxu0 %v2416_v10  ;;  %1267 = vmatmul.mubr.bf16.gmra.mrb[36].mxu1 %v2417_v11 }
  0x93   : > { %1145 = vmatprep.mubr.bf16.mxu0 %v2419_v12  ;;  %1274 = vmatprep.mubr.bf16.mxu1 %v2421_v13 }
  0x9a   : > { %1146 = vmatmul.mubr.bf16.gmra.mrb[40].mxu0 %v2423_v14  ;;  %1275 = vmatmul.mubr.bf16.gmra.mrb[40].mxu1 %v2424_v15 }
  0x9b   : > { %1153 = vmatprep.mubr.bf16.mxu0 %v2425_v16  ;;  %1282 = vmatprep.mubr.bf16.mxu1 %v2427_v17 }
  0xa2   : > { %1154 = vmatmul.mubr.bf16.gmra.mrb[44].mxu0 %v2429_v18  ;;  %1283 = vmatmul.mubr.bf16.gmra.mrb[44].mxu1 %v2430_v19 }
  0xa3   : > { %1290 = vmatprep.mubr.bf16.mxu1 %v2431_v20  ;;  %2255 = vmatprep.mubr.msk.bf16.mxu0 %vm984_vm0, %v2433_v21 }
  0xaa   : > { %1291 = vmatmul.mubr.bf16.gmra.mrb[48].mxu1 %v2434_v22  ;;  %2256 = vmatmul.mubr.msk.bf16.vlgmr.msra.gmra.mrb[48].mxu0 %vm984_vm0, %v2435_v23 }
  0xab   : > { %1298 = vmatprep.mubr.bf16.mxu1 %v2436_v24  ;;  %2259 = vmatprep.mubr.msk.bf16.mxu0 %vm984_vm0, %v2438_v25 }
  0xb2   : > { %1299 = vmatmul.mubr.bf16.gmra.mrb[52].mxu1 %v2439_v26  ;;  %2260 = vmatmul.mubr.msk.bf16.gmra.mrb[52].mxu0 %vm984_vm0, %v2440_v27 }
  0xb3   : > { %1306 = vmatprep.mubr.bf16.mxu1 %v2441_v28  ;;  %2263 = vmatprep.mubr.msk.bf16.mxu0 %vm984_vm0, %v2443_v29 }
  0xba   : > { %1307 = vmatmul.mubr.bf16.gmra.mrb[56].mxu1 %v2444_v30  ;;  %2264 = vmatmul.mubr.msk.bf16.gmra.mrb[56].mxu0 %vm984_vm0, %v2445_v31 }
  0xbb   : > { %1314 = vmatprep.mubr.bf16.mxu1 %v2446_v32  ;;  %2267 = vmatprep.mubr.msk.bf16.mxu0 %vm984_vm0, %v2448_v33 }
  0xc2   : > { %1315 = vmatmul.mubr.bf16.gmra.mrb[60].mxu1 %v2449_v34  ;;  %2268 = vmatmul.mubr.msk.bf16.gmra.mrb[60].mxu0 %vm984_vm0, %v2450_v35 }
  0xc3   : > { %1322 = vmatprep.mubr.bf16.mxu1 %v2451_v36  ;;  %2271 = vmatprep.mubr.msk.bf16.mxu0 %vm984_vm0, %v2453_v37 }
  0xca   : > { %1323 = vmatmul.mubr.bf16.gmra.mrb[64].mxu1 %v2454_v38  ;;  %2272 = vmatmul.mubr.msk.bf16.gmra.mrb[64].mxu0 %vm984_vm0, %v2455_v39  ;;  %v2803_v38 = vld [vmem:[#allocation4] ss:$0 sm:$0xff] }
  0xcb   : > { %1330 = vmatprep.mubr.bf16.mxu1 %v2456_v40  ;;  %2275 = vmatprep.mubr.msk.bf16.mxu0 %vm984_vm0, %v2458_v41 }
  0xd2   : > { %1331 = vmatmul.mubr.bf16.gmra.mrb[68].mxu1 %v2459_v42  ;;  %2276 = vmatmul.mubr.msk.bf16.gmra.mrb[68].mxu0 %vm984_vm0, %v2460_v43 }
  0xd3   : > { %1338 = vmatprep.mubr.bf16.mxu1 %v2461_v44  ;;  %2279 = vmatprep.mubr.msk.bf16.mxu0 %vm984_vm0, %v2463_v45 }
  0xda   : > { %1339 = vmatmul.mubr.bf16.gmra.mrb[72].mxu1 %v2464_v46  ;;  %2280 = vmatmul.mubr.msk.bf16.gmra.mrb[72].mxu0 %vm984_vm0, %v2465_v47 }
  0xdb   : > { %1346 = vmatprep.mubr.bf16.mxu1 %v2466_v48  ;;  %2283 = vmatprep.mubr.msk.bf16.mxu0 %vm984_vm0, %v2468_v49 }
  0xe2   : > { %1347 = vmatmul.mubr.bf16.gmra.mrb[76].mxu1 %v2469_v50  ;;  %2284 = vmatmul.mubr.msk.bf16.gmra.mrb[76].mxu0 %vm984_vm0, %v2470_v51 }
 0x11d   : > { %v2091_v52 = vpop.f32.mrb[0].mxu1  ;;  %v2019_v53 = vpop.f32.mrb[0].mxu0 }
 0x11e   : > { %v2092_v54 = vpop.f32.mrb[1].mxu1  ;;  %v2020_v55 = vpop.f32.mrb[1].mxu0 }
 0x11f   : > { %v2787_v56 = vadd.f32 %v2092_v54, %v2091_v52  ;;  %v2094_v57 = vpop.f32.mrb[2].mxu1  ;;  %v2021_v58 = vadd.f32 %v2020_v55, %v2019_v53  ;;  %v2022_v59 = vpop.f32.mrb[2].mxu0 }
 0x120   : > { %v2095_v60 = vpop.f32.mrb[3].mxu1  ;;  %v2023_v61 = vpop.f32.mrb[3].mxu0 }
 0x121   : > { %v2789_v62 = vadd.f32 %v2095_v60, %v2094_v57  ;;  %v2024_v63 = vadd.f32 %v2023_v61, %v2022_v59  ;;  %v1068_v41 = vadd.f32 %v2021_v58, %v2803_v38 }
 0x123   : > { %v1071_v48 = vadd.f32 %v2024_v63, %v2803_v38 }
 0x125   : > { %v2097_v0 = vpop.f32.mrb[4].mxu1  ;;  %v2025_v1 = vpop.f32.mrb[4].mxu0 }
 0x126   : > { %v2098_v2 = vpop.f32.mrb[5].mxu1  ;;  %v2026_v3 = vpop.f32.mrb[5].mxu0 }
 0x127   : > { %v2791_v4 = vadd.f32 %v2098_v2, %v2097_v0  ;;  %v2100_v5 = vpop.f32.mrb[6].mxu1  ;;  %v2027_v6 = vadd.f32 %v2026_v3, %v2025_v1  ;;  %v2028_v7 = vpop.f32.mrb[6].mxu0 }
 0x128   : > { %v2101_v8 = vpop.f32.mrb[7].mxu1  ;;  %v2029_v9 = vpop.f32.mrb[7].mxu0 }
 0x129   : > { %v2793_v10 = vadd.f32 %v2101_v8, %v2100_v5  ;;  %v2030_v11 = vadd.f32 %v2029_v9, %v2028_v7  ;;  %v1076_v58 = vadd.f32 %v2027_v6, %v2803_v38 }
 0x12b   : > { %v1079_v63 = vadd.f32 %v2030_v11, %v2803_v38 }
 0x12d   : > { %v2103_v12 = vpop.f32.mrb[8].mxu1  ;;  %v2031_v13 = vpop.f32.mrb[8].mxu0 }
 0x12e   : > { %v2104_v14 = vpop.f32.mrb[9].mxu1  ;;  %v2032_v15 = vpop.f32.mrb[9].mxu0 }
 0x12f   : > { %v2795_v16 = vadd.f32 %v2104_v14, %v2103_v12  ;;  %v2106_v17 = vpop.f32.mrb[10].mxu1  ;;  %v2033_v18 = vadd.f32 %v2032_v15, %v2031_v13  ;;  %v2034_v19 = vpop.f32.mrb[10].mxu0 }
 0x130   : > { %v2107_v20 = vpop.f32.mrb[11].mxu1  ;;  %v2035_v21 = vpop.f32.mrb[11].mxu0 }
 0x131   : > { %v2797_v22 = vadd.f32 %v2107_v20, %v2106_v17  ;;  %v2036_v23 = vadd.f32 %v2035_v21, %v2034_v19  ;;  %v1084_v6 = vadd.f32 %v2033_v18, %v2803_v38 }
 0x133   : > { %v1087_v11 = vadd.f32 %v2036_v23, %v2803_v38 }
 0x135   : > { %v2109_v24 = vpop.f32.mrb[12].mxu1  ;;  %v2037_v25 = vpop.f32.mrb[12].mxu0 }
 0x136   : > { %v2110_v26 = vpop.f32.mrb[13].mxu1  ;;  %v2038_v27 = vpop.f32.mrb[13].mxu0 }
 0x137   : > { %v2799_v28 = vadd.f32 %v2110_v26, %v2109_v24  ;;  %v2112_v29 = vpop.f32.mrb[14].mxu1  ;;  %v2039_v30 = vadd.f32 %v2038_v27, %v2037_v25  ;;  %v2040_v31 = vpop.f32.mrb[14].mxu0 }
 0x138   : > { %v2113_v32 = vpop.f32.mrb[15].mxu1  ;;  %v2041_v33 = vpop.f32.mrb[15].mxu0 }
 0x139   : > { %v2801_v34 = vadd.f32 %v2113_v32, %v2112_v29  ;;  %v2042_v35 = vadd.f32 %v2041_v33, %v2040_v31  ;;  %v1092_v18 = vadd.f32 %v2039_v30, %v2803_v38 }
 0x13b   : > { %v1095_v23 = vadd.f32 %v2042_v35, %v2803_v38 }
 0x13d   : > { %v2131_v36 = vpop.f32.mrb[16].mxu1  ;;  %v2043_v37 = vpop.f32.mrb[16].mxu0 }
 0x13e   : > { %v2132_v39 = vpop.f32.mrb[17].mxu1  ;;  %v2044_v40 = vpop.f32.mrb[17].mxu0 }
 0x13f   : > { %v2133_v42 = vadd.f32 %v2132_v39, %v2131_v36  ;;  %v2134_v43 = vpop.f32.mrb[18].mxu1  ;;  %v2045_v44 = vadd.f32 %v2044_v40, %v2043_v37  ;;  %v2046_v45 = vpop.f32.mrb[18].mxu0 }
 0x140   : > { %v2135_v46 = vpop.f32.mrb[19].mxu1  ;;  %v2047_v47 = vpop.f32.mrb[19].mxu0 }
 0x141   : > { %v2136_v49 = vadd.f32 %v2135_v46, %v2134_v43  ;;  %v2048_v50 = vadd.f32 %v2047_v47, %v2046_v45  ;;  %v2807_v51 = vadd.f32 %v2133_v42, %v1068_v41  ;;  %v1100_v30 = vadd.f32 %v2045_v44, %v2803_v38 }
 0x143   : > { %v2809_v52 = vadd.f32 %v2136_v49, %v1071_v48  ;;  %v1103_v35 = vadd.f32 %v2048_v50, %v2803_v38 }
 0x145   : > { %v2137_v53 = vpop.f32.mrb[20].mxu1  ;;  %v2049_v54 = vpop.f32.mrb[20].mxu0 }
 0x146   : > { %v2138_v55 = vpop.f32.mrb[21].mxu1  ;;  %v2050_v57 = vpop.f32.mrb[21].mxu0 }
 0x147   : > { %v2139_v59 = vadd.f32 %v2138_v55, %v2137_v53  ;;  %v2140_v60 = vpop.f32.mrb[22].mxu1  ;;  %v2051_v61 = vadd.f32 %v2050_v57, %v2049_v54  ;;  %v2052_v0 = vpop.f32.mrb[22].mxu0 }
 0x148   : > { %v2141_v1 = vpop.f32.mrb[23].mxu1  ;;  %v2053_v2 = vpop.f32.mrb[23].mxu0 }
 0x149   : > { %v2142_v3 = vadd.f32 %v2141_v1, %v2140_v60  ;;  %v2054_v5 = vadd.f32 %v2053_v2, %v2052_v0  ;;  %v2813_v7 = vadd.f32 %v2139_v59, %v1076_v58  ;;  %v1108_v44 = vadd.f32 %v2051_v61, %v2803_v38 }
 0x14b   : > { %v2815_v8 = vadd.f32 %v2142_v3, %v1079_v63  ;;  %v1111_v50 = vadd.f32 %v2054_v5, %v2803_v38 }
 0x14d   : > { %v2143_v9 = vpop.f32.mrb[24].mxu1  ;;  %v2055_v12 = vpop.f32.mrb[24].mxu0 }
 0x14e   : > { %v2144_v13 = vpop.f32.mrb[25].mxu1  ;;  %v2056_v14 = vpop.f32.mrb[25].mxu0 }
 0x14f   : > { %v2145_v15 = vadd.f32 %v2144_v13, %v2143_v9  ;;  %v2146_v17 = vpop.f32.mrb[26].mxu1  ;;  %v2057_v19 = vadd.f32 %v2056_v14, %v2055_v12  ;;  %v2058_v20 = vpop.f32.mrb[26].mxu0 }
 0x150   : > { %v2147_v21 = vpop.f32.mrb[27].mxu1  ;;  %v2059_v24 = vpop.f32.mrb[27].mxu0 }
 0x151   : > { %v2148_v25 = vadd.f32 %v2147_v21, %v2146_v17  ;;  %v2060_v26 = vadd.f32 %v2059_v24, %v2058_v20  ;;  %v2819_v27 = vadd.f32 %v2145_v15, %v1084_v6 }
 0x153   : > { %v2821_v29 = vadd.f32 %v2148_v25, %v1087_v11 }
 0x155   : > { %v2149_v31 = vpop.f32.mrb[28].mxu1  ;;  %v2061_v32 = vpop.f32.mrb[28].mxu0 }
 0x156   : > { %v2150_v33 = vpop.f32.mrb[29].mxu1  ;;  %v2062_v36 = vpop.f32.mrb[29].mxu0 }
 0x157   : > { %v2151_v37 = vadd.f32 %v2150_v33, %v2149_v31  ;;  %v2152_v39 = vpop.f32.mrb[30].mxu1  ;;  %v2063_v40 = vadd.f32 %v2062_v36, %v2061_v32  ;;  %v2064_v41 = vpop.f32.mrb[30].mxu0 }
 0x158   : > { %v2153_v42 = vpop.f32.mrb[31].mxu1  ;;  %v2065_v43 = vpop.f32.mrb[31].mxu0 }
 0x159   : > { %v2154_v45 = vadd.f32 %v2153_v42, %v2152_v39  ;;  %v2066_v46 = vadd.f32 %v2065_v43, %v2064_v41  ;;  %v2825_v47 = vadd.f32 %v2151_v37, %v1092_v18  ;;  %v1116_v39 = vadd.f32 %v2057_v19, %v2803_v38 }
 0x15b   : > { %v2827_v48 = vadd.f32 %v2154_v45, %v1095_v23 }
 0x15d   : > { %v2155_v49 = vpop.f32.mrb[32].mxu1  ;;  %v2067_v53 = vpop.f32.mrb[32].mxu0 }
 0x15e   : > { %v2156_v54 = vpop.f32.mrb[33].mxu1  ;;  %v2068_v55 = vpop.f32.mrb[33].mxu0 }
 0x15f   : > { %v2157_v57 = vadd.f32 %v2156_v54, %v2155_v49  ;;  %v2158_v58 = vpop.f32.mrb[34].mxu1  ;;  %v2069_v59 = vadd.f32 %v2068_v55, %v2067_v53  ;;  %v2070_v60 = vpop.f32.mrb[34].mxu0  ;;  %v1119_v49 = vadd.f32 %v2060_v26, %v2803_v38 }
 0x160   : > { %v2159_v0 = vpop.f32.mrb[35].mxu1  ;;  %v2071_v1 = vpop.f32.mrb[35].mxu0 }
 0x161   : > { %v2160_v2 = vadd.f32 %v2159_v0, %v2158_v58  ;;  %v2072_v63 = vadd.f32 %v2071_v1, %v2070_v60  ;;  %v2831_v3 = vadd.f32 %v2157_v57, %v1100_v30  ;;  %v1124_v0 = vadd.f32 %v2063_v40, %v2803_v38 }
 0x163   : > { %v2833_v9 = vadd.f32 %v2160_v2, %v1103_v35 }
 0x165   : > { %v2161_v12 = vpop.f32.mrb[36].mxu1  ;;  %v2073_v13 = vpop.f32.mrb[36].mxu0 }
 0x166   : > { %v2162_v14 = vpop.f32.mrb[37].mxu1  ;;  %v2074_v6 = vpop.f32.mrb[37].mxu0 }
 0x167   : > { %v2163_v15 = vadd.f32 %v2162_v14, %v2161_v12  ;;  %v2164_v17 = vpop.f32.mrb[38].mxu1  ;;  %v2836_v20 = vadd.f32 %v2074_v6, %v2073_v13  ;;  %v2076_v21 = vpop.f32.mrb[38].mxu0  ;;  %v1127_v14 = vadd.f32 %v2066_v46, %v2803_v38 }
 0x168   : > { %v2165_v24 = vpop.f32.mrb[39].mxu1  ;;  %v2077_v11 = vpop.f32.mrb[39].mxu0 }
 0x169   : > { %v2166_v25 = vadd.f32 %v2165_v24, %v2164_v17  ;;  %v2839_v31 = vadd.f32 %v2077_v11, %v2076_v21  ;;  %v2841_v32 = vadd.f32 %v2163_v15, %v1108_v44 }
 0x16b   : > { %v2843_v33 = vadd.f32 %v2166_v25, %v1111_v50  ;;  %v1132_v25 = vadd.f32 %v2069_v59, %v2803_v38 }
 0x16d   : > { %v2167_v36 = vpop.f32.mrb[40].mxu1  ;;  %v2079_v18 = vpop.f32.mrb[40].mxu0 }
 0x16e   : > { %v2168_v37 = vpop.f32.mrb[41].mxu1  ;;  %v2080_v61 = vpop.f32.mrb[41].mxu0 }
 0x16f   : > { %v2169_v41 = vadd.f32 %v2168_v37, %v2167_v36  ;;  %v2170_v42 = vpop.f32.mrb[42].mxu1  ;;  %v2846_v43 = vadd.f32 %v2080_v61, %v2079_v18  ;;  %v2082_v23 = vpop.f32.mrb[42].mxu0  ;;  %v1135_v61 = vadd.f32 %v2072_v63, %v2803_v38 }
 0x170   : > { %v2171_v45 = vpop.f32.mrb[43].mxu1  ;;  %v2083_v5 = vpop.f32.mrb[43].mxu0 }
 0x171   : > { %v2172_v53 = vadd.f32 %v2171_v45, %v2170_v42  ;;  %v2849_v54 = vadd.f32 %v2083_v5, %v2082_v23  ;;  %v2851_v55 = vadd.f32 %v2169_v41, %v1116_v39 }
 0x173   : > { %v2853_v30 = vadd.f32 %v2172_v53, %v1119_v49 }
 0x175   : > { %v2173_v57 = vpop.f32.mrb[44].mxu1  ;;  %v2085_v58 = vpop.f32.mrb[44].mxu0 }
 0x176   : > { %v2174_v60 = vpop.f32.mrb[45].mxu1  ;;  %v2086_v19 = vpop.f32.mrb[45].mxu0 }
 0x177   : > { %v2175_v1 = vadd.f32 %v2174_v60, %v2173_v57  ;;  %v2176_v35 = vpop.f32.mrb[46].mxu1  ;;  %v2856_v2 = vadd.f32 %v2086_v19, %v2085_v58  ;;  %v2088_v12 = vpop.f32.mrb[46].mxu0  ;;  %v1140_v19 = vadd.f32 %v2836_v20, %v2803_v38 }
 0x178   : > { %v2177_v13 = vpop.f32.mrb[47].mxu1  ;;  %v2089_v26 = vpop.f32.mrb[47].mxu0 }
 0x179   : > { %v2178_v6 = vadd.f32 %v2177_v13, %v2176_v35  ;;  %v2859_v44 = vadd.f32 %v2089_v26, %v2088_v12  ;;  %v2861_v15 = vadd.f32 %v2175_v1, %v1124_v0  ;;  %v1143_v12 = vadd.f32 %v2839_v31, %v2803_v38 }
 0x17b   : > { %v2863_v17 = vadd.f32 %v2178_v6, %v1127_v14 }
 0x17d   : > { %v2179_v21 = vpop.f32.mrb[48].mxu1  ;;  %v2257_v24 = vpop.f32.mrb[48].mxu0 }
 0x17e   : > { %v1398_v40 = vadd.f32 %v2257_v24, %v2813_v7  ;;  %v2180_v11 = vpop.f32.mrb[49].mxu1  ;;  %v1389_v50 = vpop.f32.mrb[49].mxu0 }
 0x17f   : > { %v2181_v36 = vadd.f32 %v2180_v11, %v2179_v21  ;;  %v1390_v18 = vadd.f32 %v1389_v50, %v2807_v51  ;;  %v2182_v37 = vpop.f32.mrb[50].mxu1  ;;  %v2258_v46 = vpop.f32.mrb[50].mxu0 }
 0x180   : > { %v1518_v39 = vmax.f32 %v1398_v40, 0.0  ;;  %v1401_v41 = vadd.f32 %v2258_v46, %v2815_v8  ;;  %v2183_v42 = vpop.f32.mrb[51].mxu1  ;;  %v1392_v23 = vpop.f32.mrb[51].mxu0 }
 0x181   : > { %v1516_v45 = vmax.f32 %v1390_v18, 0.0  ;;  %v2184_v5 = vadd.f32 %v2183_v42, %v2182_v37  ;;  %v1393_v7 = vadd.f32 %v1392_v23, %v2809_v52  ;;  %v2871_v49 = vadd.f32 %v2181_v36, %v1132_v25 }
 0x182   : > { %1550 = vst [vmem:[#allocation2 + $0x10] sm:$0xff] %v1518_v39  ;;  %v1519_v59 = vmax.f32 %v1401_v41, 0.0  ;;  %v1148_v36 = vadd.f32 %v2846_v43, %v2803_v38  ;;  %v1151_v39 = vadd.f32 %v2849_v54, %v2803_v38 }
 0x183   : > { %1548 = vst [vmem:[#allocation2] sm:$0xff] %v1516_v45  ;;  %v1517_v53 = vmax.f32 %v1393_v7, 0.0  ;;  %v2873_v51 = vadd.f32 %v2184_v5, %v1135_v61 }
 0x184   : > { %1551 = vst [vmem:[#allocation2 + $0x18] sm:$0xff] %v1519_v59 }
 0x185   : > { %1549 = vst [vmem:[#allocation2 + $0x8] sm:$0xff] %v1517_v53  ;;  %v2185_v63 = vpop.f32.mrb[52].mxu1  ;;  %v2261_v57 = vpop.f32.mrb[52].mxu0 }
 0x186   : > { %v1414_v8 = vadd.f32 %v2261_v57, %v2825_v47  ;;  %v2186_v58 = vpop.f32.mrb[53].mxu1  ;;  %v1405_v60 = vpop.f32.mrb[53].mxu0 }
 0x187   : > { %v2187_v52 = vadd.f32 %v2186_v58, %v2185_v63  ;;  %v1406_v0 = vadd.f32 %v1405_v60, %v2819_v27  ;;  %v2188_v1 = vpop.f32.mrb[54].mxu1  ;;  %v2262_v35 = vpop.f32.mrb[54].mxu0 }
 0x188   : > { %v1522_v13 = vmax.f32 %v1414_v8, 0.0  ;;  %v1417_v26 = vadd.f32 %v2262_v35, %v2827_v48  ;;  %v2189_v14 = vpop.f32.mrb[55].mxu1  ;;  %v1408_v6 = vpop.f32.mrb[55].mxu0 }
 0x189   : > { %v1520_v47 = vmax.f32 %v1406_v0, 0.0  ;;  %v2190_v21 = vadd.f32 %v2189_v14, %v2188_v1  ;;  %v1409_v24 = vadd.f32 %v1408_v6, %v2821_v29  ;;  %v2883_v40 = vadd.f32 %v2187_v52, %v1140_v19 }
 0x18a   : > { %1554 = vst [vmem:[#allocation2 + $0x30] sm:$0xff] %v1522_v13  ;;  %v1523_v20 = vmax.f32 %v1417_v26, 0.0 }
 0x18b   : > { %1552 = vst [vmem:[#allocation2 + $0x20] sm:$0xff] %v1520_v47  ;;  %v1521_v27 = vmax.f32 %v1409_v24, 0.0  ;;  %v2886_v11 = vadd.f32 %v2190_v21, %v1143_v12  ;;  %v1582_v5 = vld [vmem:[#allocation2 + $0x10] ss:$2 sm:$0xff] }
 0x18c   : > { %1555 = vst [vmem:[#allocation2 + $0x38] sm:$0xff] %v1523_v20  ;;  %v1580_v53 = vld [vmem:[#allocation2] ss:$2 sm:$0xff]  ;;  %v1612_v63 = vld [vmem:[#allocation2 + $0x1] ss:$2 sm:$0xff] }
 0x18d   : > { %1553 = vst [vmem:[#allocation2 + $0x28] sm:$0xff] %v1521_v27  ;;  %v2191_v48 = vpop.f32.mrb[56].mxu1  ;;  %v2265_v31 = vpop.f32.mrb[56].mxu0  ;;  %v1643_v1 = vmax.f32 %v1580_v53, %v1612_v63 }
 0x18e   : > { %v1430_v29 = vadd.f32 %v2265_v31, %v2841_v32  ;;  %v2192_v50 = vpop.f32.mrb[57].mxu1  ;;  %v1421_v25 = vpop.f32.mrb[57].mxu0  ;;  %v1614_v32 = vld [vmem:[#allocation2 + $0x11] ss:$2 sm:$0xff]  ;;  %v1159_v31 = vadd.f32 %v2859_v44, %v2803_v38 }
 0x18f   : > { %v2193_v18 = vadd.f32 %v2192_v50, %v2191_v48  ;;  %v1422_v37 = vadd.f32 %v1421_v25, %v2831_v3  ;;  %v2194_v46 = vpop.f32.mrb[58].mxu1  ;;  %v2266_v61 = vpop.f32.mrb[58].mxu0  ;;  %v1644_v60 = vmax.f32 %v1582_v5, %v1614_v32  ;;  %v1156_v48 = vadd.f32 %v2856_v2, %v2803_v38 }
 0x190   : > { %v1526_v41 = vmax.f32 %v1430_v29, 0.0  ;;  %v1433_v42 = vadd.f32 %v2266_v61, %v2843_v33  ;;  %v2195_v23 = vpop.f32.mrb[59].mxu1  ;;  %v1424_v45 = vpop.f32.mrb[59].mxu0 }
 0x191   : > { %v1524_v7 = vmax.f32 %v1422_v37, 0.0  ;;  %v2196_v43 = vadd.f32 %v2195_v23, %v2194_v46  ;;  %v1425_v59 = vadd.f32 %v1424_v45, %v2833_v9  ;;  %v2904_v3 = vadd.f32 %v2193_v18, %v1148_v36 }
 0x192   : > { %1558 = vst [vmem:[#allocation2 + $0x50] sm:$0xff] %v1526_v41  ;;  %v1527_v54 = vmax.f32 %v1433_v42, 0.0  ;;  %v1164_v45 = vadd.f32 %v2787_v56, %v2803_v38 }
 0x193   : > { %v1586_v57 = vld [vmem:[#allocation2 + $0x30] ss:$2 sm:$0xff]  ;;  %v1618_v33 = vld [vmem:[#allocation2 + $0x31] ss:$2 sm:$0xff]  ;;  %1556 = vst [vmem:[#allocation2 + $0x40] sm:$0xff] %v1524_v7  ;;  %v1525_v8 = vmax.f32 %v1425_v59, 0.0  ;;  %v2906_v58 = vadd.f32 %v2196_v43, %v1151_v39  ;;  %v1167_v43 = vadd.f32 %v2789_v62, %v2803_v38 }
 0x194   : > { %v1646_v19 = vmax.f32 %v1586_v57, %v1618_v33  ;;  %v1584_v52 = vld [vmem:[#allocation2 + $0x20] ss:$2 sm:$0xff]  ;;  %v1616_v0 = vld [vmem:[#allocation2 + $0x21] ss:$2 sm:$0xff]  ;;  %1559 = vst [vmem:[#allocation2 + $0x58] sm:$0xff] %v1527_v54 }
 0x195   : > { %v1645_v9 = vmax.f32 %v1584_v52, %v1616_v0  ;;  %1557 = vst [vmem:[#allocation2 + $0x48] sm:$0xff] %v1525_v8  ;;  %v2197_v35 = vpop.f32.mrb[60].mxu1  ;;  %v2269_v12 = vpop.f32.mrb[60].mxu0 }
 0x196   : > { %v1699_v13 = vmax.f32 %v1644_v60, %v1646_v19  ;;  %v1446_v26 = vadd.f32 %v2269_v12, %v2861_v15  ;;  %v2198_v14 = vpop.f32.mrb[61].mxu1  ;;  %v1437_v6 = vpop.f32.mrb[61].mxu0 }
 0x197   : > { %v1698_v47 = vmax.f32 %v1643_v1, %v1645_v9  ;;  %v2199_v21 = vadd.f32 %v2198_v14, %v2197_v35  ;;  %v1438_v24 = vadd.f32 %v1437_v6, %v2851_v55  ;;  %v2200_v20 = vpop.f32.mrb[62].mxu1  ;;  %v2270_v27 = vpop.f32.mrb[62].mxu0 }
 0x198   : > { %v1530_v15 = vmax.f32 %v1446_v26, 0.0  ;;  %v1449_v29 = vadd.f32 %v2270_v27, %v2863_v17  ;;  %v2201_v50 = vpop.f32.mrb[63].mxu1  ;;  %v1440_v25 = vpop.f32.mrb[63].mxu0 }
 0x199   : > { %v1983_v55 = vpack.c.bf16 %v1699_v13, %v1698_v47  ;;  %v1528_v36 = vmax.f32 %v1438_v24, 0.0  ;;  %v2202_v18 = vadd.f32 %v2201_v50, %v2200_v20  ;;  %v1441_v37 = vadd.f32 %v1440_v25, %v2853_v30 }
 0x19a   : > { %1562 = vst [vmem:[#allocation2 + $0x70] sm:$0xff] %v1530_v15  ;;  %v1531_v2 = vmax.f32 %v1449_v29, 0.0  ;;  %v1317_v46 = vadd.f32 %v2199_v21, %v1156_v48  ;;  %v1172_v50 = vadd.f32 %v2791_v4, %v2803_v38  ;;  %v1175_v25 = vadd.f32 %v2793_v10, %v2803_v38 }
 0x19b   : > { %1984 = vst [vmem:[%s2918_s9] sm:$0xff] %v1983_v55   ;;  %1560 = vst [vmem:[#allocation2 + $0x60] sm:$0xff] %v1528_v36  ;;  %v1529_v44 = vmax.f32 %v1441_v37, 0.0  ;;  %v1320_v61 = vadd.f32 %v2202_v18, %v1159_v31  ;;  %v1590_v57 = vld [vmem:[#allocation2 + $0x50] ss:$2 sm:$0xff] }
 0x19c   : > { %1563 = vst [vmem:[#allocation2 + $0x78] sm:$0xff] %v1531_v2  ;;  %v1588_v19 = vld [vmem:[#allocation2 + $0x40] ss:$2 sm:$0xff]  ;;  %v1620_v52 = vld [vmem:[#allocation2 + $0x41] ss:$2 sm:$0xff] }
 0x19d   : > { %1561 = vst [vmem:[#allocation2 + $0x68] sm:$0xff] %v1529_v44  ;;  %v2203_v39 = vpop.f32.mrb[64].mxu1  ;;  %v2273_v41 = vpop.f32.mrb[64].mxu0  ;;  %v1647_v26 = vmax.f32 %v1588_v19, %v1620_v52 }
 0x19e   : > { %v1462_v17 = vadd.f32 %v2273_v41, %v2883_v40  ;;  %v2204_v42 = vpop.f32.mrb[65].mxu1  ;;  %v1453_v23 = vpop.f32.mrb[65].mxu0  ;;  %v1622_v40 = vld [vmem:[#allocation2 + $0x51] ss:$2 sm:$0xff] }
 0x19f   : > { %v2205_v5 = vadd.f32 %v2204_v42, %v2203_v39  ;;  %v1454_v30 = vadd.f32 %v1453_v23, %v2871_v49  ;;  %v2206_v32 = vpop.f32.mrb[66].mxu1  ;;  %v2274_v7 = vpop.f32.mrb[66].mxu0  ;;  %v1648_v35 = vmax.f32 %v1590_v57, %v1622_v40 }
 0x1a0   : > { %v1534_v59 = vmax.f32 %v1462_v17, 0.0  ;;  %v1465_v53 = vadd.f32 %v2274_v7, %v2886_v11  ;;  %v2207_v63 = vpop.f32.mrb[67].mxu1  ;;  %v1456_v54 = vpop.f32.mrb[67].mxu0 }
 0x1a1   : > { %v1532_v33 = vmax.f32 %v1454_v30, 0.0  ;;  %v2208_v8 = vadd.f32 %v2207_v63, %v2206_v32  ;;  %v1457_v60 = vadd.f32 %v1456_v54, %v2873_v51  ;;  %v1325_v56 = vadd.f32 %v2205_v5, %v1164_v45 }
 0x1a2   : > { %1566 = vst [vmem:[#allocation2 + $0x90] sm:$0xff] %v1534_v59  ;;  %v1535_v49 = vmax.f32 %v1465_v53, 0.0  ;;  %v1180_v5 = vadd.f32 %v2795_v16, %v2803_v38 }
 0x1a3   : > { %v1594_v0 = vld [vmem:[#allocation2 + $0x70] ss:$2 sm:$0xff]  ;;  %v1626_v1 = vld [vmem:[#allocation2 + $0x71] ss:$2 sm:$0xff]  ;;  %1564 = vst [vmem:[#allocation2 + $0x80] sm:$0xff] %v1532_v33  ;;  %v1533_v62 = vmax.f32 %v1457_v60, 0.0  ;;  %v1328_v9 = vadd.f32 %v2208_v8, %v1167_v43  ;;  %v1183_v43 = vadd.f32 %v2797_v22, %v2803_v38 }
 0x1a4   : > { %v1650_v11 = vmax.f32 %v1594_v0, %v1626_v1  ;;  %v1592_v12 = vld [vmem:[#allocation2 + $0x60] ss:$2 sm:$0xff]  ;;  %v1624_v13 = vld [vmem:[#allocation2 + $0x61] ss:$2 sm:$0xff]  ;;  %1567 = vst [vmem:[#allocation2 + $0x98] sm:$0xff] %v1535_v49 }
 0x1a5   : > { %v1649_v14 = vmax.f32 %v1592_v12, %v1624_v13  ;;  %1565 = vst [vmem:[#allocation2 + $0x88] sm:$0xff] %v1533_v62  ;;  %v2209_v6 = vpop.f32.mrb[68].mxu1  ;;  %v2277_v51 = vpop.f32.mrb[68].mxu0 }
 0x1a6   : > { %v1701_v47 = vmax.f32 %v1648_v35, %v1650_v11  ;;  %v1478_v21 = vadd.f32 %v2277_v51, %v1317_v46  ;;  %v2210_v24 = vpop.f32.mrb[69].mxu1  ;;  %v1469_v20 = vpop.f32.mrb[69].mxu0 }
 0x1a7   : > { %v1700_v27 = vmax.f32 %v1647_v26, %v1649_v14  ;;  %v2211_v48 = vadd.f32 %v2210_v24, %v2209_v6  ;;  %v1470_v31 = vadd.f32 %v1469_v20, %v2904_v3  ;;  %v2212_v15 = vpop.f32.mrb[70].mxu1  ;;  %v2278_v29 = vpop.f32.mrb[70].mxu0 }
 0x1a8   : > { %v1538_v55 = vmax.f32 %v1478_v21, 0.0  ;;  %v1481_v36 = vadd.f32 %v2278_v29, %v1320_v61  ;;  %v2213_v18 = vpop.f32.mrb[71].mxu1  ;;  %v1472_v37 = vpop.f32.mrb[71].mxu0  ;;  %v1188_v21 = vadd.f32 %v2799_v28, %v2803_v38 }
 0x1a9   : > { %v1988_v2 = vpack.c.bf16 %v1701_v47, %v1700_v27  ;;  %v1536_v46 = vmax.f32 %v1470_v31, 0.0  ;;  %v2214_v44 = vadd.f32 %v2213_v18, %v2212_v15  ;;  %v1473_v39 = vadd.f32 %v1472_v37, %v2906_v58 }
 0x1aa   : > { %1570 = vst [vmem:[#allocation2 + $0xb0] sm:$0xff] %v1538_v55  ;;  %v1539_v3 = vmax.f32 %v1481_v36, 0.0  ;;  %v1333_v41 = vadd.f32 %v2211_v48, %v1172_v50  ;;  %v1191_v15 = vadd.f32 %v2801_v34, %v2803_v38 }
 0x1ab   : > { %2000 = vst [vmem:[%s2918_s9 + $0x8] sm:$0xff] %v1988_v2   ;;  %1568 = vst [vmem:[#allocation2 + $0xa0] sm:$0xff] %v1536_v46  ;;  %v1537_v17 = vmax.f32 %v1473_v39, 0.0  ;;  %v1336_v42 = vadd.f32 %v2214_v44, %v1175_v25  ;;  %v1598_v57 = vld [vmem:[#allocation2 + $0x90] ss:$2 sm:$0xff] }
 0x1ac   : > { %1571 = vst [vmem:[#allocation2 + $0xb8] sm:$0xff] %v1539_v3  ;;  %v1630_v40 = vld [vmem:[#allocation2 + $0x91] ss:$2 sm:$0xff]  ;;  %v1596_v52 = vld [vmem:[#allocation2 + $0x80] ss:$2 sm:$0xff] }
 0x1ad   : > { %1569 = vst [vmem:[#allocation2 + $0xa8] sm:$0xff] %v1537_v17  ;;  %v2215_v4 = vpop.f32.mrb[72].mxu1  ;;  %v2281_v10 = vpop.f32.mrb[72].mxu0  ;;  %v1628_v49 = vld [vmem:[#allocation2 + $0x81] ss:$2 sm:$0xff]  ;;  %v1652_v22 = vmax.f32 %v1598_v57, %v1630_v40 }
 0x1ae   : > { %v1494_v23 = vadd.f32 %v2281_v10, %v1333_v41  ;;  %v2216_v61 = vpop.f32.mrb[73].mxu1  ;;  %v1485_v45 = vpop.f32.mrb[73].mxu0  ;;  %v1651_v13 = vmax.f32 %v1596_v52, %v1628_v49 }
 0x1af   : > { %v2217_v30 = vadd.f32 %v2216_v61, %v2215_v4  ;;  %v1486_v32 = vadd.f32 %v1485_v45, %v1325_v56  ;;  %v2218_v58 = vpop.f32.mrb[74].mxu1  ;;  %v2282_v7 = vpop.f32.mrb[74].mxu0 }
 0x1b0   : > { %v1542_v59 = vmax.f32 %v1494_v23, 0.0  ;;  %v1497_v53 = vadd.f32 %v2282_v7, %v1336_v42  ;;  %v2219_v63 = vpop.f32.mrb[75].mxu1  ;;  %v1488_v54 = vpop.f32.mrb[75].mxu0 }
 0x1b1   : > { %v1540_v33 = vmax.f32 %v1486_v32, 0.0  ;;  %v2220_v8 = vadd.f32 %v2219_v63, %v2218_v58  ;;  %v1489_v60 = vadd.f32 %v1488_v54, %v1328_v9  ;;  %v1341_v19 = vadd.f32 %v2217_v30, %v1180_v5 }
 0x1b2   : > { %1574 = vst [vmem:[#allocation2 + $0xd0] sm:$0xff] %v1542_v59  ;;  %v1543_v16 = vmax.f32 %v1497_v53, 0.0 }
 0x1b3   : > { %v1602_v56 = vld [vmem:[#allocation2 + $0xb0] ss:$2 sm:$0xff]  ;;  %v1634_v0 = vld [vmem:[#allocation2 + $0xb1] ss:$2 sm:$0xff]  ;;  %1572 = vst [vmem:[#allocation2 + $0xc0] sm:$0xff] %v1540_v33  ;;  %v1541_v1 = vmax.f32 %v1489_v60, 0.0  ;;  %v1344_v62 = vadd.f32 %v2220_v8, %v1183_v43 }
 0x1b4   : > { %v1654_v35 = vmax.f32 %v1602_v56, %v1634_v0  ;;  %v1600_v11 = vld [vmem:[#allocation2 + $0xa0] ss:$2 sm:$0xff]  ;;  %v1632_v12 = vld [vmem:[#allocation2 + $0xa1] ss:$2 sm:$0xff]  ;;  %1575 = vst [vmem:[#allocation2 + $0xd8] sm:$0xff] %v1543_v16 }
 0x1b5   : > { %v1653_v26 = vmax.f32 %v1600_v11, %v1632_v12  ;;  %1573 = vst [vmem:[#allocation2 + $0xc8] sm:$0xff] %v1541_v1  ;;  %v2221_v14 = vpop.f32.mrb[76].mxu1  ;;  %v2285_v9 = vpop.f32.mrb[76].mxu0 }
 0x1b6   : > { %v1703_v6 = vmax.f32 %v1652_v22, %v1654_v35  ;;  %v2222_v51 = vpop.f32.mrb[77].mxu1  ;;  %v1501_v47 = vpop.f32.mrb[77].mxu0 }
 0x1b7   : > { %v1702_v24 = vmax.f32 %v1651_v13, %v1653_v26  ;;  %v2223_v20 = vadd.f32 %v2222_v51, %v2221_v14  ;;  %v1502_v27 = vadd.f32 %v1501_v47, %v1341_v19  ;;  %v2224_v48 = vpop.f32.mrb[78].mxu1  ;;  %v2286_v31 = vpop.f32.mrb[78].mxu0 }
 0x1b8   : > { %v2225_v29 = vpop.f32.mrb[79].mxu1  ;;  %v1504_v50 = vpop.f32.mrb[79].mxu0 }
 0x1b9   : > { %v1993_v25 = vpack.c.bf16 %v1703_v6, %v1702_v24  ;;  %v1349_v55 = vadd.f32 %v2223_v20, %v1188_v21  ;;  %v1544_v36 = vmax.f32 %v1502_v27, 0.0  ;;  %v2226_v18 = vadd.f32 %v2225_v29, %v2224_v48 }
 0x1ba   : > { %v1505_v37 = vadd.f32 %v1504_v50, %v1344_v62 }
 0x1bb   : > { %2001 = vst [vmem:[%s2918_s9 + $0x10] sm:$0xff] %v1993_v25   ;;  %v1510_v2 = vadd.f32 %v2285_v9, %v1349_v55  ;;  %1576 = vst [vmem:[#allocation2 + $0xe0] sm:$0xff] %v1544_v36  ;;  %v1352_v46 = vadd.f32 %v2226_v18, %v1191_v15  ;;  %v1606_v34 = vld [vmem:[#allocation2 + $0xd0] ss:$2 sm:$0xff]  ;;  %v1638_v17 = vld [vmem:[#allocation2 + $0xd1] ss:$2 sm:$0xff] }
 0x1bc   : > { %v1545_v28 = vmax.f32 %v1505_v37, 0.0  ;;  %v1604_v42 = vld [vmem:[#allocation2 + $0xc0] ss:$2 sm:$0xff]  ;;  %v1636_v4 = vld [vmem:[#allocation2 + $0xc1] ss:$2 sm:$0xff]  ;;  %v1656_v45 = vmax.f32 %v1606_v34, %v1638_v17 }
 0x1bd   : > { %v1546_v44 = vmax.f32 %v1510_v2, 0.0  ;;  %v1513_v39 = vadd.f32 %v2286_v31, %v1352_v46  ;;  %v1655_v5 = vmax.f32 %v1604_v42, %v1636_v4 }
 0x1be   : > { %1577 = vst [vmem:[#allocation2 + $0xe8] sm:$0xff] %v1545_v28 }
 0x1bf   : > { %1578 = vst [vmem:[#allocation2 + $0xf0] sm:$0xff] %v1546_v44  ;;  %v1547_v3 = vmax.f32 %v1513_v39, 0.0 }
 0x1c1   : > { %1579 = vst [vmem:[#allocation2 + $0xf8] sm:$0xff] %v1547_v3 }
 0x1c5   : > { %v1608_v38 = vld [vmem:[#allocation2 + $0xe0] ss:$2 sm:$0xff]  ;;  %v1640_v41 = vld [vmem:[#allocation2 + $0xe1] ss:$2 sm:$0xff] }
 0x1c6   : > { %v1657_v10 = vmax.f32 %v1608_v38, %v1640_v41 }
 0x1c8   : > { %v1610_v23 = vld [vmem:[#allocation2 + $0xf0] ss:$2 sm:$0xff]  ;;  %v1642_v61 = vld [vmem:[#allocation2 + $0xf1] ss:$2 sm:$0xff]  ;;  %v1704_v32 = vmax.f32 %v1655_v5, %v1657_v10 }
 0x1c9   : > { %v1658_v30 = vmax.f32 %v1610_v23, %v1642_v61 }
 0x1cb   : > { %v1705_v58 = vmax.f32 %v1656_v45, %v1658_v30 }
 0x1cd   : > { %v1998_v7 = vpack.c.bf16 %v1705_v58, %v1704_v32 }
 0x1cf   : > { %2002 = vst [vmem:[%s2918_s9 + $0x18] sm:$0xff] %v1998_v7  }
 0x1d0 PF: > { %s14_s12 = sadd.s32 1, %s2509_s12  }
 0x1d1   : > { %p11_p5 = scmp.ge.s32.totalorder %s14_s12, 4  }
 0x1d3   :  { %13 = sbr.rel (!%p11_p5) target bundleno = 1 (0x1), region = 105 }
 0x1da   :  { %1770 = vsyncpa [#allocation5], 1 }
 0x1db   :  { %1772 = vsyncpa [#allocation5 + $0x1], 1 }

// kernel: crnn_forward.7
= control target key start
LH: loop header
LB: loop body
LE: loop exit
PB: predicated region body
PF: predicated region fallthrough
CT: control target
= control target key end

     0   :  { %s6734_s12 = smov 0   ;;  %s6736_s13 = smov 0   ;;  %s8416_s0 = inlined_call_operand.vmem [shape: bf16[8,2048], index: 0, kind: input, shape index: {}]   ;;  %s8417_s1 = inlined_call_operand.vmem [shape: bf16[2048,2048], index: 1, kind: input, shape index: {}]   ;;  %s8418_s2 = inlined_call_operand.vmem [shape: f32[1,2048], index: 2, kind: input, shape index: {}]   ;;  %s8419_s3 = inlined_call_operand.vmem [shape: f32[8,2048], index: 3, kind: output, shape index: {}]  }
   0x1   :  { %s6738_s14 = smov 0   ;;  %s6740_s15 = smov 0  }
   0x2   :  { %s6742_s16 = smov 0  }
   0x3 LB: > { %s28_s17 = sadd.s32 1, %s6708_s15  ;;  %p76_p1 = scmp.ne.s32.totalorder %s6700_s13, %s6696_s12  ;;  %s6712_s16 = sphi %s6742_s16, %s13_s16   ;;  %s6708_s15 = sphi %s6740_s15, %s8423_s15   ;;  %s6704_s14 = sphi %s6738_s14, %s8422_s14   ;;  %s6700_s13 = sphi %s6736_s13, %s8421_s13   ;;  %s6696_s12 = sphi %s6734_s12, %s8420_s12  }
   0x4   : > { %p30_p0 = scmp.ge.s32.totalorder %s28_s17, 4  ;;  %p77_p2 = scmp.eq.s32.totalorder %s6712_s16, 0 }
   0x5   : > { %s69_s19 = sadd.s32 1, %s6700_s13  ;;  %p5250_p5 = scmp.ge.s32.totalorder %s6712_s16, 4 }
   0x6   : > { %s8425_s17 = smov (%p30_p0, %s28_s17), 0  ;;  %p78_p3 = por %p77_p2, %p76_p1 }
   0x7   : > { %s65_s18 = ssub.s32 %s6708_s15, %s8425_s17  ;;  %169 = sbr.rel (%p5250_p5) target bundleno = 274 (0x112), region = 20 }
   0x8   : > { %p67_p4 = scmp.eq.s32.totalorder %s65_s18, 0 }
   0xa   : > { %s6769_s20 = scalar_select %p67_p4, %s6700_s13, %s69_s19  }
   0xe   : > { %172 = sbr.rel (!%p78_p3) target bundleno = 274 (0x112), region = 24  ;;  %s174_s21 = sand.u32 (%p78_p3), 1, %s6700_s13  }
   0xf   : > { %s5789_s22 = sshll.u32 (%p78_p3), %s6708_s15, 4  ;;  %s5251_s23 = sshll.u32 (%p78_p3), %s174_s21, 12 }
  0x10   : > { %s6777_s26 = scalar_lea.vmem (%p78_p3), %s8417_s1, %s5789_s22  ;;  %s6782_s27 = scalar_lea.vmem (%p78_p3), [#allocation2], %s5251_s23 }
  0x11   : > { %v195_v0 = vld [vmem:[%s6777_s26] sm:$0xff] (%p78_p3)  ;;  %v197_v1 = vld [vmem:[%s6777_s26 + $0x8] sm:$0xff] (%p78_p3) }
  0x12   : > { %v199_v2 = vld [vmem:[%s6777_s26 + $0x40] sm:$0xff] (%p78_p3)  ;;  %196 = vst [vmem:[%s6782_s27] sm:$0xff] (%p78_p3), %v195_v0  ;;  %198 = vst [vmem:[%s6782_s27 + $0x8] sm:$0xff] (%p78_p3), %v197_v1  ;;  %v201_v3 = vld [vmem:[%s6777_s26 + $0x48] sm:$0xff] (%p78_p3) }
  0x13   : > { %200 = vst [vmem:[%s6782_s27 + $0x10] sm:$0xff] (%p78_p3), %v199_v2  ;;  %v203_v4 = vld [vmem:[%s6777_s26 + $0x80] sm:$0xff] (%p78_p3)  ;;  %v205_v5 = vld [vmem:[%s6777_s26 + $0x88] sm:$0xff] (%p78_p3)  ;;  %202 = vst [vmem:[%s6782_s27 + $0x18] sm:$0xff] (%p78_p3), %v201_v3 }
  0x14   : > { %204 = vst [vmem:[%s6782_s27 + $0x20] sm:$0xff] (%p78_p3), %v203_v4  ;;  %206 = vst [vmem:[%s6782_s27 + $0x28] sm:$0xff] (%p78_p3), %v205_v5  ;;  %v207_v6 = vld [vmem:[%s6777_s26 + $0xc0] sm:$0xff] (%p78_p3)  ;;  %v209_v7 = vld [vmem:[%s6777_s26 + $0xc8] sm:$0xff] (%p78_p3) }
  0x15   : > { %v211_v8 = vld [vmem:[%s6777_s26 + $0x100] sm:$0xff]  ;;  %208 = vst [vmem:[%s6782_s27 + $0x30] sm:$0xff] %v207_v6  ;;  %210 = vst [vmem:[%s6782_s27 + $0x38] sm:$0xff] %v209_v7  ;;  %v213_v9 = vld [vmem:[%s6777_s26 + $0x108] sm:$0xff] }
  0x16   : > { %212 = vst [vmem:[%s6782_s27 + $0x40] sm:$0xff] %v211_v8  ;;  %v215_v10 = vld [vmem:[%s6777_s26 + $0x140] sm:$0xff]  ;;  %v217_v11 = vld [vmem:[%s6777_s26 + $0x148] sm:$0xff]  ;;  %214 = vst [vmem:[%s6782_s27 + $0x48] sm:$0xff] %v213_v9 }
  0x17   : > { %216 = vst [vmem:[%s6782_s27 + $0x50] sm:$0xff] %v215_v10  ;;  %218 = vst [vmem:[%s6782_s27 + $0x58] sm:$0xff] %v217_v11  ;;  %v219_v12 = vld [vmem:[%s6777_s26 + $0x180] sm:$0xff]  ;;  %v221_v13 = vld [vmem:[%s6777_s26 + $0x188] sm:$0xff] }
  0x18   : > { %v223_v14 = vld [vmem:[%s6777_s26 + $0x1c0] sm:$0xff]  ;;  %220 = vst [vmem:[%s6782_s27 + $0x60] sm:$0xff] %v219_v12  ;;  %222 = vst [vmem:[%s6782_s27 + $0x68] sm:$0xff] %v221_v13  ;;  %v225_v15 = vld [vmem:[%s6777_s26 + $0x1c8] sm:$0xff] }
  0x19   : > { %224 = vst [vmem:[%s6782_s27 + $0x70] sm:$0xff] %v223_v14  ;;  %v227_v16 = vld [vmem:[%s6777_s26 + $0x200] sm:$0xff]  ;;  %v229_v17 = vld [vmem:[%s6777_s26 + $0x208] sm:$0xff]  ;;  %226 = vst [vmem:[%s6782_s27 + $0x78] sm:$0xff] %v225_v15 }
  0x1a   : > { %228 = vst [vmem:[%s6782_s27 + $0x80] sm:$0xff] %v227_v16  ;;  %230 = vst [vmem:[%s6782_s27 + $0x88] sm:$0xff] %v229_v17  ;;  %v231_v18 = vld [vmem:[%s6777_s26 + $0x240] sm:$0xff]  ;;  %v233_v19 = vld [vmem:[%s6777_s26 + $0x248] sm:$0xff] }
  0x1b   : > { %v235_v20 = vld [vmem:[%s6777_s26 + $0x280] sm:$0xff]  ;;  %232 = vst [vmem:[%s6782_s27 + $0x90] sm:$0xff] %v231_v18  ;;  %234 = vst [vmem:[%s6782_s27 + $0x98] sm:$0xff] %v233_v19  ;;  %v237_v21 = vld [vmem:[%s6777_s26 + $0x288] sm:$0xff] }
  0x1c   : > { %236 = vst [vmem:[%s6782_s27 + $0xa0] sm:$0xff] %v235_v20  ;;  %v239_v22 = vld [vmem:[%s6777_s26 + $0x2c0] sm:$0xff]  ;;  %v241_v23 = vld [vmem:[%s6777_s26 + $0x2c8] sm:$0xff]  ;;  %238 = vst [vmem:[%s6782_s27 + $0xa8] sm:$0xff] %v237_v21 }
  0x1d   : > { %240 = vst [vmem:[%s6782_s27 + $0xb0] sm:$0xff] %v239_v22  ;;  %242 = vst [vmem:[%s6782_s27 + $0xb8] sm:$0xff] %v241_v23  ;;  %v243_v24 = vld [vmem:[%s6777_s26 + $0x300] sm:$0xff]  ;;  %v245_v25 = vld [vmem:[%s6777_s26 + $0x308] sm:$0xff] }
  0x1e   : > { %v247_v26 = vld [vmem:[%s6777_s26 + $0x340] sm:$0xff]  ;;  %244 = vst [vmem:[%s6782_s27 + $0xc0] sm:$0xff] %v243_v24  ;;  %246 = vst [vmem:[%s6782_s27 + $0xc8] sm:$0xff] %v245_v25  ;;  %v249_v27 = vld [vmem:[%s6777_s26 + $0x348] sm:$0xff] }
  0x1f   : > { %248 = vst [vmem:[%s6782_s27 + $0xd0] sm:$0xff] %v247_v26  ;;  %v251_v28 = vld [vmem:[%s6777_s26 + $0x380] sm:$0xff]  ;;  %v253_v29 = vld [vmem:[%s6777_s26 + $0x388] sm:$0xff]  ;;  %250 = vst [vmem:[%s6782_s27 + $0xd8] sm:$0xff] %v249_v27 }
  0x20   : > { %252 = vst [vmem:[%s6782_s27 + $0xe0] sm:$0xff] %v251_v28  ;;  %254 = vst [vmem:[%s6782_s27 + $0xe8] sm:$0xff] %v253_v29  ;;  %v255_v30 = vld [vmem:[%s6777_s26 + $0x3c0] sm:$0xff]  ;;  %v257_v31 = vld [vmem:[%s6777_s26 + $0x3c8] sm:$0xff] }
  0x21   : > { %v259_v32 = vld [vmem:[%s6777_s26 + $0x400] sm:$0xff]  ;;  %256 = vst [vmem:[%s6782_s27 + $0xf0] sm:$0xff] %v255_v30  ;;  %258 = vst [vmem:[%s6782_s27 + $0xf8] sm:$0xff] %v257_v31  ;;  %v261_v33 = vld [vmem:[%s6777_s26 + $0x408] sm:$0xff] }
  0x22   : > { %260 = vst [vmem:[%s6782_s27 + $0x100] sm:$0xff] %v259_v32  ;;  %v263_v34 = vld [vmem:[%s6777_s26 + $0x440] sm:$0xff]  ;;  %v265_v35 = vld [vmem:[%s6777_s26 + $0x448] sm:$0xff]  ;;  %262 = vst [vmem:[%s6782_s27 + $0x108] sm:$0xff] %v261_v33 }
  0x23   : > { %264 = vst [vmem:[%s6782_s27 + $0x110] sm:$0xff] %v263_v34  ;;  %266 = vst [vmem:[%s6782_s27 + $0x118] sm:$0xff] %v265_v35  ;;  %v267_v36 = vld [vmem:[%s6777_s26 + $0x480] sm:$0xff]  ;;  %v269_v37 = vld [vmem:[%s6777_s26 + $0x488] sm:$0xff] }
  0x24   : > { %v271_v38 = vld [vmem:[%s6777_s26 + $0x4c0] sm:$0xff]  ;;  %268 = vst [vmem:[%s6782_s27 + $0x120] sm:$0xff] %v267_v36  ;;  %270 = vst [vmem:[%s6782_s27 + $0x128] sm:$0xff] %v269_v37  ;;  %v273_v39 = vld [vmem:[%s6777_s26 + $0x4c8] sm:$0xff] }
  0x25   : > { %272 = vst [vmem:[%s6782_s27 + $0x130] sm:$0xff] %v271_v38  ;;  %v275_v40 = vld [vmem:[%s6777_s26 + $0x500] sm:$0xff]  ;;  %v277_v41 = vld [vmem:[%s6777_s26 + $0x508] sm:$0xff]  ;;  %274 = vst [vmem:[%s6782_s27 + $0x138] sm:$0xff] %v273_v39 }
  0x26   : > { %276 = vst [vmem:[%s6782_s27 + $0x140] sm:$0xff] %v275_v40  ;;  %278 = vst [vmem:[%s6782_s27 + $0x148] sm:$0xff] %v277_v41  ;;  %v279_v42 = vld [vmem:[%s6777_s26 + $0x540] sm:$0xff]  ;;  %v281_v43 = vld [vmem:[%s6777_s26 + $0x548] sm:$0xff] }
  0x27   : > { %v283_v44 = vld [vmem:[%s6777_s26 + $0x580] sm:$0xff]  ;;  %280 = vst [vmem:[%s6782_s27 + $0x150] sm:$0xff] %v279_v42  ;;  %282 = vst [vmem:[%s6782_s27 + $0x158] sm:$0xff] %v281_v43  ;;  %v285_v45 = vld [vmem:[%s6777_s26 + $0x588] sm:$0xff] }
  0x28   : > { %284 = vst [vmem:[%s6782_s27 + $0x160] sm:$0xff] %v283_v44  ;;  %v287_v46 = vld [vmem:[%s6777_s26 + $0x5c0] sm:$0xff]  ;;  %v289_v47 = vld [vmem:[%s6777_s26 + $0x5c8] sm:$0xff]  ;;  %286 = vst [vmem:[%s6782_s27 + $0x168] sm:$0xff] %v285_v45 }
  0x29   : > { %288 = vst [vmem:[%s6782_s27 + $0x170] sm:$0xff] %v287_v46  ;;  %290 = vst [vmem:[%s6782_s27 + $0x178] sm:$0xff] %v289_v47  ;;  %v291_v48 = vld [vmem:[%s6777_s26 + $0x600] sm:$0xff]  ;;  %v293_v49 = vld [vmem:[%s6777_s26 + $0x608] sm:$0xff] }
  0x2a   : > { %v295_v50 = vld [vmem:[%s6777_s26 + $0x640] sm:$0xff]  ;;  %292 = vst [vmem:[%s6782_s27 + $0x180] sm:$0xff] %v291_v48  ;;  %294 = vst [vmem:[%s6782_s27 + $0x188] sm:$0xff] %v293_v49  ;;  %v297_v51 = vld [vmem:[%s6777_s26 + $0x648] sm:$0xff] }
  0x2b   : > { %296 = vst [vmem:[%s6782_s27 + $0x190] sm:$0xff] %v295_v50  ;;  %v299_v52 = vld [vmem:[%s6777_s26 + $0x680] sm:$0xff]  ;;  %v301_v53 = vld [vmem:[%s6777_s26 + $0x688] sm:$0xff]  ;;  %298 = vst [vmem:[%s6782_s27 + $0x198] sm:$0xff] %v297_v51 }
  0x2c   : > { %300 = vst [vmem:[%s6782_s27 + $0x1a0] sm:$0xff] %v299_v52  ;;  %302 = vst [vmem:[%s6782_s27 + $0x1a8] sm:$0xff] %v301_v53  ;;  %v303_v54 = vld [vmem:[%s6777_s26 + $0x6c0] sm:$0xff]  ;;  %v305_v55 = vld [vmem:[%s6777_s26 + $0x6c8] sm:$0xff] }
  0x2d   : > { %v307_v56 = vld [vmem:[%s6777_s26 + $0x700] sm:$0xff]  ;;  %304 = vst [vmem:[%s6782_s27 + $0x1b0] sm:$0xff] %v303_v54  ;;  %306 = vst [vmem:[%s6782_s27 + $0x1b8] sm:$0xff] %v305_v55  ;;  %v309_v57 = vld [vmem:[%s6777_s26 + $0x708] sm:$0xff] }
  0x2e   : > { %308 = vst [vmem:[%s6782_s27 + $0x1c0] sm:$0xff] %v307_v56  ;;  %v311_v58 = vld [vmem:[%s6777_s26 + $0x740] sm:$0xff]  ;;  %v313_v59 = vld [vmem:[%s6777_s26 + $0x748] sm:$0xff]  ;;  %310 = vst [vmem:[%s6782_s27 + $0x1c8] sm:$0xff] %v309_v57 }
  0x2f   : > { %312 = vst [vmem:[%s6782_s27 + $0x1d0] sm:$0xff] %v311_v58  ;;  %314 = vst [vmem:[%s6782_s27 + $0x1d8] sm:$0xff] %v313_v59  ;;  %v315_v60 = vld [vmem:[%s6777_s26 + $0x780] sm:$0xff]  ;;  %v317_v61 = vld [vmem:[%s6777_s26 + $0x788] sm:$0xff] }
  0x30   : > { %v319_v62 = vld [vmem:[%s6777_s26 + $0x7c0] sm:$0xff]  ;;  %316 = vst [vmem:[%s6782_s27 + $0x1e0] sm:$0xff] %v315_v60  ;;  %318 = vst [vmem:[%s6782_s27 + $0x1e8] sm:$0xff] %v317_v61  ;;  %v321_v63 = vld [vmem:[%s6777_s26 + $0x7c8] sm:$0xff] }
  0x31   : > { %320 = vst [vmem:[%s6782_s27 + $0x1f0] sm:$0xff] %v319_v62  ;;  %v323_v0 = vld [vmem:[%s6777_s26 + $0x800] sm:$0xff]  ;;  %v325_v1 = vld [vmem:[%s6777_s26 + $0x808] sm:$0xff]  ;;  %322 = vst [vmem:[%s6782_s27 + $0x1f8] sm:$0xff] %v321_v63 }
  0x32   : > { %324 = vst [vmem:[%s6782_s27 + $0x200] sm:$0xff] %v323_v0  ;;  %326 = vst [vmem:[%s6782_s27 + $0x208] sm:$0xff] %v325_v1  ;;  %v327_v2 = vld [vmem:[%s6777_s26 + $0x840] sm:$0xff]  ;;  %v329_v3 = vld [vmem:[%s6777_s26 + $0x848] sm:$0xff] }
  0x33   : > { %v331_v4 = vld [vmem:[%s6777_s26 + $0x880] sm:$0xff]  ;;  %328 = vst [vmem:[%s6782_s27 + $0x210] sm:$0xff] %v327_v2  ;;  %330 = vst [vmem:[%s6782_s27 + $0x218] sm:$0xff] %v329_v3  ;;  %v333_v5 = vld [vmem:[%s6777_s26 + $0x888] sm:$0xff] }
  0x34   : > { %332 = vst [vmem:[%s6782_s27 + $0x220] sm:$0xff] %v331_v4  ;;  %v335_v6 = vld [vmem:[%s6777_s26 + $0x8c0] sm:$0xff]  ;;  %v337_v7 = vld [vmem:[%s6777_s26 + $0x8c8] sm:$0xff]  ;;  %334 = vst [vmem:[%s6782_s27 + $0x228] sm:$0xff] %v333_v5 }
  0x35   : > { %336 = vst [vmem:[%s6782_s27 + $0x230] sm:$0xff] %v335_v6  ;;  %338 = vst [vmem:[%s6782_s27 + $0x238] sm:$0xff] %v337_v7  ;;  %v339_v8 = vld [vmem:[%s6777_s26 + $0x900] sm:$0xff]  ;;  %v341_v9 = vld [vmem:[%s6777_s26 + $0x908] sm:$0xff] }
  0x36   : > { %v343_v10 = vld [vmem:[%s6777_s26 + $0x940] sm:$0xff]  ;;  %340 = vst [vmem:[%s6782_s27 + $0x240] sm:$0xff] %v339_v8  ;;  %342 = vst [vmem:[%s6782_s27 + $0x248] sm:$0xff] %v341_v9  ;;  %v345_v11 = vld [vmem:[%s6777_s26 + $0x948] sm:$0xff] }
  0x37   : > { %344 = vst [vmem:[%s6782_s27 + $0x250] sm:$0xff] %v343_v10  ;;  %v347_v12 = vld [vmem:[%s6777_s26 + $0x980] sm:$0xff]  ;;  %v349_v13 = vld [vmem:[%s6777_s26 + $0x988] sm:$0xff]  ;;  %346 = vst [vmem:[%s6782_s27 + $0x258] sm:$0xff] %v345_v11 }
  0x38   : > { %348 = vst [vmem:[%s6782_s27 + $0x260] sm:$0xff] %v347_v12  ;;  %350 = vst [vmem:[%s6782_s27 + $0x268] sm:$0xff] %v349_v13  ;;  %v351_v14 = vld [vmem:[%s6777_s26 + $0x9c0] sm:$0xff]  ;;  %v353_v15 = vld [vmem:[%s6777_s26 + $0x9c8] sm:$0xff] }
  0x39   : > { %v355_v16 = vld [vmem:[%s6777_s26 + $0xa00] sm:$0xff]  ;;  %352 = vst [vmem:[%s6782_s27 + $0x270] sm:$0xff] %v351_v14  ;;  %354 = vst [vmem:[%s6782_s27 + $0x278] sm:$0xff] %v353_v15  ;;  %v357_v17 = vld [vmem:[%s6777_s26 + $0xa08] sm:$0xff] }
  0x3a   : > { %356 = vst [vmem:[%s6782_s27 + $0x280] sm:$0xff] %v355_v16  ;;  %v359_v18 = vld [vmem:[%s6777_s26 + $0xa40] sm:$0xff]  ;;  %v361_v19 = vld [vmem:[%s6777_s26 + $0xa48] sm:$0xff]  ;;  %358 = vst [vmem:[%s6782_s27 + $0x288] sm:$0xff] %v357_v17 }
  0x3b   : > { %360 = vst [vmem:[%s6782_s27 + $0x290] sm:$0xff] %v359_v18  ;;  %362 = vst [vmem:[%s6782_s27 + $0x298] sm:$0xff] %v361_v19  ;;  %v363_v20 = vld [vmem:[%s6777_s26 + $0xa80] sm:$0xff]  ;;  %v365_v21 = vld [vmem:[%s6777_s26 + $0xa88] sm:$0xff] }
  0x3c   : > { %v367_v22 = vld [vmem:[%s6777_s26 + $0xac0] sm:$0xff]  ;;  %364 = vst [vmem:[%s6782_s27 + $0x2a0] sm:$0xff] %v363_v20  ;;  %366 = vst [vmem:[%s6782_s27 + $0x2a8] sm:$0xff] %v365_v21  ;;  %v369_v23 = vld [vmem:[%s6777_s26 + $0xac8] sm:$0xff] }
  0x3d   : > { %368 = vst [vmem:[%s6782_s27 + $0x2b0] sm:$0xff] %v367_v22  ;;  %v371_v24 = vld [vmem:[%s6777_s26 + $0xb00] sm:$0xff]  ;;  %v373_v25 = vld [vmem:[%s6777_s26 + $0xb08] sm:$0xff]  ;;  %370 = vst [vmem:[%s6782_s27 + $0x2b8] sm:$0xff] %v369_v23 }
  0x3e   : > { %372 = vst [vmem:[%s6782_s27 + $0x2c0] sm:$0xff] %v371_v24  ;;  %374 = vst [vmem:[%s6782_s27 + $0x2c8] sm:$0xff] %v373_v25  ;;  %v375_v26 = vld [vmem:[%s6777_s26 + $0xb40] sm:$0xff]  ;;  %v377_v27 = vld [vmem:[%s6777_s26 + $0xb48] sm:$0xff] }
  0x3f   : > { %v379_v28 = vld [vmem:[%s6777_s26 + $0xb80] sm:$0xff]  ;;  %376 = vst [vmem:[%s6782_s27 + $0x2d0] sm:$0xff] %v375_v26  ;;  %378 = vst [vmem:[%s6782_s27 + $0x2d8] sm:$0xff] %v377_v27  ;;  %v381_v29 = vld [vmem:[%s6777_s26 + $0xb88] sm:$0xff] }
  0x40   : > { %380 = vst [vmem:[%s6782_s27 + $0x2e0] sm:$0xff] %v379_v28  ;;  %v383_v30 = vld [vmem:[%s6777_s26 + $0xbc0] sm:$0xff]  ;;  %v385_v31 = vld [vmem:[%s6777_s26 + $0xbc8] sm:$0xff]  ;;  %382 = vst [vmem:[%s6782_s27 + $0x2e8] sm:$0xff] %v381_v29 }
  0x41   : > { %384 = vst [vmem:[%s6782_s27 + $0x2f0] sm:$0xff] %v383_v30  ;;  %386 = vst [vmem:[%s6782_s27 + $0x2f8] sm:$0xff] %v385_v31  ;;  %v387_v32 = vld [vmem:[%s6777_s26 + $0xc00] sm:$0xff]  ;;  %v389_v33 = vld [vmem:[%s6777_s26 + $0xc08] sm:$0xff] }
  0x42   : > { %v391_v34 = vld [vmem:[%s6777_s26 + $0xc40] sm:$0xff]  ;;  %388 = vst [vmem:[%s6782_s27 + $0x300] sm:$0xff] %v387_v32  ;;  %390 = vst [vmem:[%s6782_s27 + $0x308] sm:$0xff] %v389_v33  ;;  %v393_v35 = vld [vmem:[%s6777_s26 + $0xc48] sm:$0xff] }
  0x43   : > { %392 = vst [vmem:[%s6782_s27 + $0x310] sm:$0xff] %v391_v34  ;;  %v395_v36 = vld [vmem:[%s6777_s26 + $0xc80] sm:$0xff]  ;;  %v397_v37 = vld [vmem:[%s6777_s26 + $0xc88] sm:$0xff]  ;;  %394 = vst [vmem:[%s6782_s27 + $0x318] sm:$0xff] %v393_v35 }
  0x44   : > { %396 = vst [vmem:[%s6782_s27 + $0x320] sm:$0xff] %v395_v36  ;;  %398 = vst [vmem:[%s6782_s27 + $0x328] sm:$0xff] %v397_v37  ;;  %v399_v38 = vld [vmem:[%s6777_s26 + $0xcc0] sm:$0xff]  ;;  %v401_v39 = vld [vmem:[%s6777_s26 + $0xcc8] sm:$0xff] }
  0x45   : > { %v403_v40 = vld [vmem:[%s6777_s26 + $0xd00] sm:$0xff]  ;;  %400 = vst [vmem:[%s6782_s27 + $0x330] sm:$0xff] %v399_v38  ;;  %402 = vst [vmem:[%s6782_s27 + $0x338] sm:$0xff] %v401_v39  ;;  %v405_v41 = vld [vmem:[%s6777_s26 + $0xd08] sm:$0xff] }
  0x46   : > { %404 = vst [vmem:[%s6782_s27 + $0x340] sm:$0xff] %v403_v40  ;;  %v407_v42 = vld [vmem:[%s6777_s26 + $0xd40] sm:$0xff]  ;;  %v409_v43 = vld [vmem:[%s6777_s26 + $0xd48] sm:$0xff]  ;;  %406 = vst [vmem:[%s6782_s27 + $0x348] sm:$0xff] %v405_v41 }
  0x47   : > { %408 = vst [vmem:[%s6782_s27 + $0x350] sm:$0xff] %v407_v42  ;;  %410 = vst [vmem:[%s6782_s27 + $0x358] sm:$0xff] %v409_v43  ;;  %v411_v44 = vld [vmem:[%s6777_s26 + $0xd80] sm:$0xff]  ;;  %v413_v45 = vld [vmem:[%s6777_s26 + $0xd88] sm:$0xff] }
  0x48   : > { %v415_v46 = vld [vmem:[%s6777_s26 + $0xdc0] sm:$0xff]  ;;  %412 = vst [vmem:[%s6782_s27 + $0x360] sm:$0xff] %v411_v44  ;;  %414 = vst [vmem:[%s6782_s27 + $0x368] sm:$0xff] %v413_v45  ;;  %v417_v47 = vld [vmem:[%s6777_s26 + $0xdc8] sm:$0xff] }
  0x49   : > { %416 = vst [vmem:[%s6782_s27 + $0x370] sm:$0xff] %v415_v46  ;;  %v419_v48 = vld [vmem:[%s6777_s26 + $0xe00] sm:$0xff]  ;;  %v421_v49 = vld [vmem:[%s6777_s26 + $0xe08] sm:$0xff]  ;;  %418 = vst [vmem:[%s6782_s27 + $0x378] sm:$0xff] %v417_v47 }
  0x4a   : > { %420 = vst [vmem:[%s6782_s27 + $0x380] sm:$0xff] %v419_v48  ;;  %422 = vst [vmem:[%s6782_s27 + $0x388] sm:$0xff] %v421_v49  ;;  %v423_v50 = vld [vmem:[%s6777_s26 + $0xe40] sm:$0xff]  ;;  %v425_v51 = vld [vmem:[%s6777_s26 + $0xe48] sm:$0xff] }
  0x4b   : > { %v427_v52 = vld [vmem:[%s6777_s26 + $0xe80] sm:$0xff]  ;;  %424 = vst [vmem:[%s6782_s27 + $0x390] sm:$0xff] %v423_v50  ;;  %426 = vst [vmem:[%s6782_s27 + $0x398] sm:$0xff] %v425_v51  ;;  %v429_v53 = vld [vmem:[%s6777_s26 + $0xe88] sm:$0xff] }
  0x4c   : > { %428 = vst [vmem:[%s6782_s27 + $0x3a0] sm:$0xff] %v427_v52  ;;  %v431_v54 = vld [vmem:[%s6777_s26 + $0xec0] sm:$0xff]  ;;  %v433_v55 = vld [vmem:[%s6777_s26 + $0xec8] sm:$0xff]  ;;  %430 = vst [vmem:[%s6782_s27 + $0x3a8] sm:$0xff] %v429_v53 }
  0x4d   : > { %432 = vst [vmem:[%s6782_s27 + $0x3b0] sm:$0xff] %v431_v54  ;;  %434 = vst [vmem:[%s6782_s27 + $0x3b8] sm:$0xff] %v433_v55  ;;  %v435_v56 = vld [vmem:[%s6777_s26 + $0xf00] sm:$0xff]  ;;  %v437_v57 = vld [vmem:[%s6777_s26 + $0xf08] sm:$0xff] }
  0x4e   : > { %v439_v58 = vld [vmem:[%s6777_s26 + $0xf40] sm:$0xff]  ;;  %436 = vst [vmem:[%s6782_s27 + $0x3c0] sm:$0xff] %v435_v56  ;;  %438 = vst [vmem:[%s6782_s27 + $0x3c8] sm:$0xff] %v437_v57  ;;  %v441_v59 = vld [vmem:[%s6777_s26 + $0xf48] sm:$0xff] }
  0x4f   : > { %440 = vst [vmem:[%s6782_s27 + $0x3d0] sm:$0xff] %v439_v58  ;;  %v443_v60 = vld [vmem:[%s6777_s26 + $0xf80] sm:$0xff]  ;;  %v445_v61 = vld [vmem:[%s6777_s26 + $0xf88] sm:$0xff]  ;;  %442 = vst [vmem:[%s6782_s27 + $0x3d8] sm:$0xff] %v441_v59 }
  0x50   : > { %444 = vst [vmem:[%s6782_s27 + $0x3e0] sm:$0xff] %v443_v60  ;;  %446 = vst [vmem:[%s6782_s27 + $0x3e8] sm:$0xff] %v445_v61  ;;  %v447_v62 = vld [vmem:[%s6777_s26 + $0xfc0] sm:$0xff]  ;;  %v449_v63 = vld [vmem:[%s6777_s26 + $0xfc8] sm:$0xff] }
  0x51   : > { %v451_v0 = vld [vmem:[%s6777_s26 + $0x1000] sm:$0xff]  ;;  %448 = vst [vmem:[%s6782_s27 + $0x3f0] sm:$0xff] %v447_v62  ;;  %450 = vst [vmem:[%s6782_s27 + $0x3f8] sm:$0xff] %v449_v63  ;;  %v453_v1 = vld [vmem:[%s6777_s26 + $0x1008] sm:$0xff] }
  0x52   : > { %452 = vst [vmem:[%s6782_s27 + $0x400] sm:$0xff] %v451_v0  ;;  %v455_v2 = vld [vmem:[%s6777_s26 + $0x1040] sm:$0xff]  ;;  %v457_v3 = vld [vmem:[%s6777_s26 + $0x1048] sm:$0xff]  ;;  %454 = vst [vmem:[%s6782_s27 + $0x408] sm:$0xff] %v453_v1 }
  0x53   : > { %456 = vst [vmem:[%s6782_s27 + $0x410] sm:$0xff] %v455_v2  ;;  %458 = vst [vmem:[%s6782_s27 + $0x418] sm:$0xff] %v457_v3  ;;  %v459_v4 = vld [vmem:[%s6777_s26 + $0x1080] sm:$0xff]  ;;  %v461_v5 = vld [vmem:[%s6777_s26 + $0x1088] sm:$0xff] }
  0x54   : > { %v463_v6 = vld [vmem:[%s6777_s26 + $0x10c0] sm:$0xff]  ;;  %460 = vst [vmem:[%s6782_s27 + $0x420] sm:$0xff] %v459_v4  ;;  %462 = vst [vmem:[%s6782_s27 + $0x428] sm:$0xff] %v461_v5  ;;  %v465_v7 = vld [vmem:[%s6777_s26 + $0x10c8] sm:$0xff] }
  0x55   : > { %464 = vst [vmem:[%s6782_s27 + $0x430] sm:$0xff] %v463_v6  ;;  %v467_v8 = vld [vmem:[%s6777_s26 + $0x1100] sm:$0xff]  ;;  %v469_v9 = vld [vmem:[%s6777_s26 + $0x1108] sm:$0xff]  ;;  %466 = vst [vmem:[%s6782_s27 + $0x438] sm:$0xff] %v465_v7 }
  0x56   : > { %468 = vst [vmem:[%s6782_s27 + $0x440] sm:$0xff] %v467_v8  ;;  %470 = vst [vmem:[%s6782_s27 + $0x448] sm:$0xff] %v469_v9  ;;  %v471_v10 = vld [vmem:[%s6777_s26 + $0x1140] sm:$0xff]  ;;  %v473_v11 = vld [vmem:[%s6777_s26 + $0x1148] sm:$0xff] }
  0x57   : > { %v475_v12 = vld [vmem:[%s6777_s26 + $0x1180] sm:$0xff]  ;;  %472 = vst [vmem:[%s6782_s27 + $0x450] sm:$0xff] %v471_v10  ;;  %474 = vst [vmem:[%s6782_s27 + $0x458] sm:$0xff] %v473_v11  ;;  %v477_v13 = vld [vmem:[%s6777_s26 + $0x1188] sm:$0xff] }
  0x58   : > { %476 = vst [vmem:[%s6782_s27 + $0x460] sm:$0xff] %v475_v12  ;;  %v479_v14 = vld [vmem:[%s6777_s26 + $0x11c0] sm:$0xff]  ;;  %v481_v15 = vld [vmem:[%s6777_s26 + $0x11c8] sm:$0xff]  ;;  %478 = vst [vmem:[%s6782_s27 + $0x468] sm:$0xff] %v477_v13 }
  0x59   : > { %480 = vst [vmem:[%s6782_s27 + $0x470] sm:$0xff] %v479_v14  ;;  %482 = vst [vmem:[%s6782_s27 + $0x478] sm:$0xff] %v481_v15  ;;  %v483_v16 = vld [vmem:[%s6777_s26 + $0x1200] sm:$0xff]  ;;  %v485_v17 = vld [vmem:[%s6777_s26 + $0x1208] sm:$0xff] }
  0x5a   : > { %v487_v18 = vld [vmem:[%s6777_s26 + $0x1240] sm:$0xff]  ;;  %484 = vst [vmem:[%s6782_s27 + $0x480] sm:$0xff] %v483_v16  ;;  %486 = vst [vmem:[%s6782_s27 + $0x488] sm:$0xff] %v485_v17  ;;  %v489_v19 = vld [vmem:[%s6777_s26 + $0x1248] sm:$0xff] }
  0x5b   : > { %488 = vst [vmem:[%s6782_s27 + $0x490] sm:$0xff] %v487_v18  ;;  %v491_v20 = vld [vmem:[%s6777_s26 + $0x1280] sm:$0xff]  ;;  %v493_v21 = vld [vmem:[%s6777_s26 + $0x1288] sm:$0xff]  ;;  %490 = vst [vmem:[%s6782_s27 + $0x498] sm:$0xff] %v489_v19 }
  0x5c   : > { %492 = vst [vmem:[%s6782_s27 + $0x4a0] sm:$0xff] %v491_v20  ;;  %494 = vst [vmem:[%s6782_s27 + $0x4a8] sm:$0xff] %v493_v21  ;;  %v495_v22 = vld [vmem:[%s6777_s26 + $0x12c0] sm:$0xff]  ;;  %v497_v23 = vld [vmem:[%s6777_s26 + $0x12c8] sm:$0xff] }
  0x5d   : > { %v499_v24 = vld [vmem:[%s6777_s26 + $0x1300] sm:$0xff]  ;;  %496 = vst [vmem:[%s6782_s27 + $0x4b0] sm:$0xff] %v495_v22  ;;  %498 = vst [vmem:[%s6782_s27 + $0x4b8] sm:$0xff] %v497_v23  ;;  %v501_v25 = vld [vmem:[%s6777_s26 + $0x1308] sm:$0xff] }
  0x5e   : > { %500 = vst [vmem:[%s6782_s27 + $0x4c0] sm:$0xff] %v499_v24  ;;  %v503_v26 = vld [vmem:[%s6777_s26 + $0x1340] sm:$0xff]  ;;  %v505_v27 = vld [vmem:[%s6777_s26 + $0x1348] sm:$0xff]  ;;  %502 = vst [vmem:[%s6782_s27 + $0x4c8] sm:$0xff] %v501_v25 }
  0x5f   : > { %504 = vst [vmem:[%s6782_s27 + $0x4d0] sm:$0xff] %v503_v26  ;;  %506 = vst [vmem:[%s6782_s27 + $0x4d8] sm:$0xff] %v505_v27  ;;  %v507_v28 = vld [vmem:[%s6777_s26 + $0x1380] sm:$0xff]  ;;  %v509_v29 = vld [vmem:[%s6777_s26 + $0x1388] sm:$0xff] }
  0x60   : > { %v511_v30 = vld [vmem:[%s6777_s26 + $0x13c0] sm:$0xff]  ;;  %508 = vst [vmem:[%s6782_s27 + $0x4e0] sm:$0xff] %v507_v28  ;;  %510 = vst [vmem:[%s6782_s27 + $0x4e8] sm:$0xff] %v509_v29  ;;  %v513_v31 = vld [vmem:[%s6777_s26 + $0x13c8] sm:$0xff] }
  0x61   : > { %512 = vst [vmem:[%s6782_s27 + $0x4f0] sm:$0xff] %v511_v30  ;;  %v515_v32 = vld [vmem:[%s6777_s26 + $0x1400] sm:$0xff]  ;;  %v517_v33 = vld [vmem:[%s6777_s26 + $0x1408] sm:$0xff]  ;;  %514 = vst [vmem:[%s6782_s27 + $0x4f8] sm:$0xff] %v513_v31 }
  0x62   : > { %516 = vst [vmem:[%s6782_s27 + $0x500] sm:$0xff] %v515_v32  ;;  %518 = vst [vmem:[%s6782_s27 + $0x508] sm:$0xff] %v517_v33  ;;  %v519_v34 = vld [vmem:[%s6777_s26 + $0x1440] sm:$0xff]  ;;  %v521_v35 = vld [vmem:[%s6777_s26 + $0x1448] sm:$0xff] }
  0x63   : > { %v523_v36 = vld [vmem:[%s6777_s26 + $0x1480] sm:$0xff]  ;;  %520 = vst [vmem:[%s6782_s27 + $0x510] sm:$0xff] %v519_v34  ;;  %522 = vst [vmem:[%s6782_s27 + $0x518] sm:$0xff] %v521_v35  ;;  %v525_v37 = vld [vmem:[%s6777_s26 + $0x1488] sm:$0xff] }
  0x64   : > { %524 = vst [vmem:[%s6782_s27 + $0x520] sm:$0xff] %v523_v36  ;;  %v527_v38 = vld [vmem:[%s6777_s26 + $0x14c0] sm:$0xff]  ;;  %v529_v39 = vld [vmem:[%s6777_s26 + $0x14c8] sm:$0xff]  ;;  %526 = vst [vmem:[%s6782_s27 + $0x528] sm:$0xff] %v525_v37 }
  0x65   : > { %528 = vst [vmem:[%s6782_s27 + $0x530] sm:$0xff] %v527_v38  ;;  %530 = vst [vmem:[%s6782_s27 + $0x538] sm:$0xff] %v529_v39  ;;  %v531_v40 = vld [vmem:[%s6777_s26 + $0x1500] sm:$0xff]  ;;  %v533_v41 = vld [vmem:[%s6777_s26 + $0x1508] sm:$0xff] }
  0x66   : > { %v535_v42 = vld [vmem:[%s6777_s26 + $0x1540] sm:$0xff]  ;;  %532 = vst [vmem:[%s6782_s27 + $0x540] sm:$0xff] %v531_v40  ;;  %534 = vst [vmem:[%s6782_s27 + $0x548] sm:$0xff] %v533_v41  ;;  %v537_v43 = vld [vmem:[%s6777_s26 + $0x1548] sm:$0xff] }
  0x67   : > { %536 = vst [vmem:[%s6782_s27 + $0x550] sm:$0xff] %v535_v42  ;;  %v539_v44 = vld [vmem:[%s6777_s26 + $0x1580] sm:$0xff]  ;;  %v541_v45 = vld [vmem:[%s6777_s26 + $0x1588] sm:$0xff]  ;;  %538 = vst [vmem:[%s6782_s27 + $0x558] sm:$0xff] %v537_v43 }
  0x68   : > { %540 = vst [vmem:[%s6782_s27 + $0x560] sm:$0xff] %v539_v44  ;;  %542 = vst [vmem:[%s6782_s27 + $0x568] sm:$0xff] %v541_v45  ;;  %v543_v46 = vld [vmem:[%s6777_s26 + $0x15c0] sm:$0xff]  ;;  %v545_v47 = vld [vmem:[%s6777_s26 + $0x15c8] sm:$0xff] }
  0x69   : > { %v547_v48 = vld [vmem:[%s6777_s26 + $0x1600] sm:$0xff]  ;;  %544 = vst [vmem:[%s6782_s27 + $0x570] sm:$0xff] %v543_v46  ;;  %546 = vst [vmem:[%s6782_s27 + $0x578] sm:$0xff] %v545_v47  ;;  %v549_v49 = vld [vmem:[%s6777_s26 + $0x1608] sm:$0xff] }
  0x6a   : > { %548 = vst [vmem:[%s6782_s27 + $0x580] sm:$0xff] %v547_v48  ;;  %v551_v50 = vld [vmem:[%s6777_s26 + $0x1640] sm:$0xff]  ;;  %v553_v51 = vld [vmem:[%s6777_s26 + $0x1648] sm:$0xff]  ;;  %550 = vst [vmem:[%s6782_s27 + $0x588] sm:$0xff] %v549_v49 }
  0x6b   : > { %552 = vst [vmem:[%s6782_s27 + $0x590] sm:$0xff] %v551_v50  ;;  %554 = vst [vmem:[%s6782_s27 + $0x598] sm:$0xff] %v553_v51  ;;  %v555_v52 = vld [vmem:[%s6777_s26 + $0x1680] sm:$0xff]  ;;  %v557_v53 = vld [vmem:[%s6777_s26 + $0x1688] sm:$0xff] }
  0x6c   : > { %v559_v54 = vld [vmem:[%s6777_s26 + $0x16c0] sm:$0xff]  ;;  %556 = vst [vmem:[%s6782_s27 + $0x5a0] sm:$0xff] %v555_v52  ;;  %558 = vst [vmem:[%s6782_s27 + $0x5a8] sm:$0xff] %v557_v53  ;;  %v561_v55 = vld [vmem:[%s6777_s26 + $0x16c8] sm:$0xff] }
  0x6d   : > { %560 = vst [vmem:[%s6782_s27 + $0x5b0] sm:$0xff] %v559_v54  ;;  %v563_v56 = vld [vmem:[%s6777_s26 + $0x1700] sm:$0xff]  ;;  %v565_v57 = vld [vmem:[%s6777_s26 + $0x1708] sm:$0xff]  ;;  %562 = vst [vmem:[%s6782_s27 + $0x5b8] sm:$0xff] %v561_v55 }
  0x6e   : > { %564 = vst [vmem:[%s6782_s27 + $0x5c0] sm:$0xff] %v563_v56  ;;  %566 = vst [vmem:[%s6782_s27 + $0x5c8] sm:$0xff] %v565_v57  ;;  %v567_v58 = vld [vmem:[%s6777_s26 + $0x1740] sm:$0xff]  ;;  %v569_v59 = vld [vmem:[%s6777_s26 + $0x1748] sm:$0xff] }
  0x6f   : > { %v571_v60 = vld [vmem:[%s6777_s26 + $0x1780] sm:$0xff]  ;;  %568 = vst [vmem:[%s6782_s27 + $0x5d0] sm:$0xff] %v567_v58  ;;  %570 = vst [vmem:[%s6782_s27 + $0x5d8] sm:$0xff] %v569_v59  ;;  %v573_v61 = vld [vmem:[%s6777_s26 + $0x1788] sm:$0xff] }
  0x70   : > { %572 = vst [vmem:[%s6782_s27 + $0x5e0] sm:$0xff] %v571_v60  ;;  %v575_v62 = vld [vmem:[%s6777_s26 + $0x17c0] sm:$0xff]  ;;  %v577_v63 = vld [vmem:[%s6777_s26 + $0x17c8] sm:$0xff]  ;;  %574 = vst [vmem:[%s6782_s27 + $0x5e8] sm:$0xff] %v573_v61 }
  0x71   : > { %576 = vst [vmem:[%s6782_s27 + $0x5f0] sm:$0xff] %v575_v62  ;;  %578 = vst [vmem:[%s6782_s27 + $0x5f8] sm:$0xff] %v577_v63  ;;  %v579_v0 = vld [vmem:[%s6777_s26 + $0x1800] sm:$0xff]  ;;  %v581_v1 = vld [vmem:[%s6777_s26 + $0x1808] sm:$0xff] }
  0x72   : > { %v583_v2 = vld [vmem:[%s6777_s26 + $0x1840] sm:$0xff]  ;;  %580 = vst [vmem:[%s6782_s27 + $0x600] sm:$0xff] %v579_v0  ;;  %582 = vst [vmem:[%s6782_s27 + $0x608] sm:$0xff] %v581_v1  ;;  %v585_v3 = vld [vmem:[%s6777_s26 + $0x1848] sm:$0xff] }
  0x73   : > { %584 = vst [vmem:[%s6782_s27 + $0x610] sm:$0xff] %v583_v2  ;;  %v587_v4 = vld [vmem:[%s6777_s26 + $0x1880] sm:$0xff]  ;;  %v589_v5 = vld [vmem:[%s6777_s26 + $0x1888] sm:$0xff]  ;;  %586 = vst [vmem:[%s6782_s27 + $0x618] sm:$0xff] %v585_v3 }
  0x74   : > { %588 = vst [vmem:[%s6782_s27 + $0x620] sm:$0xff] %v587_v4  ;;  %590 = vst [vmem:[%s6782_s27 + $0x628] sm:$0xff] %v589_v5  ;;  %v591_v6 = vld [vmem:[%s6777_s26 + $0x18c0] sm:$0xff]  ;;  %v593_v7 = vld [vmem:[%s6777_s26 + $0x18c8] sm:$0xff] }
  0x75   : > { %v595_v8 = vld [vmem:[%s6777_s26 + $0x1900] sm:$0xff]  ;;  %592 = vst [vmem:[%s6782_s27 + $0x630] sm:$0xff] %v591_v6  ;;  %594 = vst [vmem:[%s6782_s27 + $0x638] sm:$0xff] %v593_v7  ;;  %v597_v9 = vld [vmem:[%s6777_s26 + $0x1908] sm:$0xff] }
  0x76   : > { %596 = vst [vmem:[%s6782_s27 + $0x640] sm:$0xff] %v595_v8  ;;  %v599_v10 = vld [vmem:[%s6777_s26 + $0x1940] sm:$0xff]  ;;  %v601_v11 = vld [vmem:[%s6777_s26 + $0x1948] sm:$0xff]  ;;  %598 = vst [vmem:[%s6782_s27 + $0x648] sm:$0xff] %v597_v9 }
  0x77   : > { %600 = vst [vmem:[%s6782_s27 + $0x650] sm:$0xff] %v599_v10  ;;  %602 = vst [vmem:[%s6782_s27 + $0x658] sm:$0xff] %v601_v11  ;;  %v603_v12 = vld [vmem:[%s6777_s26 + $0x1980] sm:$0xff]  ;;  %v605_v13 = vld [vmem:[%s6777_s26 + $0x1988] sm:$0xff] }
  0x78   : > { %v607_v14 = vld [vmem:[%s6777_s26 + $0x19c0] sm:$0xff]  ;;  %604 = vst [vmem:[%s6782_s27 + $0x660] sm:$0xff] %v603_v12  ;;  %606 = vst [vmem:[%s6782_s27 + $0x668] sm:$0xff] %v605_v13  ;;  %v609_v15 = vld [vmem:[%s6777_s26 + $0x19c8] sm:$0xff] }
  0x79   : > { %608 = vst [vmem:[%s6782_s27 + $0x670] sm:$0xff] %v607_v14  ;;  %v611_v16 = vld [vmem:[%s6777_s26 + $0x1a00] sm:$0xff]  ;;  %v613_v17 = vld [vmem:[%s6777_s26 + $0x1a08] sm:$0xff]  ;;  %610 = vst [vmem:[%s6782_s27 + $0x678] sm:$0xff] %v609_v15 }
  0x7a   : > { %612 = vst [vmem:[%s6782_s27 + $0x680] sm:$0xff] %v611_v16  ;;  %614 = vst [vmem:[%s6782_s27 + $0x688] sm:$0xff] %v613_v17  ;;  %v615_v18 = vld [vmem:[%s6777_s26 + $0x1a40] sm:$0xff]  ;;  %v617_v19 = vld [vmem:[%s6777_s26 + $0x1a48] sm:$0xff] }
  0x7b   : > { %v619_v20 = vld [vmem:[%s6777_s26 + $0x1a80] sm:$0xff]  ;;  %616 = vst [vmem:[%s6782_s27 + $0x690] sm:$0xff] %v615_v18  ;;  %618 = vst [vmem:[%s6782_s27 + $0x698] sm:$0xff] %v617_v19  ;;  %v621_v21 = vld [vmem:[%s6777_s26 + $0x1a88] sm:$0xff] }
  0x7c   : > { %620 = vst [vmem:[%s6782_s27 + $0x6a0] sm:$0xff] %v619_v20  ;;  %v623_v22 = vld [vmem:[%s6777_s26 + $0x1ac0] sm:$0xff]  ;;  %v625_v23 = vld [vmem:[%s6777_s26 + $0x1ac8] sm:$0xff]  ;;  %622 = vst [vmem:[%s6782_s27 + $0x6a8] sm:$0xff] %v621_v21 }
  0x7d   : > { %624 = vst [vmem:[%s6782_s27 + $0x6b0] sm:$0xff] %v623_v22  ;;  %626 = vst [vmem:[%s6782_s27 + $0x6b8] sm:$0xff] %v625_v23  ;;  %v627_v24 = vld [vmem:[%s6777_s26 + $0x1b00] sm:$0xff]  ;;  %v629_v25 = vld [vmem:[%s6777_s26 + $0x1b08] sm:$0xff] }
  0x7e   : > { %v631_v26 = vld [vmem:[%s6777_s26 + $0x1b40] sm:$0xff]  ;;  %628 = vst [vmem:[%s6782_s27 + $0x6c0] sm:$0xff] %v627_v24  ;;  %630 = vst [vmem:[%s6782_s27 + $0x6c8] sm:$0xff] %v629_v25  ;;  %v633_v27 = vld [vmem:[%s6777_s26 + $0x1b48] sm:$0xff] }
  0x7f   : > { %632 = vst [vmem:[%s6782_s27 + $0x6d0] sm:$0xff] %v631_v26  ;;  %v635_v28 = vld [vmem:[%s6777_s26 + $0x1b80] sm:$0xff]  ;;  %v637_v29 = vld [vmem:[%s6777_s26 + $0x1b88] sm:$0xff]  ;;  %634 = vst [vmem:[%s6782_s27 + $0x6d8] sm:$0xff] %v633_v27 }
  0x80   : > { %636 = vst [vmem:[%s6782_s27 + $0x6e0] sm:$0xff] %v635_v28  ;;  %638 = vst [vmem:[%s6782_s27 + $0x6e8] sm:$0xff] %v637_v29  ;;  %v639_v30 = vld [vmem:[%s6777_s26 + $0x1bc0] sm:$0xff]  ;;  %v641_v31 = vld [vmem:[%s6777_s26 + $0x1bc8] sm:$0xff] }
  0x81   : > { %v643_v32 = vld [vmem:[%s6777_s26 + $0x1c00] sm:$0xff]  ;;  %640 = vst [vmem:[%s6782_s27 + $0x6f0] sm:$0xff] %v639_v30  ;;  %642 = vst [vmem:[%s6782_s27 + $0x6f8] sm:$0xff] %v641_v31  ;;  %v645_v33 = vld [vmem:[%s6777_s26 + $0x1c08] sm:$0xff] }
  0x82   : > { %644 = vst [vmem:[%s6782_s27 + $0x700] sm:$0xff] %v643_v32  ;;  %v647_v34 = vld [vmem:[%s6777_s26 + $0x1c40] sm:$0xff]  ;;  %v649_v35 = vld [vmem:[%s6777_s26 + $0x1c48] sm:$0xff]  ;;  %646 = vst [vmem:[%s6782_s27 + $0x708] sm:$0xff] %v645_v33 }
  0x83   : > { %648 = vst [vmem:[%s6782_s27 + $0x710] sm:$0xff] %v647_v34  ;;  %650 = vst [vmem:[%s6782_s27 + $0x718] sm:$0xff] %v649_v35  ;;  %v651_v36 = vld [vmem:[%s6777_s26 + $0x1c80] sm:$0xff]  ;;  %v653_v37 = vld [vmem:[%s6777_s26 + $0x1c88] sm:$0xff] }
  0x84   : > { %v655_v38 = vld [vmem:[%s6777_s26 + $0x1cc0] sm:$0xff]  ;;  %652 = vst [vmem:[%s6782_s27 + $0x720] sm:$0xff] %v651_v36  ;;  %654 = vst [vmem:[%s6782_s27 + $0x728] sm:$0xff] %v653_v37  ;;  %v657_v39 = vld [vmem:[%s6777_s26 + $0x1cc8] sm:$0xff] }
  0x85   : > { %656 = vst [vmem:[%s6782_s27 + $0x730] sm:$0xff] %v655_v38  ;;  %v659_v40 = vld [vmem:[%s6777_s26 + $0x1d00] sm:$0xff]  ;;  %v661_v41 = vld [vmem:[%s6777_s26 + $0x1d08] sm:$0xff]  ;;  %658 = vst [vmem:[%s6782_s27 + $0x738] sm:$0xff] %v657_v39 }
  0x86   : > { %660 = vst [vmem:[%s6782_s27 + $0x740] sm:$0xff] %v659_v40  ;;  %662 = vst [vmem:[%s6782_s27 + $0x748] sm:$0xff] %v661_v41  ;;  %v663_v42 = vld [vmem:[%s6777_s26 + $0x1d40] sm:$0xff]  ;;  %v665_v43 = vld [vmem:[%s6777_s26 + $0x1d48] sm:$0xff] }
  0x87   : > { %v667_v44 = vld [vmem:[%s6777_s26 + $0x1d80] sm:$0xff]  ;;  %664 = vst [vmem:[%s6782_s27 + $0x750] sm:$0xff] %v663_v42  ;;  %666 = vst [vmem:[%s6782_s27 + $0x758] sm:$0xff] %v665_v43  ;;  %v669_v45 = vld [vmem:[%s6777_s26 + $0x1d88] sm:$0xff] }
  0x88   : > { %668 = vst [vmem:[%s6782_s27 + $0x760] sm:$0xff] %v667_v44  ;;  %v671_v46 = vld [vmem:[%s6777_s26 + $0x1dc0] sm:$0xff]  ;;  %v673_v47 = vld [vmem:[%s6777_s26 + $0x1dc8] sm:$0xff]  ;;  %670 = vst [vmem:[%s6782_s27 + $0x768] sm:$0xff] %v669_v45 }
  0x89   : > { %672 = vst [vmem:[%s6782_s27 + $0x770] sm:$0xff] %v671_v46  ;;  %674 = vst [vmem:[%s6782_s27 + $0x778] sm:$0xff] %v673_v47  ;;  %v675_v48 = vld [vmem:[%s6777_s26 + $0x1e00] sm:$0xff]  ;;  %v677_v49 = vld [vmem:[%s6777_s26 + $0x1e08] sm:$0xff] }
  0x8a   : > { %v679_v50 = vld [vmem:[%s6777_s26 + $0x1e40] sm:$0xff]  ;;  %676 = vst [vmem:[%s6782_s27 + $0x780] sm:$0xff] %v675_v48  ;;  %678 = vst [vmem:[%s6782_s27 + $0x788] sm:$0xff] %v677_v49  ;;  %v681_v51 = vld [vmem:[%s6777_s26 + $0x1e48] sm:$0xff] }
  0x8b   : > { %680 = vst [vmem:[%s6782_s27 + $0x790] sm:$0xff] %v679_v50  ;;  %v683_v52 = vld [vmem:[%s6777_s26 + $0x1e80] sm:$0xff]  ;;  %v685_v53 = vld [vmem:[%s6777_s26 + $0x1e88] sm:$0xff]  ;;  %682 = vst [vmem:[%s6782_s27 + $0x798] sm:$0xff] %v681_v51 }
  0x8c   : > { %684 = vst [vmem:[%s6782_s27 + $0x7a0] sm:$0xff] %v683_v52  ;;  %686 = vst [vmem:[%s6782_s27 + $0x7a8] sm:$0xff] %v685_v53  ;;  %v687_v54 = vld [vmem:[%s6777_s26 + $0x1ec0] sm:$0xff]  ;;  %v689_v55 = vld [vmem:[%s6777_s26 + $0x1ec8] sm:$0xff] }
  0x8d   : > { %v691_v56 = vld [vmem:[%s6777_s26 + $0x1f00] sm:$0xff]  ;;  %688 = vst [vmem:[%s6782_s27 + $0x7b0] sm:$0xff] %v687_v54  ;;  %690 = vst [vmem:[%s6782_s27 + $0x7b8] sm:$0xff] %v689_v55  ;;  %v693_v57 = vld [vmem:[%s6777_s26 + $0x1f08] sm:$0xff] }
  0x8e   : > { %692 = vst [vmem:[%s6782_s27 + $0x7c0] sm:$0xff] %v691_v56  ;;  %v695_v58 = vld [vmem:[%s6777_s26 + $0x1f40] sm:$0xff]  ;;  %v697_v59 = vld [vmem:[%s6777_s26 + $0x1f48] sm:$0xff]  ;;  %694 = vst [vmem:[%s6782_s27 + $0x7c8] sm:$0xff] %v693_v57 }
  0x8f   : > { %696 = vst [vmem:[%s6782_s27 + $0x7d0] sm:$0xff] %v695_v58  ;;  %698 = vst [vmem:[%s6782_s27 + $0x7d8] sm:$0xff] %v697_v59  ;;  %v699_v60 = vld [vmem:[%s6777_s26 + $0x1f80] sm:$0xff]  ;;  %v701_v61 = vld [vmem:[%s6777_s26 + $0x1f88] sm:$0xff] }
  0x90   : > { %v703_v62 = vld [vmem:[%s6777_s26 + $0x1fc0] sm:$0xff]  ;;  %700 = vst [vmem:[%s6782_s27 + $0x7e0] sm:$0xff] %v699_v60  ;;  %702 = vst [vmem:[%s6782_s27 + $0x7e8] sm:$0xff] %v701_v61  ;;  %v705_v63 = vld [vmem:[%s6777_s26 + $0x1fc8] sm:$0xff] }
  0x91   : > { %704 = vst [vmem:[%s6782_s27 + $0x7f0] sm:$0xff] %v703_v62  ;;  %v707_v0 = vld [vmem:[%s6777_s26 + $0x2000] sm:$0xff]  ;;  %v709_v1 = vld [vmem:[%s6777_s26 + $0x2008] sm:$0xff]  ;;  %706 = vst [vmem:[%s6782_s27 + $0x7f8] sm:$0xff] %v705_v63 }
  0x92   : > { %708 = vst [vmem:[%s6782_s27 + $0x800] sm:$0xff] %v707_v0  ;;  %710 = vst [vmem:[%s6782_s27 + $0x808] sm:$0xff] %v709_v1  ;;  %v711_v2 = vld [vmem:[%s6777_s26 + $0x2040] sm:$0xff]  ;;  %v713_v3 = vld [vmem:[%s6777_s26 + $0x2048] sm:$0xff] }
  0x93   : > { %v715_v4 = vld [vmem:[%s6777_s26 + $0x2080] sm:$0xff]  ;;  %712 = vst [vmem:[%s6782_s27 + $0x810] sm:$0xff] %v711_v2  ;;  %714 = vst [vmem:[%s6782_s27 + $0x818] sm:$0xff] %v713_v3  ;;  %v717_v5 = vld [vmem:[%s6777_s26 + $0x2088] sm:$0xff] }
  0x94   : > { %716 = vst [vmem:[%s6782_s27 + $0x820] sm:$0xff] %v715_v4  ;;  %v719_v6 = vld [vmem:[%s6777_s26 + $0x20c0] sm:$0xff]  ;;  %v721_v7 = vld [vmem:[%s6777_s26 + $0x20c8] sm:$0xff]  ;;  %718 = vst [vmem:[%s6782_s27 + $0x828] sm:$0xff] %v717_v5 }
  0x95   : > { %720 = vst [vmem:[%s6782_s27 + $0x830] sm:$0xff] %v719_v6  ;;  %722 = vst [vmem:[%s6782_s27 + $0x838] sm:$0xff] %v721_v7  ;;  %v723_v8 = vld [vmem:[%s6777_s26 + $0x2100] sm:$0xff]  ;;  %v725_v9 = vld [vmem:[%s6777_s26 + $0x2108] sm:$0xff] }
  0x96   : > { %v727_v10 = vld [vmem:[%s6777_s26 + $0x2140] sm:$0xff]  ;;  %724 = vst [vmem:[%s6782_s27 + $0x840] sm:$0xff] %v723_v8  ;;  %726 = vst [vmem:[%s6782_s27 + $0x848] sm:$0xff] %v725_v9  ;;  %v729_v11 = vld [vmem:[%s6777_s26 + $0x2148] sm:$0xff] }
  0x97   : > { %728 = vst [vmem:[%s6782_s27 + $0x850] sm:$0xff] %v727_v10  ;;  %v731_v12 = vld [vmem:[%s6777_s26 + $0x2180] sm:$0xff]  ;;  %v733_v13 = vld [vmem:[%s6777_s26 + $0x2188] sm:$0xff]  ;;  %730 = vst [vmem:[%s6782_s27 + $0x858] sm:$0xff] %v729_v11 }
  0x98   : > { %732 = vst [vmem:[%s6782_s27 + $0x860] sm:$0xff] %v731_v12  ;;  %734 = vst [vmem:[%s6782_s27 + $0x868] sm:$0xff] %v733_v13  ;;  %v735_v14 = vld [vmem:[%s6777_s26 + $0x21c0] sm:$0xff]  ;;  %v737_v15 = vld [vmem:[%s6777_s26 + $0x21c8] sm:$0xff] }
  0x99   : > { %v739_v16 = vld [vmem:[%s6777_s26 + $0x2200] sm:$0xff]  ;;  %736 = vst [vmem:[%s6782_s27 + $0x870] sm:$0xff] %v735_v14  ;;  %738 = vst [vmem:[%s6782_s27 + $0x878] sm:$0xff] %v737_v15  ;;  %v741_v17 = vld [vmem:[%s6777_s26 + $0x2208] sm:$0xff] }
  0x9a   : > { %740 = vst [vmem:[%s6782_s27 + $0x880] sm:$0xff] %v739_v16  ;;  %v743_v18 = vld [vmem:[%s6777_s26 + $0x2240] sm:$0xff]  ;;  %v745_v19 = vld [vmem:[%s6777_s26 + $0x2248] sm:$0xff]  ;;  %742 = vst [vmem:[%s6782_s27 + $0x888] sm:$0xff] %v741_v17 }
  0x9b   : > { %744 = vst [vmem:[%s6782_s27 + $0x890] sm:$0xff] %v743_v18  ;;  %746 = vst [vmem:[%s6782_s27 + $0x898] sm:$0xff] %v745_v19  ;;  %v747_v20 = vld [vmem:[%s6777_s26 + $0x2280] sm:$0xff]  ;;  %v749_v21 = vld [vmem:[%s6777_s26 + $0x2288] sm:$0xff] }
  0x9c   : > { %v751_v22 = vld [vmem:[%s6777_s26 + $0x22c0] sm:$0xff]  ;;  %748 = vst [vmem:[%s6782_s27 + $0x8a0] sm:$0xff] %v747_v20  ;;  %750 = vst [vmem:[%s6782_s27 + $0x8a8] sm:$0xff] %v749_v21  ;;  %v753_v23 = vld [vmem:[%s6777_s26 + $0x22c8] sm:$0xff] }
  0x9d   : > { %752 = vst [vmem:[%s6782_s27 + $0x8b0] sm:$0xff] %v751_v22  ;;  %v755_v24 = vld [vmem:[%s6777_s26 + $0x2300] sm:$0xff]  ;;  %v757_v25 = vld [vmem:[%s6777_s26 + $0x2308] sm:$0xff]  ;;  %754 = vst [vmem:[%s6782_s27 + $0x8b8] sm:$0xff] %v753_v23 }
  0x9e   : > { %756 = vst [vmem:[%s6782_s27 + $0x8c0] sm:$0xff] %v755_v24  ;;  %758 = vst [vmem:[%s6782_s27 + $0x8c8] sm:$0xff] %v757_v25  ;;  %v759_v26 = vld [vmem:[%s6777_s26 + $0x2340] sm:$0xff]  ;;  %v761_v27 = vld [vmem:[%s6777_s26 + $0x2348] sm:$0xff] }
  0x9f   : > { %v763_v28 = vld [vmem:[%s6777_s26 + $0x2380] sm:$0xff]  ;;  %760 = vst [vmem:[%s6782_s27 + $0x8d0] sm:$0xff] %v759_v26  ;;  %762 = vst [vmem:[%s6782_s27 + $0x8d8] sm:$0xff] %v761_v27  ;;  %v765_v29 = vld [vmem:[%s6777_s26 + $0x2388] sm:$0xff] }
  0xa0   : > { %764 = vst [vmem:[%s6782_s27 + $0x8e0] sm:$0xff] %v763_v28  ;;  %v767_v30 = vld [vmem:[%s6777_s26 + $0x23c0] sm:$0xff]  ;;  %v769_v31 = vld [vmem:[%s6777_s26 + $0x23c8] sm:$0xff]  ;;  %766 = vst [vmem:[%s6782_s27 + $0x8e8] sm:$0xff] %v765_v29 }
  0xa1   : > { %768 = vst [vmem:[%s6782_s27 + $0x8f0] sm:$0xff] %v767_v30  ;;  %770 = vst [vmem:[%s6782_s27 + $0x8f8] sm:$0xff] %v769_v31  ;;  %v771_v32 = vld [vmem:[%s6777_s26 + $0x2400] sm:$0xff]  ;;  %v773_v33 = vld [vmem:[%s6777_s26 + $0x2408] sm:$0xff] }
  0xa2   : > { %v775_v34 = vld [vmem:[%s6777_s26 + $0x2440] sm:$0xff]  ;;  %772 = vst [vmem:[%s6782_s27 + $0x900] sm:$0xff] %v771_v32  ;;  %774 = vst [vmem:[%s6782_s27 + $0x908] sm:$0xff] %v773_v33  ;;  %v777_v35 = vld [vmem:[%s6777_s26 + $0x2448] sm:$0xff] }
  0xa3   : > { %776 = vst [vmem:[%s6782_s27 + $0x910] sm:$0xff] %v775_v34  ;;  %v779_v36 = vld [vmem:[%s6777_s26 + $0x2480] sm:$0xff]  ;;  %v781_v37 = vld [vmem:[%s6777_s26 + $0x2488] sm:$0xff]  ;;  %778 = vst [vmem:[%s6782_s27 + $0x918] sm:$0xff] %v777_v35 }
  0xa4   : > { %780 = vst [vmem:[%s6782_s27 + $0x920] sm:$0xff] %v779_v36  ;;  %782 = vst [vmem:[%s6782_s27 + $0x928] sm:$0xff] %v781_v37  ;;  %v783_v38 = vld [vmem:[%s6777_s26 + $0x24c0] sm:$0xff]  ;;  %v785_v39 = vld [vmem:[%s6777_s26 + $0x24c8] sm:$0xff] }
  0xa5   : > { %v787_v40 = vld [vmem:[%s6777_s26 + $0x2500] sm:$0xff]  ;;  %784 = vst [vmem:[%s6782_s27 + $0x930] sm:$0xff] %v783_v38  ;;  %786 = vst [vmem:[%s6782_s27 + $0x938] sm:$0xff] %v785_v39  ;;  %v789_v41 = vld [vmem:[%s6777_s26 + $0x2508] sm:$0xff] }
  0xa6   : > { %788 = vst [vmem:[%s6782_s27 + $0x940] sm:$0xff] %v787_v40  ;;  %v791_v42 = vld [vmem:[%s6777_s26 + $0x2540] sm:$0xff]  ;;  %v793_v43 = vld [vmem:[%s6777_s26 + $0x2548] sm:$0xff]  ;;  %790 = vst [vmem:[%s6782_s27 + $0x948] sm:$0xff] %v789_v41 }
  0xa7   : > { %792 = vst [vmem:[%s6782_s27 + $0x950] sm:$0xff] %v791_v42  ;;  %794 = vst [vmem:[%s6782_s27 + $0x958] sm:$0xff] %v793_v43  ;;  %v795_v44 = vld [vmem:[%s6777_s26 + $0x2580] sm:$0xff]  ;;  %v797_v45 = vld [vmem:[%s6777_s26 + $0x2588] sm:$0xff] }
  0xa8   : > { %v799_v46 = vld [vmem:[%s6777_s26 + $0x25c0] sm:$0xff]  ;;  %796 = vst [vmem:[%s6782_s27 + $0x960] sm:$0xff] %v795_v44  ;;  %798 = vst [vmem:[%s6782_s27 + $0x968] sm:$0xff] %v797_v45  ;;  %v801_v47 = vld [vmem:[%s6777_s26 + $0x25c8] sm:$0xff] }
  0xa9   : > { %800 = vst [vmem:[%s6782_s27 + $0x970] sm:$0xff] %v799_v46  ;;  %v803_v48 = vld [vmem:[%s6777_s26 + $0x2600] sm:$0xff]  ;;  %v805_v49 = vld [vmem:[%s6777_s26 + $0x2608] sm:$0xff]  ;;  %802 = vst [vmem:[%s6782_s27 + $0x978] sm:$0xff] %v801_v47 }
  0xaa   : > { %804 = vst [vmem:[%s6782_s27 + $0x980] sm:$0xff] %v803_v48  ;;  %806 = vst [vmem:[%s6782_s27 + $0x988] sm:$0xff] %v805_v49  ;;  %v807_v50 = vld [vmem:[%s6777_s26 + $0x2640] sm:$0xff]  ;;  %v809_v51 = vld [vmem:[%s6777_s26 + $0x2648] sm:$0xff] }
  0xab   : > { %v811_v52 = vld [vmem:[%s6777_s26 + $0x2680] sm:$0xff]  ;;  %808 = vst [vmem:[%s6782_s27 + $0x990] sm:$0xff] %v807_v50  ;;  %810 = vst [vmem:[%s6782_s27 + $0x998] sm:$0xff] %v809_v51  ;;  %v813_v53 = vld [vmem:[%s6777_s26 + $0x2688] sm:$0xff] }
  0xac   : > { %812 = vst [vmem:[%s6782_s27 + $0x9a0] sm:$0xff] %v811_v52  ;;  %v815_v54 = vld [vmem:[%s6777_s26 + $0x26c0] sm:$0xff]  ;;  %v817_v55 = vld [vmem:[%s6777_s26 + $0x26c8] sm:$0xff]  ;;  %814 = vst [vmem:[%s6782_s27 + $0x9a8] sm:$0xff] %v813_v53 }
  0xad   : > { %816 = vst [vmem:[%s6782_s27 + $0x9b0] sm:$0xff] %v815_v54  ;;  %818 = vst [vmem:[%s6782_s27 + $0x9b8] sm:$0xff] %v817_v55  ;;  %v819_v56 = vld [vmem:[%s6777_s26 + $0x2700] sm:$0xff]  ;;  %v821_v57 = vld [vmem:[%s6777_s26 + $0x2708] sm:$0xff] }
  0xae   : > { %v823_v58 = vld [vmem:[%s6777_s26 + $0x2740] sm:$0xff]  ;;  %820 = vst [vmem:[%s6782_s27 + $0x9c0] sm:$0xff] %v819_v56  ;;  %822 = vst [vmem:[%s6782_s27 + $0x9c8] sm:$0xff] %v821_v57  ;;  %v825_v59 = vld [vmem:[%s6777_s26 + $0x2748] sm:$0xff] }
  0xaf   : > { %824 = vst [vmem:[%s6782_s27 + $0x9d0] sm:$0xff] %v823_v58  ;;  %v827_v60 = vld [vmem:[%s6777_s26 + $0x2780] sm:$0xff]  ;;  %v829_v61 = vld [vmem:[%s6777_s26 + $0x2788] sm:$0xff]  ;;  %826 = vst [vmem:[%s6782_s27 + $0x9d8] sm:$0xff] %v825_v59 }
  0xb0   : > { %828 = vst [vmem:[%s6782_s27 + $0x9e0] sm:$0xff] %v827_v60  ;;  %830 = vst [vmem:[%s6782_s27 + $0x9e8] sm:$0xff] %v829_v61  ;;  %v831_v62 = vld [vmem:[%s6777_s26 + $0x27c0] sm:$0xff]  ;;  %v833_v63 = vld [vmem:[%s6777_s26 + $0x27c8] sm:$0xff] }
  0xb1   : > { %v835_v0 = vld [vmem:[%s6777_s26 + $0x2800] sm:$0xff]  ;;  %832 = vst [vmem:[%s6782_s27 + $0x9f0] sm:$0xff] %v831_v62  ;;  %834 = vst [vmem:[%s6782_s27 + $0x9f8] sm:$0xff] %v833_v63  ;;  %v837_v1 = vld [vmem:[%s6777_s26 + $0x2808] sm:$0xff] }
  0xb2   : > { %836 = vst [vmem:[%s6782_s27 + $0xa00] sm:$0xff] %v835_v0  ;;  %v839_v2 = vld [vmem:[%s6777_s26 + $0x2840] sm:$0xff]  ;;  %v841_v3 = vld [vmem:[%s6777_s26 + $0x2848] sm:$0xff]  ;;  %838 = vst [vmem:[%s6782_s27 + $0xa08] sm:$0xff] %v837_v1 }
  0xb3   : > { %840 = vst [vmem:[%s6782_s27 + $0xa10] sm:$0xff] %v839_v2  ;;  %842 = vst [vmem:[%s6782_s27 + $0xa18] sm:$0xff] %v841_v3  ;;  %v843_v4 = vld [vmem:[%s6777_s26 + $0x2880] sm:$0xff]  ;;  %v845_v5 = vld [vmem:[%s6777_s26 + $0x2888] sm:$0xff] }
  0xb4   : > { %v847_v6 = vld [vmem:[%s6777_s26 + $0x28c0] sm:$0xff]  ;;  %844 = vst [vmem:[%s6782_s27 + $0xa20] sm:$0xff] %v843_v4  ;;  %846 = vst [vmem:[%s6782_s27 + $0xa28] sm:$0xff] %v845_v5  ;;  %v849_v7 = vld [vmem:[%s6777_s26 + $0x28c8] sm:$0xff] }
  0xb5   : > { %848 = vst [vmem:[%s6782_s27 + $0xa30] sm:$0xff] %v847_v6  ;;  %v851_v8 = vld [vmem:[%s6777_s26 + $0x2900] sm:$0xff]  ;;  %v853_v9 = vld [vmem:[%s6777_s26 + $0x2908] sm:$0xff]  ;;  %850 = vst [vmem:[%s6782_s27 + $0xa38] sm:$0xff] %v849_v7 }
  0xb6   : > { %852 = vst [vmem:[%s6782_s27 + $0xa40] sm:$0xff] %v851_v8  ;;  %854 = vst [vmem:[%s6782_s27 + $0xa48] sm:$0xff] %v853_v9  ;;  %v855_v10 = vld [vmem:[%s6777_s26 + $0x2940] sm:$0xff]  ;;  %v857_v11 = vld [vmem:[%s6777_s26 + $0x2948] sm:$0xff] }
  0xb7   : > { %v859_v12 = vld [vmem:[%s6777_s26 + $0x2980] sm:$0xff]  ;;  %856 = vst [vmem:[%s6782_s27 + $0xa50] sm:$0xff] %v855_v10  ;;  %858 = vst [vmem:[%s6782_s27 + $0xa58] sm:$0xff] %v857_v11  ;;  %v861_v13 = vld [vmem:[%s6777_s26 + $0x2988] sm:$0xff] }
  0xb8   : > { %860 = vst [vmem:[%s6782_s27 + $0xa60] sm:$0xff] %v859_v12  ;;  %v863_v14 = vld [vmem:[%s6777_s26 + $0x29c0] sm:$0xff]  ;;  %v865_v15 = vld [vmem:[%s6777_s26 + $0x29c8] sm:$0xff]  ;;  %862 = vst [vmem:[%s6782_s27 + $0xa68] sm:$0xff] %v861_v13 }
  0xb9   : > { %864 = vst [vmem:[%s6782_s27 + $0xa70] sm:$0xff] %v863_v14  ;;  %866 = vst [vmem:[%s6782_s27 + $0xa78] sm:$0xff] %v865_v15  ;;  %v867_v16 = vld [vmem:[%s6777_s26 + $0x2a00] sm:$0xff]  ;;  %v869_v17 = vld [vmem:[%s6777_s26 + $0x2a08] sm:$0xff] }
  0xba   : > { %v871_v18 = vld [vmem:[%s6777_s26 + $0x2a40] sm:$0xff]  ;;  %868 = vst [vmem:[%s6782_s27 + $0xa80] sm:$0xff] %v867_v16  ;;  %870 = vst [vmem:[%s6782_s27 + $0xa88] sm:$0xff] %v869_v17  ;;  %v873_v19 = vld [vmem:[%s6777_s26 + $0x2a48] sm:$0xff] }
  0xbb   : > { %872 = vst [vmem:[%s6782_s27 + $0xa90] sm:$0xff] %v871_v18  ;;  %v875_v20 = vld [vmem:[%s6777_s26 + $0x2a80] sm:$0xff]  ;;  %v877_v21 = vld [vmem:[%s6777_s26 + $0x2a88] sm:$0xff]  ;;  %874 = vst [vmem:[%s6782_s27 + $0xa98] sm:$0xff] %v873_v19 }
  0xbc   : > { %876 = vst [vmem:[%s6782_s27 + $0xaa0] sm:$0xff] %v875_v20  ;;  %878 = vst [vmem:[%s6782_s27 + $0xaa8] sm:$0xff] %v877_v21  ;;  %v879_v22 = vld [vmem:[%s6777_s26 + $0x2ac0] sm:$0xff]  ;;  %v881_v23 = vld [vmem:[%s6777_s26 + $0x2ac8] sm:$0xff] }
  0xbd   : > { %v883_v24 = vld [vmem:[%s6777_s26 + $0x2b00] sm:$0xff]  ;;  %880 = vst [vmem:[%s6782_s27 + $0xab0] sm:$0xff] %v879_v22  ;;  %882 = vst [vmem:[%s6782_s27 + $0xab8] sm:$0xff] %v881_v23  ;;  %v885_v25 = vld [vmem:[%s6777_s26 + $0x2b08] sm:$0xff] }
  0xbe   : > { %884 = vst [vmem:[%s6782_s27 + $0xac0] sm:$0xff] %v883_v24  ;;  %v887_v26 = vld [vmem:[%s6777_s26 + $0x2b40] sm:$0xff]  ;;  %v889_v27 = vld [vmem:[%s6777_s26 + $0x2b48] sm:$0xff]  ;;  %886 = vst [vmem:[%s6782_s27 + $0xac8] sm:$0xff] %v885_v25 }
  0xbf   : > { %888 = vst [vmem:[%s6782_s27 + $0xad0] sm:$0xff] %v887_v26  ;;  %890 = vst [vmem:[%s6782_s27 + $0xad8] sm:$0xff] %v889_v27  ;;  %v891_v28 = vld [vmem:[%s6777_s26 + $0x2b80] sm:$0xff]  ;;  %v893_v29 = vld [vmem:[%s6777_s26 + $0x2b88] sm:$0xff] }
  0xc0   : > { %v895_v30 = vld [vmem:[%s6777_s26 + $0x2bc0] sm:$0xff]  ;;  %892 = vst [vmem:[%s6782_s27 + $0xae0] sm:$0xff] %v891_v28  ;;  %894 = vst [vmem:[%s6782_s27 + $0xae8] sm:$0xff] %v893_v29  ;;  %v897_v31 = vld [vmem:[%s6777_s26 + $0x2bc8] sm:$0xff] }
  0xc1   : > { %896 = vst [vmem:[%s6782_s27 + $0xaf0] sm:$0xff] %v895_v30  ;;  %v899_v32 = vld [vmem:[%s6777_s26 + $0x2c00] sm:$0xff]  ;;  %v901_v33 = vld [vmem:[%s6777_s26 + $0x2c08] sm:$0xff]  ;;  %898 = vst [vmem:[%s6782_s27 + $0xaf8] sm:$0xff] %v897_v31 }
  0xc2   : > { %900 = vst [vmem:[%s6782_s27 + $0xb00] sm:$0xff] %v899_v32  ;;  %902 = vst [vmem:[%s6782_s27 + $0xb08] sm:$0xff] %v901_v33  ;;  %v903_v34 = vld [vmem:[%s6777_s26 + $0x2c40] sm:$0xff]  ;;  %v905_v35 = vld [vmem:[%s6777_s26 + $0x2c48] sm:$0xff] }
  0xc3   : > { %v907_v36 = vld [vmem:[%s6777_s26 + $0x2c80] sm:$0xff]  ;;  %904 = vst [vmem:[%s6782_s27 + $0xb10] sm:$0xff] %v903_v34  ;;  %906 = vst [vmem:[%s6782_s27 + $0xb18] sm:$0xff] %v905_v35  ;;  %v909_v37 = vld [vmem:[%s6777_s26 + $0x2c88] sm:$0xff] }
  0xc4   : > { %908 = vst [vmem:[%s6782_s27 + $0xb20] sm:$0xff] %v907_v36  ;;  %v911_v38 = vld [vmem:[%s6777_s26 + $0x2cc0] sm:$0xff]  ;;  %v913_v39 = vld [vmem:[%s6777_s26 + $0x2cc8] sm:$0xff]  ;;  %910 = vst [vmem:[%s6782_s27 + $0xb28] sm:$0xff] %v909_v37 }
  0xc5   : > { %912 = vst [vmem:[%s6782_s27 + $0xb30] sm:$0xff] %v911_v38  ;;  %914 = vst [vmem:[%s6782_s27 + $0xb38] sm:$0xff] %v913_v39  ;;  %v915_v40 = vld [vmem:[%s6777_s26 + $0x2d00] sm:$0xff]  ;;  %v917_v41 = vld [vmem:[%s6777_s26 + $0x2d08] sm:$0xff] }
  0xc6   : > { %v919_v42 = vld [vmem:[%s6777_s26 + $0x2d40] sm:$0xff]  ;;  %916 = vst [vmem:[%s6782_s27 + $0xb40] sm:$0xff] %v915_v40  ;;  %918 = vst [vmem:[%s6782_s27 + $0xb48] sm:$0xff] %v917_v41  ;;  %v921_v43 = vld [vmem:[%s6777_s26 + $0x2d48] sm:$0xff] }
  0xc7   : > { %920 = vst [vmem:[%s6782_s27 + $0xb50] sm:$0xff] %v919_v42  ;;  %v923_v44 = vld [vmem:[%s6777_s26 + $0x2d80] sm:$0xff]  ;;  %v925_v45 = vld [vmem:[%s6777_s26 + $0x2d88] sm:$0xff]  ;;  %922 = vst [vmem:[%s6782_s27 + $0xb58] sm:$0xff] %v921_v43 }
  0xc8   : > { %924 = vst [vmem:[%s6782_s27 + $0xb60] sm:$0xff] %v923_v44  ;;  %926 = vst [vmem:[%s6782_s27 + $0xb68] sm:$0xff] %v925_v45  ;;  %v927_v46 = vld [vmem:[%s6777_s26 + $0x2dc0] sm:$0xff]  ;;  %v929_v47 = vld [vmem:[%s6777_s26 + $0x2dc8] sm:$0xff] }
  0xc9   : > { %v931_v48 = vld [vmem:[%s6777_s26 + $0x2e00] sm:$0xff]  ;;  %928 = vst [vmem:[%s6782_s27 + $0xb70] sm:$0xff] %v927_v46  ;;  %930 = vst [vmem:[%s6782_s27 + $0xb78] sm:$0xff] %v929_v47  ;;  %v933_v49 = vld [vmem:[%s6777_s26 + $0x2e08] sm:$0xff] }
  0xca   : > { %932 = vst [vmem:[%s6782_s27 + $0xb80] sm:$0xff] %v931_v48  ;;  %v935_v50 = vld [vmem:[%s6777_s26 + $0x2e40] sm:$0xff]  ;;  %v937_v51 = vld [vmem:[%s6777_s26 + $0x2e48] sm:$0xff]  ;;  %934 = vst [vmem:[%s6782_s27 + $0xb88] sm:$0xff] %v933_v49 }
  0xcb   : > { %936 = vst [vmem:[%s6782_s27 + $0xb90] sm:$0xff] %v935_v50  ;;  %938 = vst [vmem:[%s6782_s27 + $0xb98] sm:$0xff] %v937_v51  ;;  %v939_v52 = vld [vmem:[%s6777_s26 + $0x2e80] sm:$0xff]  ;;  %v941_v53 = vld [vmem:[%s6777_s26 + $0x2e88] sm:$0xff] }
  0xcc   : > { %v943_v54 = vld [vmem:[%s6777_s26 + $0x2ec0] sm:$0xff]  ;;  %940 = vst [vmem:[%s6782_s27 + $0xba0] sm:$0xff] %v939_v52  ;;  %942 = vst [vmem:[%s6782_s27 + $0xba8] sm:$0xff] %v941_v53  ;;  %v945_v55 = vld [vmem:[%s6777_s26 + $0x2ec8] sm:$0xff] }
  0xcd   : > { %944 = vst [vmem:[%s6782_s27 + $0xbb0] sm:$0xff] %v943_v54  ;;  %v947_v56 = vld [vmem:[%s6777_s26 + $0x2f00] sm:$0xff]  ;;  %v949_v57 = vld [vmem:[%s6777_s26 + $0x2f08] sm:$0xff]  ;;  %946 = vst [vmem:[%s6782_s27 + $0xbb8] sm:$0xff] %v945_v55 }
  0xce   : > { %948 = vst [vmem:[%s6782_s27 + $0xbc0] sm:$0xff] %v947_v56  ;;  %950 = vst [vmem:[%s6782_s27 + $0xbc8] sm:$0xff] %v949_v57  ;;  %v951_v58 = vld [vmem:[%s6777_s26 + $0x2f40] sm:$0xff]  ;;  %v953_v59 = vld [vmem:[%s6777_s26 + $0x2f48] sm:$0xff] }
  0xcf   : > { %v955_v60 = vld [vmem:[%s6777_s26 + $0x2f80] sm:$0xff]  ;;  %952 = vst [vmem:[%s6782_s27 + $0xbd0] sm:$0xff] %v951_v58  ;;  %954 = vst [vmem:[%s6782_s27 + $0xbd8] sm:$0xff] %v953_v59  ;;  %v957_v61 = vld [vmem:[%s6777_s26 + $0x2f88] sm:$0xff] }
  0xd0   : > { %956 = vst [vmem:[%s6782_s27 + $0xbe0] sm:$0xff] %v955_v60  ;;  %v959_v62 = vld [vmem:[%s6777_s26 + $0x2fc0] sm:$0xff]  ;;  %v961_v63 = vld [vmem:[%s6777_s26 + $0x2fc8] sm:$0xff]  ;;  %958 = vst [vmem:[%s6782_s27 + $0xbe8] sm:$0xff] %v957_v61 }
  0xd1   : > { %960 = vst [vmem:[%s6782_s27 + $0xbf0] sm:$0xff] %v959_v62  ;;  %962 = vst [vmem:[%s6782_s27 + $0xbf8] sm:$0xff] %v961_v63  ;;  %v963_v0 = vld [vmem:[%s6777_s26 + $0x3000] sm:$0xff]  ;;  %v965_v1 = vld [vmem:[%s6777_s26 + $0x3008] sm:$0xff] }
  0xd2   : > { %v967_v2 = vld [vmem:[%s6777_s26 + $0x3040] sm:$0xff]  ;;  %964 = vst [vmem:[%s6782_s27 + $0xc00] sm:$0xff] %v963_v0  ;;  %966 = vst [vmem:[%s6782_s27 + $0xc08] sm:$0xff] %v965_v1  ;;  %v969_v3 = vld [vmem:[%s6777_s26 + $0x3048] sm:$0xff] }
  0xd3   : > { %968 = vst [vmem:[%s6782_s27 + $0xc10] sm:$0xff] %v967_v2  ;;  %v971_v4 = vld [vmem:[%s6777_s26 + $0x3080] sm:$0xff]  ;;  %v973_v5 = vld [vmem:[%s6777_s26 + $0x3088] sm:$0xff]  ;;  %970 = vst [vmem:[%s6782_s27 + $0xc18] sm:$0xff] %v969_v3 }
  0xd4   : > { %972 = vst [vmem:[%s6782_s27 + $0xc20] sm:$0xff] %v971_v4  ;;  %974 = vst [vmem:[%s6782_s27 + $0xc28] sm:$0xff] %v973_v5  ;;  %v975_v6 = vld [vmem:[%s6777_s26 + $0x30c0] sm:$0xff]  ;;  %v977_v7 = vld [vmem:[%s6777_s26 + $0x30c8] sm:$0xff] }
  0xd5   : > { %v979_v8 = vld [vmem:[%s6777_s26 + $0x3100] sm:$0xff]  ;;  %976 = vst [vmem:[%s6782_s27 + $0xc30] sm:$0xff] %v975_v6  ;;  %978 = vst [vmem:[%s6782_s27 + $0xc38] sm:$0xff] %v977_v7  ;;  %v981_v9 = vld [vmem:[%s6777_s26 + $0x3108] sm:$0xff] }
  0xd6   : > { %980 = vst [vmem:[%s6782_s27 + $0xc40] sm:$0xff] %v979_v8  ;;  %v983_v10 = vld [vmem:[%s6777_s26 + $0x3140] sm:$0xff]  ;;  %v985_v11 = vld [vmem:[%s6777_s26 + $0x3148] sm:$0xff]  ;;  %982 = vst [vmem:[%s6782_s27 + $0xc48] sm:$0xff] %v981_v9 }
  0xd7   : > { %984 = vst [vmem:[%s6782_s27 + $0xc50] sm:$0xff] %v983_v10  ;;  %986 = vst [vmem:[%s6782_s27 + $0xc58] sm:$0xff] %v985_v11  ;;  %v987_v12 = vld [vmem:[%s6777_s26 + $0x3180] sm:$0xff]  ;;  %v989_v13 = vld [vmem:[%s6777_s26 + $0x3188] sm:$0xff] }
  0xd8   : > { %v991_v14 = vld [vmem:[%s6777_s26 + $0x31c0] sm:$0xff]  ;;  %988 = vst [vmem:[%s6782_s27 + $0xc60] sm:$0xff] %v987_v12  ;;  %990 = vst [vmem:[%s6782_s27 + $0xc68] sm:$0xff] %v989_v13  ;;  %v993_v15 = vld [vmem:[%s6777_s26 + $0x31c8] sm:$0xff] }
  0xd9   : > { %992 = vst [vmem:[%s6782_s27 + $0xc70] sm:$0xff] %v991_v14  ;;  %v995_v16 = vld [vmem:[%s6777_s26 + $0x3200] sm:$0xff]  ;;  %v997_v17 = vld [vmem:[%s6777_s26 + $0x3208] sm:$0xff]  ;;  %994 = vst [vmem:[%s6782_s27 + $0xc78] sm:$0xff] %v993_v15 }
  0xda   : > { %996 = vst [vmem:[%s6782_s27 + $0xc80] sm:$0xff] %v995_v16  ;;  %998 = vst [vmem:[%s6782_s27 + $0xc88] sm:$0xff] %v997_v17  ;;  %v999_v18 = vld [vmem:[%s6777_s26 + $0x3240] sm:$0xff]  ;;  %v1001_v19 = vld [vmem:[%s6777_s26 + $0x3248] sm:$0xff] }
  0xdb   : > { %v1003_v20 = vld [vmem:[%s6777_s26 + $0x3280] sm:$0xff]  ;;  %1000 = vst [vmem:[%s6782_s27 + $0xc90] sm:$0xff] %v999_v18  ;;  %1002 = vst [vmem:[%s6782_s27 + $0xc98] sm:$0xff] %v1001_v19  ;;  %v1005_v21 = vld [vmem:[%s6777_s26 + $0x3288] sm:$0xff] }
  0xdc   : > { %1004 = vst [vmem:[%s6782_s27 + $0xca0] sm:$0xff] %v1003_v20  ;;  %v1007_v22 = vld [vmem:[%s6777_s26 + $0x32c0] sm:$0xff]  ;;  %v1009_v23 = vld [vmem:[%s6777_s26 + $0x32c8] sm:$0xff]  ;;  %1006 = vst [vmem:[%s6782_s27 + $0xca8] sm:$0xff] %v1005_v21 }
  0xdd   : > { %1008 = vst [vmem:[%s6782_s27 + $0xcb0] sm:$0xff] %v1007_v22  ;;  %1010 = vst [vmem:[%s6782_s27 + $0xcb8] sm:$0xff] %v1009_v23  ;;  %v1011_v24 = vld [vmem:[%s6777_s26 + $0x3300] sm:$0xff]  ;;  %v1013_v25 = vld [vmem:[%s6777_s26 + $0x3308] sm:$0xff] }
  0xde   : > { %v1015_v26 = vld [vmem:[%s6777_s26 + $0x3340] sm:$0xff]  ;;  %1012 = vst [vmem:[%s6782_s27 + $0xcc0] sm:$0xff] %v1011_v24  ;;  %1014 = vst [vmem:[%s6782_s27 + $0xcc8] sm:$0xff] %v1013_v25  ;;  %v1017_v27 = vld [vmem:[%s6777_s26 + $0x3348] sm:$0xff] }
  0xdf   : > { %1016 = vst [vmem:[%s6782_s27 + $0xcd0] sm:$0xff] %v1015_v26  ;;  %v1019_v28 = vld [vmem:[%s6777_s26 + $0x3380] sm:$0xff]  ;;  %v1021_v29 = vld [vmem:[%s6777_s26 + $0x3388] sm:$0xff]  ;;  %1018 = vst [vmem:[%s6782_s27 + $0xcd8] sm:$0xff] %v1017_v27 }
  0xe0   : > { %1020 = vst [vmem:[%s6782_s27 + $0xce0] sm:$0xff] %v1019_v28  ;;  %1022 = vst [vmem:[%s6782_s27 + $0xce8] sm:$0xff] %v1021_v29  ;;  %v1023_v30 = vld [vmem:[%s6777_s26 + $0x33c0] sm:$0xff]  ;;  %v1025_v31 = vld [vmem:[%s6777_s26 + $0x33c8] sm:$0xff] }
  0xe1   : > { %v1027_v32 = vld [vmem:[%s6777_s26 + $0x3400] sm:$0xff]  ;;  %1024 = vst [vmem:[%s6782_s27 + $0xcf0] sm:$0xff] %v1023_v30  ;;  %1026 = vst [vmem:[%s6782_s27 + $0xcf8] sm:$0xff] %v1025_v31  ;;  %v1029_v33 = vld [vmem:[%s6777_s26 + $0x3408] sm:$0xff] }
  0xe2   : > { %1028 = vst [vmem:[%s6782_s27 + $0xd00] sm:$0xff] %v1027_v32  ;;  %v1031_v34 = vld [vmem:[%s6777_s26 + $0x3440] sm:$0xff]  ;;  %v1033_v35 = vld [vmem:[%s6777_s26 + $0x3448] sm:$0xff]  ;;  %1030 = vst [vmem:[%s6782_s27 + $0xd08] sm:$0xff] %v1029_v33 }
  0xe3   : > { %1032 = vst [vmem:[%s6782_s27 + $0xd10] sm:$0xff] %v1031_v34  ;;  %1034 = vst [vmem:[%s6782_s27 + $0xd18] sm:$0xff] %v1033_v35  ;;  %v1035_v36 = vld [vmem:[%s6777_s26 + $0x3480] sm:$0xff]  ;;  %v1037_v37 = vld [vmem:[%s6777_s26 + $0x3488] sm:$0xff] }
  0xe4   : > { %v1039_v38 = vld [vmem:[%s6777_s26 + $0x34c0] sm:$0xff]  ;;  %1036 = vst [vmem:[%s6782_s27 + $0xd20] sm:$0xff] %v1035_v36  ;;  %1038 = vst [vmem:[%s6782_s27 + $0xd28] sm:$0xff] %v1037_v37  ;;  %v1041_v39 = vld [vmem:[%s6777_s26 + $0x34c8] sm:$0xff] }
  0xe5   : > { %1040 = vst [vmem:[%s6782_s27 + $0xd30] sm:$0xff] %v1039_v38  ;;  %v1043_v40 = vld [vmem:[%s6777_s26 + $0x3500] sm:$0xff]  ;;  %v1045_v41 = vld [vmem:[%s6777_s26 + $0x3508] sm:$0xff]  ;;  %1042 = vst [vmem:[%s6782_s27 + $0xd38] sm:$0xff] %v1041_v39 }
  0xe6   : > { %1044 = vst [vmem:[%s6782_s27 + $0xd40] sm:$0xff] %v1043_v40  ;;  %1046 = vst [vmem:[%s6782_s27 + $0xd48] sm:$0xff] %v1045_v41  ;;  %v1047_v42 = vld [vmem:[%s6777_s26 + $0x3540] sm:$0xff]  ;;  %v1049_v43 = vld [vmem:[%s6777_s26 + $0x3548] sm:$0xff] }
  0xe7   : > { %v1051_v44 = vld [vmem:[%s6777_s26 + $0x3580] sm:$0xff]  ;;  %1048 = vst [vmem:[%s6782_s27 + $0xd50] sm:$0xff] %v1047_v42  ;;  %1050 = vst [vmem:[%s6782_s27 + $0xd58] sm:$0xff] %v1049_v43  ;;  %v1053_v45 = vld [vmem:[%s6777_s26 + $0x3588] sm:$0xff] }
  0xe8   : > { %1052 = vst [vmem:[%s6782_s27 + $0xd60] sm:$0xff] %v1051_v44  ;;  %v1055_v46 = vld [vmem:[%s6777_s26 + $0x35c0] sm:$0xff]  ;;  %v1057_v47 = vld [vmem:[%s6777_s26 + $0x35c8] sm:$0xff]  ;;  %1054 = vst [vmem:[%s6782_s27 + $0xd68] sm:$0xff] %v1053_v45 }
  0xe9   : > { %1056 = vst [vmem:[%s6782_s27 + $0xd70] sm:$0xff] %v1055_v46  ;;  %1058 = vst [vmem:[%s6782_s27 + $0xd78] sm:$0xff] %v1057_v47  ;;  %v1059_v48 = vld [vmem:[%s6777_s26 + $0x3600] sm:$0xff]  ;;  %v1061_v49 = vld [vmem:[%s6777_s26 + $0x3608] sm:$0xff] }
  0xea   : > { %v1063_v50 = vld [vmem:[%s6777_s26 + $0x3640] sm:$0xff]  ;;  %1060 = vst [vmem:[%s6782_s27 + $0xd80] sm:$0xff] %v1059_v48  ;;  %1062 = vst [vmem:[%s6782_s27 + $0xd88] sm:$0xff] %v1061_v49  ;;  %v1065_v51 = vld [vmem:[%s6777_s26 + $0x3648] sm:$0xff] }
  0xeb   : > { %1064 = vst [vmem:[%s6782_s27 + $0xd90] sm:$0xff] %v1063_v50  ;;  %v1067_v52 = vld [vmem:[%s6777_s26 + $0x3680] sm:$0xff]  ;;  %v1069_v53 = vld [vmem:[%s6777_s26 + $0x3688] sm:$0xff]  ;;  %1066 = vst [vmem:[%s6782_s27 + $0xd98] sm:$0xff] %v1065_v51 }
  0xec   : > { %1068 = vst [vmem:[%s6782_s27 + $0xda0] sm:$0xff] %v1067_v52  ;;  %1070 = vst [vmem:[%s6782_s27 + $0xda8] sm:$0xff] %v1069_v53  ;;  %v1071_v54 = vld [vmem:[%s6777_s26 + $0x36c0] sm:$0xff]  ;;  %v1073_v55 = vld [vmem:[%s6777_s26 + $0x36c8] sm:$0xff] }
  0xed   : > { %v1075_v56 = vld [vmem:[%s6777_s26 + $0x3700] sm:$0xff]  ;;  %1072 = vst [vmem:[%s6782_s27 + $0xdb0] sm:$0xff] %v1071_v54  ;;  %1074 = vst [vmem:[%s6782_s27 + $0xdb8] sm:$0xff] %v1073_v55  ;;  %v1077_v57 = vld [vmem:[%s6777_s26 + $0x3708] sm:$0xff] }
  0xee   : > { %1076 = vst [vmem:[%s6782_s27 + $0xdc0] sm:$0xff] %v1075_v56  ;;  %v1079_v58 = vld [vmem:[%s6777_s26 + $0x3740] sm:$0xff]  ;;  %v1081_v59 = vld [vmem:[%s6777_s26 + $0x3748] sm:$0xff]  ;;  %1078 = vst [vmem:[%s6782_s27 + $0xdc8] sm:$0xff] %v1077_v57 }
  0xef   : > { %1080 = vst [vmem:[%s6782_s27 + $0xdd0] sm:$0xff] %v1079_v58  ;;  %1082 = vst [vmem:[%s6782_s27 + $0xdd8] sm:$0xff] %v1081_v59  ;;  %v1083_v60 = vld [vmem:[%s6777_s26 + $0x3780] sm:$0xff]  ;;  %v1085_v61 = vld [vmem:[%s6777_s26 + $0x3788] sm:$0xff] }
  0xf0   : > { %v1087_v62 = vld [vmem:[%s6777_s26 + $0x37c0] sm:$0xff]  ;;  %1084 = vst [vmem:[%s6782_s27 + $0xde0] sm:$0xff] %v1083_v60  ;;  %1086 = vst [vmem:[%s6782_s27 + $0xde8] sm:$0xff] %v1085_v61  ;;  %v1089_v63 = vld [vmem:[%s6777_s26 + $0x37c8] sm:$0xff] }
  0xf1   : > { %1088 = vst [vmem:[%s6782_s27 + $0xdf0] sm:$0xff] %v1087_v62  ;;  %v1091_v0 = vld [vmem:[%s6777_s26 + $0x3800] sm:$0xff]  ;;  %v1093_v1 = vld [vmem:[%s6777_s26 + $0x3808] sm:$0xff]  ;;  %1090 = vst [vmem:[%s6782_s27 + $0xdf8] sm:$0xff] %v1089_v63 }
  0xf2   : > { %1092 = vst [vmem:[%s6782_s27 + $0xe00] sm:$0xff] %v1091_v0  ;;  %1094 = vst [vmem:[%s6782_s27 + $0xe08] sm:$0xff] %v1093_v1  ;;  %v1095_v2 = vld [vmem:[%s6777_s26 + $0x3840] sm:$0xff]  ;;  %v1097_v3 = vld [vmem:[%s6777_s26 + $0x3848] sm:$0xff] }
  0xf3   : > { %v1099_v4 = vld [vmem:[%s6777_s26 + $0x3880] sm:$0xff]  ;;  %1096 = vst [vmem:[%s6782_s27 + $0xe10] sm:$0xff] %v1095_v2  ;;  %1098 = vst [vmem:[%s6782_s27 + $0xe18] sm:$0xff] %v1097_v3  ;;  %v1101_v5 = vld [vmem:[%s6777_s26 + $0x3888] sm:$0xff] }
  0xf4   : > { %1100 = vst [vmem:[%s6782_s27 + $0xe20] sm:$0xff] %v1099_v4  ;;  %v1103_v6 = vld [vmem:[%s6777_s26 + $0x38c0] sm:$0xff]  ;;  %v1105_v7 = vld [vmem:[%s6777_s26 + $0x38c8] sm:$0xff]  ;;  %1102 = vst [vmem:[%s6782_s27 + $0xe28] sm:$0xff] %v1101_v5 }
  0xf5   : > { %1104 = vst [vmem:[%s6782_s27 + $0xe30] sm:$0xff] %v1103_v6  ;;  %1106 = vst [vmem:[%s6782_s27 + $0xe38] sm:$0xff] %v1105_v7  ;;  %v1107_v8 = vld [vmem:[%s6777_s26 + $0x3900] sm:$0xff]  ;;  %v1109_v9 = vld [vmem:[%s6777_s26 + $0x3908] sm:$0xff] }
  0xf6   : > { %v1111_v10 = vld [vmem:[%s6777_s26 + $0x3940] sm:$0xff]  ;;  %1108 = vst [vmem:[%s6782_s27 + $0xe40] sm:$0xff] %v1107_v8  ;;  %1110 = vst [vmem:[%s6782_s27 + $0xe48] sm:$0xff] %v1109_v9  ;;  %v1113_v11 = vld [vmem:[%s6777_s26 + $0x3948] sm:$0xff] }
  0xf7   : > { %1112 = vst [vmem:[%s6782_s27 + $0xe50] sm:$0xff] %v1111_v10  ;;  %v1115_v12 = vld [vmem:[%s6777_s26 + $0x3980] sm:$0xff]  ;;  %v1117_v13 = vld [vmem:[%s6777_s26 + $0x3988] sm:$0xff]  ;;  %1114 = vst [vmem:[%s6782_s27 + $0xe58] sm:$0xff] %v1113_v11 }
  0xf8   : > { %1116 = vst [vmem:[%s6782_s27 + $0xe60] sm:$0xff] %v1115_v12  ;;  %1118 = vst [vmem:[%s6782_s27 + $0xe68] sm:$0xff] %v1117_v13  ;;  %v1119_v14 = vld [vmem:[%s6777_s26 + $0x39c0] sm:$0xff]  ;;  %v1121_v15 = vld [vmem:[%s6777_s26 + $0x39c8] sm:$0xff] }
  0xf9   : > { %v1123_v16 = vld [vmem:[%s6777_s26 + $0x3a00] sm:$0xff]  ;;  %1120 = vst [vmem:[%s6782_s27 + $0xe70] sm:$0xff] %v1119_v14  ;;  %1122 = vst [vmem:[%s6782_s27 + $0xe78] sm:$0xff] %v1121_v15  ;;  %v1125_v17 = vld [vmem:[%s6777_s26 + $0x3a08] sm:$0xff] }
  0xfa   : > { %1124 = vst [vmem:[%s6782_s27 + $0xe80] sm:$0xff] %v1123_v16  ;;  %v1127_v18 = vld [vmem:[%s6777_s26 + $0x3a40] sm:$0xff]  ;;  %v1129_v19 = vld [vmem:[%s6777_s26 + $0x3a48] sm:$0xff]  ;;  %1126 = vst [vmem:[%s6782_s27 + $0xe88] sm:$0xff] %v1125_v17 }
  0xfb   : > { %1128 = vst [vmem:[%s6782_s27 + $0xe90] sm:$0xff] %v1127_v18  ;;  %1130 = vst [vmem:[%s6782_s27 + $0xe98] sm:$0xff] %v1129_v19  ;;  %v1131_v20 = vld [vmem:[%s6777_s26 + $0x3a80] sm:$0xff]  ;;  %v1133_v21 = vld [vmem:[%s6777_s26 + $0x3a88] sm:$0xff] }
  0xfc   : > { %v1135_v22 = vld [vmem:[%s6777_s26 + $0x3ac0] sm:$0xff]  ;;  %1132 = vst [vmem:[%s6782_s27 + $0xea0] sm:$0xff] %v1131_v20  ;;  %1134 = vst [vmem:[%s6782_s27 + $0xea8] sm:$0xff] %v1133_v21  ;;  %v1137_v23 = vld [vmem:[%s6777_s26 + $0x3ac8] sm:$0xff] }
  0xfd   : > { %1136 = vst [vmem:[%s6782_s27 + $0xeb0] sm:$0xff] %v1135_v22  ;;  %v1139_v24 = vld [vmem:[%s6777_s26 + $0x3b00] sm:$0xff]  ;;  %v1141_v25 = vld [vmem:[%s6777_s26 + $0x3b08] sm:$0xff]  ;;  %1138 = vst [vmem:[%s6782_s27 + $0xeb8] sm:$0xff] %v1137_v23 }
  0xfe   : > { %1140 = vst [vmem:[%s6782_s27 + $0xec0] sm:$0xff] %v1139_v24  ;;  %1142 = vst [vmem:[%s6782_s27 + $0xec8] sm:$0xff] %v1141_v25  ;;  %v1143_v26 = vld [vmem:[%s6777_s26 + $0x3b40] sm:$0xff]  ;;  %v1145_v27 = vld [vmem:[%s6777_s26 + $0x3b48] sm:$0xff] }
  0xff   : > { %v1147_v28 = vld [vmem:[%s6777_s26 + $0x3b80] sm:$0xff]  ;;  %1144 = vst [vmem:[%s6782_s27 + $0xed0] sm:$0xff] %v1143_v26  ;;  %1146 = vst [vmem:[%s6782_s27 + $0xed8] sm:$0xff] %v1145_v27  ;;  %v1149_v29 = vld [vmem:[%s6777_s26 + $0x3b88] sm:$0xff] }
 0x100   : > { %1148 = vst [vmem:[%s6782_s27 + $0xee0] sm:$0xff] %v1147_v28  ;;  %v1151_v30 = vld [vmem:[%s6777_s26 + $0x3bc0] sm:$0xff]  ;;  %v1153_v31 = vld [vmem:[%s6777_s26 + $0x3bc8] sm:$0xff]  ;;  %1150 = vst [vmem:[%s6782_s27 + $0xee8] sm:$0xff] %v1149_v29 }
 0x101   : > { %1152 = vst [vmem:[%s6782_s27 + $0xef0] sm:$0xff] %v1151_v30  ;;  %1154 = vst [vmem:[%s6782_s27 + $0xef8] sm:$0xff] %v1153_v31  ;;  %v1155_v32 = vld [vmem:[%s6777_s26 + $0x3c00] sm:$0xff]  ;;  %v1157_v33 = vld [vmem:[%s6777_s26 + $0x3c08] sm:$0xff] }
 0x102   : > { %v1159_v34 = vld [vmem:[%s6777_s26 + $0x3c40] sm:$0xff]  ;;  %1156 = vst [vmem:[%s6782_s27 + $0xf00] sm:$0xff] %v1155_v32  ;;  %1158 = vst [vmem:[%s6782_s27 + $0xf08] sm:$0xff] %v1157_v33  ;;  %v1161_v35 = vld [vmem:[%s6777_s26 + $0x3c48] sm:$0xff] }
 0x103   : > { %1160 = vst [vmem:[%s6782_s27 + $0xf10] sm:$0xff] %v1159_v34  ;;  %v1163_v36 = vld [vmem:[%s6777_s26 + $0x3c80] sm:$0xff]  ;;  %v1165_v37 = vld [vmem:[%s6777_s26 + $0x3c88] sm:$0xff]  ;;  %1162 = vst [vmem:[%s6782_s27 + $0xf18] sm:$0xff] %v1161_v35 }
 0x104   : > { %1164 = vst [vmem:[%s6782_s27 + $0xf20] sm:$0xff] %v1163_v36  ;;  %1166 = vst [vmem:[%s6782_s27 + $0xf28] sm:$0xff] %v1165_v37  ;;  %v1167_v38 = vld [vmem:[%s6777_s26 + $0x3cc0] sm:$0xff]  ;;  %v1169_v39 = vld [vmem:[%s6777_s26 + $0x3cc8] sm:$0xff] }
 0x105   : > { %v1171_v40 = vld [vmem:[%s6777_s26 + $0x3d00] sm:$0xff]  ;;  %1168 = vst [vmem:[%s6782_s27 + $0xf30] sm:$0xff] %v1167_v38  ;;  %1170 = vst [vmem:[%s6782_s27 + $0xf38] sm:$0xff] %v1169_v39  ;;  %v1173_v41 = vld [vmem:[%s6777_s26 + $0x3d08] sm:$0xff] }
 0x106   : > { %1172 = vst [vmem:[%s6782_s27 + $0xf40] sm:$0xff] %v1171_v40  ;;  %v1175_v42 = vld [vmem:[%s6777_s26 + $0x3d40] sm:$0xff]  ;;  %v1177_v43 = vld [vmem:[%s6777_s26 + $0x3d48] sm:$0xff]  ;;  %1174 = vst [vmem:[%s6782_s27 + $0xf48] sm:$0xff] %v1173_v41 }
 0x107   : > { %1176 = vst [vmem:[%s6782_s27 + $0xf50] sm:$0xff] %v1175_v42  ;;  %1178 = vst [vmem:[%s6782_s27 + $0xf58] sm:$0xff] %v1177_v43  ;;  %v1179_v44 = vld [vmem:[%s6777_s26 + $0x3d80] sm:$0xff]  ;;  %v1181_v45 = vld [vmem:[%s6777_s26 + $0x3d88] sm:$0xff] }
 0x108   : > { %v1183_v46 = vld [vmem:[%s6777_s26 + $0x3dc0] sm:$0xff]  ;;  %1180 = vst [vmem:[%s6782_s27 + $0xf60] sm:$0xff] %v1179_v44  ;;  %1182 = vst [vmem:[%s6782_s27 + $0xf68] sm:$0xff] %v1181_v45  ;;  %v1185_v47 = vld [vmem:[%s6777_s26 + $0x3dc8] sm:$0xff] }
 0x109   : > { %1184 = vst [vmem:[%s6782_s27 + $0xf70] sm:$0xff] %v1183_v46  ;;  %v1187_v48 = vld [vmem:[%s6777_s26 + $0x3e00] sm:$0xff]  ;;  %v1189_v49 = vld [vmem:[%s6777_s26 + $0x3e08] sm:$0xff]  ;;  %1186 = vst [vmem:[%s6782_s27 + $0xf78] sm:$0xff] %v1185_v47 }
 0x10a   : > { %1188 = vst [vmem:[%s6782_s27 + $0xf80] sm:$0xff] %v1187_v48  ;;  %1190 = vst [vmem:[%s6782_s27 + $0xf88] sm:$0xff] %v1189_v49  ;;  %v1191_v50 = vld [vmem:[%s6777_s26 + $0x3e40] sm:$0xff]  ;;  %v1193_v51 = vld [vmem:[%s6777_s26 + $0x3e48] sm:$0xff] }
 0x10b   : > { %v1195_v52 = vld [vmem:[%s6777_s26 + $0x3e80] sm:$0xff]  ;;  %1192 = vst [vmem:[%s6782_s27 + $0xf90] sm:$0xff] %v1191_v50  ;;  %1194 = vst [vmem:[%s6782_s27 + $0xf98] sm:$0xff] %v1193_v51  ;;  %v1197_v53 = vld [vmem:[%s6777_s26 + $0x3e88] sm:$0xff] }
 0x10c   : > { %1196 = vst [vmem:[%s6782_s27 + $0xfa0] sm:$0xff] %v1195_v52  ;;  %v1199_v54 = vld [vmem:[%s6777_s26 + $0x3ec0] sm:$0xff]  ;;  %v1201_v55 = vld [vmem:[%s6777_s26 + $0x3ec8] sm:$0xff]  ;;  %1198 = vst [vmem:[%s6782_s27 + $0xfa8] sm:$0xff] %v1197_v53 }
 0x10d   : > { %1200 = vst [vmem:[%s6782_s27 + $0xfb0] sm:$0xff] %v1199_v54  ;;  %1202 = vst [vmem:[%s6782_s27 + $0xfb8] sm:$0xff] %v1201_v55  ;;  %v1203_v56 = vld [vmem:[%s6777_s26 + $0x3f00] sm:$0xff]  ;;  %v1205_v57 = vld [vmem:[%s6777_s26 + $0x3f08] sm:$0xff] }
 0x10e   : > { %v1207_v58 = vld [vmem:[%s6777_s26 + $0x3f40] sm:$0xff]  ;;  %1204 = vst [vmem:[%s6782_s27 + $0xfc0] sm:$0xff] %v1203_v56  ;;  %1206 = vst [vmem:[%s6782_s27 + $0xfc8] sm:$0xff] %v1205_v57  ;;  %v1209_v59 = vld [vmem:[%s6777_s26 + $0x3f48] sm:$0xff] }
 0x10f   : > { %1208 = vst [vmem:[%s6782_s27 + $0xfd0] sm:$0xff] %v1207_v58  ;;  %v1211_v60 = vld [vmem:[%s6777_s26 + $0x3f80] sm:$0xff]  ;;  %v1213_v61 = vld [vmem:[%s6777_s26 + $0x3f88] sm:$0xff]  ;;  %1210 = vst [vmem:[%s6782_s27 + $0xfd8] sm:$0xff] %v1209_v59 }
 0x110   : > { %1212 = vst [vmem:[%s6782_s27 + $0xfe0] sm:$0xff] %v1211_v60  ;;  %1214 = vst [vmem:[%s6782_s27 + $0xfe8] sm:$0xff] %v1213_v61  ;;  %v1215_v62 = vld [vmem:[%s6777_s26 + $0x3fc0] sm:$0xff]  ;;  %v1217_v63 = vld [vmem:[%s6777_s26 + $0x3fc8] sm:$0xff] }
 0x111   : > { %1216 = vst [vmem:[%s6782_s27 + $0xff0] sm:$0xff] %v1215_v62  ;;  %1218 = vst [vmem:[%s6782_s27 + $0xff8] sm:$0xff] %v1217_v63 }
 0x112 PF: > { %p5254_p6 = scmp.ge.s32.totalorder %s6712_s16, 1  ;;  %p1231_p7 = scmp.lt.s32.totalorder %s6712_s16, 5 }
 0x114   : > { %p1232_p8 = pnand %p5254_p6, %p1231_p7 }
 0x115   : > { %s1238_s28 = sand.u32 (!%p1232_p8), 1, %s6696_s12   ;;  %v7811_v0 = vld [vmem:[%s8416_s0] sm:$0xff] (!%p1232_p8)  ;;  %s5256_s26 = sshll.u32 (!%p1232_p8), %s6704_s14, 2 }
 0x116   : > { %1235 = sbr.rel (%p1232_p8) target bundleno = 1009 (0x3f1), region = 51  ;;  %s5255_s4 = sshll.u32 (!%p1232_p8), %s1238_s28, 12  ;;  %v5260_v1 = vcombine.high (!%p1232_p8), %v7811_v0, %v7811_v0 }
 0x117   : > { %s7815_s5 = scalar_lea.vmem (!%p1232_p8), [#allocation2], %s5255_s4  ;;  %p1291_p9 = scmp.lt.s32.totalorder (!%p1232_p8), %s5256_s26, 15 }
 0x118   : > { %v5890_v2 = vld [vmem:[%s7815_s5 + $0x4] ss:$16 sps:$4 sm:$0xff] (!%p1232_p8)   ;;  %4495 = vmatprep.mubr.bf16.mxu0 (!%p1232_p8), %v5260_v1  ;;  %4823 = vmatprep.mubr.bf16.mxu1 (!%p1232_p8), %v5260_v1  ;;  %v5892_v3 = vld [vmem:[%s7815_s5 + $0xc] ss:$16 sps:$4 sm:$0xff] (!%p1232_p8)   ;;  %v5894_v4 = vld [vmem:[%s7815_s5] ss:$16 sps:$4 sm:$0xff] (!%p1232_p8)  }
 0x119   : > { %4463 = vmatprep.subr.bf16.mxu0 (!%p1232_p8), %v5890_v2  ;;  %v5895_v5 = vld [vmem:[%s7815_s5 + $0x8] ss:$16 sps:$4 sm:$0xff] (!%p1232_p8)   ;;  %4791 = vmatprep.subr.bf16.mxu1 (!%p1232_p8), %v5892_v3  ;;  %v5896_v6 = vld [vmem:[%s7815_s5 + $0x24] ss:$16 sps:$4 sm:$0xff] (!%p1232_p8)   ;;  %v5898_v7 = vld [vmem:[%s7815_s5 + $0x2c] ss:$16 sps:$4 sm:$0xff] (!%p1232_p8)  }
 0x11a   : > { %4464 = vmatpush1.bf16.msra.mxu0 (!%p1232_p8), %v5894_v4  ;;  %4792 = vmatpush1.bf16.msra.mxu1 (!%p1232_p8), %v5895_v5  ;;  %v5900_v8 = vld [vmem:[%s7815_s5 + $0x20] ss:$16 sps:$4 sm:$0xff] (!%p1232_p8)   ;;  %v5901_v9 = vld [vmem:[%s7815_s5 + $0x28] ss:$16 sps:$4 sm:$0xff] (!%p1232_p8)   ;;  %v5902_v10 = vld [vmem:[%s7815_s5 + $0x44] ss:$16 sps:$4 sm:$0xff] (!%p1232_p8)   ;;  %v5259_v5 = vcombine.low (!%p1232_p8), %v7811_v0, %v7811_v0 }
 0x11b   : > { %4465 = vmatprep.subr.bf16.mxu0 (!%p1232_p8), %v5896_v6  ;;  %4793 = vmatprep.subr.bf16.mxu1 (!%p1232_p8), %v5898_v7  ;;  %v5904_v11 = vld [vmem:[%s7815_s5 + $0x4c] ss:$16 sps:$4 sm:$0xff] (!%p1232_p8)   ;;  %v5906_v12 = vld [vmem:[%s7815_s5 + $0x40] ss:$16 sps:$4 sm:$0xff] (!%p1232_p8)   ;;  %v5907_v13 = vld [vmem:[%s7815_s5 + $0x48] ss:$16 sps:$4 sm:$0xff] (!%p1232_p8)  }
 0x11c   : > { %v5908_v14 = vld [vmem:[%s7815_s5 + $0x64] ss:$16 sps:$4 sm:$0xff] (!%p1232_p8)   ;;  %v5910_v15 = vld [vmem:[%s7815_s5 + $0x6c] ss:$16 sps:$4 sm:$0xff] (!%p1232_p8)   ;;  %v5912_v16 = vld [vmem:[%s7815_s5 + $0x60] ss:$16 sps:$4 sm:$0xff] (!%p1232_p8)  }
 0x11d   : > { %v5913_v17 = vld [vmem:[%s7815_s5 + $0x68] ss:$16 sps:$4 sm:$0xff]   ;;  %v5914_v18 = vld [vmem:[%s7815_s5 + $0x84] ss:$16 sps:$4 sm:$0xff]   ;;  %v5916_v19 = vld [vmem:[%s7815_s5 + $0x8c] ss:$16 sps:$4 sm:$0xff]  }
 0x11e   : > { %4466 = vmatpush1.bf16.msra.mxu0 %v5900_v8  ;;  %4794 = vmatpush1.bf16.msra.mxu1 %v5901_v9  ;;  %v5918_v20 = vld [vmem:[%s7815_s5 + $0x80] ss:$16 sps:$4 sm:$0xff]   ;;  %v5919_v21 = vld [vmem:[%s7815_s5 + $0x88] ss:$16 sps:$4 sm:$0xff]   ;;  %v5920_v22 = vld [vmem:[%s7815_s5 + $0xa4] ss:$16 sps:$4 sm:$0xff]  }
 0x11f   : > { %4467 = vmatprep.subr.bf16.mxu0 %v5902_v10  ;;  %4795 = vmatprep.subr.bf16.mxu1 %v5904_v11  ;;  %v5922_v23 = vld [vmem:[%s7815_s5 + $0xac] ss:$16 sps:$4 sm:$0xff]   ;;  %v5924_v24 = vld [vmem:[%s7815_s5 + $0xa0] ss:$16 sps:$4 sm:$0xff]   ;;  %v5925_v25 = vld [vmem:[%s7815_s5 + $0xa8] ss:$16 sps:$4 sm:$0xff]  }
 0x120   : > { %v5926_v26 = vld [vmem:[%s7815_s5 + $0xc4] ss:$16 sps:$4 sm:$0xff]   ;;  %v5928_v27 = vld [vmem:[%s7815_s5 + $0xcc] ss:$16 sps:$4 sm:$0xff]   ;;  %v5930_v28 = vld [vmem:[%s7815_s5 + $0xc0] ss:$16 sps:$4 sm:$0xff]  }
 0x121   : > { %v5931_v29 = vld [vmem:[%s7815_s5 + $0xc8] ss:$16 sps:$4 sm:$0xff]   ;;  %v5932_v30 = vld [vmem:[%s7815_s5 + $0xe4] ss:$16 sps:$4 sm:$0xff]   ;;  %v5934_v31 = vld [vmem:[%s7815_s5 + $0xec] ss:$16 sps:$4 sm:$0xff]  }
 0x122   : > { %4468 = vmatpush1.bf16.msra.mxu0 %v5906_v12  ;;  %4796 = vmatpush1.bf16.msra.mxu1 %v5907_v13  ;;  %v5936_v32 = vld [vmem:[%s7815_s5 + $0xe0] ss:$16 sps:$4 sm:$0xff]   ;;  %v5937_v33 = vld [vmem:[%s7815_s5 + $0xe8] ss:$16 sps:$4 sm:$0xff]   ;;  %v5938_v34 = vld [vmem:[%s7815_s5 + $0x104] ss:$16 sps:$4 sm:$0xff]  }
 0x123   : > { %4469 = vmatprep.subr.bf16.mxu0 %v5908_v14  ;;  %4797 = vmatprep.subr.bf16.mxu1 %v5910_v15  ;;  %v5940_v35 = vld [vmem:[%s7815_s5 + $0x10c] ss:$16 sps:$4 sm:$0xff]   ;;  %v5942_v36 = vld [vmem:[%s7815_s5 + $0x100] ss:$16 sps:$4 sm:$0xff]   ;;  %v5943_v37 = vld [vmem:[%s7815_s5 + $0x108] ss:$16 sps:$4 sm:$0xff]  }
 0x124   : > { %v5944_v38 = vld [vmem:[%s7815_s5 + $0x124] ss:$16 sps:$4 sm:$0xff]   ;;  %v5946_v39 = vld [vmem:[%s7815_s5 + $0x12c] ss:$16 sps:$4 sm:$0xff]   ;;  %v5948_v40 = vld [vmem:[%s7815_s5 + $0x120] ss:$16 sps:$4 sm:$0xff]  }
 0x125   : > { %v5949_v41 = vld [vmem:[%s7815_s5 + $0x128] ss:$16 sps:$4 sm:$0xff]   ;;  %v5950_v42 = vld [vmem:[%s7815_s5 + $0x144] ss:$16 sps:$4 sm:$0xff]   ;;  %v5952_v43 = vld [vmem:[%s7815_s5 + $0x14c] ss:$16 sps:$4 sm:$0xff]  }
 0x126   : > { %4470 = vmatpush1.bf16.msra.mxu0 %v5912_v16  ;;  %4798 = vmatpush1.bf16.msra.mxu1 %v5913_v17  ;;  %v5954_v44 = vld [vmem:[%s7815_s5 + $0x140] ss:$16 sps:$4 sm:$0xff]   ;;  %v5955_v45 = vld [vmem:[%s7815_s5 + $0x148] ss:$16 sps:$4 sm:$0xff]   ;;  %v5956_v46 = vld [vmem:[%s7815_s5 + $0x164] ss:$16 sps:$4 sm:$0xff]  }
 0x127   : > { %4471 = vmatprep.subr.bf16.mxu0 %v5914_v18  ;;  %4799 = vmatprep.subr.bf16.mxu1 %v5916_v19  ;;  %v5958_v47 = vld [vmem:[%s7815_s5 + $0x16c] ss:$16 sps:$4 sm:$0xff]   ;;  %v5960_v48 = vld [vmem:[%s7815_s5 + $0x160] ss:$16 sps:$4 sm:$0xff]   ;;  %v5961_v49 = vld [vmem:[%s7815_s5 + $0x168] ss:$16 sps:$4 sm:$0xff]  }
 0x128   : > { %v5962_v50 = vld [vmem:[%s7815_s5 + $0x184] ss:$16 sps:$4 sm:$0xff]   ;;  %v5964_v51 = vld [vmem:[%s7815_s5 + $0x18c] ss:$16 sps:$4 sm:$0xff]   ;;  %v5966_v52 = vld [vmem:[%s7815_s5 + $0x180] ss:$16 sps:$4 sm:$0xff]  }
 0x129   : > { %v5967_v53 = vld [vmem:[%s7815_s5 + $0x188] ss:$16 sps:$4 sm:$0xff]   ;;  %v5968_v54 = vld [vmem:[%s7815_s5 + $0x1a4] ss:$16 sps:$4 sm:$0xff]   ;;  %v5970_v55 = vld [vmem:[%s7815_s5 + $0x1ac] ss:$16 sps:$4 sm:$0xff]  }
 0x12a   : > { %4472 = vmatpush1.bf16.msra.mxu0 %v5918_v20  ;;  %4800 = vmatpush1.bf16.msra.mxu1 %v5919_v21  ;;  %v5972_v56 = vld [vmem:[%s7815_s5 + $0x1a0] ss:$16 sps:$4 sm:$0xff]   ;;  %v5973_v57 = vld [vmem:[%s7815_s5 + $0x1a8] ss:$16 sps:$4 sm:$0xff]   ;;  %v5974_v58 = vld [vmem:[%s7815_s5 + $0x1c4] ss:$16 sps:$4 sm:$0xff]  }
 0x12b   : > { %4473 = vmatprep.subr.bf16.mxu0 %v5920_v22  ;;  %4801 = vmatprep.subr.bf16.mxu1 %v5922_v23  ;;  %v5976_v59 = vld [vmem:[%s7815_s5 + $0x1cc] ss:$16 sps:$4 sm:$0xff]   ;;  %v5978_v60 = vld [vmem:[%s7815_s5 + $0x1c0] ss:$16 sps:$4 sm:$0xff]   ;;  %v5979_v61 = vld [vmem:[%s7815_s5 + $0x1c8] ss:$16 sps:$4 sm:$0xff]  }
 0x12c   : > { %v5980_v62 = vld [vmem:[%s7815_s5 + $0x1e4] ss:$16 sps:$4 sm:$0xff]   ;;  %v5982_v63 = vld [vmem:[%s7815_s5 + $0x1ec] ss:$16 sps:$4 sm:$0xff]   ;;  %v5984_v1 = vld [vmem:[%s7815_s5 + $0x1e0] ss:$16 sps:$4 sm:$0xff]  }
 0x12d   : > { %v5985_v2 = vld [vmem:[%s7815_s5 + $0x1e8] ss:$16 sps:$4 sm:$0xff]   ;;  %v5990_v3 = vld [vmem:[%s7815_s5 + $0x204] ss:$16 sps:$4 sm:$0xff]   ;;  %v5993_v4 = vld [vmem:[%s7815_s5 + $0x20c] ss:$16 sps:$4 sm:$0xff]  }
 0x12e   : > { %4474 = vmatpush1.bf16.msra.mxu0 %v5924_v24  ;;  %4802 = vmatpush1.bf16.msra.mxu1 %v5925_v25  ;;  %v5988_v6 = vld [vmem:[%s7815_s5 + $0x200] ss:$16 sps:$4 sm:$0xff]   ;;  %v5991_v7 = vld [vmem:[%s7815_s5 + $0x208] ss:$16 sps:$4 sm:$0xff]   ;;  %v5996_v8 = vld [vmem:[%s7815_s5 + $0x224] ss:$16 sps:$4 sm:$0xff]  }
 0x12f   : > { %4475 = vmatprep.subr.bf16.mxu0 %v5926_v26  ;;  %4803 = vmatprep.subr.bf16.mxu1 %v5928_v27  ;;  %v5999_v9 = vld [vmem:[%s7815_s5 + $0x22c] ss:$16 sps:$4 sm:$0xff]   ;;  %v5994_v10 = vld [vmem:[%s7815_s5 + $0x220] ss:$16 sps:$4 sm:$0xff]   ;;  %v5997_v11 = vld [vmem:[%s7815_s5 + $0x228] ss:$16 sps:$4 sm:$0xff]  }
 0x130   : > { %v6002_v0 = vld [vmem:[%s7815_s5 + $0x244] ss:$16 sps:$4 sm:$0xff]   ;;  %v6005_v12 = vld [vmem:[%s7815_s5 + $0x24c] ss:$16 sps:$4 sm:$0xff]   ;;  %v6000_v13 = vld [vmem:[%s7815_s5 + $0x240] ss:$16 sps:$4 sm:$0xff]  }
 0x131   : > { %v6003_v14 = vld [vmem:[%s7815_s5 + $0x248] ss:$16 sps:$4 sm:$0xff]   ;;  %v6008_v15 = vld [vmem:[%s7815_s5 + $0x264] ss:$16 sps:$4 sm:$0xff]   ;;  %v6011_v16 = vld [vmem:[%s7815_s5 + $0x26c] ss:$16 sps:$4 sm:$0xff]  }
 0x132   : > { %4476 = vmatpush1.bf16.msra.mxu0 %v5930_v28  ;;  %4804 = vmatpush1.bf16.msra.mxu1 %v5931_v29  ;;  %v6006_v17 = vld [vmem:[%s7815_s5 + $0x260] ss:$16 sps:$4 sm:$0xff]   ;;  %v6009_v18 = vld [vmem:[%s7815_s5 + $0x268] ss:$16 sps:$4 sm:$0xff]   ;;  %v6014_v19 = vld [vmem:[%s7815_s5 + $0x284] ss:$16 sps:$4 sm:$0xff]  }
 0x133   : > { %4477 = vmatprep.subr.bf16.mxu0 %v5932_v30  ;;  %4805 = vmatprep.subr.bf16.mxu1 %v5934_v31  ;;  %v6017_v20 = vld [vmem:[%s7815_s5 + $0x28c] ss:$16 sps:$4 sm:$0xff]   ;;  %v6012_v21 = vld [vmem:[%s7815_s5 + $0x280] ss:$16 sps:$4 sm:$0xff]   ;;  %v6015_v22 = vld [vmem:[%s7815_s5 + $0x288] ss:$16 sps:$4 sm:$0xff]  }
 0x134   : > { %v6020_v23 = vld [vmem:[%s7815_s5 + $0x2a4] ss:$16 sps:$4 sm:$0xff]   ;;  %v6023_v24 = vld [vmem:[%s7815_s5 + $0x2ac] ss:$16 sps:$4 sm:$0xff]   ;;  %v6018_v25 = vld [vmem:[%s7815_s5 + $0x2a0] ss:$16 sps:$4 sm:$0xff]  }
 0x135   : > { %v6021_v26 = vld [vmem:[%s7815_s5 + $0x2a8] ss:$16 sps:$4 sm:$0xff]   ;;  %v6026_v27 = vld [vmem:[%s7815_s5 + $0x2c4] ss:$16 sps:$4 sm:$0xff]   ;;  %v6029_v28 = vld [vmem:[%s7815_s5 + $0x2cc] ss:$16 sps:$4 sm:$0xff]  }
 0x136   : > { %4478 = vmatpush1.bf16.msra.mxu0 %v5936_v32  ;;  %4806 = vmatpush1.bf16.msra.mxu1 %v5937_v33  ;;  %v7912_v29 = vld [vmem:[%s8416_s0 + $0x8] sm:$0xff]  ;;  %v6024_v31 = vld [vmem:[%s7815_s5 + $0x2c0] ss:$16 sps:$4 sm:$0xff]   ;;  %v6032_v33 = vld [vmem:[%s7815_s5 + $0x2e4] ss:$16 sps:$4 sm:$0xff]   ;;  %s8427_s26 = smov (!%p1291_p9, %s5256_s26), 15 }
 0x137   : > { %4479 = vmatprep.subr.bf16.mxu0 %v5938_v34  ;;  %4807 = vmatprep.subr.bf16.mxu1 %v5940_v35  ;;  %v5262_v30 = vcombine.high %v7912_v29, %v7912_v29  ;;  %v6027_v32 = vld [vmem:[%s7815_s5 + $0x2c8] ss:$16 sps:$4 sm:$0xff]   ;;  %v6035_v34 = vld [vmem:[%s7815_s5 + $0x2ec] ss:$16 sps:$4 sm:$0xff]   ;;  %v6030_v35 = vld [vmem:[%s7815_s5 + $0x2e0] ss:$16 sps:$4 sm:$0xff]   ;;  %s1293_s29 = scalar_lea.vmem %s8418_s2, %s8427_s26 }
 0x138   : > { %s5258_s30 = sshll.u32 %s8427_s26, 3 }
 0x13a   : > { %4480 = vmatpush1.bf16.msra.mxu0 %v5942_v36  ;;  %4808 = vmatpush1.bf16.msra.mxu1 %v5943_v37  ;;  %v6033_v36 = vld [vmem:[%s7815_s5 + $0x2e8] ss:$16 sps:$4 sm:$0xff]   ;;  %v6038_v37 = vld [vmem:[%s7815_s5 + $0x304] ss:$16 sps:$4 sm:$0xff]  }
 0x13b   : > { %4481 = vmatprep.subr.bf16.mxu0 %v5944_v38  ;;  %4809 = vmatprep.subr.bf16.mxu1 %v5946_v39  ;;  %v6041_v38 = vld [vmem:[%s7815_s5 + $0x30c] ss:$16 sps:$4 sm:$0xff]   ;;  %v6036_v39 = vld [vmem:[%s7815_s5 + $0x300] ss:$16 sps:$4 sm:$0xff]  }
 0x13e   : > { %4482 = vmatpush1.bf16.msra.mxu0 %v5948_v40  ;;  %4810 = vmatpush1.bf16.msra.mxu1 %v5949_v41  ;;  %v6039_v40 = vld [vmem:[%s7815_s5 + $0x308] ss:$16 sps:$4 sm:$0xff]   ;;  %v6044_v41 = vld [vmem:[%s7815_s5 + $0x324] ss:$16 sps:$4 sm:$0xff]  }
 0x13f   : > { %4483 = vmatprep.subr.bf16.mxu0 %v5950_v42  ;;  %4811 = vmatprep.subr.bf16.mxu1 %v5952_v43  ;;  %v6047_v42 = vld [vmem:[%s7815_s5 + $0x32c] ss:$16 sps:$4 sm:$0xff]   ;;  %v6042_v43 = vld [vmem:[%s7815_s5 + $0x320] ss:$16 sps:$4 sm:$0xff]  }
 0x142   : > { %4484 = vmatpush1.bf16.msra.mxu0 %v5954_v44  ;;  %4812 = vmatpush1.bf16.msra.mxu1 %v5955_v45  ;;  %v6045_v44 = vld [vmem:[%s7815_s5 + $0x328] ss:$16 sps:$4 sm:$0xff]   ;;  %v6050_v45 = vld [vmem:[%s7815_s5 + $0x344] ss:$16 sps:$4 sm:$0xff]  }
 0x143   : > { %4485 = vmatprep.subr.bf16.mxu0 %v5956_v46  ;;  %4813 = vmatprep.subr.bf16.mxu1 %v5958_v47  ;;  %v6053_v46 = vld [vmem:[%s7815_s5 + $0x34c] ss:$16 sps:$4 sm:$0xff]   ;;  %v6048_v47 = vld [vmem:[%s7815_s5 + $0x340] ss:$16 sps:$4 sm:$0xff]  }
 0x146   : > { %4486 = vmatpush1.bf16.msra.mxu0 %v5960_v48  ;;  %4814 = vmatpush1.bf16.msra.mxu1 %v5961_v49  ;;  %v6051_v48 = vld [vmem:[%s7815_s5 + $0x348] ss:$16 sps:$4 sm:$0xff]   ;;  %v6056_v49 = vld [vmem:[%s7815_s5 + $0x364] ss:$16 sps:$4 sm:$0xff]  }
 0x147   : > { %4487 = vmatprep.subr.bf16.mxu0 %v5962_v50  ;;  %4815 = vmatprep.subr.bf16.mxu1 %v5964_v51  ;;  %v6059_v50 = vld [vmem:[%s7815_s5 + $0x36c] ss:$16 sps:$4 sm:$0xff]   ;;  %v6054_v51 = vld [vmem:[%s7815_s5 + $0x360] ss:$16 sps:$4 sm:$0xff]  }
 0x14a   : > { %4488 = vmatpush1.bf16.msra.mxu0 %v5966_v52  ;;  %4816 = vmatpush1.bf16.msra.mxu1 %v5967_v53  ;;  %v6057_v52 = vld [vmem:[%s7815_s5 + $0x368] ss:$16 sps:$4 sm:$0xff]   ;;  %v6062_v53 = vld [vmem:[%s7815_s5 + $0x384] ss:$16 sps:$4 sm:$0xff]  }
 0x14b   : > { %4489 = vmatprep.subr.bf16.mxu0 %v5968_v54  ;;  %4817 = vmatprep.subr.bf16.mxu1 %v5970_v55  ;;  %v6065_v54 = vld [vmem:[%s7815_s5 + $0x38c] ss:$16 sps:$4 sm:$0xff]   ;;  %v6060_v55 = vld [vmem:[%s7815_s5 + $0x380] ss:$16 sps:$4 sm:$0xff]  }
 0x14e   : > { %4490 = vmatpush1.bf16.msra.mxu0 %v5972_v56  ;;  %4818 = vmatpush1.bf16.msra.mxu1 %v5973_v57  ;;  %v6063_v56 = vld [vmem:[%s7815_s5 + $0x388] ss:$16 sps:$4 sm:$0xff]   ;;  %v6068_v57 = vld [vmem:[%s7815_s5 + $0x3a4] ss:$16 sps:$4 sm:$0xff]  }
 0x14f   : > { %4491 = vmatprep.subr.bf16.mxu0 %v5974_v58  ;;  %4819 = vmatprep.subr.bf16.mxu1 %v5976_v59  ;;  %v6071_v58 = vld [vmem:[%s7815_s5 + $0x3ac] ss:$16 sps:$4 sm:$0xff]   ;;  %v6066_v59 = vld [vmem:[%s7815_s5 + $0x3a0] ss:$16 sps:$4 sm:$0xff]  }
 0x152   : > { %4492 = vmatpush1.bf16.msra.mxu0 %v5978_v60  ;;  %4820 = vmatpush1.bf16.msra.mxu1 %v5979_v61  ;;  %v6069_v60 = vld [vmem:[%s7815_s5 + $0x3a8] ss:$16 sps:$4 sm:$0xff]   ;;  %v6074_v61 = vld [vmem:[%s7815_s5 + $0x3c4] ss:$16 sps:$4 sm:$0xff]  }
 0x153   : > { %4493 = vmatprep.subr.bf16.mxu0 %v5980_v62  ;;  %4821 = vmatprep.subr.bf16.mxu1 %v5982_v63  ;;  %v6077_v62 = vld [vmem:[%s7815_s5 + $0x3cc] ss:$16 sps:$4 sm:$0xff]   ;;  %v6072_v63 = vld [vmem:[%s7815_s5 + $0x3c0] ss:$16 sps:$4 sm:$0xff]  }
 0x156   : > { %4494 = vmatpush1.bf16.msra.mxu0 %v5984_v1  ;;  %4822 = vmatpush1.bf16.msra.mxu1 %v5985_v2  ;;  %v6075_v1 = vld [vmem:[%s7815_s5 + $0x3c8] ss:$16 sps:$4 sm:$0xff]   ;;  %v6080_v2 = vld [vmem:[%s7815_s5 + $0x3e4] ss:$16 sps:$4 sm:$0xff]  }
 0x157   : > { %4504 = vmatprep.subr.bf16.mxu0 %v5990_v3  ;;  %4832 = vmatprep.subr.bf16.mxu1 %v5993_v4  ;;  %v6083_v3 = vld [vmem:[%s7815_s5 + $0x3ec] ss:$16 sps:$4 sm:$0xff]   ;;  %v6078_v4 = vld [vmem:[%s7815_s5 + $0x3e0] ss:$16 sps:$4 sm:$0xff]  }
 0x159   : > { %4496 = vmatmul.mubr.bf16.vlgmr.msra.gmra.mrb[0].mxu0 %v5259_v5  ;;  %4824 = vmatmul.mubr.bf16.vlgmr.msra.gmra.mrb[0].mxu1 %v5259_v5  ;;  %v6081_v5 = vld [vmem:[%s7815_s5 + $0x3e8] ss:$16 sps:$4 sm:$0xff]  }
 0x15a   : > { %4505 = vmatpush1.bf16.msra.mxu0 %v5988_v6  ;;  %4833 = vmatpush1.bf16.msra.mxu1 %v5991_v7  ;;  %v6088_v6 = vld [vmem:[%s7815_s5 + $0x404] ss:$16 sps:$4 sm:$0xff]   ;;  %v6091_v7 = vld [vmem:[%s7815_s5 + $0x40c] ss:$16 sps:$4 sm:$0xff]  }
 0x15b   : > { %4506 = vmatprep.subr.bf16.mxu0 %v5996_v8  ;;  %4834 = vmatprep.subr.bf16.mxu1 %v5999_v9  ;;  %v5261_v8 = vcombine.low %v7912_v29, %v7912_v29  ;;  %v6086_v9 = vld [vmem:[%s7815_s5 + $0x400] ss:$16 sps:$4 sm:$0xff]   ;;  %v6121_v29 = vld [vmem:[%s7815_s5 + $0x4ac] ss:$16 sps:$4 sm:$0xff]  }
 0x15c   : > { %4536 = vmatprep.mubr.bf16.mxu0 %v5262_v30  ;;  %4864 = vmatprep.mubr.bf16.mxu1 %v5262_v30  ;;  %v6116_v30 = vld [vmem:[%s7815_s5 + $0x4a0] ss:$16 sps:$4 sm:$0xff]  }
 0x15e   : > { %4507 = vmatpush1.bf16.msra.mxu0 %v5994_v10  ;;  %4835 = vmatpush1.bf16.msra.mxu1 %v5997_v11  ;;  %v6089_v10 = vld [vmem:[%s7815_s5 + $0x408] ss:$16 sps:$4 sm:$0xff]   ;;  %v7963_v11 = vld [vmem:[%s8416_s0 + $0x10] sm:$0xff] }
 0x15f   : > { %4508 = vmatprep.subr.bf16.mxu0 %v6002_v0  ;;  %4836 = vmatprep.subr.bf16.mxu1 %v6005_v12  ;;  %v6094_v0 = vld [vmem:[%s7815_s5 + $0x424] ss:$16 sps:$4 sm:$0xff]   ;;  %v6097_v12 = vld [vmem:[%s7815_s5 + $0x42c] ss:$16 sps:$4 sm:$0xff]  }
 0x162   : > { %4509 = vmatpush1.bf16.msra.mxu0 %v6000_v13  ;;  %4837 = vmatpush1.bf16.msra.mxu1 %v6003_v14  ;;  %v5264_v13 = vcombine.high %v7963_v11, %v7963_v11  ;;  %v6092_v14 = vld [vmem:[%s7815_s5 + $0x420] ss:$16 sps:$4 sm:$0xff]  }
 0x163   : > { %4510 = vmatprep.subr.bf16.mxu0 %v6008_v15  ;;  %4838 = vmatprep.subr.bf16.mxu1 %v6011_v16  ;;  %v6095_v15 = vld [vmem:[%s7815_s5 + $0x428] ss:$16 sps:$4 sm:$0xff]   ;;  %v6100_v16 = vld [vmem:[%s7815_s5 + $0x444] ss:$16 sps:$4 sm:$0xff]  }
 0x166   : > { %4511 = vmatpush1.bf16.msra.mxu0 %v6006_v17  ;;  %4839 = vmatpush1.bf16.msra.mxu1 %v6009_v18  ;;  %v6103_v17 = vld [vmem:[%s7815_s5 + $0x44c] ss:$16 sps:$4 sm:$0xff]   ;;  %v6098_v18 = vld [vmem:[%s7815_s5 + $0x440] ss:$16 sps:$4 sm:$0xff]  }
 0x167   : > { %4512 = vmatprep.subr.bf16.mxu0 %v6014_v19  ;;  %4840 = vmatprep.subr.bf16.mxu1 %v6017_v20  ;;  %v6101_v19 = vld [vmem:[%s7815_s5 + $0x448] ss:$16 sps:$4 sm:$0xff]   ;;  %v6106_v20 = vld [vmem:[%s7815_s5 + $0x464] ss:$16 sps:$4 sm:$0xff]  }
 0x16a   : > { %4513 = vmatpush1.bf16.msra.mxu0 %v6012_v21  ;;  %4841 = vmatpush1.bf16.msra.mxu1 %v6015_v22  ;;  %v6109_v21 = vld [vmem:[%s7815_s5 + $0x46c] ss:$16 sps:$4 sm:$0xff]   ;;  %v6104_v22 = vld [vmem:[%s7815_s5 + $0x460] ss:$16 sps:$4 sm:$0xff]  }
 0x16b   : > { %4514 = vmatprep.subr.bf16.mxu0 %v6020_v23  ;;  %4842 = vmatprep.subr.bf16.mxu1 %v6023_v24  ;;  %v6107_v23 = vld [vmem:[%s7815_s5 + $0x468] ss:$16 sps:$4 sm:$0xff]   ;;  %v6112_v24 = vld [vmem:[%s7815_s5 + $0x484] ss:$16 sps:$4 sm:$0xff]  }
 0x16e   : > { %4515 = vmatpush1.bf16.msra.mxu0 %v6018_v25  ;;  %4843 = vmatpush1.bf16.msra.mxu1 %v6021_v26  ;;  %v6115_v25 = vld [vmem:[%s7815_s5 + $0x48c] ss:$16 sps:$4 sm:$0xff]   ;;  %v6110_v26 = vld [vmem:[%s7815_s5 + $0x480] ss:$16 sps:$4 sm:$0xff]  }
 0x16f   : > { %4516 = vmatprep.subr.bf16.mxu0 %v6026_v27  ;;  %4844 = vmatprep.subr.bf16.mxu1 %v6029_v28  ;;  %v6113_v27 = vld [vmem:[%s7815_s5 + $0x488] ss:$16 sps:$4 sm:$0xff]   ;;  %v6118_v28 = vld [vmem:[%s7815_s5 + $0x4a4] ss:$16 sps:$4 sm:$0xff]  }
 0x172   : > { %4517 = vmatpush1.bf16.msra.mxu0 %v6024_v31  ;;  %4845 = vmatpush1.bf16.msra.mxu1 %v6027_v32  ;;  %v6119_v31 = vld [vmem:[%s7815_s5 + $0x4a8] ss:$16 sps:$4 sm:$0xff]   ;;  %v6124_v32 = vld [vmem:[%s7815_s5 + $0x4c4] ss:$16 sps:$4 sm:$0xff]  }
 0x173   : > { %4518 = vmatprep.subr.bf16.mxu0 %v6032_v33  ;;  %4846 = vmatprep.subr.bf16.mxu1 %v6035_v34  ;;  %v6127_v33 = vld [vmem:[%s7815_s5 + $0x4cc] ss:$16 sps:$4 sm:$0xff]   ;;  %v6122_v34 = vld [vmem:[%s7815_s5 + $0x4c0] ss:$16 sps:$4 sm:$0xff]  }
 0x176   : > { %4519 = vmatpush1.bf16.msra.mxu0 %v6030_v35  ;;  %4847 = vmatpush1.bf16.msra.mxu1 %v6033_v36  ;;  %v6125_v35 = vld [vmem:[%s7815_s5 + $0x4c8] ss:$16 sps:$4 sm:$0xff]   ;;  %v6130_v36 = vld [vmem:[%s7815_s5 + $0x4e4] ss:$16 sps:$4 sm:$0xff]  }
 0x177   : > { %4520 = vmatprep.subr.bf16.mxu0 %v6038_v37  ;;  %4848 = vmatprep.subr.bf16.mxu1 %v6041_v38  ;;  %v6133_v37 = vld [vmem:[%s7815_s5 + $0x4ec] ss:$16 sps:$4 sm:$0xff]   ;;  %v6128_v38 = vld [vmem:[%s7815_s5 + $0x4e0] ss:$16 sps:$4 sm:$0xff]  }
 0x17a   : > { %4521 = vmatpush1.bf16.msra.mxu0 %v6036_v39  ;;  %4849 = vmatpush1.bf16.msra.mxu1 %v6039_v40  ;;  %v6131_v39 = vld [vmem:[%s7815_s5 + $0x4e8] ss:$16 sps:$4 sm:$0xff]   ;;  %v6136_v40 = vld [vmem:[%s7815_s5 + $0x504] ss:$16 sps:$4 sm:$0xff]  }
 0x17b   : > { %4522 = vmatprep.subr.bf16.mxu0 %v6044_v41  ;;  %4850 = vmatprep.subr.bf16.mxu1 %v6047_v42  ;;  %v6139_v41 = vld [vmem:[%s7815_s5 + $0x50c] ss:$16 sps:$4 sm:$0xff]   ;;  %v6134_v42 = vld [vmem:[%s7815_s5 + $0x500] ss:$16 sps:$4 sm:$0xff]  }
 0x17e   : > { %4523 = vmatpush1.bf16.msra.mxu0 %v6042_v43  ;;  %4851 = vmatpush1.bf16.msra.mxu1 %v6045_v44  ;;  %v6137_v43 = vld [vmem:[%s7815_s5 + $0x508] ss:$16 sps:$4 sm:$0xff]   ;;  %v6142_v44 = vld [vmem:[%s7815_s5 + $0x524] ss:$16 sps:$4 sm:$0xff]  }
 0x17f   : > { %4524 = vmatprep.subr.bf16.mxu0 %v6050_v45  ;;  %4852 = vmatprep.subr.bf16.mxu1 %v6053_v46  ;;  %v6145_v45 = vld [vmem:[%s7815_s5 + $0x52c] ss:$16 sps:$4 sm:$0xff]   ;;  %v6140_v46 = vld [vmem:[%s7815_s5 + $0x520] ss:$16 sps:$4 sm:$0xff]  }
 0x182   : > { %4525 = vmatpush1.bf16.msra.mxu0 %v6048_v47  ;;  %4853 = vmatpush1.bf16.msra.mxu1 %v6051_v48  ;;  %v6143_v47 = vld [vmem:[%s7815_s5 + $0x528] ss:$16 sps:$4 sm:$0xff]   ;;  %v6148_v48 = vld [vmem:[%s7815_s5 + $0x544] ss:$16 sps:$4 sm:$0xff]  }
 0x183   : > { %4526 = vmatprep.subr.bf16.mxu0 %v6056_v49  ;;  %4854 = vmatprep.subr.bf16.mxu1 %v6059_v50  ;;  %v6151_v49 = vld [vmem:[%s7815_s5 + $0x54c] ss:$16 sps:$4 sm:$0xff]   ;;  %v6146_v50 = vld [vmem:[%s7815_s5 + $0x540] ss:$16 sps:$4 sm:$0xff]  }
 0x186   : > { %4527 = vmatpush1.bf16.msra.mxu0 %v6054_v51  ;;  %4855 = vmatpush1.bf16.msra.mxu1 %v6057_v52  ;;  %v6149_v51 = vld [vmem:[%s7815_s5 + $0x548] ss:$16 sps:$4 sm:$0xff]   ;;  %v6154_v52 = vld [vmem:[%s7815_s5 + $0x564] ss:$16 sps:$4 sm:$0xff]  }
 0x187   : > { %4528 = vmatprep.subr.bf16.mxu0 %v6062_v53  ;;  %4856 = vmatprep.subr.bf16.mxu1 %v6065_v54  ;;  %v6157_v53 = vld [vmem:[%s7815_s5 + $0x56c] ss:$16 sps:$4 sm:$0xff]   ;;  %v6152_v54 = vld [vmem:[%s7815_s5 + $0x560] ss:$16 sps:$4 sm:$0xff]  }
 0x18a   : > { %4529 = vmatpush1.bf16.msra.mxu0 %v6060_v55  ;;  %4857 = vmatpush1.bf16.msra.mxu1 %v6063_v56  ;;  %v6155_v55 = vld [vmem:[%s7815_s5 + $0x568] ss:$16 sps:$4 sm:$0xff]   ;;  %v6160_v56 = vld [vmem:[%s7815_s5 + $0x584] ss:$16 sps:$4 sm:$0xff]  }
 0x18b   : > { %4530 = vmatprep.subr.bf16.mxu0 %v6068_v57  ;;  %4858 = vmatprep.subr.bf16.mxu1 %v6071_v58  ;;  %v6163_v57 = vld [vmem:[%s7815_s5 + $0x58c] ss:$16 sps:$4 sm:$0xff]   ;;  %v6158_v58 = vld [vmem:[%s7815_s5 + $0x580] ss:$16 sps:$4 sm:$0xff]  }
 0x18e   : > { %4531 = vmatpush1.bf16.msra.mxu0 %v6066_v59  ;;  %4859 = vmatpush1.bf16.msra.mxu1 %v6069_v60  ;;  %v6161_v59 = vld [vmem:[%s7815_s5 + $0x588] ss:$16 sps:$4 sm:$0xff]   ;;  %v6166_v60 = vld [vmem:[%s7815_s5 + $0x5a4] ss:$16 sps:$4 sm:$0xff]  }
 0x18f   : > { %4532 = vmatprep.subr.bf16.mxu0 %v6074_v61  ;;  %4860 = vmatprep.subr.bf16.mxu1 %v6077_v62  ;;  %v6169_v61 = vld [vmem:[%s7815_s5 + $0x5ac] ss:$16 sps:$4 sm:$0xff]   ;;  %v6164_v62 = vld [vmem:[%s7815_s5 + $0x5a0] ss:$16 sps:$4 sm:$0xff]  }
 0x192   : > { %4533 = vmatpush1.bf16.msra.mxu0 %v6072_v63  ;;  %4861 = vmatpush1.bf16.msra.mxu1 %v6075_v1  ;;  %v6167_v63 = vld [vmem:[%s7815_s5 + $0x5a8] ss:$16 sps:$4 sm:$0xff]   ;;  %v6172_v1 = vld [vmem:[%s7815_s5 + $0x5c4] ss:$16 sps:$4 sm:$0xff]  }
 0x193   : > { %4534 = vmatprep.subr.bf16.mxu0 %v6080_v2  ;;  %4862 = vmatprep.subr.bf16.mxu1 %v6083_v3  ;;  %v6175_v2 = vld [vmem:[%s7815_s5 + $0x5cc] ss:$16 sps:$4 sm:$0xff]   ;;  %v6170_v3 = vld [vmem:[%s7815_s5 + $0x5c0] ss:$16 sps:$4 sm:$0xff]  }
 0x196   : > { %4535 = vmatpush1.bf16.msra.mxu0 %v6078_v4  ;;  %4863 = vmatpush1.bf16.msra.mxu1 %v6081_v5  ;;  %v6173_v4 = vld [vmem:[%s7815_s5 + $0x5c8] ss:$16 sps:$4 sm:$0xff]   ;;  %v6178_v5 = vld [vmem:[%s7815_s5 + $0x5e4] ss:$16 sps:$4 sm:$0xff]  }
 0x197   : > { %4545 = vmatprep.subr.bf16.mxu0 %v6088_v6  ;;  %4873 = vmatprep.subr.bf16.mxu1 %v6091_v7  ;;  %v6181_v6 = vld [vmem:[%s7815_s5 + $0x5ec] ss:$16 sps:$4 sm:$0xff]   ;;  %v6176_v7 = vld [vmem:[%s7815_s5 + $0x5e0] ss:$16 sps:$4 sm:$0xff]  }
 0x199   : > { %4537 = vmatmul.mubr.bf16.vlgmr.msra.gmra.mrb[0].mxu0 %v5261_v8  ;;  %4865 = vmatmul.mubr.bf16.vlgmr.msra.gmra.mrb[0].mxu1 %v5261_v8  ;;  %v6179_v8 = vld [vmem:[%s7815_s5 + $0x5e8] ss:$16 sps:$4 sm:$0xff]  }
 0x19a   : > { %4546 = vmatpush1.bf16.msra.mxu0 %v6086_v9  ;;  %4874 = vmatpush1.bf16.msra.mxu1 %v6089_v10  ;;  %v6186_v9 = vld [vmem:[%s7815_s5 + $0x604] ss:$16 sps:$4 sm:$0xff]   ;;  %v6189_v10 = vld [vmem:[%s7815_s5 + $0x60c] ss:$16 sps:$4 sm:$0xff]  }
 0x19b   : > { %4547 = vmatprep.subr.bf16.mxu0 %v6094_v0  ;;  %4875 = vmatprep.subr.bf16.mxu1 %v6097_v12  ;;  %v5263_v0 = vcombine.low %v7963_v11, %v7963_v11  ;;  %v6184_v12 = vld [vmem:[%s7815_s5 + $0x600] ss:$16 sps:$4 sm:$0xff]  }
 0x19c   : > { %4577 = vmatprep.mubr.bf16.mxu0 %v5264_v13  ;;  %4905 = vmatprep.mubr.bf16.mxu1 %v5264_v13  ;;  %v8035_v13 = vld [vmem:[%s8416_s0 + $0x18] sm:$0xff] }
 0x19d   : > { %v5266_v11 = vcombine.high %v8035_v13, %v8035_v13 }
 0x19e   : > { %4548 = vmatpush1.bf16.msra.mxu0 %v6092_v14  ;;  %4876 = vmatpush1.bf16.msra.mxu1 %v6095_v15  ;;  %v6187_v14 = vld [vmem:[%s7815_s5 + $0x608] ss:$16 sps:$4 sm:$0xff]   ;;  %v6192_v15 = vld [vmem:[%s7815_s5 + $0x624] ss:$16 sps:$4 sm:$0xff]  }
 0x19f   : > { %4549 = vmatprep.subr.bf16.mxu0 %v6100_v16  ;;  %4877 = vmatprep.subr.bf16.mxu1 %v6103_v17  ;;  %v6195_v16 = vld [vmem:[%s7815_s5 + $0x62c] ss:$16 sps:$4 sm:$0xff]   ;;  %v6190_v17 = vld [vmem:[%s7815_s5 + $0x620] ss:$16 sps:$4 sm:$0xff]  }
 0x1a2   : > { %4550 = vmatpush1.bf16.msra.mxu0 %v6098_v18  ;;  %4878 = vmatpush1.bf16.msra.mxu1 %v6101_v19  ;;  %v6193_v18 = vld [vmem:[%s7815_s5 + $0x628] ss:$16 sps:$4 sm:$0xff]   ;;  %v6198_v19 = vld [vmem:[%s7815_s5 + $0x644] ss:$16 sps:$4 sm:$0xff]  }
 0x1a3   : > { %4551 = vmatprep.subr.bf16.mxu0 %v6106_v20  ;;  %4879 = vmatprep.subr.bf16.mxu1 %v6109_v21  ;;  %v6201_v20 = vld [vmem:[%s7815_s5 + $0x64c] ss:$16 sps:$4 sm:$0xff]   ;;  %v6196_v21 = vld [vmem:[%s7815_s5 + $0x640] ss:$16 sps:$4 sm:$0xff]  }
 0x1a6   : > { %4552 = vmatpush1.bf16.msra.mxu0 %v6104_v22  ;;  %4880 = vmatpush1.bf16.msra.mxu1 %v6107_v23  ;;  %v6199_v22 = vld [vmem:[%s7815_s5 + $0x648] ss:$16 sps:$4 sm:$0xff]   ;;  %v6204_v23 = vld [vmem:[%s7815_s5 + $0x664] ss:$16 sps:$4 sm:$0xff]  }
 0x1a7   : > { %4553 = vmatprep.subr.bf16.mxu0 %v6112_v24  ;;  %4881 = vmatprep.subr.bf16.mxu1 %v6115_v25  ;;  %v6207_v24 = vld [vmem:[%s7815_s5 + $0x66c] ss:$16 sps:$4 sm:$0xff]   ;;  %v6202_v25 = vld [vmem:[%s7815_s5 + $0x660] ss:$16 sps:$4 sm:$0xff]  }
 0x1aa   : > { %4554 = vmatpush1.bf16.msra.mxu0 %v6110_v26  ;;  %4882 = vmatpush1.bf16.msra.mxu1 %v6113_v27  ;;  %v6205_v26 = vld [vmem:[%s7815_s5 + $0x668] ss:$16 sps:$4 sm:$0xff]   ;;  %v6210_v27 = vld [vmem:[%s7815_s5 + $0x684] ss:$16 sps:$4 sm:$0xff]  }
 0x1ab   : > { %4555 = vmatprep.subr.bf16.mxu0 %v6118_v28  ;;  %4883 = vmatprep.subr.bf16.mxu1 %v6121_v29  ;;  %v6213_v28 = vld [vmem:[%s7815_s5 + $0x68c] ss:$16 sps:$4 sm:$0xff]   ;;  %v6208_v29 = vld [vmem:[%s7815_s5 + $0x680] ss:$16 sps:$4 sm:$0xff]  }
 0x1ae   : > { %4556 = vmatpush1.bf16.msra.mxu0 %v6116_v30  ;;  %4884 = vmatpush1.bf16.msra.mxu1 %v6119_v31  ;;  %v6211_v30 = vld [vmem:[%s7815_s5 + $0x688] ss:$16 sps:$4 sm:$0xff]   ;;  %v6216_v31 = vld [vmem:[%s7815_s5 + $0x6a4] ss:$16 sps:$4 sm:$0xff]  }
 0x1af   : > { %4557 = vmatprep.subr.bf16.mxu0 %v6124_v32  ;;  %4885 = vmatprep.subr.bf16.mxu1 %v6127_v33  ;;  %v6219_v32 = vld [vmem:[%s7815_s5 + $0x6ac] ss:$16 sps:$4 sm:$0xff]   ;;  %v6214_v33 = vld [vmem:[%s7815_s5 + $0x6a0] ss:$16 sps:$4 sm:$0xff]  }
 0x1b2   : > { %4558 = vmatpush1.bf16.msra.mxu0 %v6122_v34  ;;  %4886 = vmatpush1.bf16.msra.mxu1 %v6125_v35  ;;  %v6217_v34 = vld [vmem:[%s7815_s5 + $0x6a8] ss:$16 sps:$4 sm:$0xff]   ;;  %v6222_v35 = vld [vmem:[%s7815_s5 + $0x6c4] ss:$16 sps:$4 sm:$0xff]  }
 0x1b3   : > { %4559 = vmatprep.subr.bf16.mxu0 %v6130_v36  ;;  %4887 = vmatprep.subr.bf16.mxu1 %v6133_v37  ;;  %v6225_v36 = vld [vmem:[%s7815_s5 + $0x6cc] ss:$16 sps:$4 sm:$0xff]   ;;  %v6220_v37 = vld [vmem:[%s7815_s5 + $0x6c0] ss:$16 sps:$4 sm:$0xff]  }
 0x1b6   : > { %4560 = vmatpush1.bf16.msra.mxu0 %v6128_v38  ;;  %4888 = vmatpush1.bf16.msra.mxu1 %v6131_v39  ;;  %v6223_v38 = vld [vmem:[%s7815_s5 + $0x6c8] ss:$16 sps:$4 sm:$0xff]   ;;  %v6228_v39 = vld [vmem:[%s7815_s5 + $0x6e4] ss:$16 sps:$4 sm:$0xff]  }
 0x1b7   : > { %4561 = vmatprep.subr.bf16.mxu0 %v6136_v40  ;;  %4889 = vmatprep.subr.bf16.mxu1 %v6139_v41  ;;  %v6231_v40 = vld [vmem:[%s7815_s5 + $0x6ec] ss:$16 sps:$4 sm:$0xff]   ;;  %v6226_v41 = vld [vmem:[%s7815_s5 + $0x6e0] ss:$16 sps:$4 sm:$0xff]  }
 0x1ba   : > { %4562 = vmatpush1.bf16.msra.mxu0 %v6134_v42  ;;  %4890 = vmatpush1.bf16.msra.mxu1 %v6137_v43  ;;  %v6229_v42 = vld [vmem:[%s7815_s5 + $0x6e8] ss:$16 sps:$4 sm:$0xff]   ;;  %v6234_v43 = vld [vmem:[%s7815_s5 + $0x704] ss:$16 sps:$4 sm:$0xff]  }
 0x1bb   : > { %4563 = vmatprep.subr.bf16.mxu0 %v6142_v44  ;;  %4891 = vmatprep.subr.bf16.mxu1 %v6145_v45  ;;  %v6237_v44 = vld [vmem:[%s7815_s5 + $0x70c] ss:$16 sps:$4 sm:$0xff]   ;;  %v6232_v45 = vld [vmem:[%s7815_s5 + $0x700] ss:$16 sps:$4 sm:$0xff]  }
 0x1be   : > { %4564 = vmatpush1.bf16.msra.mxu0 %v6140_v46  ;;  %4892 = vmatpush1.bf16.msra.mxu1 %v6143_v47  ;;  %v6235_v46 = vld [vmem:[%s7815_s5 + $0x708] ss:$16 sps:$4 sm:$0xff]   ;;  %v6240_v47 = vld [vmem:[%s7815_s5 + $0x724] ss:$16 sps:$4 sm:$0xff]  }
 0x1bf   : > { %4565 = vmatprep.subr.bf16.mxu0 %v6148_v48  ;;  %4893 = vmatprep.subr.bf16.mxu1 %v6151_v49  ;;  %v6243_v48 = vld [vmem:[%s7815_s5 + $0x72c] ss:$16 sps:$4 sm:$0xff]   ;;  %v6238_v49 = vld [vmem:[%s7815_s5 + $0x720] ss:$16 sps:$4 sm:$0xff]  }
 0x1c2   : > { %4566 = vmatpush1.bf16.msra.mxu0 %v6146_v50  ;;  %4894 = vmatpush1.bf16.msra.mxu1 %v6149_v51  ;;  %v6241_v50 = vld [vmem:[%s7815_s5 + $0x728] ss:$16 sps:$4 sm:$0xff]   ;;  %v6246_v51 = vld [vmem:[%s7815_s5 + $0x744] ss:$16 sps:$4 sm:$0xff]  }
 0x1c3   : > { %4567 = vmatprep.subr.bf16.mxu0 %v6154_v52  ;;  %4895 = vmatprep.subr.bf16.mxu1 %v6157_v53  ;;  %v6249_v52 = vld [vmem:[%s7815_s5 + $0x74c] ss:$16 sps:$4 sm:$0xff]   ;;  %v6244_v53 = vld [vmem:[%s7815_s5 + $0x740] ss:$16 sps:$4 sm:$0xff]  }
 0x1c6   : > { %4568 = vmatpush1.bf16.msra.mxu0 %v6152_v54  ;;  %4896 = vmatpush1.bf16.msra.mxu1 %v6155_v55  ;;  %v6247_v54 = vld [vmem:[%s7815_s5 + $0x748] ss:$16 sps:$4 sm:$0xff]   ;;  %v6252_v55 = vld [vmem:[%s7815_s5 + $0x764] ss:$16 sps:$4 sm:$0xff]  }
 0x1c7   : > { %4569 = vmatprep.subr.bf16.mxu0 %v6160_v56  ;;  %4897 = vmatprep.subr.bf16.mxu1 %v6163_v57  ;;  %v6255_v56 = vld [vmem:[%s7815_s5 + $0x76c] ss:$16 sps:$4 sm:$0xff]   ;;  %v6250_v57 = vld [vmem:[%s7815_s5 + $0x760] ss:$16 sps:$4 sm:$0xff]  }
 0x1ca   : > { %4570 = vmatpush1.bf16.msra.mxu0 %v6158_v58  ;;  %4898 = vmatpush1.bf16.msra.mxu1 %v6161_v59  ;;  %v6253_v58 = vld [vmem:[%s7815_s5 + $0x768] ss:$16 sps:$4 sm:$0xff]   ;;  %v6258_v59 = vld [vmem:[%s7815_s5 + $0x784] ss:$16 sps:$4 sm:$0xff]  }
 0x1cb   : > { %4571 = vmatprep.subr.bf16.mxu0 %v6166_v60  ;;  %4899 = vmatprep.subr.bf16.mxu1 %v6169_v61  ;;  %v6261_v60 = vld [vmem:[%s7815_s5 + $0x78c] ss:$16 sps:$4 sm:$0xff]   ;;  %v6256_v61 = vld [vmem:[%s7815_s5 + $0x780] ss:$16 sps:$4 sm:$0xff]  }
 0x1ce   : > { %4572 = vmatpush1.bf16.msra.mxu0 %v6164_v62  ;;  %4900 = vmatpush1.bf16.msra.mxu1 %v6167_v63  ;;  %v6259_v62 = vld [vmem:[%s7815_s5 + $0x788] ss:$16 sps:$4 sm:$0xff]   ;;  %v6264_v63 = vld [vmem:[%s7815_s5 + $0x7a4] ss:$16 sps:$4 sm:$0xff]  }
 0x1cf   : > { %4573 = vmatprep.subr.bf16.mxu0 %v6172_v1  ;;  %4901 = vmatprep.subr.bf16.mxu1 %v6175_v2  ;;  %v6267_v1 = vld [vmem:[%s7815_s5 + $0x7ac] ss:$16 sps:$4 sm:$0xff]   ;;  %v6262_v2 = vld [vmem:[%s7815_s5 + $0x7a0] ss:$16 sps:$4 sm:$0xff]  }
 0x1d2   : > { %4574 = vmatpush1.bf16.msra.mxu0 %v6170_v3  ;;  %4902 = vmatpush1.bf16.msra.mxu1 %v6173_v4  ;;  %v6265_v3 = vld [vmem:[%s7815_s5 + $0x7a8] ss:$16 sps:$4 sm:$0xff]   ;;  %v6270_v4 = vld [vmem:[%s7815_s5 + $0x7c4] ss:$16 sps:$4 sm:$0xff]  }
 0x1d3   : > { %4575 = vmatprep.subr.bf16.mxu0 %v6178_v5  ;;  %4903 = vmatprep.subr.bf16.mxu1 %v6181_v6  ;;  %v6273_v5 = vld [vmem:[%s7815_s5 + $0x7cc] ss:$16 sps:$4 sm:$0xff]   ;;  %v6268_v6 = vld [vmem:[%s7815_s5 + $0x7c0] ss:$16 sps:$4 sm:$0xff]  }
 0x1d6   : > { %4576 = vmatpush1.bf16.msra.mxu0 %v6176_v7  ;;  %4904 = vmatpush1.bf16.msra.mxu1 %v6179_v8  ;;  %v6271_v7 = vld [vmem:[%s7815_s5 + $0x7c8] ss:$16 sps:$4 sm:$0xff]   ;;  %v6276_v8 = vld [vmem:[%s7815_s5 + $0x7e4] ss:$16 sps:$4 sm:$0xff]  }
 0x1d7   : > { %4586 = vmatprep.subr.bf16.mxu0 %v6186_v9  ;;  %4914 = vmatprep.subr.bf16.mxu1 %v6189_v10  ;;  %v6279_v9 = vld [vmem:[%s7815_s5 + $0x7ec] ss:$16 sps:$4 sm:$0xff]   ;;  %v6274_v10 = vld [vmem:[%s7815_s5 + $0x7e0] ss:$16 sps:$4 sm:$0xff]  }
 0x1d9   : > { %4578 = vmatmul.mubr.bf16.vlgmr.msra.gmra.mrb[0].mxu0 %v5263_v0  ;;  %4906 = vmatmul.mubr.bf16.vlgmr.msra.gmra.mrb[0].mxu1 %v5263_v0  ;;  %v6277_v0 = vld [vmem:[%s7815_s5 + $0x7e8] ss:$16 sps:$4 sm:$0xff]  }
 0x1da   : > { %4587 = vmatpush1.bf16.msra.mxu0 %v6184_v12  ;;  %4915 = vmatpush1.bf16.msra.mxu1 %v6187_v14  ;;  %v6284_v12 = vld [vmem:[%s7815_s5 + $0x804] ss:$16 sps:$4 sm:$0xff]   ;;  %v6287_v14 = vld [vmem:[%s7815_s5 + $0x80c] ss:$16 sps:$4 sm:$0xff]  }
 0x1db   : > { %4588 = vmatprep.subr.bf16.mxu0 %v6192_v15  ;;  %4916 = vmatprep.subr.bf16.mxu1 %v6195_v16  ;;  %v5265_v15 = vcombine.low %v8035_v13, %v8035_v13  ;;  %v6282_v16 = vld [vmem:[%s7815_s5 + $0x800] ss:$16 sps:$4 sm:$0xff]  }
 0x1dc   : > { %4618 = vmatprep.mubr.bf16.mxu0 %v5266_v11  ;;  %4946 = vmatprep.mubr.bf16.mxu1 %v5266_v11  ;;  %v8108_v11 = vld [vmem:[%s8416_s0 + $0x20] sm:$0xff] }
 0x1dd   : > { %v5268_v13 = vcombine.high %v8108_v11, %v8108_v11 }
 0x1de   : > { %4589 = vmatpush1.bf16.msra.mxu0 %v6190_v17  ;;  %4917 = vmatpush1.bf16.msra.mxu1 %v6193_v18  ;;  %v6285_v17 = vld [vmem:[%s7815_s5 + $0x808] ss:$16 sps:$4 sm:$0xff]   ;;  %v6290_v18 = vld [vmem:[%s7815_s5 + $0x824] ss:$16 sps:$4 sm:$0xff]  }
 0x1df   : > { %4590 = vmatprep.subr.bf16.mxu0 %v6198_v19  ;;  %4918 = vmatprep.subr.bf16.mxu1 %v6201_v20  ;;  %v6293_v19 = vld [vmem:[%s7815_s5 + $0x82c] ss:$16 sps:$4 sm:$0xff]   ;;  %v6288_v20 = vld [vmem:[%s7815_s5 + $0x820] ss:$16 sps:$4 sm:$0xff]  }
 0x1e2   : > { %4591 = vmatpush1.bf16.msra.mxu0 %v6196_v21  ;;  %4919 = vmatpush1.bf16.msra.mxu1 %v6199_v22  ;;  %v6291_v21 = vld [vmem:[%s7815_s5 + $0x828] ss:$16 sps:$4 sm:$0xff]   ;;  %v6296_v22 = vld [vmem:[%s7815_s5 + $0x844] ss:$16 sps:$4 sm:$0xff]  }
 0x1e3   : > { %4592 = vmatprep.subr.bf16.mxu0 %v6204_v23  ;;  %4920 = vmatprep.subr.bf16.mxu1 %v6207_v24  ;;  %v6299_v23 = vld [vmem:[%s7815_s5 + $0x84c] ss:$16 sps:$4 sm:$0xff]   ;;  %v6294_v24 = vld [vmem:[%s7815_s5 + $0x840] ss:$16 sps:$4 sm:$0xff]  }
 0x1e6   : > { %4593 = vmatpush1.bf16.msra.mxu0 %v6202_v25  ;;  %4921 = vmatpush1.bf16.msra.mxu1 %v6205_v26  ;;  %v6297_v25 = vld [vmem:[%s7815_s5 + $0x848] ss:$16 sps:$4 sm:$0xff]   ;;  %v6302_v26 = vld [vmem:[%s7815_s5 + $0x864] ss:$16 sps:$4 sm:$0xff]  }
 0x1e7   : > { %4594 = vmatprep.subr.bf16.mxu0 %v6210_v27  ;;  %4922 = vmatprep.subr.bf16.mxu1 %v6213_v28  ;;  %v6305_v27 = vld [vmem:[%s7815_s5 + $0x86c] ss:$16 sps:$4 sm:$0xff]   ;;  %v6300_v28 = vld [vmem:[%s7815_s5 + $0x860] ss:$16 sps:$4 sm:$0xff]  }
 0x1ea   : > { %4595 = vmatpush1.bf16.msra.mxu0 %v6208_v29  ;;  %4923 = vmatpush1.bf16.msra.mxu1 %v6211_v30  ;;  %v6303_v29 = vld [vmem:[%s7815_s5 + $0x868] ss:$16 sps:$4 sm:$0xff]   ;;  %v6308_v30 = vld [vmem:[%s7815_s5 + $0x884] ss:$16 sps:$4 sm:$0xff]  }
 0x1eb   : > { %4596 = vmatprep.subr.bf16.mxu0 %v6216_v31  ;;  %4924 = vmatprep.subr.bf16.mxu1 %v6219_v32  ;;  %v6311_v31 = vld [vmem:[%s7815_s5 + $0x88c] ss:$16 sps:$4 sm:$0xff]   ;;  %v6306_v32 = vld [vmem:[%s7815_s5 + $0x880] ss:$16 sps:$4 sm:$0xff]  }
 0x1ee   : > { %4597 = vmatpush1.bf16.msra.mxu0 %v6214_v33  ;;  %4925 = vmatpush1.bf16.msra.mxu1 %v6217_v34  ;;  %v6309_v33 = vld [vmem:[%s7815_s5 + $0x888] ss:$16 sps:$4 sm:$0xff]   ;;  %v6314_v34 = vld [vmem:[%s7815_s5 + $0x8a4] ss:$16 sps:$4 sm:$0xff]  }
 0x1ef   : > { %4598 = vmatprep.subr.bf16.mxu0 %v6222_v35  ;;  %4926 = vmatprep.subr.bf16.mxu1 %v6225_v36  ;;  %v6317_v35 = vld [vmem:[%s7815_s5 + $0x8ac] ss:$16 sps:$4 sm:$0xff]   ;;  %v6312_v36 = vld [vmem:[%s7815_s5 + $0x8a0] ss:$16 sps:$4 sm:$0xff]  }
 0x1f2   : > { %4599 = vmatpush1.bf16.msra.mxu0 %v6220_v37  ;;  %4927 = vmatpush1.bf16.msra.mxu1 %v6223_v38  ;;  %v6315_v37 = vld [vmem:[%s7815_s5 + $0x8a8] ss:$16 sps:$4 sm:$0xff]   ;;  %v6320_v38 = vld [vmem:[%s7815_s5 + $0x8c4] ss:$16 sps:$4 sm:$0xff]  }
 0x1f3   : > { %4600 = vmatprep.subr.bf16.mxu0 %v6228_v39  ;;  %4928 = vmatprep.subr.bf16.mxu1 %v6231_v40  ;;  %v6323_v39 = vld [vmem:[%s7815_s5 + $0x8cc] ss:$16 sps:$4 sm:$0xff]   ;;  %v6318_v40 = vld [vmem:[%s7815_s5 + $0x8c0] ss:$16 sps:$4 sm:$0xff]  }
 0x1f6   : > { %4601 = vmatpush1.bf16.msra.mxu0 %v6226_v41  ;;  %4929 = vmatpush1.bf16.msra.mxu1 %v6229_v42  ;;  %v6321_v41 = vld [vmem:[%s7815_s5 + $0x8c8] ss:$16 sps:$4 sm:$0xff]   ;;  %v6326_v42 = vld [vmem:[%s7815_s5 + $0x8e4] ss:$16 sps:$4 sm:$0xff]  }
 0x1f7   : > { %4602 = vmatprep.subr.bf16.mxu0 %v6234_v43  ;;  %4930 = vmatprep.subr.bf16.mxu1 %v6237_v44  ;;  %v6329_v43 = vld [vmem:[%s7815_s5 + $0x8ec] ss:$16 sps:$4 sm:$0xff]   ;;  %v6324_v44 = vld [vmem:[%s7815_s5 + $0x8e0] ss:$16 sps:$4 sm:$0xff]  }
 0x1fa   : > { %4603 = vmatpush1.bf16.msra.mxu0 %v6232_v45  ;;  %4931 = vmatpush1.bf16.msra.mxu1 %v6235_v46  ;;  %v6327_v45 = vld [vmem:[%s7815_s5 + $0x8e8] ss:$16 sps:$4 sm:$0xff]   ;;  %v6332_v46 = vld [vmem:[%s7815_s5 + $0x904] ss:$16 sps:$4 sm:$0xff]  }
 0x1fb   : > { %4604 = vmatprep.subr.bf16.mxu0 %v6240_v47  ;;  %4932 = vmatprep.subr.bf16.mxu1 %v6243_v48  ;;  %v6335_v47 = vld [vmem:[%s7815_s5 + $0x90c] ss:$16 sps:$4 sm:$0xff]   ;;  %v6330_v48 = vld [vmem:[%s7815_s5 + $0x900] ss:$16 sps:$4 sm:$0xff]  }
 0x1fe   : > { %4605 = vmatpush1.bf16.msra.mxu0 %v6238_v49  ;;  %4933 = vmatpush1.bf16.msra.mxu1 %v6241_v50  ;;  %v6333_v49 = vld [vmem:[%s7815_s5 + $0x908] ss:$16 sps:$4 sm:$0xff]   ;;  %v6338_v50 = vld [vmem:[%s7815_s5 + $0x924] ss:$16 sps:$4 sm:$0xff]  }
 0x1ff   : > { %4606 = vmatprep.subr.bf16.mxu0 %v6246_v51  ;;  %4934 = vmatprep.subr.bf16.mxu1 %v6249_v52  ;;  %v6341_v51 = vld [vmem:[%s7815_s5 + $0x92c] ss:$16 sps:$4 sm:$0xff]   ;;  %v6336_v52 = vld [vmem:[%s7815_s5 + $0x920] ss:$16 sps:$4 sm:$0xff]  }
 0x202   : > { %4607 = vmatpush1.bf16.msra.mxu0 %v6244_v53  ;;  %4935 = vmatpush1.bf16.msra.mxu1 %v6247_v54  ;;  %v6339_v53 = vld [vmem:[%s7815_s5 + $0x928] ss:$16 sps:$4 sm:$0xff]   ;;  %v6344_v54 = vld [vmem:[%s7815_s5 + $0x944] ss:$16 sps:$4 sm:$0xff]  }
 0x203   : > { %4608 = vmatprep.subr.bf16.mxu0 %v6252_v55  ;;  %4936 = vmatprep.subr.bf16.mxu1 %v6255_v56  ;;  %v6347_v55 = vld [vmem:[%s7815_s5 + $0x94c] ss:$16 sps:$4 sm:$0xff]   ;;  %v6342_v56 = vld [vmem:[%s7815_s5 + $0x940] ss:$16 sps:$4 sm:$0xff]  }
 0x206   : > { %4609 = vmatpush1.bf16.msra.mxu0 %v6250_v57  ;;  %4937 = vmatpush1.bf16.msra.mxu1 %v6253_v58  ;;  %v6345_v57 = vld [vmem:[%s7815_s5 + $0x948] ss:$16 sps:$4 sm:$0xff]   ;;  %v6350_v58 = vld [vmem:[%s7815_s5 + $0x964] ss:$16 sps:$4 sm:$0xff]  }
 0x207   : > { %4610 = vmatprep.subr.bf16.mxu0 %v6258_v59  ;;  %4938 = vmatprep.subr.bf16.mxu1 %v6261_v60  ;;  %v6353_v59 = vld [vmem:[%s7815_s5 + $0x96c] ss:$16 sps:$4 sm:$0xff]   ;;  %v6348_v60 = vld [vmem:[%s7815_s5 + $0x960] ss:$16 sps:$4 sm:$0xff]  }
 0x20a   : > { %4611 = vmatpush1.bf16.msra.mxu0 %v6256_v61  ;;  %4939 = vmatpush1.bf16.msra.mxu1 %v6259_v62  ;;  %v6351_v61 = vld [vmem:[%s7815_s5 + $0x968] ss:$16 sps:$4 sm:$0xff]   ;;  %v6356_v62 = vld [vmem:[%s7815_s5 + $0x984] ss:$16 sps:$4 sm:$0xff]  }
 0x20b   : > { %4612 = vmatprep.subr.bf16.mxu0 %v6264_v63  ;;  %4940 = vmatprep.subr.bf16.mxu1 %v6267_v1  ;;  %v6359_v63 = vld [vmem:[%s7815_s5 + $0x98c] ss:$16 sps:$4 sm:$0xff]   ;;  %v6354_v1 = vld [vmem:[%s7815_s5 + $0x980] ss:$16 sps:$4 sm:$0xff]  }
 0x20e   : > { %4613 = vmatpush1.bf16.msra.mxu0 %v6262_v2  ;;  %4941 = vmatpush1.bf16.msra.mxu1 %v6265_v3  ;;  %v6357_v2 = vld [vmem:[%s7815_s5 + $0x988] ss:$16 sps:$4 sm:$0xff]   ;;  %v6362_v3 = vld [vmem:[%s7815_s5 + $0x9a4] ss:$16 sps:$4 sm:$0xff]  }
 0x20f   : > { %4614 = vmatprep.subr.bf16.mxu0 %v6270_v4  ;;  %4942 = vmatprep.subr.bf16.mxu1 %v6273_v5  ;;  %v6365_v4 = vld [vmem:[%s7815_s5 + $0x9ac] ss:$16 sps:$4 sm:$0xff]   ;;  %v6360_v5 = vld [vmem:[%s7815_s5 + $0x9a0] ss:$16 sps:$4 sm:$0xff]  }
 0x212   : > { %4615 = vmatpush1.bf16.msra.mxu0 %v6268_v6  ;;  %4943 = vmatpush1.bf16.msra.mxu1 %v6271_v7  ;;  %v6363_v6 = vld [vmem:[%s7815_s5 + $0x9a8] ss:$16 sps:$4 sm:$0xff]   ;;  %v6368_v7 = vld [vmem:[%s7815_s5 + $0x9c4] ss:$16 sps:$4 sm:$0xff]  }
 0x213   : > { %4616 = vmatprep.subr.bf16.mxu0 %v6276_v8  ;;  %4944 = vmatprep.subr.bf16.mxu1 %v6279_v9  ;;  %v6371_v8 = vld [vmem:[%s7815_s5 + $0x9cc] ss:$16 sps:$4 sm:$0xff]   ;;  %v6366_v9 = vld [vmem:[%s7815_s5 + $0x9c0] ss:$16 sps:$4 sm:$0xff]  }
 0x216   : > { %4617 = vmatpush1.bf16.msra.mxu0 %v6274_v10  ;;  %4945 = vmatpush1.bf16.msra.mxu1 %v6277_v0  ;;  %v6369_v10 = vld [vmem:[%s7815_s5 + $0x9c8] ss:$16 sps:$4 sm:$0xff]   ;;  %v6374_v0 = vld [vmem:[%s7815_s5 + $0x9e4] ss:$16 sps:$4 sm:$0xff]  }
 0x217   : > { %4627 = vmatprep.subr.bf16.mxu0 %v6284_v12  ;;  %4955 = vmatprep.subr.bf16.mxu1 %v6287_v14  ;;  %v6377_v12 = vld [vmem:[%s7815_s5 + $0x9ec] ss:$16 sps:$4 sm:$0xff]   ;;  %v6372_v14 = vld [vmem:[%s7815_s5 + $0x9e0] ss:$16 sps:$4 sm:$0xff]  }
 0x219   : > { %4619 = vmatmul.mubr.bf16.vlgmr.msra.gmra.mrb[0].mxu0 %v5265_v15  ;;  %4947 = vmatmul.mubr.bf16.vlgmr.msra.gmra.mrb[0].mxu1 %v5265_v15  ;;  %v6375_v15 = vld [vmem:[%s7815_s5 + $0x9e8] ss:$16 sps:$4 sm:$0xff]  }
 0x21a   : > { %4628 = vmatpush1.bf16.msra.mxu0 %v6282_v16  ;;  %4956 = vmatpush1.bf16.msra.mxu1 %v6285_v17  ;;  %v6382_v16 = vld [vmem:[%s7815_s5 + $0xa04] ss:$16 sps:$4 sm:$0xff]   ;;  %v6385_v17 = vld [vmem:[%s7815_s5 + $0xa0c] ss:$16 sps:$4 sm:$0xff]  }
 0x21b   : > { %4629 = vmatprep.subr.bf16.mxu0 %v6290_v18  ;;  %4957 = vmatprep.subr.bf16.mxu1 %v6293_v19  ;;  %v8178_v18 = vld [vmem:[%s8416_s0 + $0x28] sm:$0xff]  ;;  %v5267_v19 = vcombine.low %v8108_v11, %v8108_v11  ;;  %v6386_v11 = vld [vmem:[%s7815_s5 + $0xa20] ss:$16 sps:$4 sm:$0xff]  }
 0x21c   : > { %4659 = vmatprep.mubr.bf16.mxu0 %v5268_v13  ;;  %4987 = vmatprep.mubr.bf16.mxu1 %v5268_v13  ;;  %v6380_v13 = vld [vmem:[%s7815_s5 + $0xa00] ss:$16 sps:$4 sm:$0xff]  }
 0x21e   : > { %4630 = vmatpush1.bf16.msra.mxu0 %v6288_v20  ;;  %4958 = vmatpush1.bf16.msra.mxu1 %v6291_v21  ;;  %v6383_v20 = vld [vmem:[%s7815_s5 + $0xa08] ss:$16 sps:$4 sm:$0xff]   ;;  %v6388_v21 = vld [vmem:[%s7815_s5 + $0xa24] ss:$16 sps:$4 sm:$0xff]  }
 0x21f   : > { %4631 = vmatprep.subr.bf16.mxu0 %v6296_v22  ;;  %4959 = vmatprep.subr.bf16.mxu1 %v6299_v23  ;;  %v6391_v22 = vld [vmem:[%s7815_s5 + $0xa2c] ss:$16 sps:$4 sm:$0xff]   ;;  %v5270_v23 = vcombine.high %v8178_v18, %v8178_v18 }
 0x222   : > { %4632 = vmatpush1.bf16.msra.mxu0 %v6294_v24  ;;  %4960 = vmatpush1.bf16.msra.mxu1 %v6297_v25  ;;  %v6389_v24 = vld [vmem:[%s7815_s5 + $0xa28] ss:$16 sps:$4 sm:$0xff]   ;;  %v6394_v25 = vld [vmem:[%s7815_s5 + $0xa44] ss:$16 sps:$4 sm:$0xff]  }
 0x223   : > { %4633 = vmatprep.subr.bf16.mxu0 %v6302_v26  ;;  %4961 = vmatprep.subr.bf16.mxu1 %v6305_v27  ;;  %v6397_v26 = vld [vmem:[%s7815_s5 + $0xa4c] ss:$16 sps:$4 sm:$0xff]   ;;  %v6392_v27 = vld [vmem:[%s7815_s5 + $0xa40] ss:$16 sps:$4 sm:$0xff]  }
 0x226   : > { %4634 = vmatpush1.bf16.msra.mxu0 %v6300_v28  ;;  %4962 = vmatpush1.bf16.msra.mxu1 %v6303_v29  ;;  %v6395_v28 = vld [vmem:[%s7815_s5 + $0xa48] ss:$16 sps:$4 sm:$0xff]   ;;  %v6400_v29 = vld [vmem:[%s7815_s5 + $0xa64] ss:$16 sps:$4 sm:$0xff]  }
 0x227   : > { %4635 = vmatprep.subr.bf16.mxu0 %v6308_v30  ;;  %4963 = vmatprep.subr.bf16.mxu1 %v6311_v31  ;;  %v6403_v30 = vld [vmem:[%s7815_s5 + $0xa6c] ss:$16 sps:$4 sm:$0xff]   ;;  %v6398_v31 = vld [vmem:[%s7815_s5 + $0xa60] ss:$16 sps:$4 sm:$0xff]  }
 0x22a   : > { %4636 = vmatpush1.bf16.msra.mxu0 %v6306_v32  ;;  %4964 = vmatpush1.bf16.msra.mxu1 %v6309_v33  ;;  %v6401_v32 = vld [vmem:[%s7815_s5 + $0xa68] ss:$16 sps:$4 sm:$0xff]   ;;  %v6406_v33 = vld [vmem:[%s7815_s5 + $0xa84] ss:$16 sps:$4 sm:$0xff]  }
 0x22b   : > { %4637 = vmatprep.subr.bf16.mxu0 %v6314_v34  ;;  %4965 = vmatprep.subr.bf16.mxu1 %v6317_v35  ;;  %v6409_v34 = vld [vmem:[%s7815_s5 + $0xa8c] ss:$16 sps:$4 sm:$0xff]   ;;  %v6404_v35 = vld [vmem:[%s7815_s5 + $0xa80] ss:$16 sps:$4 sm:$0xff]  }
 0x22e   : > { %4638 = vmatpush1.bf16.msra.mxu0 %v6312_v36  ;;  %4966 = vmatpush1.bf16.msra.mxu1 %v6315_v37  ;;  %v6407_v36 = vld [vmem:[%s7815_s5 + $0xa88] ss:$16 sps:$4 sm:$0xff]   ;;  %v6412_v37 = vld [vmem:[%s7815_s5 + $0xaa4] ss:$16 sps:$4 sm:$0xff]  }
 0x22f   : > { %4639 = vmatprep.subr.bf16.mxu0 %v6320_v38  ;;  %4967 = vmatprep.subr.bf16.mxu1 %v6323_v39  ;;  %v6415_v38 = vld [vmem:[%s7815_s5 + $0xaac] ss:$16 sps:$4 sm:$0xff]   ;;  %v6410_v39 = vld [vmem:[%s7815_s5 + $0xaa0] ss:$16 sps:$4 sm:$0xff]  }
 0x232   : > { %4640 = vmatpush1.bf16.msra.mxu0 %v6318_v40  ;;  %4968 = vmatpush1.bf16.msra.mxu1 %v6321_v41  ;;  %v6413_v40 = vld [vmem:[%s7815_s5 + $0xaa8] ss:$16 sps:$4 sm:$0xff]   ;;  %v6418_v41 = vld [vmem:[%s7815_s5 + $0xac4] ss:$16 sps:$4 sm:$0xff]  }
 0x233   : > { %4641 = vmatprep.subr.bf16.mxu0 %v6326_v42  ;;  %4969 = vmatprep.subr.bf16.mxu1 %v6329_v43  ;;  %v6421_v42 = vld [vmem:[%s7815_s5 + $0xacc] ss:$16 sps:$4 sm:$0xff]   ;;  %v6416_v43 = vld [vmem:[%s7815_s5 + $0xac0] ss:$16 sps:$4 sm:$0xff]  }
 0x236   : > { %4642 = vmatpush1.bf16.msra.mxu0 %v6324_v44  ;;  %4970 = vmatpush1.bf16.msra.mxu1 %v6327_v45  ;;  %v6419_v44 = vld [vmem:[%s7815_s5 + $0xac8] ss:$16 sps:$4 sm:$0xff]   ;;  %v6424_v45 = vld [vmem:[%s7815_s5 + $0xae4] ss:$16 sps:$4 sm:$0xff]  }
 0x237   : > { %4643 = vmatprep.subr.bf16.mxu0 %v6332_v46  ;;  %4971 = vmatprep.subr.bf16.mxu1 %v6335_v47  ;;  %v6427_v46 = vld [vmem:[%s7815_s5 + $0xaec] ss:$16 sps:$4 sm:$0xff]   ;;  %v6422_v47 = vld [vmem:[%s7815_s5 + $0xae0] ss:$16 sps:$4 sm:$0xff]  }
 0x23a   : > { %4644 = vmatpush1.bf16.msra.mxu0 %v6330_v48  ;;  %4972 = vmatpush1.bf16.msra.mxu1 %v6333_v49  ;;  %v6425_v48 = vld [vmem:[%s7815_s5 + $0xae8] ss:$16 sps:$4 sm:$0xff]   ;;  %v6430_v49 = vld [vmem:[%s7815_s5 + $0xb04] ss:$16 sps:$4 sm:$0xff]  }
 0x23b   : > { %4645 = vmatprep.subr.bf16.mxu0 %v6338_v50  ;;  %4973 = vmatprep.subr.bf16.mxu1 %v6341_v51  ;;  %v6433_v50 = vld [vmem:[%s7815_s5 + $0xb0c] ss:$16 sps:$4 sm:$0xff]   ;;  %v6428_v51 = vld [vmem:[%s7815_s5 + $0xb00] ss:$16 sps:$4 sm:$0xff]  }
 0x23e   : > { %4646 = vmatpush1.bf16.msra.mxu0 %v6336_v52  ;;  %4974 = vmatpush1.bf16.msra.mxu1 %v6339_v53  ;;  %v6431_v52 = vld [vmem:[%s7815_s5 + $0xb08] ss:$16 sps:$4 sm:$0xff]   ;;  %v6436_v53 = vld [vmem:[%s7815_s5 + $0xb24] ss:$16 sps:$4 sm:$0xff]  }
 0x23f   : > { %4647 = vmatprep.subr.bf16.mxu0 %v6344_v54  ;;  %4975 = vmatprep.subr.bf16.mxu1 %v6347_v55  ;;  %v6439_v54 = vld [vmem:[%s7815_s5 + $0xb2c] ss:$16 sps:$4 sm:$0xff]   ;;  %v6434_v55 = vld [vmem:[%s7815_s5 + $0xb20] ss:$16 sps:$4 sm:$0xff]  }
 0x242   : > { %4648 = vmatpush1.bf16.msra.mxu0 %v6342_v56  ;;  %4976 = vmatpush1.bf16.msra.mxu1 %v6345_v57  ;;  %v6437_v56 = vld [vmem:[%s7815_s5 + $0xb28] ss:$16 sps:$4 sm:$0xff]   ;;  %v6442_v57 = vld [vmem:[%s7815_s5 + $0xb44] ss:$16 sps:$4 sm:$0xff]  }
 0x243   : > { %4649 = vmatprep.subr.bf16.mxu0 %v6350_v58  ;;  %4977 = vmatprep.subr.bf16.mxu1 %v6353_v59  ;;  %v6445_v58 = vld [vmem:[%s7815_s5 + $0xb4c] ss:$16 sps:$4 sm:$0xff]   ;;  %v6440_v59 = vld [vmem:[%s7815_s5 + $0xb40] ss:$16 sps:$4 sm:$0xff]  }
 0x246   : > { %4650 = vmatpush1.bf16.msra.mxu0 %v6348_v60  ;;  %4978 = vmatpush1.bf16.msra.mxu1 %v6351_v61  ;;  %v6443_v60 = vld [vmem:[%s7815_s5 + $0xb48] ss:$16 sps:$4 sm:$0xff]   ;;  %v6448_v61 = vld [vmem:[%s7815_s5 + $0xb64] ss:$16 sps:$4 sm:$0xff]  }
 0x247   : > { %4651 = vmatprep.subr.bf16.mxu0 %v6356_v62  ;;  %4979 = vmatprep.subr.bf16.mxu1 %v6359_v63  ;;  %v6451_v62 = vld [vmem:[%s7815_s5 + $0xb6c] ss:$16 sps:$4 sm:$0xff]   ;;  %v6446_v63 = vld [vmem:[%s7815_s5 + $0xb60] ss:$16 sps:$4 sm:$0xff]  }
 0x24a   : > { %4652 = vmatpush1.bf16.msra.mxu0 %v6354_v1  ;;  %4980 = vmatpush1.bf16.msra.mxu1 %v6357_v2  ;;  %v6449_v1 = vld [vmem:[%s7815_s5 + $0xb68] ss:$16 sps:$4 sm:$0xff]   ;;  %v6454_v2 = vld [vmem:[%s7815_s5 + $0xb84] ss:$16 sps:$4 sm:$0xff]  }
 0x24b   : > { %4653 = vmatprep.subr.bf16.mxu0 %v6362_v3  ;;  %4981 = vmatprep.subr.bf16.mxu1 %v6365_v4  ;;  %v6457_v3 = vld [vmem:[%s7815_s5 + $0xb8c] ss:$16 sps:$4 sm:$0xff]   ;;  %v6452_v4 = vld [vmem:[%s7815_s5 + $0xb80] ss:$16 sps:$4 sm:$0xff]  }
 0x24e   : > { %4654 = vmatpush1.bf16.msra.mxu0 %v6360_v5  ;;  %4982 = vmatpush1.bf16.msra.mxu1 %v6363_v6  ;;  %v6455_v5 = vld [vmem:[%s7815_s5 + $0xb88] ss:$16 sps:$4 sm:$0xff]   ;;  %v6460_v6 = vld [vmem:[%s7815_s5 + $0xba4] ss:$16 sps:$4 sm:$0xff]  }
 0x24f   : > { %4655 = vmatprep.subr.bf16.mxu0 %v6368_v7  ;;  %4983 = vmatprep.subr.bf16.mxu1 %v6371_v8  ;;  %v6463_v7 = vld [vmem:[%s7815_s5 + $0xbac] ss:$16 sps:$4 sm:$0xff]   ;;  %v6458_v8 = vld [vmem:[%s7815_s5 + $0xba0] ss:$16 sps:$4 sm:$0xff]  }
 0x252   : > { %4656 = vmatpush1.bf16.msra.mxu0 %v6366_v9  ;;  %4984 = vmatpush1.bf16.msra.mxu1 %v6369_v10  ;;  %v6461_v9 = vld [vmem:[%s7815_s5 + $0xba8] ss:$16 sps:$4 sm:$0xff]   ;;  %v6466_v10 = vld [vmem:[%s7815_s5 + $0xbc4] ss:$16 sps:$4 sm:$0xff]  }
 0x253   : > { %4657 = vmatprep.subr.bf16.mxu0 %v6374_v0  ;;  %4985 = vmatprep.subr.bf16.mxu1 %v6377_v12  ;;  %v6469_v0 = vld [vmem:[%s7815_s5 + $0xbcc] ss:$16 sps:$4 sm:$0xff]   ;;  %v6464_v12 = vld [vmem:[%s7815_s5 + $0xbc0] ss:$16 sps:$4 sm:$0xff]  }
 0x256   : > { %4658 = vmatpush1.bf16.msra.mxu0 %v6372_v14  ;;  %4986 = vmatpush1.bf16.msra.mxu1 %v6375_v15  ;;  %v6467_v14 = vld [vmem:[%s7815_s5 + $0xbc8] ss:$16 sps:$4 sm:$0xff]   ;;  %v6472_v15 = vld [vmem:[%s7815_s5 + $0xbe4] ss:$16 sps:$4 sm:$0xff]  }
 0x257   : > { %4668 = vmatprep.subr.bf16.mxu0 %v6382_v16  ;;  %4996 = vmatprep.subr.bf16.mxu1 %v6385_v17  ;;  %v6475_v16 = vld [vmem:[%s7815_s5 + $0xbec] ss:$16 sps:$4 sm:$0xff]   ;;  %v6470_v17 = vld [vmem:[%s7815_s5 + $0xbe0] ss:$16 sps:$4 sm:$0xff]  }
 0x259   : > { %4660 = vmatmul.mubr.bf16.vlgmr.msra.gmra.mrb[0].mxu0 %v5267_v19  ;;  %4988 = vmatmul.mubr.bf16.vlgmr.msra.gmra.mrb[0].mxu1 %v5267_v19  ;;  %v6473_v19 = vld [vmem:[%s7815_s5 + $0xbe8] ss:$16 sps:$4 sm:$0xff]  }
 0x25a   : > { %4669 = vmatpush1.bf16.msra.mxu0 %v6380_v13  ;;  %4997 = vmatpush1.bf16.msra.mxu1 %v6383_v20  ;;  %v6480_v13 = vld [vmem:[%s7815_s5 + $0xc04] ss:$16 sps:$4 sm:$0xff]   ;;  %v6483_v20 = vld [vmem:[%s7815_s5 + $0xc0c] ss:$16 sps:$4 sm:$0xff]  }
 0x25b   : > { %4670 = vmatprep.subr.bf16.mxu0 %v6388_v21  ;;  %4998 = vmatprep.subr.bf16.mxu1 %v6391_v22  ;;  %v5269_v21 = vcombine.low %v8178_v18, %v8178_v18  ;;  %v8253_v22 = vld [vmem:[%s8416_s0 + $0x30] sm:$0xff] }
 0x25c   : > { %4700 = vmatprep.mubr.bf16.mxu0 %v5270_v23  ;;  %5028 = vmatprep.mubr.bf16.mxu1 %v5270_v23  ;;  %v6478_v23 = vld [vmem:[%s7815_s5 + $0xc00] ss:$16 sps:$4 sm:$0xff]   ;;  %v5272_v18 = vcombine.high %v8253_v22, %v8253_v22 }
 0x25e   : > { %4671 = vmatpush1.bf16.msra.mxu0 %v6386_v11  ;;  %4999 = vmatpush1.bf16.msra.mxu1 %v6389_v24  ;;  %v6481_v11 = vld [vmem:[%s7815_s5 + $0xc08] ss:$16 sps:$4 sm:$0xff]   ;;  %v6486_v24 = vld [vmem:[%s7815_s5 + $0xc24] ss:$16 sps:$4 sm:$0xff]  }
 0x25f   : > { %4672 = vmatprep.subr.bf16.mxu0 %v6394_v25  ;;  %5000 = vmatprep.subr.bf16.mxu1 %v6397_v26  ;;  %v6489_v25 = vld [vmem:[%s7815_s5 + $0xc2c] ss:$16 sps:$4 sm:$0xff]   ;;  %v6484_v26 = vld [vmem:[%s7815_s5 + $0xc20] ss:$16 sps:$4 sm:$0xff]  }
 0x262   : > { %4673 = vmatpush1.bf16.msra.mxu0 %v6392_v27  ;;  %5001 = vmatpush1.bf16.msra.mxu1 %v6395_v28  ;;  %v6487_v27 = vld [vmem:[%s7815_s5 + $0xc28] ss:$16 sps:$4 sm:$0xff]   ;;  %v6492_v28 = vld [vmem:[%s7815_s5 + $0xc44] ss:$16 sps:$4 sm:$0xff]  }
 0x263   : > { %4674 = vmatprep.subr.bf16.mxu0 %v6400_v29  ;;  %5002 = vmatprep.subr.bf16.mxu1 %v6403_v30  ;;  %v6495_v29 = vld [vmem:[%s7815_s5 + $0xc4c] ss:$16 sps:$4 sm:$0xff]   ;;  %v6490_v30 = vld [vmem:[%s7815_s5 + $0xc40] ss:$16 sps:$4 sm:$0xff]  }
 0x266   : > { %4675 = vmatpush1.bf16.msra.mxu0 %v6398_v31  ;;  %5003 = vmatpush1.bf16.msra.mxu1 %v6401_v32  ;;  %v6493_v31 = vld [vmem:[%s7815_s5 + $0xc48] ss:$16 sps:$4 sm:$0xff]   ;;  %v6498_v32 = vld [vmem:[%s7815_s5 + $0xc64] ss:$16 sps:$4 sm:$0xff]  }
 0x267   : > { %4676 = vmatprep.subr.bf16.mxu0 %v6406_v33  ;;  %5004 = vmatprep.subr.bf16.mxu1 %v6409_v34  ;;  %v6501_v33 = vld [vmem:[%s7815_s5 + $0xc6c] ss:$16 sps:$4 sm:$0xff]   ;;  %v6496_v34 = vld [vmem:[%s7815_s5 + $0xc60] ss:$16 sps:$4 sm:$0xff]  }
 0x26a   : > { %4677 = vmatpush1.bf16.msra.mxu0 %v6404_v35  ;;  %5005 = vmatpush1.bf16.msra.mxu1 %v6407_v36  ;;  %v6499_v35 = vld [vmem:[%s7815_s5 + $0xc68] ss:$16 sps:$4 sm:$0xff]   ;;  %v6504_v36 = vld [vmem:[%s7815_s5 + $0xc84] ss:$16 sps:$4 sm:$0xff]  }
 0x26b   : > { %4678 = vmatprep.subr.bf16.mxu0 %v6412_v37  ;;  %5006 = vmatprep.subr.bf16.mxu1 %v6415_v38  ;;  %v6507_v37 = vld [vmem:[%s7815_s5 + $0xc8c] ss:$16 sps:$4 sm:$0xff]   ;;  %v6502_v38 = vld [vmem:[%s7815_s5 + $0xc80] ss:$16 sps:$4 sm:$0xff]  }
 0x26e   : > { %4679 = vmatpush1.bf16.msra.mxu0 %v6410_v39  ;;  %5007 = vmatpush1.bf16.msra.mxu1 %v6413_v40  ;;  %v6505_v39 = vld [vmem:[%s7815_s5 + $0xc88] ss:$16 sps:$4 sm:$0xff]   ;;  %v6510_v40 = vld [vmem:[%s7815_s5 + $0xca4] ss:$16 sps:$4 sm:$0xff]  }
 0x26f   : > { %4680 = vmatprep.subr.bf16.mxu0 %v6418_v41  ;;  %5008 = vmatprep.subr.bf16.mxu1 %v6421_v42  ;;  %v6513_v41 = vld [vmem:[%s7815_s5 + $0xcac] ss:$16 sps:$4 sm:$0xff]   ;;  %v6508_v42 = vld [vmem:[%s7815_s5 + $0xca0] ss:$16 sps:$4 sm:$0xff]  }
 0x272   : > { %4681 = vmatpush1.bf16.msra.mxu0 %v6416_v43  ;;  %5009 = vmatpush1.bf16.msra.mxu1 %v6419_v44  ;;  %v6511_v43 = vld [vmem:[%s7815_s5 + $0xca8] ss:$16 sps:$4 sm:$0xff]   ;;  %v6516_v44 = vld [vmem:[%s7815_s5 + $0xcc4] ss:$16 sps:$4 sm:$0xff]  }
 0x273   : > { %4682 = vmatprep.subr.bf16.mxu0 %v6424_v45  ;;  %5010 = vmatprep.subr.bf16.mxu1 %v6427_v46  ;;  %v6519_v45 = vld [vmem:[%s7815_s5 + $0xccc] ss:$16 sps:$4 sm:$0xff]   ;;  %v6514_v46 = vld [vmem:[%s7815_s5 + $0xcc0] ss:$16 sps:$4 sm:$0xff]  }
 0x276   : > { %4683 = vmatpush1.bf16.msra.mxu0 %v6422_v47  ;;  %5011 = vmatpush1.bf16.msra.mxu1 %v6425_v48  ;;  %v6517_v47 = vld [vmem:[%s7815_s5 + $0xcc8] ss:$16 sps:$4 sm:$0xff]   ;;  %v6522_v48 = vld [vmem:[%s7815_s5 + $0xce4] ss:$16 sps:$4 sm:$0xff]  }
 0x277   : > { %4684 = vmatprep.subr.bf16.mxu0 %v6430_v49  ;;  %5012 = vmatprep.subr.bf16.mxu1 %v6433_v50  ;;  %v6525_v49 = vld [vmem:[%s7815_s5 + $0xcec] ss:$16 sps:$4 sm:$0xff]   ;;  %v6520_v50 = vld [vmem:[%s7815_s5 + $0xce0] ss:$16 sps:$4 sm:$0xff]  }
 0x27a   : > { %4685 = vmatpush1.bf16.msra.mxu0 %v6428_v51  ;;  %5013 = vmatpush1.bf16.msra.mxu1 %v6431_v52  ;;  %v6523_v51 = vld [vmem:[%s7815_s5 + $0xce8] ss:$16 sps:$4 sm:$0xff]   ;;  %v6528_v52 = vld [vmem:[%s7815_s5 + $0xd04] ss:$16 sps:$4 sm:$0xff]  }
 0x27b   : > { %4686 = vmatprep.subr.bf16.mxu0 %v6436_v53  ;;  %5014 = vmatprep.subr.bf16.mxu1 %v6439_v54  ;;  %v6531_v53 = vld [vmem:[%s7815_s5 + $0xd0c] ss:$16 sps:$4 sm:$0xff]   ;;  %v6526_v54 = vld [vmem:[%s7815_s5 + $0xd00] ss:$16 sps:$4 sm:$0xff]  }
 0x27e   : > { %4687 = vmatpush1.bf16.msra.mxu0 %v6434_v55  ;;  %5015 = vmatpush1.bf16.msra.mxu1 %v6437_v56  ;;  %v6529_v55 = vld [vmem:[%s7815_s5 + $0xd08] ss:$16 sps:$4 sm:$0xff]   ;;  %v6534_v56 = vld [vmem:[%s7815_s5 + $0xd24] ss:$16 sps:$4 sm:$0xff]  }
 0x27f   : > { %4688 = vmatprep.subr.bf16.mxu0 %v6442_v57  ;;  %5016 = vmatprep.subr.bf16.mxu1 %v6445_v58  ;;  %v6537_v57 = vld [vmem:[%s7815_s5 + $0xd2c] ss:$16 sps:$4 sm:$0xff]   ;;  %v6532_v58 = vld [vmem:[%s7815_s5 + $0xd20] ss:$16 sps:$4 sm:$0xff]  }
 0x282   : > { %4689 = vmatpush1.bf16.msra.mxu0 %v6440_v59  ;;  %5017 = vmatpush1.bf16.msra.mxu1 %v6443_v60  ;;  %v6535_v59 = vld [vmem:[%s7815_s5 + $0xd28] ss:$16 sps:$4 sm:$0xff]   ;;  %v6540_v60 = vld [vmem:[%s7815_s5 + $0xd44] ss:$16 sps:$4 sm:$0xff]  }
 0x283   : > { %4690 = vmatprep.subr.bf16.mxu0 %v6448_v61  ;;  %5018 = vmatprep.subr.bf16.mxu1 %v6451_v62  ;;  %v6543_v61 = vld [vmem:[%s7815_s5 + $0xd4c] ss:$16 sps:$4 sm:$0xff]   ;;  %v6538_v62 = vld [vmem:[%s7815_s5 + $0xd40] ss:$16 sps:$4 sm:$0xff]  }
 0x286   : > { %4691 = vmatpush1.bf16.msra.mxu0 %v6446_v63  ;;  %5019 = vmatpush1.bf16.msra.mxu1 %v6449_v1  ;;  %v6541_v63 = vld [vmem:[%s7815_s5 + $0xd48] ss:$16 sps:$4 sm:$0xff]   ;;  %v6546_v1 = vld [vmem:[%s7815_s5 + $0xd64] ss:$16 sps:$4 sm:$0xff]  }
 0x287   : > { %4692 = vmatprep.subr.bf16.mxu0 %v6454_v2  ;;  %5020 = vmatprep.subr.bf16.mxu1 %v6457_v3  ;;  %v6549_v2 = vld [vmem:[%s7815_s5 + $0xd6c] ss:$16 sps:$4 sm:$0xff]   ;;  %v6544_v3 = vld [vmem:[%s7815_s5 + $0xd60] ss:$16 sps:$4 sm:$0xff]  }
 0x28a   : > { %4693 = vmatpush1.bf16.msra.mxu0 %v6452_v4  ;;  %5021 = vmatpush1.bf16.msra.mxu1 %v6455_v5  ;;  %v6547_v4 = vld [vmem:[%s7815_s5 + $0xd68] ss:$16 sps:$4 sm:$0xff]   ;;  %v6552_v5 = vld [vmem:[%s7815_s5 + $0xd84] ss:$16 sps:$4 sm:$0xff]  }
 0x28b   : > { %4694 = vmatprep.subr.bf16.mxu0 %v6460_v6  ;;  %5022 = vmatprep.subr.bf16.mxu1 %v6463_v7  ;;  %v6555_v6 = vld [vmem:[%s7815_s5 + $0xd8c] ss:$16 sps:$4 sm:$0xff]   ;;  %v6550_v7 = vld [vmem:[%s7815_s5 + $0xd80] ss:$16 sps:$4 sm:$0xff]  }
 0x28e   : > { %4695 = vmatpush1.bf16.msra.mxu0 %v6458_v8  ;;  %5023 = vmatpush1.bf16.msra.mxu1 %v6461_v9  ;;  %v6553_v8 = vld [vmem:[%s7815_s5 + $0xd88] ss:$16 sps:$4 sm:$0xff]   ;;  %v6558_v9 = vld [vmem:[%s7815_s5 + $0xda4] ss:$16 sps:$4 sm:$0xff]  }
 0x28f   : > { %4696 = vmatprep.subr.bf16.mxu0 %v6466_v10  ;;  %5024 = vmatprep.subr.bf16.mxu1 %v6469_v0  ;;  %v6561_v10 = vld [vmem:[%s7815_s5 + $0xdac] ss:$16 sps:$4 sm:$0xff]   ;;  %v6556_v0 = vld [vmem:[%s7815_s5 + $0xda0] ss:$16 sps:$4 sm:$0xff]  }
 0x292   : > { %4697 = vmatpush1.bf16.msra.mxu0 %v6464_v12  ;;  %5025 = vmatpush1.bf16.msra.mxu1 %v6467_v14  ;;  %v6559_v12 = vld [vmem:[%s7815_s5 + $0xda8] ss:$16 sps:$4 sm:$0xff]   ;;  %v6564_v14 = vld [vmem:[%s7815_s5 + $0xdc4] ss:$16 sps:$4 sm:$0xff]  }
 0x293   : > { %4698 = vmatprep.subr.bf16.mxu0 %v6472_v15  ;;  %5026 = vmatprep.subr.bf16.mxu1 %v6475_v16  ;;  %v6567_v15 = vld [vmem:[%s7815_s5 + $0xdcc] ss:$16 sps:$4 sm:$0xff]   ;;  %v6562_v16 = vld [vmem:[%s7815_s5 + $0xdc0] ss:$16 sps:$4 sm:$0xff]  }
 0x296   : > { %4699 = vmatpush1.bf16.msra.mxu0 %v6470_v17  ;;  %5027 = vmatpush1.bf16.msra.mxu1 %v6473_v19  ;;  %v6565_v17 = vld [vmem:[%s7815_s5 + $0xdc8] ss:$16 sps:$4 sm:$0xff]   ;;  %v6570_v19 = vld [vmem:[%s7815_s5 + $0xde4] ss:$16 sps:$4 sm:$0xff]  }
 0x297   : > { %4709 = vmatprep.subr.bf16.mxu0 %v6480_v13  ;;  %5037 = vmatprep.subr.bf16.mxu1 %v6483_v20  ;;  %v6573_v13 = vld [vmem:[%s7815_s5 + $0xdec] ss:$16 sps:$4 sm:$0xff]   ;;  %v6568_v20 = vld [vmem:[%s7815_s5 + $0xde0] ss:$16 sps:$4 sm:$0xff]  }
 0x299   : > { %4701 = vmatmul.mubr.bf16.vlgmr.msra.gmra.mrb[0].mxu0 %v5269_v21  ;;  %5029 = vmatmul.mubr.bf16.vlgmr.msra.gmra.mrb[0].mxu1 %v5269_v21  ;;  %v6571_v21 = vld [vmem:[%s7815_s5 + $0xde8] ss:$16 sps:$4 sm:$0xff]  }
 0x29a   : > { %4710 = vmatpush1.bf16.msra.mxu0 %v6478_v23  ;;  %5038 = vmatpush1.bf16.msra.mxu1 %v6481_v11  ;;  %v6578_v23 = vld [vmem:[%s7815_s5 + $0xe04] ss:$16 sps:$4 sm:$0xff]   ;;  %v6581_v11 = vld [vmem:[%s7815_s5 + $0xe0c] ss:$16 sps:$4 sm:$0xff]  }
 0x29b   : > { %4711 = vmatprep.subr.bf16.mxu0 %v6486_v24  ;;  %5039 = vmatprep.subr.bf16.mxu1 %v6489_v25  ;;  %v5271_v24 = vcombine.low %v8253_v22, %v8253_v22  ;;  %v8326_v25 = vld [vmem:[%s8416_s0 + $0x38] sm:$0xff] }
 0x29c   : > { %4741 = vmatprep.mubr.bf16.mxu0 %v5272_v18  ;;  %5069 = vmatprep.mubr.bf16.mxu1 %v5272_v18  ;;  %v6576_v18 = vld [vmem:[%s7815_s5 + $0xe00] ss:$16 sps:$4 sm:$0xff]   ;;  %v5274_v22 = vcombine.high %v8326_v25, %v8326_v25 }
 0x29e   : > { %4712 = vmatpush1.bf16.msra.mxu0 %v6484_v26  ;;  %5040 = vmatpush1.bf16.msra.mxu1 %v6487_v27  ;;  %v6579_v26 = vld [vmem:[%s7815_s5 + $0xe08] ss:$16 sps:$4 sm:$0xff]   ;;  %v6584_v27 = vld [vmem:[%s7815_s5 + $0xe24] ss:$16 sps:$4 sm:$0xff]  }
 0x29f   : > { %4713 = vmatprep.subr.bf16.mxu0 %v6492_v28  ;;  %5041 = vmatprep.subr.bf16.mxu1 %v6495_v29  ;;  %v6587_v28 = vld [vmem:[%s7815_s5 + $0xe2c] ss:$16 sps:$4 sm:$0xff]   ;;  %v6582_v29 = vld [vmem:[%s7815_s5 + $0xe20] ss:$16 sps:$4 sm:$0xff]  }
 0x2a2   : > { %4714 = vmatpush1.bf16.msra.mxu0 %v6490_v30  ;;  %5042 = vmatpush1.bf16.msra.mxu1 %v6493_v31  ;;  %v6585_v30 = vld [vmem:[%s7815_s5 + $0xe28] ss:$16 sps:$4 sm:$0xff]   ;;  %v6590_v31 = vld [vmem:[%s7815_s5 + $0xe44] ss:$16 sps:$4 sm:$0xff]  }
 0x2a3   : > { %4715 = vmatprep.subr.bf16.mxu0 %v6498_v32  ;;  %5043 = vmatprep.subr.bf16.mxu1 %v6501_v33  ;;  %v6593_v32 = vld [vmem:[%s7815_s5 + $0xe4c] ss:$16 sps:$4 sm:$0xff]   ;;  %v6588_v33 = vld [vmem:[%s7815_s5 + $0xe40] ss:$16 sps:$4 sm:$0xff]  }
 0x2a6   : > { %4716 = vmatpush1.bf16.msra.mxu0 %v6496_v34  ;;  %5044 = vmatpush1.bf16.msra.mxu1 %v6499_v35  ;;  %v6591_v34 = vld [vmem:[%s7815_s5 + $0xe48] ss:$16 sps:$4 sm:$0xff]   ;;  %v6596_v35 = vld [vmem:[%s7815_s5 + $0xe64] ss:$16 sps:$4 sm:$0xff]  }
 0x2a7   : > { %4717 = vmatprep.subr.bf16.mxu0 %v6504_v36  ;;  %5045 = vmatprep.subr.bf16.mxu1 %v6507_v37  ;;  %v6599_v36 = vld [vmem:[%s7815_s5 + $0xe6c] ss:$16 sps:$4 sm:$0xff]   ;;  %v6594_v37 = vld [vmem:[%s7815_s5 + $0xe60] ss:$16 sps:$4 sm:$0xff]  }
 0x2aa   : > { %4718 = vmatpush1.bf16.msra.mxu0 %v6502_v38  ;;  %5046 = vmatpush1.bf16.msra.mxu1 %v6505_v39  ;;  %v6597_v38 = vld [vmem:[%s7815_s5 + $0xe68] ss:$16 sps:$4 sm:$0xff]   ;;  %v6602_v39 = vld [vmem:[%s7815_s5 + $0xe84] ss:$16 sps:$4 sm:$0xff]  }
 0x2ab   : > { %4719 = vmatprep.subr.bf16.mxu0 %v6510_v40  ;;  %5047 = vmatprep.subr.bf16.mxu1 %v6513_v41  ;;  %v6605_v40 = vld [vmem:[%s7815_s5 + $0xe8c] ss:$16 sps:$4 sm:$0xff]   ;;  %v6600_v41 = vld [vmem:[%s7815_s5 + $0xe80] ss:$16 sps:$4 sm:$0xff]  }
 0x2ae   : > { %4720 = vmatpush1.bf16.msra.mxu0 %v6508_v42  ;;  %5048 = vmatpush1.bf16.msra.mxu1 %v6511_v43  ;;  %v6603_v42 = vld [vmem:[%s7815_s5 + $0xe88] ss:$16 sps:$4 sm:$0xff]   ;;  %v6608_v43 = vld [vmem:[%s7815_s5 + $0xea4] ss:$16 sps:$4 sm:$0xff]  }
 0x2af   : > { %4721 = vmatprep.subr.bf16.mxu0 %v6516_v44  ;;  %5049 = vmatprep.subr.bf16.mxu1 %v6519_v45  ;;  %v6611_v44 = vld [vmem:[%s7815_s5 + $0xeac] ss:$16 sps:$4 sm:$0xff]   ;;  %v6606_v45 = vld [vmem:[%s7815_s5 + $0xea0] ss:$16 sps:$4 sm:$0xff]  }
 0x2b2   : > { %4722 = vmatpush1.bf16.msra.mxu0 %v6514_v46  ;;  %5050 = vmatpush1.bf16.msra.mxu1 %v6517_v47  ;;  %v6609_v46 = vld [vmem:[%s7815_s5 + $0xea8] ss:$16 sps:$4 sm:$0xff]   ;;  %v6614_v47 = vld [vmem:[%s7815_s5 + $0xec4] ss:$16 sps:$4 sm:$0xff]  }
 0x2b3   : > { %4723 = vmatprep.subr.bf16.mxu0 %v6522_v48  ;;  %5051 = vmatprep.subr.bf16.mxu1 %v6525_v49  ;;  %v6617_v48 = vld [vmem:[%s7815_s5 + $0xecc] ss:$16 sps:$4 sm:$0xff]   ;;  %v6612_v49 = vld [vmem:[%s7815_s5 + $0xec0] ss:$16 sps:$4 sm:$0xff]  }
 0x2b6   : > { %4724 = vmatpush1.bf16.msra.mxu0 %v6520_v50  ;;  %5052 = vmatpush1.bf16.msra.mxu1 %v6523_v51  ;;  %v6615_v50 = vld [vmem:[%s7815_s5 + $0xec8] ss:$16 sps:$4 sm:$0xff]   ;;  %v6620_v51 = vld [vmem:[%s7815_s5 + $0xee4] ss:$16 sps:$4 sm:$0xff]  }
 0x2b7   : > { %4725 = vmatprep.subr.bf16.mxu0 %v6528_v52  ;;  %5053 = vmatprep.subr.bf16.mxu1 %v6531_v53  ;;  %v6623_v52 = vld [vmem:[%s7815_s5 + $0xeec] ss:$16 sps:$4 sm:$0xff]   ;;  %v6618_v53 = vld [vmem:[%s7815_s5 + $0xee0] ss:$16 sps:$4 sm:$0xff]  }
 0x2ba   : > { %4726 = vmatpush1.bf16.msra.mxu0 %v6526_v54  ;;  %5054 = vmatpush1.bf16.msra.mxu1 %v6529_v55  ;;  %v6621_v54 = vld [vmem:[%s7815_s5 + $0xee8] ss:$16 sps:$4 sm:$0xff]   ;;  %v6626_v55 = vld [vmem:[%s7815_s5 + $0xf04] ss:$16 sps:$4 sm:$0xff]  }
 0x2bb   : > { %4727 = vmatprep.subr.bf16.mxu0 %v6534_v56  ;;  %5055 = vmatprep.subr.bf16.mxu1 %v6537_v57  ;;  %v6629_v56 = vld [vmem:[%s7815_s5 + $0xf0c] ss:$16 sps:$4 sm:$0xff]   ;;  %v6624_v57 = vld [vmem:[%s7815_s5 + $0xf00] ss:$16 sps:$4 sm:$0xff]  }
 0x2be   : > { %4728 = vmatpush1.bf16.msra.mxu0 %v6532_v58  ;;  %5056 = vmatpush1.bf16.msra.mxu1 %v6535_v59  ;;  %v6627_v58 = vld [vmem:[%s7815_s5 + $0xf08] ss:$16 sps:$4 sm:$0xff]   ;;  %v6632_v59 = vld [vmem:[%s7815_s5 + $0xf24] ss:$16 sps:$4 sm:$0xff]  }
 0x2bf   : > { %4729 = vmatprep.subr.bf16.mxu0 %v6540_v60  ;;  %5057 = vmatprep.subr.bf16.mxu1 %v6543_v61  ;;  %v6635_v60 = vld [vmem:[%s7815_s5 + $0xf2c] ss:$16 sps:$4 sm:$0xff]   ;;  %v6630_v61 = vld [vmem:[%s7815_s5 + $0xf20] ss:$16 sps:$4 sm:$0xff]  }
 0x2c2   : > { %4730 = vmatpush1.bf16.msra.mxu0 %v6538_v62  ;;  %5058 = vmatpush1.bf16.msra.mxu1 %v6541_v63  ;;  %v6633_v62 = vld [vmem:[%s7815_s5 + $0xf28] ss:$16 sps:$4 sm:$0xff]   ;;  %v6638_v63 = vld [vmem:[%s7815_s5 + $0xf44] ss:$16 sps:$4 sm:$0xff]  }
 0x2c3   : > { %4731 = vmatprep.subr.bf16.mxu0 %v6546_v1  ;;  %5059 = vmatprep.subr.bf16.mxu1 %v6549_v2  ;;  %v6641_v1 = vld [vmem:[%s7815_s5 + $0xf4c] ss:$16 sps:$4 sm:$0xff]   ;;  %v6636_v2 = vld [vmem:[%s7815_s5 + $0xf40] ss:$16 sps:$4 sm:$0xff]  }
 0x2c6   : > { %4732 = vmatpush1.bf16.msra.mxu0 %v6544_v3  ;;  %5060 = vmatpush1.bf16.msra.mxu1 %v6547_v4  ;;  %v6639_v3 = vld [vmem:[%s7815_s5 + $0xf48] ss:$16 sps:$4 sm:$0xff]   ;;  %v6644_v4 = vld [vmem:[%s7815_s5 + $0xf64] ss:$16 sps:$4 sm:$0xff]  }
 0x2c7   : > { %4733 = vmatprep.subr.bf16.mxu0 %v6552_v5  ;;  %5061 = vmatprep.subr.bf16.mxu1 %v6555_v6  ;;  %v6647_v5 = vld [vmem:[%s7815_s5 + $0xf6c] ss:$16 sps:$4 sm:$0xff]   ;;  %v6642_v6 = vld [vmem:[%s7815_s5 + $0xf60] ss:$16 sps:$4 sm:$0xff]  }
 0x2ca   : > { %4734 = vmatpush1.bf16.msra.mxu0 %v6550_v7  ;;  %5062 = vmatpush1.bf16.msra.mxu1 %v6553_v8  ;;  %v6645_v7 = vld [vmem:[%s7815_s5 + $0xf68] ss:$16 sps:$4 sm:$0xff]   ;;  %v6650_v8 = vld [vmem:[%s7815_s5 + $0xf84] ss:$16 sps:$4 sm:$0xff]  }
 0x2cb   : > { %4735 = vmatprep.subr.bf16.mxu0 %v6558_v9  ;;  %5063 = vmatprep.subr.bf16.mxu1 %v6561_v10  ;;  %v6653_v9 = vld [vmem:[%s7815_s5 + $0xf8c] ss:$16 sps:$4 sm:$0xff]   ;;  %v6648_v10 = vld [vmem:[%s7815_s5 + $0xf80] ss:$16 sps:$4 sm:$0xff]  }
 0x2ce   : > { %4736 = vmatpush1.bf16.msra.mxu0 %v6556_v0  ;;  %5064 = vmatpush1.bf16.msra.mxu1 %v6559_v12  ;;  %v6651_v0 = vld [vmem:[%s7815_s5 + $0xf88] ss:$16 sps:$4 sm:$0xff]   ;;  %v6656_v12 = vld [vmem:[%s7815_s5 + $0xfa4] ss:$16 sps:$4 sm:$0xff]  }
 0x2cf   : > { %4737 = vmatprep.subr.bf16.mxu0 %v6564_v14  ;;  %5065 = vmatprep.subr.bf16.mxu1 %v6567_v15  ;;  %v6659_v14 = vld [vmem:[%s7815_s5 + $0xfac] ss:$16 sps:$4 sm:$0xff]   ;;  %v6654_v15 = vld [vmem:[%s7815_s5 + $0xfa0] ss:$16 sps:$4 sm:$0xff]  }
 0x2d2   : > { %4738 = vmatpush1.bf16.msra.mxu0 %v6562_v16  ;;  %5066 = vmatpush1.bf16.msra.mxu1 %v6565_v17  ;;  %v6657_v16 = vld [vmem:[%s7815_s5 + $0xfa8] ss:$16 sps:$4 sm:$0xff]   ;;  %v6662_v17 = vld [vmem:[%s7815_s5 + $0xfc4] ss:$16 sps:$4 sm:$0xff]  }
 0x2d3   : > { %4739 = vmatprep.subr.bf16.mxu0 %v6570_v19  ;;  %5067 = vmatprep.subr.bf16.mxu1 %v6573_v13  ;;  %v6665_v19 = vld [vmem:[%s7815_s5 + $0xfcc] ss:$16 sps:$4 sm:$0xff]   ;;  %v6660_v13 = vld [vmem:[%s7815_s5 + $0xfc0] ss:$16 sps:$4 sm:$0xff]  }
 0x2d6   : > { %4740 = vmatpush1.bf16.msra.mxu0 %v6568_v20  ;;  %5068 = vmatpush1.bf16.msra.mxu1 %v6571_v21  ;;  %v6663_v20 = vld [vmem:[%s7815_s5 + $0xfc8] ss:$16 sps:$4 sm:$0xff]   ;;  %v6668_v21 = vld [vmem:[%s7815_s5 + $0xfe4] ss:$16 sps:$4 sm:$0xff]  }
 0x2d7   : > { %4750 = vmatprep.subr.bf16.mxu0 %v6578_v23  ;;  %5078 = vmatprep.subr.bf16.mxu1 %v6581_v11  ;;  %v6671_v23 = vld [vmem:[%s7815_s5 + $0xfec] ss:$16 sps:$4 sm:$0xff]   ;;  %v6666_v11 = vld [vmem:[%s7815_s5 + $0xfe0] ss:$16 sps:$4 sm:$0xff]  }
 0x2d9   : > { %4742 = vmatmul.mubr.bf16.vlgmr.msra.gmra.mrb[0].mxu0 %v5271_v24  ;;  %5070 = vmatmul.mubr.bf16.vlgmr.msra.gmra.mrb[0].mxu1 %v5271_v24  ;;  %v6669_v24 = vld [vmem:[%s7815_s5 + $0xfe8] ss:$16 sps:$4 sm:$0xff]   ;;  %s1303_s5 = scalar_lea.vmem %s8419_s3, %s5258_s30 }
 0x2da   : > { %4751 = vmatpush1.bf16.msra.mxu0 %v6576_v18  ;;  %5079 = vmatpush1.bf16.msra.mxu1 %v6579_v26  ;;  %v5273_v18 = vcombine.low %v8326_v25, %v8326_v25  ;;  %v1827_v26 = vlaneseq }
 0x2db   : > { %4752 = vmatprep.subr.bf16.mxu0 %v6584_v27  ;;  %5080 = vmatprep.subr.bf16.mxu1 %v6587_v28 }
 0x2dc   : > { %4782 = vmatprep.mubr.bf16.mxu0 %v5274_v22  ;;  %5110 = vmatprep.mubr.bf16.mxu1 %v5274_v22  ;;  %v1828_v27 = vshrl.u32 %v1827_v26, 7 }
 0x2de   : > { %4753 = vmatpush1.bf16.msra.mxu0 %v6582_v29  ;;  %5081 = vmatpush1.bf16.msra.mxu1 %v6585_v30  ;;  %v1829_v28 = vsub.s32 0, %v1828_v27  ;;  %v1837_v22 = vsub.s32 2, %v1828_v27  ;;  %v1825_v29 = vld [vmem:[%s1293_s29] sm:$0xf]  ;;  %v1833_v30 = vsub.s32 1, %v1828_v27 }
 0x2df   : > { %4754 = vmatprep.subr.bf16.mxu0 %v6590_v31  ;;  %5082 = vmatprep.subr.bf16.mxu1 %v6593_v32  ;;  %v1841_v31 = vsub.s32 3, %v1828_v27 }
 0x2e0   : > { %v1830_v25 = vrot.slane %v1825_v29, %v1829_v28  ;;  %v1838_v32 = vrot.slane %v1825_v29, %v1837_v22 }
 0x2e2   : > { %4755 = vmatpush1.bf16.msra.mxu0 %v6588_v33  ;;  %5083 = vmatpush1.bf16.msra.mxu1 %v6591_v34  ;;  %v1834_v33 = vrot.slane %v1825_v29, %v1833_v30  ;;  %v1842_v34 = vrot.slane %v1825_v29, %v1841_v31 }
 0x2e3   : > { %4756 = vmatprep.subr.bf16.mxu0 %v6596_v35  ;;  %5084 = vmatprep.subr.bf16.mxu1 %v6599_v36 }
 0x2e6   : > { %4757 = vmatpush1.bf16.msra.mxu0 %v6594_v37  ;;  %5085 = vmatpush1.bf16.msra.mxu1 %v6597_v38 }
 0x2e7   : > { %4758 = vmatprep.subr.bf16.mxu0 %v6602_v39  ;;  %5086 = vmatprep.subr.bf16.mxu1 %v6605_v40 }
 0x2ea   : > { %4759 = vmatpush1.bf16.msra.mxu0 %v6600_v41  ;;  %5087 = vmatpush1.bf16.msra.mxu1 %v6603_v42 }
 0x2eb   : > { %4760 = vmatprep.subr.bf16.mxu0 %v6608_v43  ;;  %5088 = vmatprep.subr.bf16.mxu1 %v6611_v44 }
 0x2ee   : > { %4761 = vmatpush1.bf16.msra.mxu0 %v6606_v45  ;;  %5089 = vmatpush1.bf16.msra.mxu1 %v6609_v46 }
 0x2ef   : > { %4762 = vmatprep.subr.bf16.mxu0 %v6614_v47  ;;  %5090 = vmatprep.subr.bf16.mxu1 %v6617_v48 }
 0x2f2   : > { %4763 = vmatpush1.bf16.msra.mxu0 %v6612_v49  ;;  %5091 = vmatpush1.bf16.msra.mxu1 %v6615_v50 }
 0x2f3   : > { %4764 = vmatprep.subr.bf16.mxu0 %v6620_v51  ;;  %5092 = vmatprep.subr.bf16.mxu1 %v6623_v52 }
 0x2f6   : > { %4765 = vmatpush1.bf16.msra.mxu0 %v6618_v53  ;;  %5093 = vmatpush1.bf16.msra.mxu1 %v6621_v54 }
 0x2f7   : > { %4766 = vmatprep.subr.bf16.mxu0 %v6626_v55  ;;  %5094 = vmatprep.subr.bf16.mxu1 %v6629_v56 }
 0x2fa   : > { %4767 = vmatpush1.bf16.msra.mxu0 %v6624_v57  ;;  %5095 = vmatpush1.bf16.msra.mxu1 %v6627_v58 }
 0x2fb   : > { %4768 = vmatprep.subr.bf16.mxu0 %v6632_v59  ;;  %5096 = vmatprep.subr.bf16.mxu1 %v6635_v60 }
 0x2fe   : > { %4769 = vmatpush1.bf16.msra.mxu0 %v6630_v61  ;;  %5097 = vmatpush1.bf16.msra.mxu1 %v6633_v62 }
 0x2ff   : > { %4770 = vmatprep.subr.bf16.mxu0 %v6638_v63  ;;  %5098 = vmatprep.subr.bf16.mxu1 %v6641_v1 }
 0x302   : > { %4771 = vmatpush1.bf16.msra.mxu0 %v6636_v2  ;;  %5099 = vmatpush1.bf16.msra.mxu1 %v6639_v3 }
 0x303   : > { %4772 = vmatprep.subr.bf16.mxu0 %v6644_v4  ;;  %5100 = vmatprep.subr.bf16.mxu1 %v6647_v5 }
 0x306   : > { %4773 = vmatpush1.bf16.msra.mxu0 %v6642_v6  ;;  %5101 = vmatpush1.bf16.msra.mxu1 %v6645_v7 }
 0x307   : > { %4774 = vmatprep.subr.bf16.mxu0 %v6650_v8  ;;  %5102 = vmatprep.subr.bf16.mxu1 %v6653_v9 }
 0x30a   : > { %4775 = vmatpush1.bf16.msra.mxu0 %v6648_v10  ;;  %5103 = vmatpush1.bf16.msra.mxu1 %v6651_v0 }
 0x30b   : > { %4776 = vmatprep.subr.bf16.mxu0 %v6656_v12  ;;  %5104 = vmatprep.subr.bf16.mxu1 %v6659_v14 }
 0x30e   : > { %4777 = vmatpush1.bf16.msra.mxu0 %v6654_v15  ;;  %5105 = vmatpush1.bf16.msra.mxu1 %v6657_v16 }
 0x30f   : > { %4778 = vmatprep.subr.bf16.mxu0 %v6662_v17  ;;  %5106 = vmatprep.subr.bf16.mxu1 %v6665_v19 }
 0x312   : > { %4779 = vmatpush1.bf16.msra.mxu0 %v6660_v13  ;;  %5107 = vmatpush1.bf16.msra.mxu1 %v6663_v20 }
 0x313   : > { %4780 = vmatprep.subr.bf16.mxu0 %v6668_v21  ;;  %5108 = vmatprep.subr.bf16.mxu1 %v6671_v23 }
 0x316   : > { %4781 = vmatpush1.bf16.msra.mxu0 %v6666_v11  ;;  %5109 = vmatpush1.bf16.msra.mxu1 %v6669_v24 }
 0x319   : > { %4783 = vmatmul.mubr.bf16.vlgmr.msra.gmra.mrb[0].mxu0 %v5273_v18  ;;  %5111 = vmatmul.mubr.bf16.vlgmr.msra.gmra.mrb[0].mxu1 %v5273_v18 }
 0x3ec   : > { %v4784_v35 = vpop.f32.mrb[0].mxu0  ;;  %v5112_v36 = vpop.f32.mrb[0].mxu1 }
 0x3ed   : > { %v5790_v37 = vadd.f32 %v4784_v35, %v1830_v25  ;;  %v5792_v38 = vadd.f32 %v5112_v36, %v1838_v32  ;;  %v4786_v39 = vpop.f32.mrb[1].mxu0  ;;  %v5114_v40 = vpop.f32.mrb[1].mxu1 }
 0x3ee   : > { %v5791_v41 = vadd.f32 %v4786_v39, %v1834_v33  ;;  %v5793_v42 = vadd.f32 %v5114_v40, %v1842_v34  ;;  %v4788_v43 = vpop.f32.mrb[2].mxu0  ;;  %v5116_v44 = vpop.f32.mrb[2].mxu1 }
 0x3ef   : > { %5119 = vst [vmem:[%s1303_s5] sm:$0xff] %v5790_v37  ;;  %5121 = vst [vmem:[%s1303_s5 + $0x10] sm:$0xff] %v5792_v38  ;;  %v4789_v45 = vpop.f32.mrb[3].mxu0  ;;  %v5117_v46 = vpop.f32.mrb[3].mxu1 }
 0x3f0   : > { %5120 = vst [vmem:[%s1303_s5 + $0x8] sm:$0xff] %v5791_v41  ;;  %5122 = vst [vmem:[%s1303_s5 + $0x18] sm:$0xff] %v5793_v42 }
 0x3f1 PF: > { %s13_s16 = sadd.s32 1, %s6712_s16   ;;  %s8420_s12 = smov %s6700_s13 }
 0x3f2   : > { %p10_p10 = scmp.ge.s32.totalorder %s13_s16, 6   ;;  %s8421_s13 = smov %s6769_s20 }
 0x3f3   : > { %s8422_s14 = smov %s6708_s15  ;;  %s8423_s15 = smov %s8425_s17 }
 0x3f4   :  { %12 = sbr.rel (!%p10_p10) target bundleno = 3 (0x3), region = 96 }

// kernel: crnn_forward.9
= control target key start
LH: loop header
LB: loop body
LE: loop exit
PB: predicated region body
PF: predicated region fallthrough
CT: control target
= control target key end

     0   :  { %s624_s1 = inlined_call_operand.vmem [shape: bf16[512,128], index: 1, kind: input, shape index: {}]   ;;  %s625_s0 = inlined_call_operand.vmem [shape: bf16[8,512], index: 0, kind: input, shape index: {}]   ;;  %s626_s2 = inlined_call_operand.vmem [shape: f32[1,128], index: 2, kind: input, shape index: {}]   ;;  %s627_s3 = inlined_call_operand.vmem [shape: f32[8,128], index: 3, kind: output, shape index: {}]  }
   0x1   :  { %v460_v0 = vld [vmem:[%s624_s1 + $0x40] sm:$0xff]   ;;  %v464_v4 = vld [vmem:[%s624_s1 + $0x48] sm:$0xff]   ;;  %v468_v8 = vld [vmem:[%s624_s1 + $0x50] sm:$0xff]  }
   0x2   :  { %v461_v1 = vld [vmem:[%s624_s1 + $0xc0] sm:$0xff]   ;;  %416 = vmatprep.subr.bf16.mxu0 %v460_v0  ;;  %v465_v5 = vld [vmem:[%s624_s1 + $0xc8] sm:$0xff]   ;;  %v469_v9 = vld [vmem:[%s624_s1 + $0xd0] sm:$0xff]  }
   0x3   :  { %v462_v2 = vld [vmem:[%s624_s1] sm:$0xff]   ;;  %438 = vmatprep.subr.bf16.mxu1 %v461_v1  ;;  %v466_v6 = vld [vmem:[%s624_s1 + $0x8] sm:$0xff]   ;;  %v470_v10 = vld [vmem:[%s624_s1 + $0x10] sm:$0xff]  }
   0x4   :  { %v463_v3 = vld [vmem:[%s624_s1 + $0x80] sm:$0xff]   ;;  %417 = vmatpush3.bf16.msra.mxu0 %v462_v2  ;;  %v467_v7 = vld [vmem:[%s624_s1 + $0x88] sm:$0xff]   ;;  %v471_v11 = vld [vmem:[%s624_s1 + $0x90] sm:$0xff]  }
   0x5   :  { %439 = vmatpush3.bf16.msra.mxu1 %v463_v3  ;;  %418 = vmatprep.subr.bf16.mxu0 %v464_v4  ;;  %v472_v12 = vld [vmem:[%s624_s1 + $0x58] sm:$0xff]   ;;  %v476_v16 = vld [vmem:[%s624_s1 + $0x60] sm:$0xff]   ;;  %v480_v20 = vld [vmem:[%s624_s1 + $0x68] sm:$0xff]  }
   0x6   :  { %440 = vmatprep.subr.bf16.mxu1 %v465_v5  ;;  %v473_v13 = vld [vmem:[%s624_s1 + $0xd8] sm:$0xff]   ;;  %v477_v17 = vld [vmem:[%s624_s1 + $0xe0] sm:$0xff]   ;;  %v481_v21 = vld [vmem:[%s624_s1 + $0xe8] sm:$0xff]  }
   0x7   :  { %v474_v14 = vld [vmem:[%s624_s1 + $0x18] sm:$0xff]   ;;  %v478_v18 = vld [vmem:[%s624_s1 + $0x20] sm:$0xff]   ;;  %v482_v22 = vld [vmem:[%s624_s1 + $0x28] sm:$0xff]  }
   0x8   :  { %419 = vmatpush3.bf16.msra.mxu0 %v466_v6  ;;  %v475_v15 = vld [vmem:[%s624_s1 + $0x98] sm:$0xff]   ;;  %v479_v19 = vld [vmem:[%s624_s1 + $0xa0] sm:$0xff]   ;;  %v483_v23 = vld [vmem:[%s624_s1 + $0xa8] sm:$0xff]  }
   0x9   :  { %441 = vmatpush3.bf16.msra.mxu1 %v467_v7  ;;  %420 = vmatprep.subr.bf16.mxu0 %v468_v8  ;;  %v484_v24 = vld [vmem:[%s624_s1 + $0x70] sm:$0xff]   ;;  %v488_v28 = vld [vmem:[%s624_s1 + $0x78] sm:$0xff]   ;;  %v15_v32 = vld [vmem:[%s625_s0] sm:$0xff] }
   0xa   :  { %442 = vmatprep.subr.bf16.mxu1 %v469_v9  ;;  %v485_v25 = vld [vmem:[%s624_s1 + $0xf0] sm:$0xff]   ;;  %v489_v29 = vld [vmem:[%s624_s1 + $0xf8] sm:$0xff]   ;;  %v16_v33 = vld [vmem:[%s625_s0 + $0x8] sm:$0xff]  ;;  %v380_v34 = vcombine.low %v15_v32, %v15_v32  ;;  %v381_v35 = vcombine.high %v15_v32, %v15_v32 }
   0xb   :  { %v486_v26 = vld [vmem:[%s624_s1 + $0x30] sm:$0xff]   ;;  %v490_v30 = vld [vmem:[%s624_s1 + $0x38] sm:$0xff]   ;;  %v382_v36 = vcombine.low %v16_v33, %v16_v33  ;;  %v383_v37 = vcombine.high %v16_v33, %v16_v33  ;;  %v379_v40 = vld [vmem:[%s626_s2] ss:$0 sm:$0xff] }
   0xc   :  { %421 = vmatpush3.bf16.msra.mxu0 %v470_v10  ;;  %v487_v27 = vld [vmem:[%s624_s1 + $0xb0] sm:$0xff]   ;;  %v491_v31 = vld [vmem:[%s624_s1 + $0xb8] sm:$0xff]   ;;  %326 = vmatprep.mubr.bf16.mxu0 %v381_v35 }
   0xd   :  { %443 = vmatpush3.bf16.msra.mxu1 %v471_v11  ;;  %422 = vmatprep.subr.bf16.mxu0 %v472_v12 }
   0xe   :  { %444 = vmatprep.subr.bf16.mxu1 %v473_v13  ;;  %366 = vmatprep.mubr.bf16.mxu1 %v383_v37 }
  0x10   :  { %423 = vmatpush3.bf16.msra.mxu0 %v474_v14 }
  0x11   :  { %445 = vmatpush3.bf16.msra.mxu1 %v475_v15  ;;  %424 = vmatprep.subr.bf16.mxu0 %v476_v16 }
  0x12   :  { %446 = vmatprep.subr.bf16.mxu1 %v477_v17 }
  0x14   :  { %425 = vmatpush3.bf16.msra.mxu0 %v478_v18 }
  0x15   :  { %447 = vmatpush3.bf16.msra.mxu1 %v479_v19  ;;  %426 = vmatprep.subr.bf16.mxu0 %v480_v20 }
  0x16   :  { %448 = vmatprep.subr.bf16.mxu1 %v481_v21 }
  0x18   :  { %427 = vmatpush3.bf16.msra.mxu0 %v482_v22 }
  0x19   :  { %449 = vmatpush3.bf16.msra.mxu1 %v483_v23  ;;  %428 = vmatprep.subr.bf16.mxu0 %v484_v24 }
  0x1a   :  { %450 = vmatprep.subr.bf16.mxu1 %v485_v25 }
  0x1c   :  { %429 = vmatpush3.bf16.msra.mxu0 %v486_v26 }
  0x1d   :  { %451 = vmatpush3.bf16.msra.mxu1 %v487_v27  ;;  %430 = vmatprep.subr.bf16.mxu0 %v488_v28 }
  0x1e   :  { %452 = vmatprep.subr.bf16.mxu1 %v489_v29 }
  0x20   :  { %431 = vmatpush3.bf16.msra.mxu0 %v490_v30 }
  0x21   :  { %453 = vmatpush3.bf16.msra.mxu1 %v491_v31 }
  0x23   :  { %327 = vmatmul.mubr.bf16.vlgmr.msra.gmra.mrb[0].mxu0 %v380_v34 }
  0x24   :  { %367 = vmatmul.mubr.bf16.vlgmr.msra.gmra.mrb[0].mxu1 %v382_v36 }
  0xf6   :  { %v432_v38 = vpop.f32.mrb[0].mxu0 }
  0xf7   :  { %v454_v39 = vpop.f32.mrb[0].mxu1  ;;  %v433_v41 = vpop.f32.mrb[1].mxu0 }
  0xf8   :  { %v455_v42 = vpop.f32.mrb[1].mxu1  ;;  %v434_v43 = vadd.f32 %v433_v41, %v432_v38  ;;  %v435_v45 = vpop.f32.mrb[2].mxu0 }
  0xf9   :  { %v456_v44 = vadd.f32 %v455_v42, %v454_v39  ;;  %v457_v46 = vpop.f32.mrb[2].mxu1  ;;  %v436_v47 = vpop.f32.mrb[3].mxu0 }
  0xfa   :  { %v458_v48 = vpop.f32.mrb[3].mxu1  ;;  %v329_v49 = vadd.f32 %v434_v43, %v379_v40 }
  0xfc   :  { %v369_v50 = vadd.f32 %v456_v44, %v329_v49 }
  0xfe   :  { %374 = vst [vmem:[%s627_s3] sm:$0xff] %v369_v50 }

// kernel: crnn_forward.8
= control target key start
LH: loop header
LB: loop body
LE: loop exit
PB: predicated region body
PF: predicated region fallthrough
CT: control target
= control target key end

     0   :  { %s5296_s9 = smov 0   ;;  %s5298_s10 = smov 0   ;;  %s6770_s0 = inlined_call_operand.vmem [shape: f32[4,2,2048], index: 0, kind: input, shape index: {}]   ;;  %s6771_s1 = inlined_call_operand.vmem [shape: bf16[2,256,1024], index: 1, kind: input, shape index: {}]   ;;  %s6772_s2 = inlined_call_operand.vmem [shape: f32[4,2,512], index: 2, kind: output, shape index: {}]  }
   0x1   :  { %s5300_s11 = smov 0   ;;  %s5302_s12 = smov 0  }
   0x2   :  { %s5304_s13 = smov 0  }
   0x3 LB: > { %s24_s14 = sadd.s32 1, %s5273_s12  ;;  %s4556_s15 = sadd.s32 4294967295, %s5277_s13   ;;  %s5277_s13 = sphi %s5304_s13, %s12_s13   ;;  %s5273_s12 = sphi %s5302_s12, %s7218_s12   ;;  %s5269_s11 = sphi %s5300_s11, %s7217_s11   ;;  %s5265_s10 = sphi %s5298_s10, %s7216_s10   ;;  %s5261_s9 = sphi %s5296_s9, %s7215_s9  }
   0x4   : > { %p26_p0 = scmp.ge.s32.totalorder %s24_s14, 2  ;;  %p46_p1 = scmp.ne.s32.totalorder %s5265_s10, %s5261_s9 }
   0x5   : > { %p47_p2 = scmp.eq.s32.totalorder %s5277_s13, 0  ;;  %p110_p4 = scmp.eq.s32.totalorder %s4556_s15, 1 }
   0x6   : > { %s7220_s14 = smov (%p26_p0, %s24_s14), 0  ;;  %s39_s17 = sadd.s32 1, %s5265_s10 }
   0x7   : > { %p48_p3 = por %p47_p2, %p46_p1  ;;  %s35_s16 = ssub.s32 %s5273_s12, %s7220_s14 }
   0x8   : > { %p37_p5 = scmp.eq.s32.totalorder %s35_s16, 0  ;;  %p5331_p6 = por %p110_p4, %p46_p1 }
   0x9   : > { %p4563_p7 = scmp.ge.s32.totalorder %s5277_s13, 2 }
   0xa   : > { %s5336_s19 = scalar_select %p37_p5, %s5265_s10, %s39_s17  }
   0xb   : > { %132 = sbr.rel (%p4563_p7) target bundleno = 26 (0x1a), region = 16 }
  0x12   : > { %135 = sbr.rel (!%p48_p3) target bundleno = 26 (0x1a), region = 20  ;;  %s137_s20 = sand.u32 (%p48_p3), 1, %s5265_s10  }
  0x13   : > { %s5122_s21 = sshll.u32 (%p48_p3), %s5273_s12, 4  ;;  %s4564_s22 = sshll.u32 (%p48_p3), %s137_s20, 6 }
  0x14   : > { %s148_s25 = scalar_lea.vmem (%p48_p3), %s6770_s0, %s5122_s21  ;;  %s139_s26 = scalar_lea.vmem (%p48_p3), [#allocation4], %s4564_s22 }
  0x15   : > { %v161_v0 = vld [vmem:[%s148_s25] sm:$0xff] (%p48_p3)  ;;  %v163_v1 = vld [vmem:[%s148_s25 + $0x8] sm:$0xff] (%p48_p3) }
  0x16   : > { %v165_v2 = vld [vmem:[%s148_s25 + $0x20] sm:$0xff] (%p48_p3)  ;;  %162 = vst [vmem:[%s139_s26] sm:$0xff] (%p48_p3), %v161_v0  ;;  %164 = vst [vmem:[%s139_s26 + $0x8] sm:$0xff] (%p48_p3), %v163_v1  ;;  %v167_v3 = vld [vmem:[%s148_s25 + $0x28] sm:$0xff] (%p48_p3) }
  0x17   : > { %166 = vst [vmem:[%s139_s26 + $0x10] sm:$0xff] (%p48_p3), %v165_v2  ;;  %v169_v4 = vld [vmem:[%s148_s25 + $0x40] sm:$0xff] (%p48_p3)  ;;  %v171_v5 = vld [vmem:[%s148_s25 + $0x48] sm:$0xff] (%p48_p3)  ;;  %168 = vst [vmem:[%s139_s26 + $0x18] sm:$0xff] (%p48_p3), %v167_v3 }
  0x18   : > { %170 = vst [vmem:[%s139_s26 + $0x20] sm:$0xff] (%p48_p3), %v169_v4  ;;  %172 = vst [vmem:[%s139_s26 + $0x28] sm:$0xff] (%p48_p3), %v171_v5  ;;  %v173_v6 = vld [vmem:[%s148_s25 + $0x60] sm:$0xff] (%p48_p3)  ;;  %v175_v7 = vld [vmem:[%s148_s25 + $0x68] sm:$0xff] (%p48_p3) }
  0x19   : > { %174 = vst [vmem:[%s139_s26 + $0x30] sm:$0xff] %v173_v6  ;;  %176 = vst [vmem:[%s139_s26 + $0x38] sm:$0xff] %v175_v7 }
  0x1a PF: > { %p4568_p8 = scmp.ge.s32.totalorder %s5277_s13, 1  ;;  %p189_p9 = scmp.lt.s32.totalorder %s5277_s13, 3 }
  0x1c   : > { %p190_p10 = pnand %p4568_p8, %p189_p9 }
  0x1e   : > { %193 = sbr.rel (%p190_p10) target bundleno = 1402 (0x57a), region = 47 }
  0x25   : > { %p226_p11 = scmp.lt.s32.totalorder %s5269_s11, 1  ;;  %v5279_v8 = vmov 0.0   ;;  %s196_s4 = sand.u32 1, %s5261_s9  }
  0x26   : > { %240 = vst [vmem:[#allocation2] sm:$0xf] %v5279_v8  ;;  %241 = vst [vmem:[#allocation3] sm:$0xf] %v5279_v8  ;;  %s4569_s5 = sshll.u32 %s196_s4, 6  ;;  %s5124_s6 = smul.u32 48, %s5269_s11 }
  0x27   : > { %s227_s27 = scalar_select %p226_p11, %s5269_s11, 1 }
  0x28   : > { %s5957_s7 = scalar_lea.vmem [#allocation4], %s4569_s5  ;;  %s4570_s15 = sshll.u32 %s196_s4, 4 }
  0x29   : > { %s5123_s28 = sshll.u32 %s227_s27, 10  ;;  %s247_s8 = scalar_lea.vmem %s5957_s7, %s5124_s6 [#allocation4] }
  0x2a   : > { %s5351_s3 = scalar_lea.vmem %s6771_s1, %s5123_s28  ;;  %s5125_s16 = smul.u32 12, %s5269_s11 }
  0x2b   : > { %v263_v9 = vld [vmem:[%s5351_s3] sm:$0xff]  ;;  %v264_v11 = vld [vmem:[%s5351_s3 + $0x8] sm:$0xff]  ;;  %s5968_s17 = scalar_lea.vmem [#allocation5], %s4570_s15  ;;  %s4709_s9 = sshll.u32 %s5269_s11, 1 }
  0x2c   : > { %v267_v10 = vld [vmem:[%s5351_s3 + $0x20] sm:$0xff]  ;;  %v268_v13 = vld [vmem:[%s5351_s3 + $0x28] sm:$0xff]  ;;  %s1273_s20 = scalar_lea.vmem %s5968_s17, %s5125_s16 [#allocation5]  ;;  %s6314_s21 = smul.u32 3, %s5269_s11 }
  0x2d   : > { %v5356_v12 = vcombine.high %v263_v9, %v267_v10  ;;  %v5359_v14 = vcombine.low %v263_v9, %v267_v10  ;;  %v271_v15 = vld [vmem:[%s5351_s3 + $0x40] sm:$0xff]  ;;  %v5363_v17 = vcombine.high %v264_v11, %v268_v13  ;;  %v5365_v18 = vcombine.low %v264_v11, %v268_v13  ;;  %v272_v20 = vld [vmem:[%s5351_s3 + $0x48] sm:$0xff]  ;;  %s6316_s22 = ssub.s32 1, %s4709_s9  ;;  %s5132_s9 = sshll.u32 (%p5331_p6), %s5269_s11, 2 }
  0x2e   : > { %v275_v16 = vld [vmem:[%s5351_s3 + $0x60] sm:$0xff]  ;;  %v276_v21 = vld [vmem:[%s5351_s3 + $0x68] sm:$0xff]  ;;  %s6320_s23 = sadd.s32 %s6316_s22, %s6314_s21  ;;  %s4845_s28 = sshll.u32 %s6316_s22, 1 }
  0x2f   : > { %v5367_v19 = vcombine.high %v271_v15, %v275_v16  ;;  %v279_v22 = vld [vmem:[%s5351_s3 + $0x80] sm:$0xff]  ;;  %1031 = vmatprep.subr.bf16.mxu0 %v5356_v12  ;;  %v5373_v23 = vcombine.high %v272_v20, %v276_v21  ;;  %v280_v25 = vld [vmem:[%s5351_s3 + $0x88] sm:$0xff]  ;;  %1072 = vmatprep.subr.bf16.mxu1 %v5363_v17  ;;  %v5380_v27 = vcombine.low %v271_v15, %v275_v16  ;;  %s5126_s24 = sshll.u32 %s6320_s23, 4  ;;  %s5127_s26 = sshll.u32 %s6320_s23, 2 }
  0x30   : > { %v283_v24 = vld [vmem:[%s5351_s3 + $0xa0] sm:$0xff]  ;;  %v284_v26 = vld [vmem:[%s5351_s3 + $0xa8] sm:$0xff]  ;;  %1032 = vmatpush1.bf16.msra.mxu0 %v5359_v14  ;;  %1073 = vmatpush1.bf16.msra.mxu1 %v5365_v18  ;;  %v5384_v28 = vcombine.low %v272_v20, %v276_v21  ;;  %s1280_s25 = scalar_lea.vmem %s5957_s7, %s5126_s24 [#allocation4]  ;;  %s2306_s27 = scalar_lea.vmem %s5968_s17, %s5127_s26 [#allocation5] }
  0x31   : > { %1033 = vmatprep.subr.bf16.mxu0 %v5367_v19  ;;  %v5386_v29 = vcombine.high %v279_v22, %v283_v24  ;;  %1074 = vmatprep.subr.bf16.mxu1 %v5373_v23  ;;  %v5389_v30 = vcombine.high %v280_v25, %v284_v26  ;;  %v287_v31 = vld [vmem:[%s5351_s3 + $0xc0] sm:$0xff]  ;;  %v288_v33 = vld [vmem:[%s5351_s3 + $0xc8] sm:$0xff]  ;;  %v5396_v35 = vcombine.low %v279_v22, %v283_v24  ;;  %s6651_s29 = sadd.s32 %s4845_s28, %s6314_s21  ;;  %s3340_s6 = smul.u32 3, %s6316_s22 }
  0x32   : > { %v291_v32 = vld [vmem:[%s5351_s3 + $0xe0] sm:$0xff]  ;;  %v292_v34 = vld [vmem:[%s5351_s3 + $0xe8] sm:$0xff]  ;;  %v5400_v36 = vcombine.low %v280_v25, %v284_v26  ;;  %s5128_s30 = sshll.u32 %s6651_s29, 4  ;;  %s5129_s4 = sshll.u32 %s6651_s29, 2 }
  0x33   : > { %v5402_v37 = vcombine.high %v287_v31, %v291_v32  ;;  %v5405_v38 = vcombine.high %v288_v33, %v292_v34  ;;  %v295_v39 = vld [vmem:[%s5351_s3 + $0x100] sm:$0xff]  ;;  %v296_v41 = vld [vmem:[%s5351_s3 + $0x108] sm:$0xff]  ;;  %v5412_v43 = vcombine.low %v287_v31, %v291_v32  ;;  %v5416_v44 = vcombine.low %v288_v33, %v292_v34  ;;  %s3338_s5 = scalar_lea.vmem %s5968_s17, %s5129_s4 [#allocation5]  ;;  %s4389_s23 = scalar_lea.vmem (%p5331_p6), %s6772_s2, %s5132_s9 }
  0x34   : > { %1034 = vmatpush1.bf16.msra.mxu0 %v5380_v27  ;;  %1075 = vmatpush1.bf16.msra.mxu1 %v5384_v28  ;;  %v299_v40 = vld [vmem:[%s5351_s3 + $0x120] sm:$0xff]  ;;  %v300_v42 = vld [vmem:[%s5351_s3 + $0x128] sm:$0xff] }
  0x35   : > { %1035 = vmatprep.subr.bf16.mxu0 %v5386_v29  ;;  %1076 = vmatprep.subr.bf16.mxu1 %v5389_v30  ;;  %v5418_v45 = vcombine.high %v295_v39, %v299_v40  ;;  %v5421_v46 = vcombine.high %v296_v41, %v300_v42  ;;  %v303_v47 = vld [vmem:[%s5351_s3 + $0x140] sm:$0xff]  ;;  %v304_v49 = vld [vmem:[%s5351_s3 + $0x148] sm:$0xff]  ;;  %v5428_v51 = vcombine.low %v295_v39, %v299_v40 }
  0x36   : > { %v307_v48 = vld [vmem:[%s5351_s3 + $0x160] sm:$0xff]  ;;  %v308_v50 = vld [vmem:[%s5351_s3 + $0x168] sm:$0xff]  ;;  %v5432_v52 = vcombine.low %v296_v41, %v300_v42 }
  0x37   : > { %v5434_v53 = vcombine.high %v303_v47, %v307_v48  ;;  %v5437_v54 = vcombine.high %v304_v49, %v308_v50  ;;  %v311_v55 = vld [vmem:[%s5351_s3 + $0x180] sm:$0xff]  ;;  %v312_v57 = vld [vmem:[%s5351_s3 + $0x188] sm:$0xff]  ;;  %v5444_v59 = vcombine.low %v303_v47, %v307_v48  ;;  %v5448_v60 = vcombine.low %v304_v49, %v308_v50 }
  0x38   : > { %1036 = vmatpush1.bf16.msra.mxu0 %v5396_v35  ;;  %1077 = vmatpush1.bf16.msra.mxu1 %v5400_v36  ;;  %v315_v56 = vld [vmem:[%s5351_s3 + $0x1a0] sm:$0xff]  ;;  %v316_v58 = vld [vmem:[%s5351_s3 + $0x1a8] sm:$0xff] }
  0x39   : > { %1037 = vmatprep.subr.bf16.mxu0 %v5402_v37  ;;  %1078 = vmatprep.subr.bf16.mxu1 %v5405_v38  ;;  %v5450_v61 = vcombine.high %v311_v55, %v315_v56  ;;  %v5452_v62 = vld.sshfl [vmem:[#allocation2] sm:$0x33 pattern:$0x76325410]  ;;  %v5455_v63 = vcombine.high %v312_v57, %v316_v58  ;;  %v320_v3 = vld [vmem:[%s5351_s3 + $0x1c8] sm:$0xff]  ;;  %v5464_v5 = vcombine.low %v311_v55, %v315_v56 }
  0x3a   : > { %v319_v0 = vld [vmem:[%s5351_s3 + $0x1c0] sm:$0xff]  ;;  %v258_v2 = vcombine.high %v5452_v62, %v5452_v62  ;;  %v324_v4 = vld [vmem:[%s5351_s3 + $0x1e8] sm:$0xff]  ;;  %v5470_v7 = vcombine.low %v312_v57, %v316_v58 }
  0x3b   : > { %v323_v1 = vld [vmem:[%s5351_s3 + $0x1e0] sm:$0xff]  ;;  %v5475_v9 = vcombine.high %v320_v3, %v324_v4  ;;  %v328_v13 = vld [vmem:[%s5351_s3 + $0x208] sm:$0xff]  ;;  %v5488_v20 = vcombine.low %v320_v3, %v324_v4 }
  0x3c   : > { %1038 = vmatpush1.bf16.msra.mxu0 %v5412_v43  ;;  %1079 = vmatpush1.bf16.msra.mxu1 %v5416_v44  ;;  %v5466_v6 = vpack.c.bf16 %v258_v2, %v258_v2  ;;  %v5472_v8 = vcombine.high %v319_v0, %v323_v1  ;;  %v327_v10 = vld [vmem:[%s5351_s3 + $0x200] sm:$0xff]  ;;  %v332_v15 = vld [vmem:[%s5351_s3 + $0x228] sm:$0xff]  ;;  %v5484_v16 = vcombine.low %v319_v0, %v323_v1 }
  0x3d   : > { %1039 = vmatprep.subr.bf16.mxu0 %v5418_v45  ;;  %1080 = vmatprep.subr.bf16.mxu1 %v5421_v46  ;;  %v331_v11 = vld [vmem:[%s5351_s3 + $0x220] sm:$0xff]  ;;  %v5493_v22 = vcombine.high %v328_v13, %v332_v15  ;;  %v336_v26 = vld [vmem:[%s5351_s3 + $0x248] sm:$0xff]  ;;  %v5504_v33 = vcombine.low %v328_v13, %v332_v15 }
  0x3e   : > { %1063 = vmatprep.mubr.bf16.mxu0 %v5466_v6  ;;  %1104 = vmatprep.mubr.bf16.mxu1 %v5466_v6  ;;  %v5490_v21 = vcombine.high %v327_v10, %v331_v11  ;;  %v335_v24 = vld [vmem:[%s5351_s3 + $0x240] sm:$0xff]  ;;  %v340_v31 = vld [vmem:[%s5351_s3 + $0x268] sm:$0xff]  ;;  %v5500_v32 = vcombine.low %v327_v10, %v331_v11 }
  0x3f   : > { %v339_v25 = vld [vmem:[%s5351_s3 + $0x260] sm:$0xff]  ;;  %v5509_v39 = vcombine.high %v336_v26, %v340_v31  ;;  %v344_v42 = vld [vmem:[%s5351_s3 + $0x288] sm:$0xff]  ;;  %v5520_v49 = vcombine.low %v336_v26, %v340_v31 }
  0x40   : > { %1040 = vmatpush1.bf16.msra.mxu0 %v5428_v51  ;;  %1081 = vmatpush1.bf16.msra.mxu1 %v5432_v52  ;;  %v5506_v34 = vcombine.high %v335_v24, %v339_v25  ;;  %v343_v40 = vld [vmem:[%s5351_s3 + $0x280] sm:$0xff]  ;;  %v348_v47 = vld [vmem:[%s5351_s3 + $0x2a8] sm:$0xff]  ;;  %v5516_v48 = vcombine.low %v335_v24, %v339_v25 }
  0x41   : > { %1041 = vmatprep.subr.bf16.mxu0 %v5434_v53  ;;  %1082 = vmatprep.subr.bf16.mxu1 %v5437_v54  ;;  %v347_v41 = vld [vmem:[%s5351_s3 + $0x2a0] sm:$0xff]  ;;  %v5525_v55 = vcombine.high %v344_v42, %v348_v47  ;;  %v352_v58 = vld [vmem:[%s5351_s3 + $0x2c8] sm:$0xff]  ;;  %v5536_v2 = vcombine.low %v344_v42, %v348_v47 }
  0x42   : > { %v5522_v50 = vcombine.high %v343_v40, %v347_v41  ;;  %v351_v56 = vld [vmem:[%s5351_s3 + $0x2c0] sm:$0xff]  ;;  %v356_v0 = vld [vmem:[%s5351_s3 + $0x2e8] sm:$0xff]  ;;  %v5532_v1 = vcombine.low %v343_v40, %v347_v41 }
  0x43   : > { %v355_v57 = vld [vmem:[%s5351_s3 + $0x2e0] sm:$0xff]  ;;  %6921 = vst [vmem:[#allocation6_spill] sm:$0xff] %v5536_v2  ;;  %v5541_v4 = vcombine.high %v352_v58, %v356_v0  ;;  %v360_v13 = vld [vmem:[%s5351_s3 + $0x308] sm:$0xff]  ;;  %v5552_v25 = vcombine.low %v352_v58, %v356_v0 }
  0x44   : > { %1042 = vmatpush1.bf16.msra.mxu0 %v5444_v59  ;;  %1083 = vmatpush1.bf16.msra.mxu1 %v5448_v60  ;;  %v5538_v3 = vcombine.high %v351_v56, %v355_v57  ;;  %v359_v10 = vld [vmem:[%s5351_s3 + $0x300] sm:$0xff]  ;;  %v364_v15 = vld [vmem:[%s5351_s3 + $0x328] sm:$0xff]  ;;  %v5548_v24 = vcombine.low %v351_v56, %v355_v57 }
  0x45   : > { %1043 = vmatprep.subr.bf16.mxu0 %v5450_v61  ;;  %1084 = vmatprep.subr.bf16.mxu1 %v5455_v63  ;;  %6923 = vst [vmem:[#allocation8_spill] sm:$0xff] %v5541_v4  ;;  %v363_v11 = vld [vmem:[%s5351_s3 + $0x320] sm:$0xff]  ;;  %6925 = vst [vmem:[#allocation10_spill] sm:$0xff] %v5552_v25  ;;  %v5557_v31 = vcombine.high %v360_v13, %v364_v15  ;;  %v368_v42 = vld [vmem:[%s5351_s3 + $0x348] sm:$0xff]  ;;  %v5568_v57 = vcombine.low %v360_v13, %v364_v15 }
  0x46   : > { %6922 = vst [vmem:[#allocation7_spill] sm:$0xff] %v5538_v3  ;;  %6924 = vst [vmem:[#allocation9_spill] sm:$0xff] %v5548_v24  ;;  %v5554_v26 = vcombine.high %v359_v10, %v363_v11  ;;  %v367_v40 = vld [vmem:[%s5351_s3 + $0x340] sm:$0xff]  ;;  %v372_v47 = vld [vmem:[%s5351_s3 + $0x368] sm:$0xff]  ;;  %v5564_v56 = vcombine.low %v359_v10, %v363_v11 }
  0x47   : > { %6927 = vst [vmem:[#allocation12_spill] sm:$0xff] %v5557_v31  ;;  %v371_v41 = vld [vmem:[%s5351_s3 + $0x360] sm:$0xff]  ;;  %6929 = vst [vmem:[#allocation14_spill] sm:$0xff] %v5568_v57  ;;  %v5573_v0 = vcombine.high %v368_v42, %v372_v47  ;;  %v376_v10 = vld [vmem:[%s5351_s3 + $0x388] sm:$0xff]  ;;  %v5584_v13 = vcombine.low %v368_v42, %v372_v47 }
  0x48   : > { %1044 = vmatpush1.bf16.msra.mxu0 %v5464_v5  ;;  %1085 = vmatpush1.bf16.msra.mxu1 %v5470_v7  ;;  %6926 = vst [vmem:[#allocation11_spill] sm:$0xff] %v5554_v26  ;;  %6928 = vst [vmem:[#allocation13_spill] sm:$0xff] %v5564_v56  ;;  %v5570_v58 = vcombine.high %v367_v40, %v371_v41  ;;  %v380_v11 = vld [vmem:[%s5351_s3 + $0x3a8] sm:$0xff] }
  0x49   : > { %1045 = vmatprep.subr.bf16.mxu0 %v5472_v8  ;;  %1086 = vmatprep.subr.bf16.mxu1 %v5475_v9  ;;  %6931 = vst [vmem:[#allocation16_spill] sm:$0xff] %v5573_v0  ;;  %6933 = vst [vmem:[#allocation18_spill] sm:$0xff] %v5584_v13  ;;  %v5600_v42 = vcombine.low %v376_v10, %v380_v11 }
  0x4a   : > { %6930 = vst [vmem:[#allocation15_spill] sm:$0xff] %v5570_v58 }
  0x4b   : > { %6937 = vst [vmem:[#allocation22_spill] sm:$0xff] %v5600_v42 }
  0x4c   : > { %1046 = vmatpush1.bf16.msra.mxu0 %v5484_v16  ;;  %1087 = vmatpush1.bf16.msra.mxu1 %v5488_v20 }
  0x4d   : > { %1047 = vmatprep.subr.bf16.mxu0 %v5490_v21  ;;  %1088 = vmatprep.subr.bf16.mxu1 %v5493_v22 }
  0x50   : > { %1048 = vmatpush1.bf16.msra.mxu0 %v5500_v32  ;;  %1089 = vmatpush1.bf16.msra.mxu1 %v5504_v33 }
  0x51   : > { %1049 = vmatprep.subr.bf16.mxu0 %v5506_v34  ;;  %1090 = vmatprep.subr.bf16.mxu1 %v5509_v39 }
  0x54   : > { %1050 = vmatpush1.bf16.msra.mxu0 %v5516_v48  ;;  %1091 = vmatpush1.bf16.msra.mxu1 %v5520_v49 }
  0x55   : > { %1051 = vmatprep.subr.bf16.mxu0 %v5522_v50  ;;  %1092 = vmatprep.subr.bf16.mxu1 %v5525_v55 }
  0x58   : > { %1052 = vmatpush1.bf16.msra.mxu0 %v5532_v1  ;;  %1093 = vmatpush1.bf16.msra.mxu1 %v5536_v2  ;;  %v390_v2 = vld [vmem:[%s5351_s3 + $0x3f8] sm:$0xff] }
  0x59   : > { %1053 = vmatprep.subr.bf16.mxu0 %v5538_v3  ;;  %1094 = vmatprep.subr.bf16.mxu1 %v5541_v4  ;;  %v375_v4 = vld [vmem:[%s5351_s3 + $0x380] sm:$0xff]  ;;  %v277_v3 = vld [vmem:[%s5351_s3 + $0x70] sm:$0xff] }
  0x5c   : > { %1054 = vmatpush1.bf16.msra.mxu0 %v5548_v24  ;;  %1095 = vmatpush1.bf16.msra.mxu1 %v5552_v25  ;;  %v379_v24 = vld [vmem:[%s5351_s3 + $0x3a0] sm:$0xff]  ;;  %v5580_v25 = vcombine.low %v367_v40, %v371_v41  ;;  %v384_v40 = vld [vmem:[%s5351_s3 + $0x3c8] sm:$0xff] }
  0x5d   : > { %1055 = vmatprep.subr.bf16.mxu0 %v5554_v26  ;;  %1096 = vmatprep.subr.bf16.mxu1 %v5557_v31  ;;  %v5586_v15 = vcombine.high %v375_v4, %v379_v24  ;;  %v5589_v31 = vcombine.high %v376_v10, %v380_v11  ;;  %v383_v26 = vld [vmem:[%s5351_s3 + $0x3c0] sm:$0xff]  ;;  %v388_v41 = vld [vmem:[%s5351_s3 + $0x3e8] sm:$0xff] }
  0x5e   : > { %6932 = vst [vmem:[#allocation17_spill] sm:$0xff] %v5580_v25  ;;  %v5616_v10 = vcombine.low %v384_v40, %v388_v41 }
  0x5f   : > { %6934 = vst [vmem:[#allocation19_spill] sm:$0xff] %v5586_v15  ;;  %6935 = vst [vmem:[#allocation20_spill] sm:$0xff] %v5589_v31 }
  0x60   : > { %1056 = vmatpush1.bf16.msra.mxu0 %v5564_v56  ;;  %1097 = vmatpush1.bf16.msra.mxu1 %v5568_v57  ;;  %v387_v56 = vld [vmem:[%s5351_s3 + $0x3e0] sm:$0xff]  ;;  %v5596_v57 = vcombine.low %v375_v4, %v379_v24  ;;  %v266_v4 = vld [vmem:[%s5351_s3 + $0x18] sm:$0xff]  ;;  %6941 = vst [vmem:[#allocation26_spill] sm:$0xff] %v5616_v10 }
  0x61   : > { %1057 = vmatprep.subr.bf16.mxu0 %v5570_v58  ;;  %1098 = vmatprep.subr.bf16.mxu1 %v5573_v0  ;;  %v5602_v47 = vcombine.high %v383_v26, %v387_v56  ;;  %v5605_v0 = vcombine.high %v384_v40, %v388_v41  ;;  %v265_v58 = vld [vmem:[%s5351_s3 + $0x10] sm:$0xff]  ;;  %v270_v24 = vld [vmem:[%s5351_s3 + $0x38] sm:$0xff] }
  0x62   : > { %6936 = vst [vmem:[#allocation21_spill] sm:$0xff] %v5596_v57  ;;  %v5636_v41 = vcombine.low %v266_v4, %v270_v24 }
  0x63   : > { %6938 = vst [vmem:[#allocation23_spill] sm:$0xff] %v5602_v47  ;;  %6939 = vst [vmem:[#allocation24_spill] sm:$0xff] %v5605_v0 }
  0x64   : > { %1058 = vmatpush1.bf16.msra.mxu0 %v5580_v25  ;;  %1099 = vmatpush1.bf16.msra.mxu1 %v5584_v13  ;;  %v269_v25 = vld [vmem:[%s5351_s3 + $0x30] sm:$0xff]  ;;  %v5612_v13 = vcombine.low %v383_v26, %v387_v56  ;;  %v5627_v26 = vpack.c.bf16 %v5452_v62, %v5452_v62  ;;  %v274_v56 = vld [vmem:[%s5351_s3 + $0x58] sm:$0xff]  ;;  %6945 = vst [vmem:[#allocation30_spill] sm:$0xff] %v5636_v41 }
  0x65   : > { %1059 = vmatprep.subr.bf16.mxu0 %v5586_v15  ;;  %1100 = vmatprep.subr.bf16.mxu1 %v5589_v31  ;;  %v5618_v11 = vcombine.high %v265_v58, %v269_v25  ;;  %v5621_v31 = vcombine.high %v266_v4, %v270_v24  ;;  %v273_v15 = vld [vmem:[%s5351_s3 + $0x50] sm:$0xff]  ;;  %v5632_v40 = vcombine.low %v265_v58, %v269_v25  ;;  %v282_v25 = vld [vmem:[%s5351_s3 + $0x98] sm:$0xff] }
  0x66   : > { %6940 = vst [vmem:[#allocation25_spill] sm:$0xff] %v5612_v13  ;;  %v281_v62 = vld [vmem:[%s5351_s3 + $0x90] sm:$0xff]  ;;  %v286_v58 = vld [vmem:[%s5351_s3 + $0xb8] sm:$0xff]  ;;  %v5650_v4 = vcombine.low %v273_v15, %v277_v3 }
  0x67   : > { %6942 = vst [vmem:[#allocation27_spill] sm:$0xff] %v5618_v11  ;;  %6943 = vst [vmem:[#allocation28_spill] sm:$0xff] %v5621_v31 }
  0x68   : > { %1060 = vmatpush1.bf16.msra.mxu0 %v5596_v57  ;;  %1101 = vmatpush1.bf16.msra.mxu1 %v5600_v42  ;;  %6944 = vst [vmem:[#allocation29_spill] sm:$0xff] %v5632_v40  ;;  %v285_v57 = vld [vmem:[%s5351_s3 + $0xb0] sm:$0xff]  ;;  %6948 = vst [vmem:[#allocation33_spill] sm:$0xff] %v5650_v4 }
  0x69   : > { %1061 = vmatprep.subr.bf16.mxu0 %v5602_v47  ;;  %1102 = vmatprep.subr.bf16.mxu1 %v5605_v0  ;;  %v278_v47 = vld [vmem:[%s5351_s3 + $0x78] sm:$0xff]  ;;  %v5638_v0 = vcombine.high %v273_v15, %v277_v3 }
  0x6a   : > { %v5641_v42 = vcombine.high %v274_v56, %v278_v47  ;;  %v5654_v24 = vcombine.low %v274_v56, %v278_v47  ;;  %v290_v3 = vld [vmem:[%s5351_s3 + $0xd8] sm:$0xff]  ;;  %v5668_v47 = vcombine.low %v281_v62, %v285_v57  ;;  %v5672_v56 = vcombine.low %v282_v25, %v286_v58 }
  0x6b   : > { %6946 = vst [vmem:[#allocation31_spill] sm:$0xff] %v5638_v0  ;;  %v294_v15 = vld [vmem:[%s5351_s3 + $0xf8] sm:$0xff] }
  0x6c   : > { %1062 = vmatpush1.bf16.msra.mxu0 %v5612_v13  ;;  %1103 = vmatpush1.bf16.msra.mxu1 %v5616_v10  ;;  %6947 = vst [vmem:[#allocation32_spill] sm:$0xff] %v5641_v42  ;;  %6949 = vst [vmem:[#allocation34_spill] sm:$0xff] %v5654_v24  ;;  %v289_v10 = vld [vmem:[%s5351_s3 + $0xd0] sm:$0xff] }
  0x6d   : > { %1113 = vmatprep.subr.bf16.mxu0 %v5618_v11  ;;  %1154 = vmatprep.subr.bf16.mxu1 %v5621_v31  ;;  %v5656_v31 = vcombine.high %v281_v62, %v285_v57  ;;  %v5659_v11 = vcombine.high %v282_v25, %v286_v58  ;;  %v293_v13 = vld [vmem:[%s5351_s3 + $0xf0] sm:$0xff]  ;;  %6952 = vst [vmem:[#allocation37_spill] sm:$0xff] %v5668_v47  ;;  %6953 = vst [vmem:[#allocation38_spill] sm:$0xff] %v5672_v56  ;;  %v298_v57 = vld [vmem:[%s5351_s3 + $0x118] sm:$0xff] }
  0x6e   : > { %v302_v62 = vld [vmem:[%s5351_s3 + $0x138] sm:$0xff]  ;;  %v5688_v25 = vcombine.low %v290_v3, %v294_v15 }
  0x6f   : > { %1064 = vmatmul.mubr.bf16.vlgmr.msra.gmra.mrb[0].mxu0 %v5627_v26  ;;  %1105 = vmatmul.mubr.bf16.vlgmr.msra.gmra.mrb[0].mxu1 %v5627_v26  ;;  %6950 = vst [vmem:[#allocation35_spill] sm:$0xff] %v5656_v31  ;;  %6951 = vst [vmem:[#allocation36_spill] sm:$0xff] %v5659_v11 }
  0x70   : > { %1114 = vmatpush1.bf16.msra.mxu0 %v5632_v40  ;;  %1155 = vmatpush1.bf16.msra.mxu1 %v5636_v41  ;;  %6957 = vst [vmem:[#allocation42_spill] sm:$0xff] %v5688_v25  ;;  %v389_v41 = vld [vmem:[%s5351_s3 + $0x3f0] sm:$0xff]  ;;  %v386_v40 = vld [vmem:[%s5351_s3 + $0x3d8] sm:$0xff] }
  0x71   : > { %1115 = vmatprep.subr.bf16.mxu0 %v5638_v0  ;;  %1156 = vmatprep.subr.bf16.mxu1 %v5641_v42  ;;  %v5674_v42 = vcombine.high %v289_v10, %v293_v13  ;;  %v5677_v0 = vcombine.high %v290_v3, %v294_v15  ;;  %v5704_v3 = vcombine.low %v298_v57, %v302_v62 }
  0x72   : > { %1145 = vmatprep.mubr.bf16.mxu0 %v5466_v6  ;;  %1186 = vmatprep.mubr.bf16.mxu1 %v5466_v6  ;;  %v297_v6 = vld [vmem:[%s5351_s3 + $0x110] sm:$0xff] }
  0x73   : > { %6954 = vst [vmem:[#allocation39_spill] sm:$0xff] %v5674_v42  ;;  %6955 = vst [vmem:[#allocation40_spill] sm:$0xff] %v5677_v0 }
  0x74   : > { %1116 = vmatpush1.bf16.msra.mxu0 %v5650_v4  ;;  %1157 = vmatpush1.bf16.msra.mxu1 %v5654_v24  ;;  %v301_v4 = vld [vmem:[%s5351_s3 + $0x130] sm:$0xff]  ;;  %v5684_v24 = vcombine.low %v289_v10, %v293_v13  ;;  %v306_v13 = vld [vmem:[%s5351_s3 + $0x158] sm:$0xff]  ;;  %6961 = vst [vmem:[#allocation46_spill] sm:$0xff] %v5704_v3 }
  0x75   : > { %1117 = vmatprep.subr.bf16.mxu0 %v5656_v31  ;;  %1158 = vmatprep.subr.bf16.mxu1 %v5659_v11  ;;  %v5690_v58 = vcombine.high %v297_v6, %v301_v4  ;;  %v5693_v11 = vcombine.high %v298_v57, %v302_v62  ;;  %v305_v31 = vld [vmem:[%s5351_s3 + $0x150] sm:$0xff]  ;;  %v310_v10 = vld [vmem:[%s5351_s3 + $0x178] sm:$0xff] }
  0x76   : > { %6956 = vst [vmem:[#allocation41_spill] sm:$0xff] %v5684_v24  ;;  %v5720_v57 = vcombine.low %v306_v13, %v310_v10 }
  0x77   : > { %6958 = vst [vmem:[#allocation43_spill] sm:$0xff] %v5690_v58  ;;  %6959 = vst [vmem:[#allocation44_spill] sm:$0xff] %v5693_v11 }
  0x78   : > { %1118 = vmatpush1.bf16.msra.mxu0 %v5668_v47  ;;  %1159 = vmatpush1.bf16.msra.mxu1 %v5672_v56  ;;  %v309_v47 = vld [vmem:[%s5351_s3 + $0x170] sm:$0xff]  ;;  %v5700_v56 = vcombine.low %v297_v6, %v301_v4  ;;  %v314_v4 = vld [vmem:[%s5351_s3 + $0x198] sm:$0xff]  ;;  %6965 = vst [vmem:[#allocation50_spill] sm:$0xff] %v5720_v57 }
  0x79   : > { %1119 = vmatprep.subr.bf16.mxu0 %v5674_v42  ;;  %1160 = vmatprep.subr.bf16.mxu1 %v5677_v0  ;;  %v5706_v15 = vcombine.high %v305_v31, %v309_v47  ;;  %v5709_v0 = vcombine.high %v306_v13, %v310_v10  ;;  %v313_v42 = vld [vmem:[%s5351_s3 + $0x190] sm:$0xff]  ;;  %v318_v6 = vld [vmem:[%s5351_s3 + $0x1b8] sm:$0xff] }
  0x7a   : > { %6960 = vst [vmem:[#allocation45_spill] sm:$0xff] %v5700_v56  ;;  %v5736_v13 = vcombine.low %v314_v4, %v318_v6 }
  0x7b   : > { %6962 = vst [vmem:[#allocation47_spill] sm:$0xff] %v5706_v15  ;;  %6963 = vst [vmem:[#allocation48_spill] sm:$0xff] %v5709_v0 }
  0x7c   : > { %1120 = vmatpush1.bf16.msra.mxu0 %v5684_v24  ;;  %1161 = vmatpush1.bf16.msra.mxu1 %v5688_v25  ;;  %v317_v24 = vld [vmem:[%s5351_s3 + $0x1b0] sm:$0xff]  ;;  %v5716_v25 = vcombine.low %v305_v31, %v309_v47  ;;  %v322_v31 = vld [vmem:[%s5351_s3 + $0x1d8] sm:$0xff]  ;;  %6969 = vst [vmem:[#allocation54_spill] sm:$0xff] %v5736_v13 }
  0x7d   : > { %1121 = vmatprep.subr.bf16.mxu0 %v5690_v58  ;;  %1162 = vmatprep.subr.bf16.mxu1 %v5693_v11  ;;  %v5722_v62 = vcombine.high %v313_v42, %v317_v24  ;;  %v5725_v11 = vcombine.high %v314_v4, %v318_v6  ;;  %v321_v58 = vld [vmem:[%s5351_s3 + $0x1d0] sm:$0xff]  ;;  %v326_v47 = vld [vmem:[%s5351_s3 + $0x1f8] sm:$0xff] }
  0x7e   : > { %6964 = vst [vmem:[#allocation49_spill] sm:$0xff] %v5716_v25  ;;  %v5752_v4 = vcombine.low %v322_v31, %v326_v47 }
  0x7f   : > { %6966 = vst [vmem:[#allocation51_spill] sm:$0xff] %v5722_v62  ;;  %6967 = vst [vmem:[#allocation52_spill] sm:$0xff] %v5725_v11 }
  0x80   : > { %1122 = vmatpush1.bf16.msra.mxu0 %v5700_v56  ;;  %1163 = vmatpush1.bf16.msra.mxu1 %v5704_v3  ;;  %v325_v56 = vld [vmem:[%s5351_s3 + $0x1f0] sm:$0xff]  ;;  %v5732_v3 = vcombine.low %v313_v42, %v317_v24  ;;  %v330_v42 = vld [vmem:[%s5351_s3 + $0x218] sm:$0xff]  ;;  %6973 = vst [vmem:[#allocation58_spill] sm:$0xff] %v5752_v4 }
  0x81   : > { %1123 = vmatprep.subr.bf16.mxu0 %v5706_v15  ;;  %1164 = vmatprep.subr.bf16.mxu1 %v5709_v0  ;;  %v5738_v10 = vcombine.high %v321_v58, %v325_v56  ;;  %v5741_v0 = vcombine.high %v322_v31, %v326_v47  ;;  %v329_v15 = vld [vmem:[%s5351_s3 + $0x210] sm:$0xff]  ;;  %v334_v24 = vld [vmem:[%s5351_s3 + $0x238] sm:$0xff] }
  0x82   : > { %6968 = vst [vmem:[#allocation53_spill] sm:$0xff] %v5732_v3  ;;  %v5768_v31 = vcombine.low %v330_v42, %v334_v24 }
  0x83   : > { %6970 = vst [vmem:[#allocation55_spill] sm:$0xff] %v5738_v10  ;;  %6971 = vst [vmem:[#allocation56_spill] sm:$0xff] %v5741_v0 }
  0x84   : > { %1124 = vmatpush1.bf16.msra.mxu0 %v5716_v25  ;;  %1165 = vmatpush1.bf16.msra.mxu1 %v5720_v57  ;;  %v333_v25 = vld [vmem:[%s5351_s3 + $0x230] sm:$0xff]  ;;  %v5748_v57 = vcombine.low %v321_v58, %v325_v56  ;;  %v338_v56 = vld [vmem:[%s5351_s3 + $0x258] sm:$0xff]  ;;  %6977 = vst [vmem:[#allocation62_spill] sm:$0xff] %v5768_v31 }
  0x85   : > { %1125 = vmatprep.subr.bf16.mxu0 %v5722_v62  ;;  %1166 = vmatprep.subr.bf16.mxu1 %v5725_v11  ;;  %v5754_v6 = vcombine.high %v329_v15, %v333_v25  ;;  %v5757_v11 = vcombine.high %v330_v42, %v334_v24  ;;  %v337_v62 = vld [vmem:[%s5351_s3 + $0x250] sm:$0xff]  ;;  %v342_v58 = vld [vmem:[%s5351_s3 + $0x278] sm:$0xff] }
  0x86   : > { %6972 = vst [vmem:[#allocation57_spill] sm:$0xff] %v5748_v57  ;;  %v5784_v42 = vcombine.low %v338_v56, %v342_v58 }
  0x87   : > { %6974 = vst [vmem:[#allocation59_spill] sm:$0xff] %v5754_v6  ;;  %6975 = vst [vmem:[#allocation60_spill] sm:$0xff] %v5757_v11 }
  0x88   : > { %1126 = vmatpush1.bf16.msra.mxu0 %v5732_v3  ;;  %1167 = vmatpush1.bf16.msra.mxu1 %v5736_v13  ;;  %v341_v3 = vld [vmem:[%s5351_s3 + $0x270] sm:$0xff]  ;;  %v5764_v13 = vcombine.low %v329_v15, %v333_v25  ;;  %v346_v25 = vld [vmem:[%s5351_s3 + $0x298] sm:$0xff]  ;;  %6981 = vst [vmem:[#allocation66_spill] sm:$0xff] %v5784_v42 }
  0x89   : > { %1127 = vmatprep.subr.bf16.mxu0 %v5738_v10  ;;  %1168 = vmatprep.subr.bf16.mxu1 %v5741_v0  ;;  %v5770_v47 = vcombine.high %v337_v62, %v341_v3  ;;  %v5773_v0 = vcombine.high %v338_v56, %v342_v58  ;;  %v345_v10 = vld [vmem:[%s5351_s3 + $0x290] sm:$0xff]  ;;  %v350_v15 = vld [vmem:[%s5351_s3 + $0x2b8] sm:$0xff] }
  0x8a   : > { %6976 = vst [vmem:[#allocation61_spill] sm:$0xff] %v5764_v13  ;;  %v5800_v56 = vcombine.low %v346_v25, %v350_v15 }
  0x8b   : > { %6978 = vst [vmem:[#allocation63_spill] sm:$0xff] %v5770_v47  ;;  %6979 = vst [vmem:[#allocation64_spill] sm:$0xff] %v5773_v0 }
  0x8c   : > { %1128 = vmatpush1.bf16.msra.mxu0 %v5748_v57  ;;  %1169 = vmatpush1.bf16.msra.mxu1 %v5752_v4  ;;  %v349_v57 = vld [vmem:[%s5351_s3 + $0x2b0] sm:$0xff]  ;;  %v5780_v4 = vcombine.low %v337_v62, %v341_v3  ;;  %v354_v3 = vld [vmem:[%s5351_s3 + $0x2d8] sm:$0xff]  ;;  %6985 = vst [vmem:[#allocation70_spill] sm:$0xff] %v5800_v56 }
  0x8d   : > { %1129 = vmatprep.subr.bf16.mxu0 %v5754_v6  ;;  %1170 = vmatprep.subr.bf16.mxu1 %v5757_v11  ;;  %v5786_v24 = vcombine.high %v345_v10, %v349_v57  ;;  %v5789_v11 = vcombine.high %v346_v25, %v350_v15  ;;  %v353_v6 = vld [vmem:[%s5351_s3 + $0x2d0] sm:$0xff]  ;;  %v358_v62 = vld [vmem:[%s5351_s3 + $0x2f8] sm:$0xff] }
  0x8e   : > { %6980 = vst [vmem:[#allocation65_spill] sm:$0xff] %v5780_v4  ;;  %v5816_v25 = vcombine.low %v354_v3, %v358_v62 }
  0x8f   : > { %6982 = vst [vmem:[#allocation67_spill] sm:$0xff] %v5786_v24  ;;  %6983 = vst [vmem:[#allocation68_spill] sm:$0xff] %v5789_v11 }
  0x90   : > { %1130 = vmatpush1.bf16.msra.mxu0 %v5764_v13  ;;  %1171 = vmatpush1.bf16.msra.mxu1 %v5768_v31  ;;  %v357_v13 = vld [vmem:[%s5351_s3 + $0x2f0] sm:$0xff]  ;;  %v5796_v31 = vcombine.low %v345_v10, %v349_v57  ;;  %v362_v57 = vld [vmem:[%s5351_s3 + $0x318] sm:$0xff]  ;;  %6989 = vst [vmem:[#allocation74_spill] sm:$0xff] %v5816_v25 }
  0x91   : > { %1131 = vmatprep.subr.bf16.mxu0 %v5770_v47  ;;  %1172 = vmatprep.subr.bf16.mxu1 %v5773_v0  ;;  %v5802_v58 = vcombine.high %v353_v6, %v357_v13  ;;  %v5805_v0 = vcombine.high %v354_v3, %v358_v62  ;;  %v361_v47 = vld [vmem:[%s5351_s3 + $0x310] sm:$0xff]  ;;  %v366_v10 = vld [vmem:[%s5351_s3 + $0x338] sm:$0xff] }
  0x92   : > { %6984 = vst [vmem:[#allocation69_spill] sm:$0xff] %v5796_v31  ;;  %v5832_v3 = vcombine.low %v362_v57, %v366_v10 }
  0x93   : > { %6986 = vst [vmem:[#allocation71_spill] sm:$0xff] %v5802_v58  ;;  %6987 = vst [vmem:[#allocation72_spill] sm:$0xff] %v5805_v0 }
  0x94   : > { %1132 = vmatpush1.bf16.msra.mxu0 %v5780_v4  ;;  %1173 = vmatpush1.bf16.msra.mxu1 %v5784_v42  ;;  %v365_v4 = vld [vmem:[%s5351_s3 + $0x330] sm:$0xff]  ;;  %v5812_v42 = vcombine.low %v353_v6, %v357_v13  ;;  %v370_v13 = vld [vmem:[%s5351_s3 + $0x358] sm:$0xff] }
  0x95   : > { %1133 = vmatprep.subr.bf16.mxu0 %v5786_v24  ;;  %1174 = vmatprep.subr.bf16.mxu1 %v5789_v11  ;;  %v5818_v15 = vcombine.high %v361_v47, %v365_v4  ;;  %v5821_v11 = vcombine.high %v362_v57, %v366_v10  ;;  %v369_v24 = vld [vmem:[%s5351_s3 + $0x350] sm:$0xff]  ;;  %v374_v6 = vld [vmem:[%s5351_s3 + $0x378] sm:$0xff] }
  0x96   : > { %6988 = vst [vmem:[#allocation73_spill] sm:$0xff] %v5812_v42  ;;  %v5848_v57 = vcombine.low %v370_v13, %v374_v6 }
  0x97   : > { %6990 = vst [vmem:[#allocation75_spill] sm:$0xff] %v5818_v15  ;;  %6991 = vst [vmem:[#allocation76_spill] sm:$0xff] %v5821_v11 }
  0x98   : > { %1134 = vmatpush1.bf16.msra.mxu0 %v5796_v31  ;;  %1175 = vmatpush1.bf16.msra.mxu1 %v5800_v56  ;;  %v373_v31 = vld [vmem:[%s5351_s3 + $0x370] sm:$0xff]  ;;  %v5828_v56 = vcombine.low %v361_v47, %v365_v4  ;;  %v378_v4 = vld [vmem:[%s5351_s3 + $0x398] sm:$0xff] }
  0x99   : > { %1135 = vmatprep.subr.bf16.mxu0 %v5802_v58  ;;  %1176 = vmatprep.subr.bf16.mxu1 %v5805_v0  ;;  %v5834_v62 = vcombine.high %v369_v24, %v373_v31  ;;  %v5837_v0 = vcombine.high %v370_v13, %v374_v6  ;;  %v377_v58 = vld [vmem:[%s5351_s3 + $0x390] sm:$0xff]  ;;  %v382_v47 = vld [vmem:[%s5351_s3 + $0x3b8] sm:$0xff]  ;;  %v5869_v6 = vcombine.high %v386_v40, %v390_v2 }
  0x9b   : > { %6992 = vst [vmem:[#allocation77_spill] sm:$0xff] %v5837_v0 }
  0x9c   : > { %1136 = vmatpush1.bf16.msra.mxu0 %v5812_v42  ;;  %1177 = vmatpush1.bf16.msra.mxu1 %v5816_v25  ;;  %v381_v42 = vld [vmem:[%s5351_s3 + $0x3b0] sm:$0xff]  ;;  %v5844_v25 = vcombine.low %v369_v24, %v373_v31  ;;  %v5864_v24 = vcombine.low %v378_v4, %v382_v47 }
  0x9d   : > { %1137 = vmatprep.subr.bf16.mxu0 %v5818_v15  ;;  %1178 = vmatprep.subr.bf16.mxu1 %v5821_v11  ;;  %v5850_v10 = vcombine.high %v377_v58, %v381_v42  ;;  %v5853_v11 = vcombine.high %v378_v4, %v382_v47  ;;  %v385_v15 = vld [vmem:[%s5351_s3 + $0x3d0] sm:$0xff]  ;;  %v5860_v31 = vcombine.low %v377_v58, %v381_v42 }
  0x9e   : > { %v5866_v13 = vcombine.high %v385_v15, %v389_v41  ;;  %v5876_v42 = vcombine.low %v386_v40, %v390_v2 }
  0xa0   : > { %1138 = vmatpush1.bf16.msra.mxu0 %v5828_v56  ;;  %1179 = vmatpush1.bf16.msra.mxu1 %v5832_v3 }
  0xa1   : > { %1139 = vmatprep.subr.bf16.mxu0 %v5834_v62  ;;  %1180 = vmatprep.subr.bf16.mxu1 %v5837_v0  ;;  %v5872_v0 = vcombine.low %v385_v15, %v389_v41 }
  0xa4   : > { %1140 = vmatpush1.bf16.msra.mxu0 %v5844_v25  ;;  %1181 = vmatpush1.bf16.msra.mxu1 %v5848_v57 }
  0xa5   : > { %1141 = vmatprep.subr.bf16.mxu0 %v5850_v10  ;;  %1182 = vmatprep.subr.bf16.mxu1 %v5853_v11 }
  0xa8   : > { %1142 = vmatpush1.bf16.msra.mxu0 %v5860_v31  ;;  %1183 = vmatpush1.bf16.msra.mxu1 %v5864_v24 }
  0xa9   : > { %1143 = vmatprep.subr.bf16.mxu0 %v5866_v13  ;;  %1184 = vmatprep.subr.bf16.mxu1 %v5869_v6 }
  0xac   : > { %1144 = vmatpush1.bf16.msra.mxu0 %v5872_v0  ;;  %1185 = vmatpush1.bf16.msra.mxu1 %v5876_v42 }
  0xad   : > { %2064 = vmatprep.subr.bf16.mxu0 %v5356_v12  ;;  %2105 = vmatprep.subr.bf16.mxu1 %v5363_v17  ;;  %v6993_v12 = vld [vmem:[#allocation6_spill] sm:$0xff]  ;;  %v6995_v17 = vld [vmem:[#allocation8_spill] sm:$0xff] }
  0xaf   : > { %1146 = vmatmul.mubr.bf16.vlgmr.msra.gmra.mrb[4].mxu0 %v5627_v26  ;;  %1187 = vmatmul.mubr.bf16.vlgmr.msra.gmra.mrb[4].mxu1 %v5627_v26 }
  0xb0   : > { %2065 = vmatpush1.bf16.msra.mxu0 %v5359_v14  ;;  %2106 = vmatpush1.bf16.msra.mxu1 %v5365_v18  ;;  %v6994_v14 = vld [vmem:[#allocation7_spill] sm:$0xff]  ;;  %v6996_v18 = vld [vmem:[#allocation9_spill] sm:$0xff] }
  0xb1   : > { %2066 = vmatprep.subr.bf16.mxu0 %v5367_v19  ;;  %2107 = vmatprep.subr.bf16.mxu1 %v5373_v23  ;;  %v6997_v19 = vld [vmem:[#allocation10_spill] sm:$0xff]  ;;  %v6998_v23 = vld [vmem:[#allocation11_spill] sm:$0xff] }
  0xb4   : > { %2067 = vmatpush1.bf16.msra.mxu0 %v5380_v27  ;;  %2108 = vmatpush1.bf16.msra.mxu1 %v5384_v28  ;;  %v6999_v27 = vld [vmem:[#allocation12_spill] sm:$0xff]  ;;  %v7000_v28 = vld [vmem:[#allocation13_spill] sm:$0xff] }
  0xb5   : > { %2068 = vmatprep.subr.bf16.mxu0 %v5386_v29  ;;  %2109 = vmatprep.subr.bf16.mxu1 %v5389_v30  ;;  %v7001_v29 = vld [vmem:[#allocation14_spill] sm:$0xff]  ;;  %v7002_v30 = vld [vmem:[#allocation15_spill] sm:$0xff] }
  0xb8   : > { %2069 = vmatpush1.bf16.msra.mxu0 %v5396_v35  ;;  %2110 = vmatpush1.bf16.msra.mxu1 %v5400_v36  ;;  %v7003_v35 = vld [vmem:[#allocation16_spill] sm:$0xff]  ;;  %v7004_v36 = vld [vmem:[#allocation17_spill] sm:$0xff] }
  0xb9   : > { %2070 = vmatprep.subr.bf16.mxu0 %v5402_v37  ;;  %2111 = vmatprep.subr.bf16.mxu1 %v5405_v38  ;;  %v7005_v37 = vld [vmem:[#allocation18_spill] sm:$0xff]  ;;  %v7006_v38 = vld [vmem:[#allocation19_spill] sm:$0xff] }
  0xbc   : > { %2071 = vmatpush1.bf16.msra.mxu0 %v5412_v43  ;;  %2112 = vmatpush1.bf16.msra.mxu1 %v5416_v44  ;;  %v7007_v43 = vld [vmem:[#allocation20_spill] sm:$0xff]  ;;  %v7008_v44 = vld [vmem:[#allocation21_spill] sm:$0xff] }
  0xbd   : > { %2072 = vmatprep.subr.bf16.mxu0 %v5418_v45  ;;  %2113 = vmatprep.subr.bf16.mxu1 %v5421_v46  ;;  %v7009_v45 = vld [vmem:[#allocation22_spill] sm:$0xff]  ;;  %v7010_v46 = vld [vmem:[#allocation23_spill] sm:$0xff] }
  0xc0   : > { %2073 = vmatpush1.bf16.msra.mxu0 %v5428_v51  ;;  %2114 = vmatpush1.bf16.msra.mxu1 %v5432_v52  ;;  %v7011_v51 = vld [vmem:[#allocation24_spill] sm:$0xff]  ;;  %v7012_v52 = vld [vmem:[#allocation25_spill] sm:$0xff] }
  0xc1   : > { %2074 = vmatprep.subr.bf16.mxu0 %v5434_v53  ;;  %2115 = vmatprep.subr.bf16.mxu1 %v5437_v54  ;;  %v7013_v53 = vld [vmem:[#allocation26_spill] sm:$0xff]  ;;  %v7014_v54 = vld [vmem:[#allocation27_spill] sm:$0xff] }
  0xc4   : > { %2075 = vmatpush1.bf16.msra.mxu0 %v5444_v59  ;;  %2116 = vmatpush1.bf16.msra.mxu1 %v5448_v60  ;;  %v7015_v59 = vld [vmem:[#allocation28_spill] sm:$0xff]  ;;  %v5280_v60 = vmov 1983009808  }
  0xc5   : > { %2076 = vmatprep.subr.bf16.mxu0 %v5450_v61  ;;  %2117 = vmatprep.subr.bf16.mxu1 %v5455_v63  ;;  %v1206_v61 = vunpack.c.l.s4 %v5280_v60  ;;  %v1208_v63 = vlaneseq }
  0xc8   : > { %2077 = vmatpush1.bf16.msra.mxu0 %v5464_v5  ;;  %2118 = vmatpush1.bf16.msra.mxu1 %v5470_v7  ;;  %v1207_v5 = vunpack.c.0.s8 %v1206_v61  ;;  %v1209_v7 = vshrl.u32 %v1208_v63, 7 }
  0xc9   : > { %2078 = vmatprep.subr.bf16.mxu0 %v5472_v8  ;;  %2119 = vmatprep.subr.bf16.mxu1 %v5475_v9 }
  0xca   : > { %v5949_v9 = vsub.s32 %v1207_v5, %v1209_v7 }
  0xcc   : > { %2079 = vmatpush1.bf16.msra.mxu0 %v5484_v16  ;;  %2120 = vmatpush1.bf16.msra.mxu1 %v5488_v20 }
  0xcd   : > { %2080 = vmatprep.subr.bf16.mxu0 %v5490_v21  ;;  %2121 = vmatprep.subr.bf16.mxu1 %v5493_v22 }
  0xd0   : > { %2081 = vmatpush1.bf16.msra.mxu0 %v5500_v32  ;;  %2122 = vmatpush1.bf16.msra.mxu1 %v5504_v33 }
  0xd1   : > { %2082 = vmatprep.subr.bf16.mxu0 %v5506_v34  ;;  %2123 = vmatprep.subr.bf16.mxu1 %v5509_v39 }
  0xd4   : > { %2083 = vmatpush1.bf16.msra.mxu0 %v5516_v48  ;;  %2124 = vmatpush1.bf16.msra.mxu1 %v5520_v49 }
  0xd5   : > { %2084 = vmatprep.subr.bf16.mxu0 %v5522_v50  ;;  %2125 = vmatprep.subr.bf16.mxu1 %v5525_v55 }
  0xd8   : > { %2085 = vmatpush1.bf16.msra.mxu0 %v5532_v1  ;;  %2126 = vmatpush1.bf16.msra.mxu1 %v6993_v12  ;;  %v248_v1 = vld [vmem:[%s247_s8] sm:$0xff] }
  0xd9   : > { %2086 = vmatprep.subr.bf16.mxu0 %v6994_v14  ;;  %2127 = vmatprep.subr.bf16.mxu1 %v6995_v17 }
  0xdc   : > { %2087 = vmatpush1.bf16.msra.mxu0 %v6996_v18  ;;  %2128 = vmatpush1.bf16.msra.mxu1 %v6997_v19 }
  0xdd   : > { %2088 = vmatprep.subr.bf16.mxu0 %v6998_v23  ;;  %2129 = vmatprep.subr.bf16.mxu1 %v6999_v27 }
  0xe0   : > { %2089 = vmatpush1.bf16.msra.mxu0 %v7000_v28  ;;  %2130 = vmatpush1.bf16.msra.mxu1 %v7001_v29 }
  0xe1   : > { %2090 = vmatprep.subr.bf16.mxu0 %v7002_v30  ;;  %2131 = vmatprep.subr.bf16.mxu1 %v7003_v35 }
  0xe4   : > { %2091 = vmatpush1.bf16.msra.mxu0 %v7004_v36  ;;  %2132 = vmatpush1.bf16.msra.mxu1 %v7005_v37  ;;  %v249_v37 = vld [vmem:[%s247_s8 + $0x8] sm:$0xff]  ;;  %s6736_s8 = sadd.s32 %s3340_s6, %s6314_s21 }
  0xe5   : > { %2092 = vmatprep.subr.bf16.mxu0 %v7006_v38  ;;  %2133 = vmatprep.subr.bf16.mxu1 %v7007_v43  ;;  %s5130_s15 = sshll.u32 %s6736_s8, 4 }
  0xe6   : > { %s3344_s16 = scalar_lea.vmem %s5957_s7, %s5130_s15 [#allocation4] }
  0xe8   : > { %2093 = vmatpush1.bf16.msra.mxu0 %v7008_v44  ;;  %2134 = vmatpush1.bf16.msra.mxu1 %v7009_v45 }
  0xe9   : > { %2094 = vmatprep.subr.bf16.mxu0 %v7010_v46  ;;  %2135 = vmatprep.subr.bf16.mxu1 %v7011_v51  ;;  %v243_v51 = vld [vmem:[#allocation3] sm:$0xf] }
  0xec   : > { %2095 = vmatpush1.bf16.msra.mxu0 %v7012_v52  ;;  %2136 = vmatpush1.bf16.msra.mxu1 %v7013_v53 }
  0xed   : > { %2146 = vmatprep.subr.bf16.mxu0 %v7014_v54  ;;  %2187 = vmatprep.subr.bf16.mxu1 %v7015_v59 }
 0x142   : > { %v1065_v8 = vpop.f32.mrb[0].mxu0  ;;  %v1106_v16 = vpop.f32.mrb[0].mxu1 }
 0x143   : > { %v1067_v20 = vpop.f32.mrb[1].mxu0  ;;  %v1108_v22 = vpop.f32.mrb[1].mxu1 }
 0x144   : > { %v1203_v21 = vcombine.low %v1065_v8, %v1067_v20  ;;  %v1069_v32 = vpop.f32.mrb[2].mxu0  ;;  %v1204_v33 = vcombine.low %v1106_v16, %v1108_v22  ;;  %v1110_v34 = vpop.f32.mrb[2].mxu1 }
 0x145   : > { %v1070_v39 = vpop.f32.mrb[3].mxu0  ;;  %v1111_v49 = vpop.f32.mrb[3].mxu1  ;;  %v7016_v32 = vld [vmem:[#allocation29_spill] sm:$0xff]  ;;  %v7018_v34 = vld [vmem:[#allocation31_spill] sm:$0xff] }
 0x146   : > { %v1211_v48 = vrot.slane %v1203_v21, %v5949_v9  ;;  %v1218_v50 = vrot.slane %v1204_v33, %v5949_v9  ;;  %v7017_v33 = vld [vmem:[#allocation30_spill] sm:$0xff]  ;;  %v7019_v39 = vld [vmem:[#allocation32_spill] sm:$0xff] }
 0x147   : > { %v7021_v49 = vld [vmem:[#allocation34_spill] sm:$0xff] }
 0x148   : > { %v1219_v55 = vcombine.low %v1211_v48, %v1218_v50  ;;  %v7020_v48 = vld [vmem:[#allocation33_spill] sm:$0xff]  ;;  %v7022_v50 = vld [vmem:[#allocation35_spill] sm:$0xff] }
 0x14a   : > { %v1239_v2 = vadd.f32 %v1219_v55, %v248_v1  ;;  %v7023_v55 = vld [vmem:[#allocation36_spill] sm:$0xff]  ;;  %v7024_v1 = vld [vmem:[#allocation37_spill] sm:$0xff] }
 0x14c   : > { %v1248_v26 = vrot.slane %v1239_v2, 4  ;;  %v4704_v41 = vmul.f32 -1.442695, %v1239_v2  ;;  %v7025_v2 = vld [vmem:[#allocation38_spill] sm:$0xff] }
 0x14e   : > { %v4705_v40 = vmul.f32 -1.442695, %v1248_v26  ;;  %v7026_v26 = vld [vmem:[#allocation39_spill] sm:$0xff] }
 0x150   : > { %5175 = vpow2.f32 %v4705_v40  ;;  %v7027_v40 = vld [vmem:[#allocation40_spill] sm:$0xff] }
 0x151   : > { %5177 = vpow2.f32 %v4704_v41  ;;  %v7028_v41 = vld [vmem:[#allocation41_spill] sm:$0xff] }
 0x15a   : > { %v5176_v47 = vpop.eup %5175 }
 0x15b   : > { %v5178_v18 = vpop.eup %5177  ;;  %v1253_v30 = vadd.f32 1.0, %v5176_v47  ;;  %v7032_v47 = vld [vmem:[#allocation45_spill] sm:$0xff] }
 0x15c   : > { %v1244_v36 = vadd.f32 1.0, %v5178_v18  ;;  %v7036_v18 = vld [vmem:[#allocation49_spill] sm:$0xff] }
 0x15d   : > { %5179 = vrcp.f32 %v1253_v30  ;;  %v7042_v30 = vld [vmem:[#allocation55_spill] sm:$0xff] }
 0x15e   : > { %5181 = vrcp.f32 %v1244_v36  ;;  %v7044_v36 = vld [vmem:[#allocation57_spill] sm:$0xff] }
 0x167   : > { %v5180_v46 = vpop.eup %5179 }
 0x168   : > { %v5182_v52 = vpop.eup %5181  ;;  %v1266_v54 = vmul.f32 %v5180_v46, %v243_v51  ;;  %v7050_v46 = vld [vmem:[#allocation63_spill] sm:$0xff]  ;;  %v7051_v51 = vld [vmem:[#allocation64_spill] sm:$0xff] }
 0x182   : > { %v1147_v58 = vpop.f32.mrb[4].mxu0  ;;  %v1188_v15 = vpop.f32.mrb[4].mxu1 }
 0x183   : > { %v1149_v4 = vpop.f32.mrb[5].mxu0  ;;  %v1190_v14 = vpop.f32.mrb[5].mxu1 }
 0x184   : > { %v1220_v12 = vcombine.low %v1147_v58, %v1149_v4  ;;  %v1151_v17 = vpop.f32.mrb[6].mxu0  ;;  %v1221_v19 = vcombine.low %v1188_v15, %v1190_v14  ;;  %v1192_v23 = vpop.f32.mrb[6].mxu1  ;;  %v7029_v58 = vld [vmem:[#allocation42_spill] sm:$0xff]  ;;  %v7030_v15 = vld [vmem:[#allocation43_spill] sm:$0xff]  ;;  %v7031_v4 = vld [vmem:[#allocation44_spill] sm:$0xff] }
 0x185   : > { %v1152_v27 = vpop.f32.mrb[7].mxu0  ;;  %v1193_v29 = vpop.f32.mrb[7].mxu1  ;;  %v7034_v14 = vld [vmem:[#allocation47_spill] sm:$0xff]  ;;  %v7035_v17 = vld [vmem:[#allocation48_spill] sm:$0xff] }
 0x186   : > { %v1228_v28 = vrot.slane %v1220_v12, %v5949_v9  ;;  %v1235_v35 = vrot.slane %v1221_v19, %v5949_v9  ;;  %v7033_v12 = vld [vmem:[#allocation46_spill] sm:$0xff]  ;;  %v7038_v23 = vld [vmem:[#allocation51_spill] sm:$0xff]  ;;  %v7039_v27 = vld [vmem:[#allocation52_spill] sm:$0xff] }
 0x187   : > { %v7037_v19 = vld [vmem:[#allocation50_spill] sm:$0xff] }
 0x188   : > { %v1236_v38 = vcombine.low %v1228_v28, %v1235_v35  ;;  %v7040_v28 = vld [vmem:[#allocation53_spill] sm:$0xff]  ;;  %v7041_v29 = vld [vmem:[#allocation54_spill] sm:$0xff]  ;;  %v7043_v35 = vld [vmem:[#allocation56_spill] sm:$0xff] }
 0x18a   : > { %v1240_v43 = vadd.f32 %v1236_v38, %v249_v37  ;;  %v7045_v37 = vld [vmem:[#allocation58_spill] sm:$0xff]  ;;  %v7046_v38 = vld [vmem:[#allocation59_spill] sm:$0xff] }
 0x18c   : > { %5183 = vtanh.f32 %v1240_v43  ;;  %v1258_v44 = vrot.slane %v1240_v43, 4  ;;  %v7047_v43 = vld [vmem:[#allocation60_spill] sm:$0xff] }
 0x18e   : > { %v4706_v45 = vmul.f32 -1.442695, %v1258_v44  ;;  %v7048_v44 = vld [vmem:[#allocation61_spill] sm:$0xff] }
 0x190   : > { %5185 = vpow2.f32 %v4706_v45  ;;  %v7049_v45 = vld [vmem:[#allocation62_spill] sm:$0xff] }
 0x196   : > { %v5184_v53 = vpop.eup %5183 }
 0x197   : > { %v1267_v59 = vmul.f32 %v5184_v53, %v5182_v52  ;;  %v7052_v52 = vld [vmem:[#allocation65_spill] sm:$0xff]  ;;  %v7053_v53 = vld [vmem:[#allocation66_spill] sm:$0xff] }
 0x199   : > { %v5962_v60 = vadd.f32 %v1267_v59, %v1266_v54  ;;  %v7054_v54 = vld [vmem:[#allocation67_spill] sm:$0xff]  ;;  %v7055_v59 = vld [vmem:[#allocation68_spill] sm:$0xff] }
 0x19a   : > { %v5186_v61 = vpop.eup %5185 }
 0x19b   : > { %v1263_v63 = vadd.f32 1.0, %v5186_v61  ;;  %5187 = vtanh.f32 %v5962_v60  ;;  %v7056_v61 = vld [vmem:[#allocation69_spill] sm:$0xff] }
 0x19d   : > { %5189 = vrcp.f32 %v1263_v63  ;;  %v7057_v63 = vld [vmem:[#allocation70_spill] sm:$0xff] }
 0x1a5   : > { %v5188_v5 = vpop.eup %5187 }
 0x1a7   : > { %v5190_v7 = vpop.eup %5189 }
 0x1a8   : > { %v1270_v8 = vmul.f32 %v5190_v7, %v5188_v5  ;;  %v7058_v5 = vld [vmem:[#allocation71_spill] sm:$0xff]  ;;  %v7059_v7 = vld [vmem:[#allocation72_spill] sm:$0xff] }
 0x1aa   : > { %1274 = vst [vmem:[%s1273_s20] sm:$0xf] %v1270_v8  ;;  %v1290_v16 = vrot.slane %v1270_v8, %v5949_v9  ;;  %v7060_v8 = vld [vmem:[#allocation73_spill] sm:$0xff] }
 0x1ac   : > { %v1291_v20 = vcombine.high %v1290_v16, %v1290_v16  ;;  %v5972_v22 = vpack.c.bf16 %v1290_v16, %v1290_v16  ;;  %v7061_v16 = vld [vmem:[#allocation74_spill] sm:$0xff] }
 0x1ae   : > { %v1295_v21 = vpack.c.bf16 %v1291_v20, %v1291_v20  ;;  %v7062_v20 = vld [vmem:[#allocation75_spill] sm:$0xff] }
 0x1b0   : > { %2096 = vmatprep.mubr.bf16.mxu0 %v1295_v21  ;;  %2137 = vmatprep.mubr.bf16.mxu1 %v1295_v21 }
 0x1b1   : > { %2097 = vmatmul.mubr.bf16.vlgmr.msra.gmra.mrb[8].mxu0 %v5972_v22  ;;  %2138 = vmatmul.mubr.bf16.vlgmr.msra.gmra.mrb[8].mxu1 %v5972_v22 }
 0x1b2   : > { %2147 = vmatpush1.bf16.msra.mxu0 %v7016_v32  ;;  %2188 = vmatpush1.bf16.msra.mxu1 %v7017_v33  ;;  %v7064_v32 = vld [vmem:[#allocation77_spill] sm:$0xff] }
 0x1b3   : > { %2178 = vmatprep.mubr.bf16.mxu0 %v1295_v21  ;;  %2219 = vmatprep.mubr.bf16.mxu1 %v1295_v21  ;;  %v7063_v21 = vld [vmem:[#allocation76_spill] sm:$0xff] }
 0x1b4   : > { %2148 = vmatprep.subr.bf16.mxu0 %v7018_v34  ;;  %2189 = vmatprep.subr.bf16.mxu1 %v7019_v39  ;;  %v2348_v34 = vld [vmem:[%s5351_s3 + $0xa0] sm:$0xff]  ;;  %v2345_v39 = vld [vmem:[%s5351_s3 + $0x88] sm:$0xff] }
 0x1b6   : > { %2149 = vmatpush1.bf16.msra.mxu0 %v7020_v48  ;;  %2190 = vmatpush1.bf16.msra.mxu1 %v7021_v49  ;;  %v2349_v48 = vld [vmem:[%s5351_s3 + $0xa8] sm:$0xff] }
 0x1b7   : > { %2150 = vmatprep.subr.bf16.mxu0 %v7022_v50  ;;  %2191 = vmatprep.subr.bf16.mxu1 %v7023_v55 }
 0x1ba   : > { %2151 = vmatpush1.bf16.msra.mxu0 %v7024_v1  ;;  %2192 = vmatpush1.bf16.msra.mxu1 %v7025_v2  ;;  %v6076_v1 = vcombine.high %v2345_v39, %v2349_v48  ;;  %v2352_v2 = vld [vmem:[%s5351_s3 + $0xc0] sm:$0xff] }
 0x1bb   : > { %2152 = vmatprep.subr.bf16.mxu0 %v7026_v26  ;;  %2193 = vmatprep.subr.bf16.mxu1 %v7027_v40  ;;  %v2356_v26 = vld [vmem:[%s5351_s3 + $0xe0] sm:$0xff]  ;;  %v2353_v40 = vld [vmem:[%s5351_s3 + $0xc8] sm:$0xff] }
 0x1be   : > { %2153 = vmatpush1.bf16.msra.mxu0 %v7028_v41  ;;  %2194 = vmatpush1.bf16.msra.mxu1 %v7029_v58  ;;  %v2357_v41 = vld [vmem:[%s5351_s3 + $0xe8] sm:$0xff] }
 0x1bf   : > { %2154 = vmatprep.subr.bf16.mxu0 %v7030_v15  ;;  %2195 = vmatprep.subr.bf16.mxu1 %v7031_v4  ;;  %v6087_v15 = vcombine.low %v2345_v39, %v2349_v48  ;;  %v6089_v4 = vcombine.high %v2352_v2, %v2356_v26  ;;  %v2400_v39 = vld [vmem:[%s5351_s3 + $0x240] sm:$0xff] }
 0x1c0   : > { %v2404_v48 = vld [vmem:[%s5351_s3 + $0x260] sm:$0xff] }
 0x1c2   : > { %2155 = vmatpush1.bf16.msra.mxu0 %v7032_v47  ;;  %2196 = vmatpush1.bf16.msra.mxu1 %v7033_v12  ;;  %v6092_v47 = vcombine.high %v2353_v40, %v2357_v41  ;;  %v2360_v12 = vld [vmem:[%s5351_s3 + $0x100] sm:$0xff] }
 0x1c3   : > { %2156 = vmatprep.subr.bf16.mxu0 %v7034_v14  ;;  %2197 = vmatprep.subr.bf16.mxu1 %v7035_v17  ;;  %v2364_v14 = vld [vmem:[%s5351_s3 + $0x120] sm:$0xff]  ;;  %v2361_v17 = vld [vmem:[%s5351_s3 + $0x108] sm:$0xff] }
 0x1c6   : > { %2157 = vmatpush1.bf16.msra.mxu0 %v7036_v18  ;;  %2198 = vmatpush1.bf16.msra.mxu1 %v7037_v19  ;;  %v2365_v18 = vld [vmem:[%s5351_s3 + $0x128] sm:$0xff]  ;;  %v6099_v19 = vcombine.low %v2352_v2, %v2356_v26  ;;  %v6187_v26 = vcombine.high %v2400_v39, %v2404_v48 }
 0x1c7   : > { %2158 = vmatprep.subr.bf16.mxu0 %v7038_v23  ;;  %2199 = vmatprep.subr.bf16.mxu1 %v7039_v27  ;;  %v6103_v23 = vcombine.low %v2353_v40, %v2357_v41  ;;  %v6105_v27 = vcombine.high %v2360_v12, %v2364_v14  ;;  %v2401_v2 = vld [vmem:[%s5351_s3 + $0x248] sm:$0xff]  ;;  %v6190_v41 = vcombine.low %v2400_v39, %v2404_v48 }
 0x1c8   : > { %v2405_v40 = vld [vmem:[%s5351_s3 + $0x268] sm:$0xff] }
 0x1c9   : > { %v2425_v39 = vld [vmem:[%s5351_s3 + $0x308] sm:$0xff] }
 0x1ca   : > { %2159 = vmatpush1.bf16.msra.mxu0 %v7040_v28  ;;  %2200 = vmatpush1.bf16.msra.mxu1 %v7041_v29  ;;  %v6108_v28 = vcombine.high %v2361_v17, %v2365_v18  ;;  %v6111_v29 = vcombine.low %v2360_v12, %v2364_v14  ;;  %v6192_v12 = vcombine.low %v2401_v2, %v2405_v40 }
 0x1cb   : > { %2160 = vmatprep.subr.bf16.mxu0 %v7042_v30  ;;  %2201 = vmatprep.subr.bf16.mxu1 %v7043_v35  ;;  %v6115_v30 = vcombine.low %v2361_v17, %v2365_v18  ;;  %v2368_v35 = vld [vmem:[%s5351_s3 + $0x140] sm:$0xff]  ;;  %v6194_v14 = vcombine.high %v2401_v2, %v2405_v40  ;;  %v2429_v40 = vld [vmem:[%s5351_s3 + $0x328] sm:$0xff] }
 0x1cc   : > { %v2408_v17 = vld [vmem:[%s5351_s3 + $0x280] sm:$0xff] }
 0x1cd   : > { %v2412_v18 = vld [vmem:[%s5351_s3 + $0x2a0] sm:$0xff] }
 0x1ce   : > { %2161 = vmatpush1.bf16.msra.mxu0 %v7044_v36  ;;  %2202 = vmatpush1.bf16.msra.mxu1 %v7045_v37  ;;  %v2372_v36 = vld [vmem:[%s5351_s3 + $0x160] sm:$0xff]  ;;  %v2369_v37 = vld [vmem:[%s5351_s3 + $0x148] sm:$0xff] }
 0x1cf   : > { %2162 = vmatprep.subr.bf16.mxu0 %v7046_v38  ;;  %2203 = vmatprep.subr.bf16.mxu1 %v7047_v43  ;;  %v6123_v38 = vcombine.high %v2368_v35, %v2372_v36  ;;  %v2373_v43 = vld [vmem:[%s5351_s3 + $0x168] sm:$0xff] }
 0x1d2   : > { %2163 = vmatpush1.bf16.msra.mxu0 %v7048_v44  ;;  %2204 = vmatpush1.bf16.msra.mxu1 %v7049_v45  ;;  %v6126_v44 = vcombine.low %v2368_v35, %v2372_v36  ;;  %v6128_v45 = vcombine.low %v2369_v37, %v2373_v43  ;;  %v2409_v35 = vld [vmem:[%s5351_s3 + $0x288] sm:$0xff]  ;;  %v6203_v36 = vcombine.high %v2408_v17, %v2412_v18 }
 0x1d3   : > { %2164 = vmatprep.subr.bf16.mxu0 %v7050_v46  ;;  %2205 = vmatprep.subr.bf16.mxu1 %v7051_v51  ;;  %v6130_v46 = vcombine.high %v2369_v37, %v2373_v43  ;;  %v2376_v51 = vld [vmem:[%s5351_s3 + $0x180] sm:$0xff]  ;;  %v2413_v37 = vld [vmem:[%s5351_s3 + $0x2a8] sm:$0xff]  ;;  %v6206_v43 = vcombine.low %v2408_v17, %v2412_v18 }
 0x1d4   : > { %7065 = vst [vmem:[#allocation6_spill] sm:$0xff] %v6203_v36  ;;  %v2432_v17 = vld [vmem:[%s5351_s3 + $0x340] sm:$0xff] }
 0x1d5   : > { %7066 = vst [vmem:[#allocation7_spill] sm:$0xff] %v6206_v43  ;;  %v2436_v18 = vld [vmem:[%s5351_s3 + $0x360] sm:$0xff] }
 0x1d6   : > { %2165 = vmatpush1.bf16.msra.mxu0 %v7052_v52  ;;  %2206 = vmatpush1.bf16.msra.mxu1 %v7053_v53  ;;  %v2380_v52 = vld [vmem:[%s5351_s3 + $0x1a0] sm:$0xff]  ;;  %v2377_v53 = vld [vmem:[%s5351_s3 + $0x188] sm:$0xff] }
 0x1d7   : > { %2166 = vmatprep.subr.bf16.mxu0 %v7054_v54  ;;  %2207 = vmatprep.subr.bf16.mxu1 %v7055_v59  ;;  %v6139_v54 = vcombine.high %v2376_v51, %v2380_v52  ;;  %v2381_v59 = vld [vmem:[%s5351_s3 + $0x1a8] sm:$0xff] }
 0x1da   : > { %2167 = vmatpush1.bf16.msra.mxu0 %v7056_v61  ;;  %2208 = vmatpush1.bf16.msra.mxu1 %v7057_v63  ;;  %v6142_v61 = vcombine.low %v2376_v51, %v2380_v52  ;;  %v6144_v63 = vcombine.low %v2377_v53, %v2381_v59  ;;  %v6208_v51 = vcombine.low %v2409_v35, %v2413_v37 }
 0x1db   : > { %2168 = vmatprep.subr.bf16.mxu0 %v7058_v5  ;;  %2209 = vmatprep.subr.bf16.mxu1 %v7059_v7  ;;  %v6146_v5 = vcombine.high %v2377_v53, %v2381_v59  ;;  %v2384_v7 = vld [vmem:[%s5351_s3 + $0x1c0] sm:$0xff]  ;;  %v6210_v52 = vcombine.high %v2409_v35, %v2413_v37  ;;  %v6242_v35 = vcombine.low %v2425_v39, %v2429_v40 }
 0x1dc   : > { %7067 = vst [vmem:[#allocation8_spill] sm:$0xff] %v6208_v51  ;;  %v2416_v53 = vld [vmem:[%s5351_s3 + $0x2c0] sm:$0xff]  ;;  %v6244_v37 = vcombine.high %v2425_v39, %v2429_v40  ;;  %v6259_v39 = vcombine.low %v2432_v17, %v2436_v18 }
 0x1dd   : > { %7068 = vst [vmem:[#allocation9_spill] sm:$0xff] %v6210_v52  ;;  %v2420_v59 = vld [vmem:[%s5351_s3 + $0x2e0] sm:$0xff]  ;;  %7075 = vst [vmem:[#allocation16_spill] sm:$0xff] %v6242_v35 }
 0x1de   : > { %2169 = vmatpush1.bf16.msra.mxu0 %v7060_v8  ;;  %2210 = vmatpush1.bf16.msra.mxu1 %v7061_v16  ;;  %v2388_v8 = vld [vmem:[%s5351_s3 + $0x1e0] sm:$0xff]  ;;  %v2385_v16 = vld [vmem:[%s5351_s3 + $0x1c8] sm:$0xff]  ;;  %7076 = vst [vmem:[#allocation17_spill] sm:$0xff] %v6244_v37  ;;  %7079 = vst [vmem:[#allocation20_spill] sm:$0xff] %v6259_v39 }
 0x1df   : > { %2170 = vmatprep.subr.bf16.mxu0 %v7062_v20  ;;  %2211 = vmatprep.subr.bf16.mxu1 %v7063_v21  ;;  %v6155_v20 = vcombine.high %v2384_v7, %v2388_v8  ;;  %v2389_v21 = vld [vmem:[%s5351_s3 + $0x1e8] sm:$0xff] }
 0x1e2   : > { %2171 = vmatpush1.bf16.msra.mxu0 %v5828_v56  ;;  %2212 = vmatpush1.bf16.msra.mxu1 %v5832_v3  ;;  %v2332_v56 = vld [vmem:[%s5351_s3 + $0x20] sm:$0xff] }
 0x1e3   : > { %2172 = vmatprep.subr.bf16.mxu0 %v5834_v62  ;;  %2213 = vmatprep.subr.bf16.mxu1 %v7064_v32  ;;  %v6158_v32 = vcombine.low %v2384_v7, %v2388_v8  ;;  %v2417_v7 = vld [vmem:[%s5351_s3 + $0x2c8] sm:$0xff]  ;;  %v6219_v8 = vcombine.high %v2416_v53, %v2420_v59 }
 0x1e5   : > { %7069 = vst [vmem:[#allocation10_spill] sm:$0xff] %v6219_v8 }
 0x1e6   : > { %2173 = vmatpush1.bf16.msra.mxu0 %v5844_v25  ;;  %2214 = vmatpush1.bf16.msra.mxu1 %v5848_v57  ;;  %v2329_v25 = vld [vmem:[%s5351_s3 + $0x8] sm:$0xff] }
 0x1e7   : > { %2174 = vmatprep.subr.bf16.mxu0 %v5850_v10  ;;  %2215 = vmatprep.subr.bf16.mxu1 %v5853_v11  ;;  %v2328_v11 = vld [vmem:[%s5351_s3] sm:$0xff]  ;;  %v2333_v57 = vld [vmem:[%s5351_s3 + $0x28] sm:$0xff] }
 0x1e8   : > { %v6043_v3 = vcombine.low %v2328_v11, %v2332_v56  ;;  %v6045_v62 = vcombine.high %v2328_v11, %v2332_v56  ;;  %v2340_v10 = vld [vmem:[%s5351_s3 + $0x60] sm:$0xff]  ;;  %v6160_v11 = vcombine.low %v2385_v16, %v2389_v21  ;;  %v6162_v56 = vcombine.high %v2385_v16, %v2389_v21  ;;  %v2421_v16 = vld [vmem:[%s5351_s3 + $0x2e8] sm:$0xff] }
 0x1e9   : > { %v6222_v21 = vcombine.low %v2416_v53, %v2420_v59  ;;  %v6246_v53 = vcombine.high %v2432_v17, %v2436_v18  ;;  %v2433_v59 = vld [vmem:[%s5351_s3 + $0x348] sm:$0xff] }
 0x1ea   : > { %2175 = vmatpush1.bf16.msra.mxu0 %v5860_v31  ;;  %2216 = vmatpush1.bf16.msra.mxu1 %v5864_v24  ;;  %v6050_v31 = vcombine.low %v2329_v25, %v2333_v57  ;;  %v6052_v24 = vcombine.high %v2329_v25, %v2333_v57  ;;  %v2392_v25 = vld [vmem:[%s5351_s3 + $0x200] sm:$0xff] }
 0x1eb   : > { %2176 = vmatprep.subr.bf16.mxu0 %v5866_v13  ;;  %2217 = vmatprep.subr.bf16.mxu1 %v5869_v6  ;;  %v2337_v6 = vld [vmem:[%s5351_s3 + $0x48] sm:$0xff]  ;;  %v2396_v57 = vld [vmem:[%s5351_s3 + $0x220] sm:$0xff]  ;;  %7070 = vst [vmem:[#allocation11_spill] sm:$0xff] %v6222_v21  ;;  %7077 = vst [vmem:[#allocation18_spill] sm:$0xff] %v6246_v53 }
 0x1ee   : > { %2177 = vmatpush1.bf16.msra.mxu0 %v5872_v0  ;;  %2218 = vmatpush1.bf16.msra.mxu1 %v5876_v42  ;;  %v2336_v0 = vld [vmem:[%s5351_s3 + $0x40] sm:$0xff]  ;;  %v2341_v42 = vld [vmem:[%s5351_s3 + $0x68] sm:$0xff] }
 0x1ef   : > { %v6054_v13 = vcombine.high %v2336_v0, %v2340_v10  ;;  %3096 = vmatprep.subr.bf16.mxu0 %v6045_v62  ;;  %v6060_v33 = vcombine.high %v2337_v6, %v2341_v42  ;;  %3137 = vmatprep.subr.bf16.mxu1 %v6052_v24  ;;  %v6067_v49 = vcombine.low %v2336_v0, %v2340_v10  ;;  %v2393_v0 = vld [vmem:[%s5351_s3 + $0x208] sm:$0xff] }
 0x1f0   : > { %v6071_v50 = vcombine.low %v2337_v6, %v2341_v42  ;;  %v6171_v10 = vcombine.high %v2392_v25, %v2396_v57  ;;  %v2397_v6 = vld [vmem:[%s5351_s3 + $0x228] sm:$0xff]  ;;  %v6174_v42 = vcombine.low %v2392_v25, %v2396_v57  ;;  %v6224_v25 = vcombine.low %v2417_v7, %v2421_v16 }
 0x1f1   : > { %2179 = vmatmul.mubr.bf16.vlgmr.msra.gmra.mrb[12].mxu0 %v5972_v22  ;;  %2220 = vmatmul.mubr.bf16.vlgmr.msra.gmra.mrb[12].mxu1 %v5972_v22  ;;  %v2344_v22 = vld [vmem:[%s5351_s3 + $0x80] sm:$0xff]  ;;  %v6226_v57 = vcombine.high %v2417_v7, %v2421_v16  ;;  %v2437_v7 = vld [vmem:[%s5351_s3 + $0x368] sm:$0xff] }
 0x1f2   : > { %3097 = vmatpush1.bf16.msra.mxu0 %v6043_v3  ;;  %3138 = vmatpush1.bf16.msra.mxu1 %v6050_v31  ;;  %v6073_v55 = vcombine.high %v2344_v22, %v2348_v34  ;;  %v6083_v58 = vcombine.low %v2344_v22, %v2348_v34  ;;  %v6176_v22 = vcombine.low %v2393_v0, %v2397_v6  ;;  %v2440_v16 = vld [vmem:[%s5351_s3 + $0x380] sm:$0xff] }
 0x1f3   : > { %3098 = vmatprep.subr.bf16.mxu0 %v6054_v13  ;;  %3139 = vmatprep.subr.bf16.mxu1 %v6060_v33  ;;  %v6178_v34 = vcombine.high %v2393_v0, %v2397_v6  ;;  %7071 = vst [vmem:[#allocation12_spill] sm:$0xff] %v6224_v25  ;;  %7072 = vst [vmem:[#allocation13_spill] sm:$0xff] %v6226_v57  ;;  %v2424_v0 = vld [vmem:[%s5351_s3 + $0x300] sm:$0xff]  ;;  %v6263_v40 = vcombine.low %v2433_v59, %v2437_v7 }
 0x1f4   : > { %v2428_v6 = vld [vmem:[%s5351_s3 + $0x320] sm:$0xff] }
 0x1f5   : > { %v6235_v48 = vcombine.low %v2424_v0, %v2428_v6  ;;  %v6237_v2 = vcombine.high %v2424_v0, %v2428_v6  ;;  %v2444_v0 = vld [vmem:[%s5351_s3 + $0x3a0] sm:$0xff]  ;;  %v2441_v6 = vld [vmem:[%s5351_s3 + $0x388] sm:$0xff]  ;;  %7080 = vst [vmem:[#allocation21_spill] sm:$0xff] %v6263_v40 }
 0x1f6   : > { %3099 = vmatpush1.bf16.msra.mxu0 %v6067_v49  ;;  %3140 = vmatpush1.bf16.msra.mxu1 %v6071_v50  ;;  %v6275_v17 = vcombine.low %v2440_v16, %v2444_v0 }
 0x1f7   : > { %3100 = vmatprep.subr.bf16.mxu0 %v6073_v55  ;;  %3141 = vmatprep.subr.bf16.mxu1 %v6076_v1  ;;  %7073 = vst [vmem:[#allocation14_spill] sm:$0xff] %v6235_v48  ;;  %7074 = vst [vmem:[#allocation15_spill] sm:$0xff] %v6237_v2 }
 0x1f8   : > { %7083 = vst [vmem:[#allocation24_spill] sm:$0xff] %v6275_v17 }
 0x1fa   : > { %3101 = vmatpush1.bf16.msra.mxu0 %v6083_v58  ;;  %3142 = vmatpush1.bf16.msra.mxu1 %v6087_v15 }
 0x1fb   : > { %3102 = vmatprep.subr.bf16.mxu0 %v6089_v4  ;;  %3143 = vmatprep.subr.bf16.mxu1 %v6092_v47 }
 0x1fe   : > { %3103 = vmatpush1.bf16.msra.mxu0 %v6099_v19  ;;  %3144 = vmatpush1.bf16.msra.mxu1 %v6103_v23 }
 0x1ff   : > { %3104 = vmatprep.subr.bf16.mxu0 %v6105_v27  ;;  %3145 = vmatprep.subr.bf16.mxu1 %v6108_v28 }
 0x202   : > { %3105 = vmatpush1.bf16.msra.mxu0 %v6111_v29  ;;  %3146 = vmatpush1.bf16.msra.mxu1 %v6115_v30 }
 0x203   : > { %3106 = vmatprep.subr.bf16.mxu0 %v6123_v38  ;;  %3147 = vmatprep.subr.bf16.mxu1 %v6130_v46 }
 0x206   : > { %3107 = vmatpush1.bf16.msra.mxu0 %v6126_v44  ;;  %3148 = vmatpush1.bf16.msra.mxu1 %v6128_v45 }
 0x207   : > { %3108 = vmatprep.subr.bf16.mxu0 %v6139_v54  ;;  %3149 = vmatprep.subr.bf16.mxu1 %v6146_v5 }
 0x20a   : > { %3109 = vmatpush1.bf16.msra.mxu0 %v6142_v61  ;;  %3150 = vmatpush1.bf16.msra.mxu1 %v6144_v63 }
 0x20b   : > { %3110 = vmatprep.subr.bf16.mxu0 %v6155_v20  ;;  %3151 = vmatprep.subr.bf16.mxu1 %v6162_v56 }
 0x20e   : > { %3111 = vmatpush1.bf16.msra.mxu0 %v6158_v32  ;;  %3152 = vmatpush1.bf16.msra.mxu1 %v6160_v11 }
 0x20f   : > { %3112 = vmatprep.subr.bf16.mxu0 %v6171_v10  ;;  %3153 = vmatprep.subr.bf16.mxu1 %v6178_v34 }
 0x212   : > { %3113 = vmatpush1.bf16.msra.mxu0 %v6174_v42  ;;  %3154 = vmatpush1.bf16.msra.mxu1 %v6176_v22 }
 0x213   : > { %3114 = vmatprep.subr.bf16.mxu0 %v6187_v26  ;;  %3155 = vmatprep.subr.bf16.mxu1 %v6194_v14 }
 0x216   : > { %3115 = vmatpush1.bf16.msra.mxu0 %v6190_v41  ;;  %3156 = vmatpush1.bf16.msra.mxu1 %v6192_v12 }
 0x217   : > { %3116 = vmatprep.subr.bf16.mxu0 %v6203_v36  ;;  %3157 = vmatprep.subr.bf16.mxu1 %v6210_v52 }
 0x21a   : > { %3117 = vmatpush1.bf16.msra.mxu0 %v6206_v43  ;;  %3158 = vmatpush1.bf16.msra.mxu1 %v6208_v51  ;;  %v2452_v51 = vld [vmem:[%s5351_s3 + $0x3e0] sm:$0xff]  ;;  %v2449_v43 = vld [vmem:[%s5351_s3 + $0x3c8] sm:$0xff] }
 0x21b   : > { %3118 = vmatprep.subr.bf16.mxu0 %v6219_v8  ;;  %3159 = vmatprep.subr.bf16.mxu1 %v6226_v57  ;;  %v2448_v8 = vld [vmem:[%s5351_s3 + $0x3c0] sm:$0xff] }
 0x21e   : > { %3119 = vmatpush1.bf16.msra.mxu0 %v6222_v21  ;;  %3160 = vmatpush1.bf16.msra.mxu1 %v6224_v25  ;;  %v6252_v25 = vcombine.high %v2433_v59, %v2437_v7  ;;  %v2445_v21 = vld [vmem:[%s5351_s3 + $0x3a8] sm:$0xff]  ;;  %v6281_v59 = vcombine.high %v2448_v8, %v2452_v51 }
 0x21f   : > { %3120 = vmatprep.subr.bf16.mxu0 %v6237_v2  ;;  %3161 = vmatprep.subr.bf16.mxu1 %v6244_v37  ;;  %v6265_v2 = vcombine.high %v2440_v16, %v2444_v0  ;;  %v6268_v57 = vcombine.high %v2441_v6, %v2445_v21  ;;  %v2453_v37 = vld [vmem:[%s5351_s3 + $0x3e8] sm:$0xff]  ;;  %v6279_v18 = vcombine.low %v2441_v6, %v2445_v21  ;;  %v2330_v21 = vld [vmem:[%s5351_s3 + $0x10] sm:$0xff]  ;;  %v2331_v6 = vld [vmem:[%s5351_s3 + $0x18] sm:$0xff] }
 0x220   : > { %7078 = vst [vmem:[#allocation19_spill] sm:$0xff] %v6252_v25  ;;  %7085 = vst [vmem:[#allocation26_spill] sm:$0xff] %v6281_v59  ;;  %v6284_v7 = vcombine.high %v2449_v43, %v2453_v37  ;;  %v6291_v16 = vcombine.low %v2449_v43, %v2453_v37  ;;  %v2334_v0 = vld [vmem:[%s5351_s3 + $0x30] sm:$0xff] }
 0x221   : > { %7081 = vst [vmem:[#allocation22_spill] sm:$0xff] %v6265_v2  ;;  %7082 = vst [vmem:[#allocation23_spill] sm:$0xff] %v6268_v57 }
 0x222   : > { %3121 = vmatpush1.bf16.msra.mxu0 %v6235_v48  ;;  %3162 = vmatpush1.bf16.msra.mxu1 %v6242_v35  ;;  %7084 = vst [vmem:[#allocation25_spill] sm:$0xff] %v6279_v18  ;;  %7086 = vst [vmem:[#allocation27_spill] sm:$0xff] %v6284_v7 }
 0x223   : > { %3122 = vmatprep.subr.bf16.mxu0 %v6246_v53  ;;  %3163 = vmatprep.subr.bf16.mxu1 %v6252_v25  ;;  %7088 = vst [vmem:[#allocation29_spill] sm:$0xff] %v6291_v16 }
 0x226   : > { %3123 = vmatpush1.bf16.msra.mxu0 %v6259_v39  ;;  %3164 = vmatpush1.bf16.msra.mxu1 %v6263_v40  ;;  %v6287_v39 = vcombine.low %v2448_v8, %v2452_v51  ;;  %v6302_v51 = vcombine.low %v2330_v21, %v2334_v0 }
 0x227   : > { %3124 = vmatprep.subr.bf16.mxu0 %v6265_v2  ;;  %3165 = vmatprep.subr.bf16.mxu1 %v6268_v57  ;;  %v6299_v57 = vcombine.high %v2330_v21, %v2334_v0 }
 0x228   : > { %7087 = vst [vmem:[#allocation28_spill] sm:$0xff] %v6287_v39 }
 0x229   : > { %7089 = vst [vmem:[#allocation30_spill] sm:$0xff] %v6299_v57 }
 0x22a   : > { %3125 = vmatpush1.bf16.msra.mxu0 %v6275_v17  ;;  %3166 = vmatpush1.bf16.msra.mxu1 %v6279_v18  ;;  %v2335_v17 = vld [vmem:[%s5351_s3 + $0x38] sm:$0xff] }
 0x22b   : > { %3126 = vmatprep.subr.bf16.mxu0 %v6281_v59  ;;  %3167 = vmatprep.subr.bf16.mxu1 %v6284_v7  ;;  %v6304_v8 = vcombine.low %v2331_v6, %v2335_v17  ;;  %v6306_v18 = vcombine.high %v2331_v6, %v2335_v17 }
 0x22d   : > { %7090 = vst [vmem:[#allocation31_spill] sm:$0xff] %v6304_v8  ;;  %7091 = vst [vmem:[#allocation32_spill] sm:$0xff] %v6306_v18 }
 0x22e   : > { %3127 = vmatpush1.bf16.msra.mxu0 %v6287_v39  ;;  %3168 = vmatpush1.bf16.msra.mxu1 %v6291_v16 }
 0x22f   : > { %3178 = vmatprep.subr.bf16.mxu0 %v6299_v57  ;;  %3219 = vmatprep.subr.bf16.mxu1 %v6306_v18 }
 0x284   : > { %v2098_v43 = vpop.f32.mrb[8].mxu0  ;;  %v2139_v37 = vpop.f32.mrb[8].mxu1 }
 0x285   : > { %v2100_v39 = vpop.f32.mrb[9].mxu0  ;;  %v2141_v16 = vpop.f32.mrb[9].mxu1 }
 0x286   : > { %v2236_v7 = vcombine.low %v2098_v43, %v2100_v39  ;;  %v2237_v59 = vcombine.low %v2139_v37, %v2141_v16  ;;  %v2102_v2 = vpop.f32.mrb[10].mxu0  ;;  %v2143_v21 = vpop.f32.mrb[10].mxu1 }
 0x287   : > { %v2103_v0 = vpop.f32.mrb[11].mxu0  ;;  %v2144_v40 = vpop.f32.mrb[11].mxu1  ;;  %v1281_v2 = vld [vmem:[%s1280_s25] sm:$0xff] }
 0x288   : > { %v2244_v17 = vrot.slane %v2236_v7, %v5949_v9  ;;  %v2251_v6 = vrot.slane %v2237_v59, %v5949_v9 }
 0x28a   : > { %v2252_v25 = vcombine.low %v2244_v17, %v2251_v6 }
 0x28c   : > { %v2272_v39 = vadd.f32 %v2252_v25, %v1281_v2 }
 0x28e   : > { %v2281_v40 = vrot.slane %v2272_v39, 4  ;;  %v4840_v7 = vmul.f32 -1.442695, %v2272_v39 }
 0x290   : > { %v4841_v16 = vmul.f32 -1.442695, %v2281_v40  ;;  %v1282_v40 = vld [vmem:[%s1280_s25 + $0x8] sm:$0xff] }
 0x292   : > { %5191 = vpow2.f32 %v4841_v16 }
 0x293   : > { %5193 = vpow2.f32 %v4840_v7 }
 0x29c   : > { %v5192_v37 = vpop.eup %5191 }
 0x29d   : > { %v5194_v17 = vpop.eup %5193  ;;  %v2286_v52 = vadd.f32 1.0, %v5192_v37 }
 0x29e   : > { %v2277_v39 = vadd.f32 1.0, %v5194_v17 }
 0x29f   : > { %5195 = vrcp.f32 %v2286_v52 }
 0x2a0   : > { %5197 = vrcp.f32 %v2277_v39  ;;  %v2343_v39 = vld [vmem:[%s5351_s3 + $0x78] sm:$0xff] }
 0x2c4   : > { %v2180_v59 = vpop.f32.mrb[12].mxu0  ;;  %v2221_v43 = vpop.f32.mrb[12].mxu1 }
 0x2c5   : > { %v2182_v21 = vpop.f32.mrb[13].mxu0  ;;  %v2223_v0 = vpop.f32.mrb[13].mxu1 }
 0x2c6   : > { %v2253_v6 = vcombine.low %v2180_v59, %v2182_v21  ;;  %v2254_v18 = vcombine.low %v2221_v43, %v2223_v0  ;;  %v2184_v57 = vpop.f32.mrb[14].mxu0  ;;  %v2225_v53 = vpop.f32.mrb[14].mxu1 }
 0x2c7   : > { %v2185_v35 = vpop.f32.mrb[15].mxu0  ;;  %v2226_v48 = vpop.f32.mrb[15].mxu1 }
 0x2c8   : > { %v2261_v25 = vrot.slane %v2253_v6, %v5949_v9  ;;  %v2268_v2 = vrot.slane %v2254_v18, %v5949_v9  ;;  %v5196_v57 = vpop.eup %5195  ;;  %v2338_v6 = vld [vmem:[%s5351_s3 + $0x50] sm:$0xff] }
 0x2c9   : > { %v5198_v35 = vpop.eup %5197  ;;  %v2299_v53 = vmul.f32 %v5196_v57, %v5962_v60 }
 0x2ca   : > { %v2269_v16 = vcombine.low %v2261_v25, %v2268_v2  ;;  %v2342_v25 = vld [vmem:[%s5351_s3 + $0x70] sm:$0xff]  ;;  %v2339_v2 = vld [vmem:[%s5351_s3 + $0x58] sm:$0xff] }
 0x2cb   : > { %v6342_v57 = vcombine.high %v2339_v2, %v2343_v39 }
 0x2cc   : > { %v2273_v7 = vadd.f32 %v2269_v16, %v1282_v40 }
 0x2cd   : > { %7093 = vst [vmem:[#allocation34_spill] sm:$0xff] %v6342_v57 }
 0x2ce   : > { %5199 = vtanh.f32 %v2273_v7  ;;  %v2291_v36 = vrot.slane %v2273_v7, 4  ;;  %v2346_v7 = vld [vmem:[%s5351_s3 + $0x90] sm:$0xff] }
 0x2d0   : > { %v4842_v59 = vmul.f32 -1.442695, %v2291_v36 }
 0x2d2   : > { %5201 = vpow2.f32 %v4842_v59  ;;  %v6340_v59 = vcombine.high %v2338_v6, %v2342_v25 }
 0x2d4   : > { %7092 = vst [vmem:[#allocation33_spill] sm:$0xff] %v6340_v59 }
 0x2d8   : > { %v5200_v48 = vpop.eup %5199 }
 0x2d9   : > { %v2300_v18 = vmul.f32 %v5200_v48, %v5198_v35  ;;  %v2350_v35 = vld [vmem:[%s5351_s3 + $0xb0] sm:$0xff]  ;;  %v2347_v48 = vld [vmem:[%s5351_s3 + $0x98] sm:$0xff] }
 0x2db   : > { %v6327_v43 = vadd.f32 %v2300_v18, %v2299_v53  ;;  %v2351_v53 = vld [vmem:[%s5351_s3 + $0xb8] sm:$0xff]  ;;  %v6351_v18 = vcombine.low %v2338_v6, %v2342_v25  ;;  %v6367_v6 = vcombine.low %v2346_v7, %v2350_v35 }
 0x2dc   : > { %v5202_v52 = vpop.eup %5201  ;;  %v6369_v25 = vcombine.low %v2347_v48, %v2351_v53 }
 0x2dd   : > { %v2296_v37 = vadd.f32 1.0, %v5202_v52  ;;  %5203 = vtanh.f32 %v6327_v43  ;;  %7094 = vst [vmem:[#allocation35_spill] sm:$0xff] %v6351_v18  ;;  %v6353_v52 = vcombine.low %v2339_v2, %v2343_v39  ;;  %7098 = vst [vmem:[#allocation39_spill] sm:$0xff] %v6367_v6 }
 0x2de   : > { %7099 = vst [vmem:[#allocation40_spill] sm:$0xff] %v6369_v25 }
 0x2df   : > { %5205 = vrcp.f32 %v2296_v37  ;;  %7095 = vst [vmem:[#allocation36_spill] sm:$0xff] %v6353_v52  ;;  %v6355_v37 = vcombine.high %v2346_v7, %v2350_v35 }
 0x2e1   : > { %7096 = vst [vmem:[#allocation37_spill] sm:$0xff] %v6355_v37 }
 0x2e7   : > { %v5204_v36 = vpop.eup %5203 }
 0x2e9   : > { %v5206_v21 = vpop.eup %5205 }
 0x2ea   : > { %v2303_v0 = vmul.f32 %v5206_v21, %v5204_v36  ;;  %v6357_v36 = vcombine.high %v2347_v48, %v2351_v53  ;;  %v2354_v21 = vld [vmem:[%s5351_s3 + $0xd0] sm:$0xff] }
 0x2ec   : > { %2307 = vst [vmem:[%s2306_s27] sm:$0xf] %v2303_v0  ;;  %v2322_v60 = vrot.slane %v2303_v0, %v5949_v9  ;;  %7097 = vst [vmem:[#allocation38_spill] sm:$0xff] %v6357_v36  ;;  %v2358_v0 = vld [vmem:[%s5351_s3 + $0xf0] sm:$0xff] }
 0x2ed   : > { %v6373_v2 = vcombine.high %v2354_v21, %v2358_v0  ;;  %v6383_v7 = vcombine.low %v2354_v21, %v2358_v0 }
 0x2ee   : > { %v2323_v17 = vcombine.high %v2322_v60, %v2322_v60  ;;  %v6337_v16 = vpack.c.bf16 %v2322_v60, %v2322_v60  ;;  %v2355_v60 = vld [vmem:[%s5351_s3 + $0xd8] sm:$0xff] }
 0x2ef   : > { %7100 = vst [vmem:[#allocation41_spill] sm:$0xff] %v6373_v2  ;;  %7102 = vst [vmem:[#allocation43_spill] sm:$0xff] %v6383_v7 }
 0x2f0   : > { %v2327_v40 = vpack.c.bf16 %v2323_v17, %v2323_v17  ;;  %v2359_v17 = vld [vmem:[%s5351_s3 + $0xf8] sm:$0xff] }
 0x2f1   : > { %v6375_v39 = vcombine.high %v2355_v60, %v2359_v17  ;;  %v6385_v35 = vcombine.low %v2355_v60, %v2359_v17 }
 0x2f2   : > { %3128 = vmatprep.mubr.bf16.mxu0 %v2327_v40  ;;  %3169 = vmatprep.mubr.bf16.mxu1 %v2327_v40 }
 0x2f3   : > { %3129 = vmatmul.mubr.bf16.vlgmr.msra.gmra.mrb[16].mxu0 %v6337_v16  ;;  %3170 = vmatmul.mubr.bf16.vlgmr.msra.gmra.mrb[16].mxu1 %v6337_v16  ;;  %7101 = vst [vmem:[#allocation42_spill] sm:$0xff] %v6375_v39  ;;  %7103 = vst [vmem:[#allocation44_spill] sm:$0xff] %v6385_v35 }
 0x2f4   : > { %3179 = vmatpush1.bf16.msra.mxu0 %v6302_v51  ;;  %3220 = vmatpush1.bf16.msra.mxu1 %v6304_v8  ;;  %v2455_v8 = vld [vmem:[%s5351_s3 + $0x3f8] sm:$0xff] }
 0x2f5   : > { %3210 = vmatprep.mubr.bf16.mxu0 %v2327_v40  ;;  %3251 = vmatprep.mubr.bf16.mxu1 %v2327_v40  ;;  %v2362_v40 = vld [vmem:[%s5351_s3 + $0x110] sm:$0xff] }
 0x2f6   : > { %3180 = vmatprep.subr.bf16.mxu0 %v6340_v59  ;;  %3221 = vmatprep.subr.bf16.mxu1 %v6342_v57  ;;  %v2363_v57 = vld [vmem:[%s5351_s3 + $0x118] sm:$0xff] }
 0x2f7   : > { %v2451_v59 = vld [vmem:[%s5351_s3 + $0x3d8] sm:$0xff] }
 0x2f8   : > { %3181 = vmatpush1.bf16.msra.mxu0 %v6351_v18  ;;  %3222 = vmatpush1.bf16.msra.mxu1 %v6353_v52  ;;  %v2366_v18 = vld [vmem:[%s5351_s3 + $0x130] sm:$0xff]  ;;  %v2367_v52 = vld [vmem:[%s5351_s3 + $0x138] sm:$0xff] }
 0x2f9   : > { %3182 = vmatprep.subr.bf16.mxu0 %v6355_v37  ;;  %3223 = vmatprep.subr.bf16.mxu1 %v6357_v36  ;;  %v6389_v48 = vcombine.high %v2362_v40, %v2366_v18  ;;  %v6391_v53 = vcombine.high %v2363_v57, %v2367_v52  ;;  %v2370_v36 = vld [vmem:[%s5351_s3 + $0x150] sm:$0xff]  ;;  %v2371_v37 = vld [vmem:[%s5351_s3 + $0x158] sm:$0xff]  ;;  %v6399_v21 = vcombine.low %v2362_v40, %v2366_v18 }
 0x2fa   : > { %v6401_v0 = vcombine.low %v2363_v57, %v2367_v52 }
 0x2fb   : > { %7104 = vst [vmem:[#allocation45_spill] sm:$0xff] %v6389_v48  ;;  %7105 = vst [vmem:[#allocation46_spill] sm:$0xff] %v6391_v53 }
 0x2fc   : > { %3183 = vmatpush1.bf16.msra.mxu0 %v6367_v6  ;;  %3224 = vmatpush1.bf16.msra.mxu1 %v6369_v25  ;;  %v2374_v6 = vld [vmem:[%s5351_s3 + $0x170] sm:$0xff]  ;;  %v2375_v25 = vld [vmem:[%s5351_s3 + $0x178] sm:$0xff]  ;;  %7106 = vst [vmem:[#allocation47_spill] sm:$0xff] %v6399_v21  ;;  %7107 = vst [vmem:[#allocation48_spill] sm:$0xff] %v6401_v0 }
 0x2fd   : > { %3184 = vmatprep.subr.bf16.mxu0 %v6373_v2  ;;  %3225 = vmatprep.subr.bf16.mxu1 %v6375_v39  ;;  %v6405_v60 = vcombine.high %v2370_v36, %v2374_v6  ;;  %v6407_v17 = vcombine.high %v2371_v37, %v2375_v25  ;;  %v2378_v39 = vld [vmem:[%s5351_s3 + $0x190] sm:$0xff]  ;;  %v2379_v2 = vld [vmem:[%s5351_s3 + $0x198] sm:$0xff]  ;;  %v6415_v57 = vcombine.low %v2370_v36, %v2374_v6 }
 0x2fe   : > { %v6417_v18 = vcombine.low %v2371_v37, %v2375_v25 }
 0x2ff   : > { %7108 = vst [vmem:[#allocation49_spill] sm:$0xff] %v6405_v60  ;;  %7109 = vst [vmem:[#allocation50_spill] sm:$0xff] %v6407_v17 }
 0x300   : > { %3185 = vmatpush1.bf16.msra.mxu0 %v6383_v7  ;;  %3226 = vmatpush1.bf16.msra.mxu1 %v6385_v35  ;;  %v2382_v7 = vld [vmem:[%s5351_s3 + $0x1b0] sm:$0xff]  ;;  %v2383_v35 = vld [vmem:[%s5351_s3 + $0x1b8] sm:$0xff]  ;;  %7110 = vst [vmem:[#allocation51_spill] sm:$0xff] %v6415_v57  ;;  %7111 = vst [vmem:[#allocation52_spill] sm:$0xff] %v6417_v18 }
 0x301   : > { %3186 = vmatprep.subr.bf16.mxu0 %v6389_v48  ;;  %3227 = vmatprep.subr.bf16.mxu1 %v6391_v53  ;;  %v6421_v52 = vcombine.high %v2378_v39, %v2382_v7  ;;  %v6423_v40 = vcombine.high %v2379_v2, %v2383_v35  ;;  %v2386_v53 = vld [vmem:[%s5351_s3 + $0x1d0] sm:$0xff]  ;;  %v2387_v48 = vld [vmem:[%s5351_s3 + $0x1d8] sm:$0xff]  ;;  %v6431_v37 = vcombine.low %v2378_v39, %v2382_v7 }
 0x302   : > { %v6433_v36 = vcombine.low %v2379_v2, %v2383_v35 }
 0x303   : > { %7112 = vst [vmem:[#allocation53_spill] sm:$0xff] %v6421_v52  ;;  %7113 = vst [vmem:[#allocation54_spill] sm:$0xff] %v6423_v40 }
 0x304   : > { %3187 = vmatpush1.bf16.msra.mxu0 %v6399_v21  ;;  %3228 = vmatpush1.bf16.msra.mxu1 %v6401_v0  ;;  %v2390_v21 = vld [vmem:[%s5351_s3 + $0x1f0] sm:$0xff]  ;;  %v2391_v0 = vld [vmem:[%s5351_s3 + $0x1f8] sm:$0xff]  ;;  %7114 = vst [vmem:[#allocation55_spill] sm:$0xff] %v6431_v37  ;;  %7115 = vst [vmem:[#allocation56_spill] sm:$0xff] %v6433_v36 }
 0x305   : > { %3188 = vmatprep.subr.bf16.mxu0 %v6405_v60  ;;  %3229 = vmatprep.subr.bf16.mxu1 %v6407_v17  ;;  %v6437_v6 = vcombine.high %v2386_v53, %v2390_v21  ;;  %v6439_v25 = vcombine.high %v2387_v48, %v2391_v0  ;;  %v2394_v17 = vld [vmem:[%s5351_s3 + $0x210] sm:$0xff]  ;;  %v2395_v60 = vld [vmem:[%s5351_s3 + $0x218] sm:$0xff]  ;;  %v6447_v2 = vcombine.low %v2386_v53, %v2390_v21 }
 0x306   : > { %v6449_v39 = vcombine.low %v2387_v48, %v2391_v0 }
 0x307   : > { %7116 = vst [vmem:[#allocation57_spill] sm:$0xff] %v6437_v6  ;;  %7117 = vst [vmem:[#allocation58_spill] sm:$0xff] %v6439_v25 }
 0x308   : > { %3189 = vmatpush1.bf16.msra.mxu0 %v6415_v57  ;;  %3230 = vmatpush1.bf16.msra.mxu1 %v6417_v18  ;;  %v2398_v57 = vld [vmem:[%s5351_s3 + $0x230] sm:$0xff]  ;;  %v2399_v18 = vld [vmem:[%s5351_s3 + $0x238] sm:$0xff]  ;;  %7118 = vst [vmem:[#allocation59_spill] sm:$0xff] %v6447_v2  ;;  %7119 = vst [vmem:[#allocation60_spill] sm:$0xff] %v6449_v39 }
 0x309   : > { %3190 = vmatprep.subr.bf16.mxu0 %v6421_v52  ;;  %3231 = vmatprep.subr.bf16.mxu1 %v6423_v40  ;;  %v6453_v7 = vcombine.high %v2394_v17, %v2398_v57  ;;  %v6455_v35 = vcombine.high %v2395_v60, %v2399_v18  ;;  %v2402_v40 = vld [vmem:[%s5351_s3 + $0x250] sm:$0xff]  ;;  %v2403_v52 = vld [vmem:[%s5351_s3 + $0x258] sm:$0xff]  ;;  %v6463_v48 = vcombine.low %v2394_v17, %v2398_v57 }
 0x30a   : > { %v6465_v53 = vcombine.low %v2395_v60, %v2399_v18 }
 0x30b   : > { %7120 = vst [vmem:[#allocation61_spill] sm:$0xff] %v6453_v7  ;;  %7121 = vst [vmem:[#allocation62_spill] sm:$0xff] %v6455_v35 }
 0x30c   : > { %3191 = vmatpush1.bf16.msra.mxu0 %v6431_v37  ;;  %3232 = vmatpush1.bf16.msra.mxu1 %v6433_v36  ;;  %v2406_v37 = vld [vmem:[%s5351_s3 + $0x270] sm:$0xff]  ;;  %v2407_v36 = vld [vmem:[%s5351_s3 + $0x278] sm:$0xff]  ;;  %7122 = vst [vmem:[#allocation63_spill] sm:$0xff] %v6463_v48  ;;  %7123 = vst [vmem:[#allocation64_spill] sm:$0xff] %v6465_v53 }
 0x30d   : > { %3192 = vmatprep.subr.bf16.mxu0 %v6437_v6  ;;  %3233 = vmatprep.subr.bf16.mxu1 %v6439_v25  ;;  %v6469_v21 = vcombine.high %v2402_v40, %v2406_v37  ;;  %v6471_v0 = vcombine.high %v2403_v52, %v2407_v36  ;;  %v2410_v25 = vld [vmem:[%s5351_s3 + $0x290] sm:$0xff]  ;;  %v2411_v6 = vld [vmem:[%s5351_s3 + $0x298] sm:$0xff]  ;;  %v6479_v60 = vcombine.low %v2402_v40, %v2406_v37 }
 0x30e   : > { %v6481_v17 = vcombine.low %v2403_v52, %v2407_v36 }
 0x30f   : > { %7124 = vst [vmem:[#allocation65_spill] sm:$0xff] %v6469_v21  ;;  %7125 = vst [vmem:[#allocation66_spill] sm:$0xff] %v6471_v0 }
 0x310   : > { %3193 = vmatpush1.bf16.msra.mxu0 %v6447_v2  ;;  %3234 = vmatpush1.bf16.msra.mxu1 %v6449_v39  ;;  %v2414_v2 = vld [vmem:[%s5351_s3 + $0x2b0] sm:$0xff]  ;;  %v2415_v39 = vld [vmem:[%s5351_s3 + $0x2b8] sm:$0xff]  ;;  %7126 = vst [vmem:[#allocation67_spill] sm:$0xff] %v6479_v60  ;;  %7127 = vst [vmem:[#allocation68_spill] sm:$0xff] %v6481_v17 }
 0x311   : > { %3194 = vmatprep.subr.bf16.mxu0 %v6453_v7  ;;  %3235 = vmatprep.subr.bf16.mxu1 %v6455_v35  ;;  %v6485_v57 = vcombine.high %v2410_v25, %v2414_v2  ;;  %v6487_v18 = vcombine.high %v2411_v6, %v2415_v39  ;;  %v2418_v35 = vld [vmem:[%s5351_s3 + $0x2d0] sm:$0xff]  ;;  %v2419_v7 = vld [vmem:[%s5351_s3 + $0x2d8] sm:$0xff]  ;;  %v6495_v52 = vcombine.low %v2410_v25, %v2414_v2 }
 0x312   : > { %v6497_v40 = vcombine.low %v2411_v6, %v2415_v39 }
 0x313   : > { %7128 = vst [vmem:[#allocation69_spill] sm:$0xff] %v6485_v57  ;;  %7129 = vst [vmem:[#allocation70_spill] sm:$0xff] %v6487_v18 }
 0x314   : > { %3195 = vmatpush1.bf16.msra.mxu0 %v6463_v48  ;;  %3236 = vmatpush1.bf16.msra.mxu1 %v6465_v53  ;;  %v2422_v48 = vld [vmem:[%s5351_s3 + $0x2f0] sm:$0xff]  ;;  %v2423_v53 = vld [vmem:[%s5351_s3 + $0x2f8] sm:$0xff]  ;;  %7130 = vst [vmem:[#allocation71_spill] sm:$0xff] %v6495_v52  ;;  %7131 = vst [vmem:[#allocation72_spill] sm:$0xff] %v6497_v40 }
 0x315   : > { %3196 = vmatprep.subr.bf16.mxu0 %v6469_v21  ;;  %3237 = vmatprep.subr.bf16.mxu1 %v6471_v0  ;;  %v6501_v37 = vcombine.high %v2418_v35, %v2422_v48  ;;  %v6503_v36 = vcombine.high %v2419_v7, %v2423_v53  ;;  %v2426_v0 = vld [vmem:[%s5351_s3 + $0x310] sm:$0xff]  ;;  %v2427_v21 = vld [vmem:[%s5351_s3 + $0x318] sm:$0xff]  ;;  %v6511_v6 = vcombine.low %v2418_v35, %v2422_v48 }
 0x316   : > { %v6513_v25 = vcombine.low %v2419_v7, %v2423_v53 }
 0x317   : > { %7132 = vst [vmem:[#allocation73_spill] sm:$0xff] %v6501_v37  ;;  %7133 = vst [vmem:[#allocation74_spill] sm:$0xff] %v6503_v36 }
 0x318   : > { %3197 = vmatpush1.bf16.msra.mxu0 %v6479_v60  ;;  %3238 = vmatpush1.bf16.msra.mxu1 %v6481_v17  ;;  %v2430_v60 = vld [vmem:[%s5351_s3 + $0x330] sm:$0xff]  ;;  %v2431_v17 = vld [vmem:[%s5351_s3 + $0x338] sm:$0xff]  ;;  %7134 = vst [vmem:[#allocation75_spill] sm:$0xff] %v6511_v6  ;;  %7135 = vst [vmem:[#allocation76_spill] sm:$0xff] %v6513_v25 }
 0x319   : > { %3198 = vmatprep.subr.bf16.mxu0 %v6485_v57  ;;  %3239 = vmatprep.subr.bf16.mxu1 %v6487_v18  ;;  %v6517_v2 = vcombine.high %v2426_v0, %v2430_v60  ;;  %v6519_v39 = vcombine.high %v2427_v21, %v2431_v17  ;;  %v2434_v18 = vld [vmem:[%s5351_s3 + $0x350] sm:$0xff]  ;;  %v2435_v57 = vld [vmem:[%s5351_s3 + $0x358] sm:$0xff]  ;;  %v6527_v7 = vcombine.low %v2426_v0, %v2430_v60 }
 0x31a   : > { %v6529_v35 = vcombine.low %v2427_v21, %v2431_v17 }
 0x31b   : > { %7136 = vst [vmem:[#allocation77_spill] sm:$0xff] %v6517_v2  ;;  %7137 = vst [vmem:[#allocation78_spill] sm:$0xff] %v6519_v39 }
 0x31c   : > { %3199 = vmatpush1.bf16.msra.mxu0 %v6495_v52  ;;  %3240 = vmatpush1.bf16.msra.mxu1 %v6497_v40  ;;  %v2438_v52 = vld [vmem:[%s5351_s3 + $0x370] sm:$0xff]  ;;  %v2439_v40 = vld [vmem:[%s5351_s3 + $0x378] sm:$0xff] }
 0x31d   : > { %3200 = vmatprep.subr.bf16.mxu0 %v6501_v37  ;;  %3241 = vmatprep.subr.bf16.mxu1 %v6503_v36  ;;  %v6533_v48 = vcombine.high %v2434_v18, %v2438_v52  ;;  %v6535_v53 = vcombine.high %v2435_v57, %v2439_v40  ;;  %v2442_v36 = vld [vmem:[%s5351_s3 + $0x390] sm:$0xff]  ;;  %v2443_v37 = vld [vmem:[%s5351_s3 + $0x398] sm:$0xff]  ;;  %v6543_v21 = vcombine.low %v2434_v18, %v2438_v52 }
 0x31e   : > { %v6545_v0 = vcombine.low %v2435_v57, %v2439_v40  ;;  %v6567_v40 = vcombine.high %v2451_v59, %v2455_v8 }
 0x31f   : > { %7138 = vst [vmem:[#allocation79_spill] sm:$0xff] %v6535_v53  ;;  %7139 = vst [vmem:[#allocation80_spill] sm:$0xff] %v6543_v21 }
 0x320   : > { %3201 = vmatpush1.bf16.msra.mxu0 %v6511_v6  ;;  %3242 = vmatpush1.bf16.msra.mxu1 %v6513_v25  ;;  %v2446_v6 = vld [vmem:[%s5351_s3 + $0x3b0] sm:$0xff]  ;;  %v2447_v25 = vld [vmem:[%s5351_s3 + $0x3b8] sm:$0xff] }
 0x321   : > { %3202 = vmatprep.subr.bf16.mxu0 %v6517_v2  ;;  %3243 = vmatprep.subr.bf16.mxu1 %v6519_v39  ;;  %v6549_v60 = vcombine.high %v2442_v36, %v2446_v6  ;;  %v6551_v17 = vcombine.high %v2443_v37, %v2447_v25  ;;  %v2450_v39 = vld [vmem:[%s5351_s3 + $0x3d0] sm:$0xff]  ;;  %v6559_v18 = vcombine.low %v2442_v36, %v2446_v6 }
 0x322   : > { %v2454_v2 = vld [vmem:[%s5351_s3 + $0x3f0] sm:$0xff]  ;;  %v6561_v57 = vcombine.low %v2443_v37, %v2447_v25  ;;  %s2312_s3 = scalar_lea.vmem %s5957_s7, %s5128_s30 [#allocation4]  ;;  %s5131_s7 = sshll.u32 %s6736_s8, 2 }
 0x323   : > { %v6565_v52 = vcombine.high %v2450_v39, %v2454_v2  ;;  %s4370_s20 = scalar_lea.vmem %s5968_s17, %s5131_s7 [#allocation5] }
 0x324   : > { %3203 = vmatpush1.bf16.msra.mxu0 %v6527_v7  ;;  %3244 = vmatpush1.bf16.msra.mxu1 %v6529_v35 }
 0x325   : > { %3204 = vmatprep.subr.bf16.mxu0 %v6533_v48  ;;  %3245 = vmatprep.subr.bf16.mxu1 %v6535_v53  ;;  %v6571_v53 = vcombine.low %v2450_v39, %v2454_v2 }
 0x328   : > { %3205 = vmatpush1.bf16.msra.mxu0 %v6543_v21  ;;  %3246 = vmatpush1.bf16.msra.mxu1 %v6545_v0  ;;  %v6573_v21 = vcombine.low %v2451_v59, %v2455_v8 }
 0x329   : > { %3206 = vmatprep.subr.bf16.mxu0 %v6549_v60  ;;  %3247 = vmatprep.subr.bf16.mxu1 %v6551_v17 }
 0x32c   : > { %3207 = vmatpush1.bf16.msra.mxu0 %v6559_v18  ;;  %3248 = vmatpush1.bf16.msra.mxu1 %v6561_v57 }
 0x32d   : > { %3208 = vmatprep.subr.bf16.mxu0 %v6565_v52  ;;  %3249 = vmatprep.subr.bf16.mxu1 %v6567_v40 }
 0x330   : > { %3209 = vmatpush1.bf16.msra.mxu0 %v6571_v53  ;;  %3250 = vmatpush1.bf16.msra.mxu1 %v6573_v21 }
 0x331   : > { %4128 = vmatprep.subr.bf16.mxu0 %v6045_v62  ;;  %4169 = vmatprep.subr.bf16.mxu1 %v6052_v24  ;;  %v7141_v62 = vld [vmem:[#allocation9_spill] sm:$0xff]  ;;  %v7143_v24 = vld [vmem:[#allocation8_spill] sm:$0xff] }
 0x333   : > { %3211 = vmatmul.mubr.bf16.vlgmr.msra.gmra.mrb[20].mxu0 %v6337_v16  ;;  %3252 = vmatmul.mubr.bf16.vlgmr.msra.gmra.mrb[20].mxu1 %v6337_v16 }
 0x334   : > { %4129 = vmatpush1.bf16.msra.mxu0 %v6043_v3  ;;  %4170 = vmatpush1.bf16.msra.mxu1 %v6050_v31  ;;  %v7140_v3 = vld [vmem:[#allocation6_spill] sm:$0xff]  ;;  %v7142_v31 = vld [vmem:[#allocation7_spill] sm:$0xff] }
 0x335   : > { %4130 = vmatprep.subr.bf16.mxu0 %v6054_v13  ;;  %4171 = vmatprep.subr.bf16.mxu1 %v6060_v33  ;;  %v7144_v13 = vld [vmem:[#allocation10_spill] sm:$0xff]  ;;  %v7145_v33 = vld [vmem:[#allocation13_spill] sm:$0xff] }
 0x338   : > { %4131 = vmatpush1.bf16.msra.mxu0 %v6067_v49  ;;  %4172 = vmatpush1.bf16.msra.mxu1 %v6071_v50  ;;  %v7146_v49 = vld [vmem:[#allocation11_spill] sm:$0xff]  ;;  %v7147_v50 = vld [vmem:[#allocation12_spill] sm:$0xff] }
 0x339   : > { %4132 = vmatprep.subr.bf16.mxu0 %v6073_v55  ;;  %4173 = vmatprep.subr.bf16.mxu1 %v6076_v1  ;;  %v7148_v55 = vld [vmem:[#allocation15_spill] sm:$0xff]  ;;  %v7149_v1 = vld [vmem:[#allocation17_spill] sm:$0xff] }
 0x33c   : > { %4133 = vmatpush1.bf16.msra.mxu0 %v6083_v58  ;;  %4174 = vmatpush1.bf16.msra.mxu1 %v6087_v15  ;;  %v7150_v58 = vld [vmem:[#allocation14_spill] sm:$0xff]  ;;  %v7151_v15 = vld [vmem:[#allocation16_spill] sm:$0xff] }
 0x33d   : > { %4134 = vmatprep.subr.bf16.mxu0 %v6089_v4  ;;  %4175 = vmatprep.subr.bf16.mxu1 %v6092_v47  ;;  %v7152_v4 = vld [vmem:[#allocation18_spill] sm:$0xff]  ;;  %v7153_v47 = vld [vmem:[#allocation19_spill] sm:$0xff] }
 0x340   : > { %4135 = vmatpush1.bf16.msra.mxu0 %v6099_v19  ;;  %4176 = vmatpush1.bf16.msra.mxu1 %v6103_v23  ;;  %v7154_v19 = vld [vmem:[#allocation20_spill] sm:$0xff]  ;;  %v7155_v23 = vld [vmem:[#allocation21_spill] sm:$0xff] }
 0x341   : > { %4136 = vmatprep.subr.bf16.mxu0 %v6105_v27  ;;  %4177 = vmatprep.subr.bf16.mxu1 %v6108_v28  ;;  %v7156_v27 = vld [vmem:[#allocation22_spill] sm:$0xff]  ;;  %v7157_v28 = vld [vmem:[#allocation23_spill] sm:$0xff] }
 0x344   : > { %4137 = vmatpush1.bf16.msra.mxu0 %v6111_v29  ;;  %4178 = vmatpush1.bf16.msra.mxu1 %v6115_v30  ;;  %v7158_v29 = vld [vmem:[#allocation24_spill] sm:$0xff]  ;;  %v7159_v30 = vld [vmem:[#allocation25_spill] sm:$0xff] }
 0x345   : > { %4138 = vmatprep.subr.bf16.mxu0 %v6123_v38  ;;  %4179 = vmatprep.subr.bf16.mxu1 %v6130_v46  ;;  %v7160_v38 = vld [vmem:[#allocation26_spill] sm:$0xff]  ;;  %v7163_v46 = vld [vmem:[#allocation29_spill] sm:$0xff] }
 0x348   : > { %4139 = vmatpush1.bf16.msra.mxu0 %v6126_v44  ;;  %4180 = vmatpush1.bf16.msra.mxu1 %v6128_v45  ;;  %v7161_v44 = vld [vmem:[#allocation27_spill] sm:$0xff]  ;;  %v7162_v45 = vld [vmem:[#allocation28_spill] sm:$0xff] }
 0x349   : > { %4140 = vmatprep.subr.bf16.mxu0 %v6139_v54  ;;  %4181 = vmatprep.subr.bf16.mxu1 %v6146_v5  ;;  %v7164_v54 = vld [vmem:[#allocation30_spill] sm:$0xff] }
 0x34c   : > { %4141 = vmatpush1.bf16.msra.mxu0 %v6142_v61  ;;  %4182 = vmatpush1.bf16.msra.mxu1 %v6144_v63  ;;  %v7165_v61 = vld [vmem:[#allocation32_spill] sm:$0xff] }
 0x34d   : > { %4142 = vmatprep.subr.bf16.mxu0 %v6155_v20  ;;  %4183 = vmatprep.subr.bf16.mxu1 %v6162_v56 }
 0x350   : > { %4143 = vmatpush1.bf16.msra.mxu0 %v6158_v32  ;;  %4184 = vmatpush1.bf16.msra.mxu1 %v6160_v11 }
 0x351   : > { %4144 = vmatprep.subr.bf16.mxu0 %v6171_v10  ;;  %4185 = vmatprep.subr.bf16.mxu1 %v6178_v34 }
 0x354   : > { %4145 = vmatpush1.bf16.msra.mxu0 %v6174_v42  ;;  %4186 = vmatpush1.bf16.msra.mxu1 %v6176_v22 }
 0x355   : > { %4146 = vmatprep.subr.bf16.mxu0 %v6187_v26  ;;  %4187 = vmatprep.subr.bf16.mxu1 %v6194_v14  ;;  %v2313_v14 = vld [vmem:[%s2312_s3] sm:$0xff] }
 0x358   : > { %4147 = vmatpush1.bf16.msra.mxu0 %v6190_v41  ;;  %4188 = vmatpush1.bf16.msra.mxu1 %v6192_v12 }
 0x359   : > { %4148 = vmatprep.subr.bf16.mxu0 %v7140_v3  ;;  %4189 = vmatprep.subr.bf16.mxu1 %v7141_v62 }
 0x35c   : > { %4149 = vmatpush1.bf16.msra.mxu0 %v7142_v31  ;;  %4190 = vmatpush1.bf16.msra.mxu1 %v7143_v24 }
 0x35d   : > { %4150 = vmatprep.subr.bf16.mxu0 %v7144_v13  ;;  %4191 = vmatprep.subr.bf16.mxu1 %v7145_v33 }
 0x360   : > { %4151 = vmatpush1.bf16.msra.mxu0 %v7146_v49  ;;  %4192 = vmatpush1.bf16.msra.mxu1 %v7147_v50 }
 0x361   : > { %4152 = vmatprep.subr.bf16.mxu0 %v7148_v55  ;;  %4193 = vmatprep.subr.bf16.mxu1 %v7149_v1 }
 0x364   : > { %4153 = vmatpush1.bf16.msra.mxu0 %v7150_v58  ;;  %4194 = vmatpush1.bf16.msra.mxu1 %v7151_v15  ;;  %v2314_v15 = vld [vmem:[%s2312_s3 + $0x8] sm:$0xff] }
 0x365   : > { %4154 = vmatprep.subr.bf16.mxu0 %v7152_v4  ;;  %4195 = vmatprep.subr.bf16.mxu1 %v7153_v47 }
 0x368   : > { %4155 = vmatpush1.bf16.msra.mxu0 %v7154_v19  ;;  %4196 = vmatpush1.bf16.msra.mxu1 %v7155_v23 }
 0x369   : > { %4156 = vmatprep.subr.bf16.mxu0 %v7156_v27  ;;  %4197 = vmatprep.subr.bf16.mxu1 %v7157_v28 }
 0x36c   : > { %4157 = vmatpush1.bf16.msra.mxu0 %v7158_v29  ;;  %4198 = vmatpush1.bf16.msra.mxu1 %v7159_v30 }
 0x36d   : > { %4158 = vmatprep.subr.bf16.mxu0 %v7160_v38  ;;  %4199 = vmatprep.subr.bf16.mxu1 %v7161_v44 }
 0x370   : > { %4159 = vmatpush1.bf16.msra.mxu0 %v7162_v45  ;;  %4200 = vmatpush1.bf16.msra.mxu1 %v7163_v46 }
 0x371   : > { %4210 = vmatprep.subr.bf16.mxu0 %v7164_v54  ;;  %4251 = vmatprep.subr.bf16.mxu1 %v7165_v61 }
 0x3c6   : > { %v3130_v63 = vpop.f32.mrb[16].mxu0  ;;  %v3171_v5 = vpop.f32.mrb[16].mxu1 }
 0x3c7   : > { %v3132_v20 = vpop.f32.mrb[17].mxu0  ;;  %v3173_v32 = vpop.f32.mrb[17].mxu1 }
 0x3c8   : > { %v3268_v11 = vcombine.low %v3130_v63, %v3132_v20  ;;  %v3269_v56 = vcombine.low %v3171_v5, %v3173_v32  ;;  %v3134_v10 = vpop.f32.mrb[18].mxu0  ;;  %v3175_v42 = vpop.f32.mrb[18].mxu1 }
 0x3c9   : > { %v3135_v22 = vpop.f32.mrb[19].mxu0  ;;  %v3176_v34 = vpop.f32.mrb[19].mxu1  ;;  %v7168_v10 = vld [vmem:[#allocation34_spill] sm:$0xff]  ;;  %v7169_v42 = vld [vmem:[#allocation35_spill] sm:$0xff] }
 0x3ca   : > { %v3276_v26 = vrot.slane %v3268_v11, %v5949_v9  ;;  %v3283_v41 = vrot.slane %v3269_v56, %v5949_v9  ;;  %v7167_v56 = vld [vmem:[#allocation33_spill] sm:$0xff]  ;;  %v7170_v22 = vld [vmem:[#allocation36_spill] sm:$0xff] }
 0x3cb   : > { %v7171_v34 = vld [vmem:[#allocation37_spill] sm:$0xff] }
 0x3cc   : > { %v3284_v12 = vcombine.low %v3276_v26, %v3283_v41  ;;  %v7172_v26 = vld [vmem:[#allocation38_spill] sm:$0xff]  ;;  %v7173_v41 = vld [vmem:[#allocation39_spill] sm:$0xff] }
 0x3ce   : > { %v3304_v8 = vadd.f32 %v3284_v12, %v2313_v14  ;;  %v7174_v12 = vld [vmem:[#allocation40_spill] sm:$0xff]  ;;  %v7176_v14 = vld [vmem:[#allocation42_spill] sm:$0xff] }
 0x3d0   : > { %v3313_v16 = vrot.slane %v3304_v8, 4  ;;  %v4976_v37 = vmul.f32 -1.442695, %v3304_v8  ;;  %v7177_v8 = vld [vmem:[#allocation43_spill] sm:$0xff] }
 0x3d2   : > { %v4977_v59 = vmul.f32 -1.442695, %v3313_v16  ;;  %v7178_v16 = vld [vmem:[#allocation44_spill] sm:$0xff] }
 0x3d4   : > { %5207 = vpow2.f32 %v4977_v59  ;;  %v7179_v59 = vld [vmem:[#allocation45_spill] sm:$0xff] }
 0x3d5   : > { %5209 = vpow2.f32 %v4976_v37  ;;  %v7180_v37 = vld [vmem:[#allocation46_spill] sm:$0xff] }
 0x3de   : > { %v5208_v25 = vpop.eup %5207 }
 0x3df   : > { %v5210_v3 = vpop.eup %5209  ;;  %v3318_v50 = vadd.f32 1.0, %v5208_v25  ;;  %v7183_v25 = vld [vmem:[#allocation49_spill] sm:$0xff] }
 0x3e0   : > { %v3309_v58 = vadd.f32 1.0, %v5210_v3  ;;  %v7186_v3 = vld [vmem:[#allocation52_spill] sm:$0xff] }
 0x3e1   : > { %5211 = vrcp.f32 %v3318_v50  ;;  %v7193_v50 = vld [vmem:[#allocation59_spill] sm:$0xff] }
 0x3e2   : > { %5213 = vrcp.f32 %v3309_v58  ;;  %v7196_v58 = vld [vmem:[#allocation62_spill] sm:$0xff] }
 0x3eb   : > { %v5212_v27 = vpop.eup %5211 }
 0x3ec   : > { %v5214_v28 = vpop.eup %5213  ;;  %v3331_v30 = vmul.f32 %v5212_v27, %v6327_v43  ;;  %v7166_v43 = vld [vmem:[#allocation31_spill] sm:$0xff]  ;;  %v7202_v27 = vld [vmem:[#allocation68_spill] sm:$0xff] }
 0x406   : > { %v3212_v36 = vpop.f32.mrb[20].mxu0  ;;  %v3253_v6 = vpop.f32.mrb[20].mxu1 }
 0x407   : > { %v3214_v2 = vpop.f32.mrb[21].mxu0  ;;  %v3255_v39 = vpop.f32.mrb[21].mxu1 }
 0x408   : > { %v3285_v62 = vcombine.low %v3212_v36, %v3214_v2  ;;  %v3286_v31 = vcombine.low %v3253_v6, %v3255_v39  ;;  %v3216_v24 = vpop.f32.mrb[22].mxu0  ;;  %v3257_v13 = vpop.f32.mrb[22].mxu1  ;;  %v7181_v36 = vld [vmem:[#allocation47_spill] sm:$0xff]  ;;  %v7182_v6 = vld [vmem:[#allocation48_spill] sm:$0xff]  ;;  %v7184_v2 = vld [vmem:[#allocation50_spill] sm:$0xff] }
 0x409   : > { %v3217_v33 = vpop.f32.mrb[23].mxu0  ;;  %v3258_v49 = vpop.f32.mrb[23].mxu1  ;;  %v7185_v39 = vld [vmem:[#allocation51_spill] sm:$0xff]  ;;  %v7190_v13 = vld [vmem:[#allocation56_spill] sm:$0xff] }
 0x40a   : > { %v3293_v55 = vrot.slane %v3285_v62, %v5949_v9  ;;  %v3300_v1 = vrot.slane %v3286_v31, %v5949_v9  ;;  %v7187_v62 = vld [vmem:[#allocation53_spill] sm:$0xff]  ;;  %v7188_v31 = vld [vmem:[#allocation54_spill] sm:$0xff]  ;;  %v7189_v24 = vld [vmem:[#allocation55_spill] sm:$0xff] }
 0x40b   : > { %v7191_v33 = vld [vmem:[#allocation57_spill] sm:$0xff]  ;;  %v7192_v49 = vld [vmem:[#allocation58_spill] sm:$0xff] }
 0x40c   : > { %v3301_v4 = vcombine.low %v3293_v55, %v3300_v1  ;;  %v7194_v55 = vld [vmem:[#allocation60_spill] sm:$0xff]  ;;  %v7195_v1 = vld [vmem:[#allocation61_spill] sm:$0xff] }
 0x40e   : > { %v3305_v47 = vadd.f32 %v3301_v4, %v2314_v15  ;;  %v7197_v15 = vld [vmem:[#allocation63_spill] sm:$0xff]  ;;  %v7198_v4 = vld [vmem:[#allocation64_spill] sm:$0xff] }
 0x410   : > { %5215 = vtanh.f32 %v3305_v47  ;;  %v3323_v19 = vrot.slane %v3305_v47, 4  ;;  %v7199_v47 = vld [vmem:[#allocation65_spill] sm:$0xff] }
 0x412   : > { %v4978_v23 = vmul.f32 -1.442695, %v3323_v19  ;;  %v7200_v19 = vld [vmem:[#allocation66_spill] sm:$0xff] }
 0x414   : > { %5217 = vpow2.f32 %v4978_v23  ;;  %v7201_v23 = vld [vmem:[#allocation67_spill] sm:$0xff] }
 0x41a   : > { %v5216_v29 = vpop.eup %5215 }
 0x41b   : > { %v3332_v38 = vmul.f32 %v5216_v29, %v5214_v28  ;;  %v7203_v28 = vld [vmem:[#allocation69_spill] sm:$0xff]  ;;  %v7204_v29 = vld [vmem:[#allocation70_spill] sm:$0xff] }
 0x41d   : > { %v6658_v44 = vadd.f32 %v3332_v38, %v3331_v30  ;;  %v7205_v30 = vld [vmem:[#allocation71_spill] sm:$0xff]  ;;  %v7206_v38 = vld [vmem:[#allocation72_spill] sm:$0xff] }
 0x41e   : > { %v5218_v45 = vpop.eup %5217 }
 0x41f   : > { %v3328_v46 = vadd.f32 1.0, %v5218_v45  ;;  %5219 = vtanh.f32 %v6658_v44  ;;  %v7207_v45 = vld [vmem:[#allocation73_spill] sm:$0xff] }
 0x421   : > { %5221 = vrcp.f32 %v3328_v46  ;;  %v7208_v46 = vld [vmem:[#allocation74_spill] sm:$0xff] }
 0x429   : > { %v5220_v54 = vpop.eup %5219 }
 0x42b   : > { %v5222_v61 = vpop.eup %5221 }
 0x42c   : > { %v3335_v63 = vmul.f32 %v5222_v61, %v5220_v54  ;;  %v7209_v54 = vld [vmem:[#allocation75_spill] sm:$0xff]  ;;  %v7210_v61 = vld [vmem:[#allocation76_spill] sm:$0xff] }
 0x42e   : > { %3339 = vst [vmem:[%s3338_s5] sm:$0xf] %v3335_v63  ;;  %v3354_v5 = vrot.slane %v3335_v63, %v5949_v9  ;;  %v7211_v63 = vld [vmem:[#allocation77_spill] sm:$0xff] }
 0x430   : > { %v3355_v20 = vcombine.high %v3354_v5, %v3354_v5  ;;  %v6664_v11 = vpack.c.bf16 %v3354_v5, %v3354_v5  ;;  %v7212_v5 = vld [vmem:[#allocation78_spill] sm:$0xff] }
 0x432   : > { %v3359_v32 = vpack.c.bf16 %v3355_v20, %v3355_v20  ;;  %v7213_v20 = vld [vmem:[#allocation79_spill] sm:$0xff] }
 0x434   : > { %4160 = vmatprep.mubr.bf16.mxu0 %v3359_v32  ;;  %4201 = vmatprep.mubr.bf16.mxu1 %v3359_v32 }
 0x435   : > { %4161 = vmatmul.mubr.bf16.vlgmr.msra.gmra.mrb[24].mxu0 %v6664_v11  ;;  %4202 = vmatmul.mubr.bf16.vlgmr.msra.gmra.mrb[24].mxu1 %v6664_v11 }
 0x436   : > { %4211 = vmatpush1.bf16.msra.mxu0 %v6302_v51  ;;  %4252 = vmatpush1.bf16.msra.mxu1 %v7166_v43  ;;  %v7175_v51 = vld [vmem:[#allocation41_spill] sm:$0xff] }
 0x437   : > { %4242 = vmatprep.mubr.bf16.mxu0 %v3359_v32  ;;  %4283 = vmatprep.mubr.bf16.mxu1 %v3359_v32  ;;  %v7214_v32 = vld [vmem:[#allocation80_spill] sm:$0xff] }
 0x438   : > { %4212 = vmatprep.subr.bf16.mxu0 %v7167_v56  ;;  %4253 = vmatprep.subr.bf16.mxu1 %v7168_v10 }
 0x43a   : > { %4213 = vmatpush1.bf16.msra.mxu0 %v7169_v42  ;;  %4254 = vmatpush1.bf16.msra.mxu1 %v7170_v22 }
 0x43b   : > { %4214 = vmatprep.subr.bf16.mxu0 %v7171_v34  ;;  %4255 = vmatprep.subr.bf16.mxu1 %v7172_v26 }
 0x43e   : > { %4215 = vmatpush1.bf16.msra.mxu0 %v7173_v41  ;;  %4256 = vmatpush1.bf16.msra.mxu1 %v7174_v12 }
 0x43f   : > { %4216 = vmatprep.subr.bf16.mxu0 %v7175_v51  ;;  %4257 = vmatprep.subr.bf16.mxu1 %v7176_v14 }
 0x442   : > { %4217 = vmatpush1.bf16.msra.mxu0 %v7177_v8  ;;  %4258 = vmatpush1.bf16.msra.mxu1 %v7178_v16 }
 0x443   : > { %4218 = vmatprep.subr.bf16.mxu0 %v7179_v59  ;;  %4259 = vmatprep.subr.bf16.mxu1 %v7180_v37 }
 0x446   : > { %4219 = vmatpush1.bf16.msra.mxu0 %v7181_v36  ;;  %4260 = vmatpush1.bf16.msra.mxu1 %v7182_v6 }
 0x447   : > { %4220 = vmatprep.subr.bf16.mxu0 %v7183_v25  ;;  %4261 = vmatprep.subr.bf16.mxu1 %v7184_v2 }
 0x44a   : > { %4221 = vmatpush1.bf16.msra.mxu0 %v7185_v39  ;;  %4262 = vmatpush1.bf16.msra.mxu1 %v7186_v3 }
 0x44b   : > { %4222 = vmatprep.subr.bf16.mxu0 %v7187_v62  ;;  %4263 = vmatprep.subr.bf16.mxu1 %v7188_v31  ;;  %v3346_v62 = vld [vmem:[%s3344_s16 + $0x8] sm:$0xff] }
 0x44e   : > { %4223 = vmatpush1.bf16.msra.mxu0 %v7189_v24  ;;  %4264 = vmatpush1.bf16.msra.mxu1 %v7190_v13 }
 0x44f   : > { %4224 = vmatprep.subr.bf16.mxu0 %v7191_v33  ;;  %4265 = vmatprep.subr.bf16.mxu1 %v7192_v49 }
 0x452   : > { %4225 = vmatpush1.bf16.msra.mxu0 %v7193_v50  ;;  %4266 = vmatpush1.bf16.msra.mxu1 %v7194_v55 }
 0x453   : > { %4226 = vmatprep.subr.bf16.mxu0 %v7195_v1  ;;  %4267 = vmatprep.subr.bf16.mxu1 %v7196_v58 }
 0x456   : > { %4227 = vmatpush1.bf16.msra.mxu0 %v7197_v15  ;;  %4268 = vmatpush1.bf16.msra.mxu1 %v7198_v4 }
 0x457   : > { %4228 = vmatprep.subr.bf16.mxu0 %v7199_v47  ;;  %4269 = vmatprep.subr.bf16.mxu1 %v7200_v19 }
 0x45a   : > { %4229 = vmatpush1.bf16.msra.mxu0 %v7201_v23  ;;  %4270 = vmatpush1.bf16.msra.mxu1 %v7202_v27 }
 0x45b   : > { %4230 = vmatprep.subr.bf16.mxu0 %v7203_v28  ;;  %4271 = vmatprep.subr.bf16.mxu1 %v7204_v29 }
 0x45e   : > { %4231 = vmatpush1.bf16.msra.mxu0 %v7205_v30  ;;  %4272 = vmatpush1.bf16.msra.mxu1 %v7206_v38 }
 0x45f   : > { %4232 = vmatprep.subr.bf16.mxu0 %v7207_v45  ;;  %4273 = vmatprep.subr.bf16.mxu1 %v7208_v46 }
 0x462   : > { %4233 = vmatpush1.bf16.msra.mxu0 %v7209_v54  ;;  %4274 = vmatpush1.bf16.msra.mxu1 %v7210_v61 }
 0x463   : > { %4234 = vmatprep.subr.bf16.mxu0 %v7211_v63  ;;  %4275 = vmatprep.subr.bf16.mxu1 %v7212_v5 }
 0x466   : > { %4235 = vmatpush1.bf16.msra.mxu0 %v6527_v7  ;;  %4276 = vmatpush1.bf16.msra.mxu1 %v6529_v35 }
 0x467   : > { %4236 = vmatprep.subr.bf16.mxu0 %v6533_v48  ;;  %4277 = vmatprep.subr.bf16.mxu1 %v7213_v20 }
 0x46a   : > { %4237 = vmatpush1.bf16.msra.mxu0 %v7214_v32  ;;  %4278 = vmatpush1.bf16.msra.mxu1 %v6545_v0 }
 0x46b   : > { %4238 = vmatprep.subr.bf16.mxu0 %v6549_v60  ;;  %4279 = vmatprep.subr.bf16.mxu1 %v6551_v17 }
 0x46e   : > { %4239 = vmatpush1.bf16.msra.mxu0 %v6559_v18  ;;  %4280 = vmatpush1.bf16.msra.mxu1 %v6561_v57 }
 0x46f   : > { %4240 = vmatprep.subr.bf16.mxu0 %v6565_v52  ;;  %4281 = vmatprep.subr.bf16.mxu1 %v6567_v40 }
 0x472   : > { %4241 = vmatpush1.bf16.msra.mxu0 %v6571_v53  ;;  %4282 = vmatpush1.bf16.msra.mxu1 %v6573_v21 }
 0x475   : > { %4243 = vmatmul.mubr.bf16.vlgmr.msra.gmra.mrb[28].mxu0 %v6664_v11  ;;  %4284 = vmatmul.mubr.bf16.vlgmr.msra.gmra.mrb[28].mxu1 %v6664_v11  ;;  %v3345_v11 = vld [vmem:[%s3344_s16] sm:$0xff] }
 0x508   : > { %v4162_v7 = vpop.f32.mrb[24].mxu0  ;;  %v4203_v35 = vpop.f32.mrb[24].mxu1 }
 0x509   : > { %v4164_v48 = vpop.f32.mrb[25].mxu0  ;;  %v4205_v0 = vpop.f32.mrb[25].mxu1 }
 0x50a   : > { %v4300_v60 = vcombine.low %v4162_v7, %v4164_v48  ;;  %v4301_v17 = vcombine.low %v4203_v35, %v4205_v0  ;;  %v4166_v18 = vpop.f32.mrb[26].mxu0  ;;  %v4207_v57 = vpop.f32.mrb[26].mxu1 }
 0x50b   : > { %v4167_v52 = vpop.f32.mrb[27].mxu0  ;;  %v4208_v40 = vpop.f32.mrb[27].mxu1 }
 0x50c   : > { %v4308_v53 = vrot.slane %v4300_v60, %v5949_v9  ;;  %v4315_v21 = vrot.slane %v4301_v17, %v5949_v9 }
 0x50e   : > { %v4316_v43 = vcombine.low %v4308_v53, %v4315_v21 }
 0x510   : > { %v4336_v56 = vadd.f32 %v4316_v43, %v3345_v11 }
 0x512   : > { %v4345_v10 = vrot.slane %v4336_v56, 4  ;;  %v5111_v22 = vmul.f32 -1.442695, %v4336_v56 }
 0x514   : > { %v5112_v42 = vmul.f32 -1.442695, %v4345_v10 }
 0x516   : > { %5223 = vpow2.f32 %v5112_v42 }
 0x517   : > { %5225 = vpow2.f32 %v5111_v22 }
 0x520   : > { %v5224_v41 = vpop.eup %5223 }
 0x521   : > { %v5226_v14 = vpop.eup %5225  ;;  %v4350_v25 = vadd.f32 1.0, %v5224_v41 }
 0x522   : > { %v4341_v3 = vadd.f32 1.0, %v5226_v14 }
 0x523   : > { %5227 = vrcp.f32 %v4350_v25 }
 0x524   : > { %5229 = vrcp.f32 %v4341_v3 }
 0x52d   : > { %v5228_v49 = vpop.eup %5227 }
 0x52e   : > { %v5230_v50 = vpop.eup %5229  ;;  %v4363_v1 = vmul.f32 %v5228_v49, %v6658_v44 }
 0x548   : > { %v4244_v34 = vpop.f32.mrb[28].mxu0  ;;  %v4285_v26 = vpop.f32.mrb[28].mxu1 }
 0x549   : > { %v4246_v12 = vpop.f32.mrb[29].mxu0  ;;  %v4287_v51 = vpop.f32.mrb[29].mxu1 }
 0x54a   : > { %v4317_v8 = vcombine.low %v4244_v34, %v4246_v12  ;;  %v4318_v16 = vcombine.low %v4285_v26, %v4287_v51  ;;  %v4248_v59 = vpop.f32.mrb[30].mxu0  ;;  %v4289_v37 = vpop.f32.mrb[30].mxu1 }
 0x54b   : > { %v4249_v36 = vpop.f32.mrb[31].mxu0  ;;  %v4290_v6 = vpop.f32.mrb[31].mxu1 }
 0x54c   : > { %v4325_v2 = vrot.slane %v4317_v8, %v5949_v9  ;;  %v4332_v39 = vrot.slane %v4318_v16, %v5949_v9 }
 0x54e   : > { %v4333_v31 = vcombine.low %v4325_v2, %v4332_v39 }
 0x550   : > { %v4337_v24 = vadd.f32 %v4333_v31, %v3346_v62 }
 0x552   : > { %5231 = vtanh.f32 %v4337_v24  ;;  %v4355_v13 = vrot.slane %v4337_v24, 4 }
 0x554   : > { %v5113_v33 = vmul.f32 -1.442695, %v4355_v13 }
 0x556   : > { %5233 = vpow2.f32 %v5113_v33 }
 0x55c   : > { %v5232_v55 = vpop.eup %5231 }
 0x55d   : > { %v4364_v58 = vmul.f32 %v5232_v55, %v5230_v50 }
 0x55f   : > { %v4365_v15 = vadd.f32 %v4364_v58, %v4363_v1 }
 0x560   : > { %v5234_v9 = vpop.eup %5233 }
 0x561   : > { %v4360_v4 = vadd.f32 1.0, %v5234_v9  ;;  %4373 = vst [vmem:[#allocation3] sm:$0xf] %v4365_v15  ;;  %5235 = vtanh.f32 %v4365_v15 }
 0x563   : > { %5237 = vrcp.f32 %v4360_v4 }
 0x56a   : > { %4380 = sbr.rel (!%p5331_p6) target bundleno = 1402 (0x57a), region = 59 }
 0x56b   : > { %v5236_v47 = vpop.eup %5235 }
 0x56d   : > { %v5238_v19 = vpop.eup %5237 }
 0x56e   : > { %v4367_v23 = vmul.f32 %v5238_v19, %v5236_v47 }
 0x570   : > { %4371 = vst [vmem:[%s4370_s20] sm:$0xf] %v4367_v23  ;;  %4372 = vst [vmem:[#allocation2] sm:$0xf] %v4367_v23 }
 0x577   : > { %v4405_v44 = vld [vmem:[%s5968_s17] sm:$0xf]  ;;  %v4407_v27 = vld [vmem:[%s5968_s17 + $0x4] sm:$0xf]  ;;  %v4409_v28 = vld [vmem:[%s5968_s17 + $0x8] sm:$0xf] }
 0x578   : > { %v4411_v29 = vld [vmem:[%s5968_s17 + $0xc] sm:$0xf]  ;;  %4406 = vst [vmem:[%s4389_s23] sm:$0xf] %v4405_v44  ;;  %4408 = vst [vmem:[%s4389_s23 + $0x8] sm:$0xf] %v4407_v27 }
 0x579   : > { %4410 = vst [vmem:[%s4389_s23 + $0x10] sm:$0xf] %v4409_v28  ;;  %4412 = vst [vmem:[%s4389_s23 + $0x18] sm:$0xf] %v4411_v29 }
 0x57a PF: > { %s12_s13 = sadd.s32 1, %s5277_s13   ;;  %s7215_s9 = smov %s5265_s10 }
 0x57b   : > { %p9_p12 = scmp.ge.s32.totalorder %s12_s13, 4   ;;  %s7216_s10 = smov %s5336_s19 }
 0x57c   : > { %s7217_s11 = smov %s5273_s12  ;;  %s7218_s12 = smov %s7220_s14 }
 0x57d   :  { %11 = sbr.rel (!%p9_p12) target bundleno = 3 (0x3), region = 142 }

</bundles_post_ra>
